<compile_context>
chip_gen: v6e
topology: v6e:2x2x1
jax: 0.10.0
libtpu: 0.0.40
codegen_flags: <defaults>
</compile_context>

<pallas_src>
import jax
import jax.numpy as jnp
from jax.experimental import pallas as pl
from jax.experimental.pallas import tpu as pltpu

# ---- module constants --------------------------------------------------------
USER_EMBEDDING_SIZE = 256
TSF_FUSION_SIZE = 256
CNN_HIDDEN = 128
NUM_CARS = 1                        # action_space.n - 1  (small synthetic choice)
NUM_COURIERS = 1
MAP_CHANNELS = 7 * NUM_CARS + NUM_COURIERS          # 8
NUM_USERS = 20                      # stand-in for len(USER_INDEX)
VOCAB = NUM_USERS + 1 + 5
N_FEAT = 29 + 7 + 1                                   # order | pred | entropy
ENC_IN = USER_EMBEDDING_SIZE + N_FEAT                 # 293 (torch.cat order)
FEAT_PAD = 128                                        # lane-padded feature block
MAP_H = 16
MAP_W = 16
S_POS = MAP_H * MAP_W
BN_EPS = 1e-5

assert MAP_W & (MAP_W - 1) == 0 and S_POS & (S_POS - 1) == 0
assert 9 * MAP_CHANNELS <= 128 and N_FEAT <= FEAT_PAD
_W_LOG2 = MAP_W.bit_length() - 1

# 3x3 tap offsets relative to the output position, (dy, dx) with ky=dy+1, kx=dx+1
TAPS = tuple((ky - 1, kx - 1) for ky in range(3) for kx in range(3))


# =============================================================================
# Fused forward kernel (one grid step == TB batch samples)
# =============================================================================
def fused_kernel(user_ref, feat_ref, col0_ref,
                 w1u_ref, w1f_ref, b1_ref, w2_ref, b2_ref, w3_ref, b3_ref,
                 qfw_ref, qfb_ref,
                 cw0_ref, cw1_ref, cw2_ref, cshift_ref, calpha_ref,
                 kvw_ref, kvb_ref, fw2_ref, fw3_ref,
                 out_ref):
    f32 = jnp.float32
    bf16 = jnp.bfloat16
    TB = user_ref.shape[0]
    M = TB * S_POS

    # ---------------- user-feature MLP encoder (M = TB) -----------------------
    xu = user_ref[...].reshape(TB, USER_EMBEDDING_SIZE)        # bf16
    xf = feat_ref[...].reshape(TB, FEAT_PAD)                   # bf16 (packed feats)
    h = (jnp.dot(xu, w1u_ref[...], preferred_element_type=f32)
         + jnp.dot(xf, w1f_ref[...], preferred_element_type=f32)
         + b1_ref[...])
    h = jnp.maximum(h, 0.0)
    h = jnp.maximum(jnp.dot(h.astype(bf16), w2_ref[...],
                            preferred_element_type=f32) + b2_ref[...], 0.0)
    mixed = jnp.maximum(jnp.dot(h.astype(bf16), w3_ref[...],
                                preferred_element_type=f32) + b3_ref[...], 0.0)
    repr_b = mixed.astype(bf16)                                # (TB, 256)

    # to_q and fusion-w1 share the LHS -> one (256,512) matmul
    qf = jnp.dot(repr_b, qfw_ref[...], preferred_element_type=f32) + qfb_ref[...]
    q_b = jnp.maximum(qf[:, :TSF_FUSION_SIZE], 0.0).astype(bf16)   # (TB, 256)
    fus1 = qf[:, TSF_FUSION_SIZE:]                                 # (TB, 256) f32

    # ---------------- conv layer 0: wrapper-side im2col -> one matmul ---------
    col = col0_ref[...].reshape(M, 128)                        # bf16, K padded 72->128
    y = jnp.dot(col, cw0_ref[...], preferred_element_type=f32) + cshift_ref[0:1, :]
    fm = jnp.where(y > 0, y, y * calpha_ref[0])                # (M, 128) f32

    # ---------------- conv layers 1/2: roll + mask + accumulate ---------------
    # destination-validity masks (zero padding + sample isolation inside tile)
    ridx = jax.lax.broadcasted_iota(jnp.int32, (M, 1), 0)
    jj = ridx & (MAP_W - 1)
    ii = (ridx & (S_POS - 1)) >> _W_LOG2
    row_ok = {-1: (ii >= 1), 0: None, 1: (ii <= MAP_H - 2)}
    col_ok = {-1: (jj >= 1), 0: None, 1: (jj <= MAP_W - 2)}
    masks = {}
    for dy, dx in TAPS:
        parts = [m for m in (row_ok[dy], col_ok[dx]) if m is not None]
        if not parts:
            masks[(dy, dx)] = None
        elif len(parts) == 1:
            masks[(dy, dx)] = parts[0].astype(f32)
        else:
            masks[(dy, dx)] = jnp.logical_and(parts[0], parts[1]).astype(f32)

    def conv_roll(src_f32, w_ref, layer):
        acc = jnp.zeros((M, CNN_HIDDEN), f32)
        for t, (dy, dx) in enumerate(TAPS):
            off = dy * MAP_W + dx
            tap = src_f32 if off == 0 else pltpu.roll(src_f32, (-off) % M, axis=0)
            msk = masks[(dy, dx)]
            if msk is not None:
                tap = tap * msk
            acc += jnp.dot(tap.astype(jnp.bfloat16), w_ref[t],
                           preferred_element_type=f32)
        ysh = acc + cshift_ref[layer:layer + 1, :]              # folded BN2d shift
        a = calpha_ref[layer]
        return jnp.where(ysh > 0, ysh, ysh * a)                 # PReLU (scalar alpha)

    fm = conv_roll(fm, cw1_ref, 1)
    fm = conv_roll(fm, cw2_ref, 2)                              # (M, 128) f32
    fm_b = fm.astype(bf16)

    # ---------------- to_k / to_v fused (M = TB*S) -----------------------------
    kv = jnp.maximum(jnp.dot(fm_b, kvw_ref[...], preferred_element_type=f32)
                     + kvb_ref[...], 0.0)                       # (M, 512)
    kv3 = kv.astype(bf16).reshape(TB, S_POS, 2 * TSF_FUSION_SIZE)
    k3 = kv3[:, :, :TSF_FUSION_SIZE]
    v3 = kv3[:, :, TSF_FUSION_SIZE:]

    # ---------------- attention over spatial positions -------------------------
    q3 = q_b.reshape(TB, 1, TSF_FUSION_SIZE)
    scores = jnp.einsum('bqd,bsd->bqs', q3, k3,
                        preferred_element_type=f32)             # (TB, 1, S)
    mmax = jnp.max(scores, axis=-1, keepdims=True)
    e = jnp.exp(scores - mmax)
    attn = e * pl.reciprocal(jnp.sum(e, axis=-1, keepdims=True), approx=True)
    attn_out = jnp.einsum('bqs,bsd->bqd', attn.astype(bf16), v3,
                          preferred_element_type=f32).reshape(TB, TSF_FUSION_SIZE)

    # ---------------- spatial mean pool ----------------------------------------
    pool = jnp.sum(fm.reshape(TB, S_POS, CNN_HIDDEN), axis=1) * (1.0 / S_POS)

    # ---------------- fusion Linear(640->256) + folded BN1d + ReLU -------------
    pre = (fus1
           + jnp.dot(attn_out.astype(bf16), fw2_ref[...], preferred_element_type=f32)
           + jnp.dot(pool.astype(bf16), fw3_ref[...], preferred_element_type=f32))
    out_ref[...] = jnp.maximum(pre, 0.0).reshape(TB, 1, TSF_FUSION_SIZE)


# =============================================================================
# Wrapper: single pallas_call, batch-tiled grid
# =============================================================================
def fused_forward_call(user_init, feat, col0, p):
    B = user_init.shape[0]

    # Batch tile: amortize per-step overhead, keep >=2 grid steps (v7x megacore),
    # cap at 8 samples/step to stay well inside VMEM on all generations.
    if B <= 2:
        TB = 1
    else:
        TB = int(min(8, -(-B // 2)))
    Bp = (-(-B // TB)) * TB
    if Bp != B:
        padn = Bp - B
        user_init = jnp.pad(user_init, ((0, padn), (0, 0)))
        feat = jnp.pad(feat, ((0, padn), (0, 0)))
        col0 = jnp.pad(col0, ((0, padn), (0, 0), (0, 0)))

    user3 = user_init.reshape(Bp, 1, USER_EMBEDDING_SIZE)
    feat3 = feat.reshape(Bp, 1, FEAT_PAD)

    def samp_spec(shape):                         # batch-tiled input
        nd = len(shape) - 1
        return pl.BlockSpec((TB,) + tuple(shape[1:]),
                            lambda b, _nd=nd: (b,) + (0,) * _nd)

    def rep_spec(x):                              # weight resident across steps
        nd = x.ndim
        return pl.BlockSpec(x.shape, lambda b, _nd=nd: (0,) * _nd)

    smem_spec = pl.BlockSpec(memory_space=pltpu.MemorySpace.SMEM)

    operands = [
        (user3, 'samp'), (feat3, 'samp'), (col0, 'samp'),
        (p['w1_user'], 'rep'), (p['w1_feat'], 'rep'), (p['b1'], 'rep'),
        (p['w2'], 'rep'), (p['b2'], 'rep'), (p['w3'], 'rep'), (p['b3'], 'rep'),
        (p['qf_w'], 'rep'), (p['qf_b'], 'rep'),
        (p['conv0_w'], 'rep'), (p['conv1_w'], 'rep'), (p['conv2_w'], 'rep'),
        (p['conv_shift'], 'rep'), (p['conv_alpha'], 'smem'),
        (p['kv_w'], 'rep'), (p['kv_b'], 'rep'),
        (p['f_w2'], 'rep'), (p['f_w3'], 'rep'),
    ]
    args = [x for x, _ in operands]
    in_specs = [samp_spec(x.shape) if kind == 'samp'
                else (smem_spec if kind == 'smem' else rep_spec(x))
                for x, kind in operands]

    out = pl.pallas_call(
        fused_kernel,
        grid=(Bp // TB,),
        out_shape=jax.ShapeDtypeStruct((Bp, 1, TSF_FUSION_SIZE), jnp.float32),
        in_specs=in_specs,
        out_specs=pl.BlockSpec((TB, 1, TSF_FUSION_SIZE), lambda b: (b, 0, 0)),
        compiler_params=pltpu.CompilerParams(
            dimension_semantics=("parallel",)),
    )(*args)
    return out.reshape(Bp, TSF_FUSION_SIZE)[:B]


# =============================================================================
# Parameter initialization (deterministic, synthetic; BN folded; bf16 weights)
# =============================================================================
def init_params(key):
    keys = iter(jax.random.split(key, 64))
    bf = jnp.bfloat16

    def w(shape, scale=0.05, dtype=jnp.float32):
        return (jax.random.normal(next(keys), shape, jnp.float32) * scale).astype(dtype)

    p = {}
    emb = w((VOCAB, USER_EMBEDDING_SIZE))
    p['embedding'] = emb.at[0].set(0.0).astype(bf)         # padding_idx = 0

    # encoder layer-1 weight; rows ordered as torch.cat([user | order | pred | ent])
    w1 = w((ENC_IN, USER_EMBEDDING_SIZE))
    p['w1_user'] = w1[:USER_EMBEDDING_SIZE].astype(bf)                    # (256,256)
    w1_rest = w1[USER_EMBEDDING_SIZE:]                                    # (37,256)
    p['w1_feat'] = jnp.concatenate(
        [w1_rest, jnp.zeros((FEAT_PAD - N_FEAT, USER_EMBEDDING_SIZE), jnp.float32)],
        axis=0).astype(bf)                                                # (128,256)
    p['b1'] = w((1, USER_EMBEDDING_SIZE))
    p['w2'], p['b2'] = w((256, 256), dtype=bf), w((1, 256))
    p['w3'], p['b3'] = w((256, 256), dtype=bf), w((1, 256))

    # conv stack + folded BatchNorm2d (eval): w' = w*scale, epilogue = +shift, PReLU
    cins = [MAP_CHANNELS, CNN_HIDDEN, CNN_HIDDEN]
    conv_raw, scales, shifts = [], [], []
    for cin in cins:
        wt = w((CNN_HIDDEN, cin, 3, 3))                    # torch (Cout,Cin,kh,kw)
        gamma = 1.0 + w((CNN_HIDDEN,), 0.1)
        beta = w((CNN_HIDDEN,), 0.1)
        mean = w((CNN_HIDDEN,), 0.1)
        var = jnp.abs(w((CNN_HIDDEN,), 0.1)) + 1.0
        s = gamma / jnp.sqrt(var + BN_EPS)
        conv_raw.append(wt)
        scales.append(s)
        shifts.append(beta - mean * s)

    # layer 0: im2col weight (kh,kw,Cin,Cout) -> (72,128), K zero-padded to 128
    w0 = jnp.transpose(conv_raw[0], (2, 3, 1, 0)).reshape(9 * MAP_CHANNELS, CNN_HIDDEN)
    w0 = w0 * scales[0][None, :]
    p['conv0_w'] = jnp.concatenate(
        [w0, jnp.zeros((128 - 9 * MAP_CHANNELS, CNN_HIDDEN), jnp.float32)],
        axis=0).astype(bf)                                                # (128,128)

    # layers 1/2: per-tap weights (9, Cin, Cout), BN scale folded into Cout
    for i in (1, 2):
        w9 = jnp.transpose(conv_raw[i], (2, 3, 1, 0)).reshape(9, CNN_HIDDEN, CNN_HIDDEN)
        p[f'conv{i}_w'] = (w9 * scales[i][None, None, :]).astype(bf)

    p['conv_shift'] = jnp.stack(shifts)                    # (3,128) f32
    p['conv_alpha'] = jnp.full((3,), 0.25, jnp.float32)    # PReLU default (SMEM)

    # to_q / to_k / to_v
    q_w, q_b = w((USER_EMBEDDING_SIZE, TSF_FUSION_SIZE)), w((1, TSF_FUSION_SIZE))
    k_w, k_b = w((CNN_HIDDEN, TSF_FUSION_SIZE)), w((1, TSF_FUSION_SIZE))
    v_w, v_b = w((CNN_HIDDEN, TSF_FUSION_SIZE)), w((1, TSF_FUSION_SIZE))
    p['kv_w'] = jnp.concatenate([k_w, v_w], axis=1).astype(bf)            # (128,512)
    p['kv_b'] = jnp.concatenate([k_b, v_b], axis=1)                       # (1,512)

    # fusion Linear(640->256) + folded BatchNorm1d (eval)
    wf = w((USER_EMBEDDING_SIZE + TSF_FUSION_SIZE + CNN_HIDDEN, TSF_FUSION_SIZE))
    f_b = w((1, TSF_FUSION_SIZE))
    gamma = 1.0 + w((TSF_FUSION_SIZE,), 0.1)
    beta = w((TSF_FUSION_SIZE,), 0.1)
    mean = w((TSF_FUSION_SIZE,), 0.1)
    var = jnp.abs(w((TSF_FUSION_SIZE,), 0.1)) + 1.0
    sf = gamma / jnp.sqrt(var + BN_EPS)
    shift_f = beta - mean * sf
    f_w1 = wf[:USER_EMBEDDING_SIZE] * sf[None, :]
    p['f_w2'] = (wf[USER_EMBEDDING_SIZE:USER_EMBEDDING_SIZE + TSF_FUSION_SIZE]
                 * sf[None, :]).astype(bf)
    p['f_w3'] = (wf[USER_EMBEDDING_SIZE + TSF_FUSION_SIZE:] * sf[None, :]).astype(bf)
    fb_eff = f_b * sf[None, :] + shift_f[None, :]                          # (1,256)

    # fuse to_q with fusion-w1 (same LHS): (256,512) weight, (1,512) bias
    p['qf_w'] = jnp.concatenate([q_w, f_w1], axis=1).astype(bf)
    p['qf_b'] = jnp.concatenate([q_b, fb_eff], axis=1)
    return p


# =============================================================================
# Forward pass (gather / layout prep in plain JAX; all compute in one kernel)
# =============================================================================
@jax.jit
def forward(params, order, pred_time, entropy, dispatch_map_nchw):
    B = order.shape[0]
    # TODO(synk): nn.Embedding lookup (uid = entropy.long()) stays a plain-JAX
    # gather; data-dependent row gather has no clean single-kernel expression here.
    uid = entropy.astype(jnp.int32)
    user_init = jnp.take(params['embedding'], uid, axis=0)          # (B,256) bf16

    # pack [order | pred_time | entropy | 0-pad] into one lane-aligned (B,128) input
    feat = jnp.concatenate(
        [order, pred_time, entropy[:, None],
         jnp.zeros((B, FEAT_PAD - N_FEAT), order.dtype)], axis=-1).astype(jnp.bfloat16)

    # conv layer-0 im2col here (cheap XLA) -> one lane-dense K=128 matmul in-kernel
    x_nhwc = jnp.transpose(dispatch_map_nchw, (0, 2, 3, 1))
    xp = jnp.pad(x_nhwc, ((0, 0), (1, 1), (1, 1), (0, 0)))
    patches = [xp[:, dy:dy + MAP_H, dx:dx + MAP_W, :]
               for dy in range(3) for dx in range(3)]
    col0 = jnp.concatenate(patches, axis=-1).reshape(B, S_POS, 9 * MAP_CHANNELS)
    col0 = jnp.pad(col0, ((0, 0), (0, 0), (0, 128 - 9 * MAP_CHANNELS)))
    col0 = col0.astype(jnp.bfloat16)

    return fused_forward_call(user_init, feat, col0, params)


# =============================================================================
if __name__ == "__main__":
    key = jax.random.PRNGKey(0)
    kp, ko, kt, ke, km = jax.random.split(key, 5)

    B = 2
    params = init_params(kp)

    order = jax.random.normal(ko, (B, 29), jnp.float32)
    pred_time = jax.random.normal(kt, (B, 7), jnp.float32)
    # entropy doubles as uid (uid = entropy.long()) -> keep in valid index range
    entropy = jax.random.uniform(ke, (B,), jnp.float32, 1.0, float(VOCAB - 1))
    dispatch_map = jax.random.normal(km, (B, MAP_CHANNELS, MAP_H, MAP_W), jnp.float32)

    state = []  # RLlib state passthrough (unused)
    out = forward(params, order, pred_time, entropy, dispatch_map)
    out = jax.block_until_ready(out)
    assert out.shape == (B, TSF_FUSION_SIZE) and out.dtype == jnp.float32
    assert bool(jnp.all(jnp.isfinite(out)))
    print("KERNEL_OK")
</pallas_src>

<mosaic_0001>
module attributes {stable_mosaic.version = 11 : i64} {
  func.func @fused_kernel(%arg0: i32, %arg1: memref<1x1x256xbf16, #tpu.memory_space<vmem>>, %arg2: memref<1x1x128xbf16, #tpu.memory_space<vmem>>, %arg3: memref<1x256x128xbf16, #tpu.memory_space<vmem>>, %arg4: memref<256x256xbf16, #tpu.memory_space<vmem>>, %arg5: memref<128x256xbf16, #tpu.memory_space<vmem>>, %arg6: memref<1x256xf32, #tpu.memory_space<vmem>>, %arg7: memref<256x256xbf16, #tpu.memory_space<vmem>>, %arg8: memref<1x256xf32, #tpu.memory_space<vmem>>, %arg9: memref<256x256xbf16, #tpu.memory_space<vmem>>, %arg10: memref<1x256xf32, #tpu.memory_space<vmem>>, %arg11: memref<256x512xbf16, #tpu.memory_space<vmem>>, %arg12: memref<1x512xf32, #tpu.memory_space<vmem>>, %arg13: memref<128x128xbf16, #tpu.memory_space<vmem>>, %arg14: memref<9x128x128xbf16, #tpu.memory_space<vmem>>, %arg15: memref<9x128x128xbf16, #tpu.memory_space<vmem>>, %arg16: memref<3x128xf32, #tpu.memory_space<vmem>>, %arg17: memref<3xf32, #tpu.memory_space<smem>>, %arg18: memref<128x512xbf16, #tpu.memory_space<vmem>>, %arg19: memref<1x512xf32, #tpu.memory_space<vmem>>, %arg20: memref<256x256xbf16, #tpu.memory_space<vmem>>, %arg21: memref<128x256xbf16, #tpu.memory_space<vmem>>, %arg22: memref<1x1x256xf32, #tpu.memory_space<vmem>>) attributes {dimension_semantics = [#tpu.dimension_semantics<parallel>], iteration_bounds = array<i64: 2>, scalar_prefetch = 0 : i64, scratch_operands = 0 : i64, tpu.core_type = #tpu.core_type<tc>, window_params = [{transform_indices = @transform_0, window_bounds = array<i64: 1, 1, 256>}, {transform_indices = @transform_1, window_bounds = array<i64: 1, 1, 128>}, {transform_indices = @transform_2, window_bounds = array<i64: 1, 256, 128>}, {pipeline_mode = #tpu.pipeline_mode<synchronous>, transform_indices = @transform_3, window_bounds = array<i64: 256, 256>}, {pipeline_mode = #tpu.pipeline_mode<synchronous>, transform_indices = @transform_4, window_bounds = array<i64: 128, 256>}, {pipeline_mode = #tpu.pipeline_mode<synchronous>, transform_indices = @transform_5, window_bounds = array<i64: 1, 256>}, {pipeline_mode = #tpu.pipeline_mode<synchronous>, transform_indices = @transform_6, window_bounds = array<i64: 256, 256>}, {pipeline_mode = #tpu.pipeline_mode<synchronous>, transform_indices = @transform_7, window_bounds = array<i64: 1, 256>}, {pipeline_mode = #tpu.pipeline_mode<synchronous>, transform_indices = @transform_8, window_bounds = array<i64: 256, 256>}, {pipeline_mode = #tpu.pipeline_mode<synchronous>, transform_indices = @transform_9, window_bounds = array<i64: 1, 256>}, {pipeline_mode = #tpu.pipeline_mode<synchronous>, transform_indices = @transform_10, window_bounds = array<i64: 256, 512>}, {pipeline_mode = #tpu.pipeline_mode<synchronous>, transform_indices = @transform_11, window_bounds = array<i64: 1, 512>}, {pipeline_mode = #tpu.pipeline_mode<synchronous>, transform_indices = @transform_12, window_bounds = array<i64: 128, 128>}, {pipeline_mode = #tpu.pipeline_mode<synchronous>, transform_indices = @transform_13, window_bounds = array<i64: 9, 128, 128>}, {pipeline_mode = #tpu.pipeline_mode<synchronous>, transform_indices = @transform_14, window_bounds = array<i64: 9, 128, 128>}, {pipeline_mode = #tpu.pipeline_mode<synchronous>, transform_indices = @transform_15, window_bounds = array<i64: 3, 128>}, {transform_indices = @transform_16, window_bounds = array<i64: 3>}, {pipeline_mode = #tpu.pipeline_mode<synchronous>, transform_indices = @transform_17, window_bounds = array<i64: 128, 512>}, {pipeline_mode = #tpu.pipeline_mode<synchronous>, transform_indices = @transform_18, window_bounds = array<i64: 1, 512>}, {pipeline_mode = #tpu.pipeline_mode<synchronous>, transform_indices = @transform_19, window_bounds = array<i64: 256, 256>}, {pipeline_mode = #tpu.pipeline_mode<synchronous>, transform_indices = @transform_20, window_bounds = array<i64: 128, 256>}, {transform_indices = @transform_21, window_bounds = array<i64: 1, 1, 256>}]} {
    %c0 = arith.constant 0 : index
    %c0_0 = arith.constant 0 : index
    %c0_1 = arith.constant 0 : index
    %0 = vector.load %arg1[%c0, %c0_0, %c0_1] : memref<1x1x256xbf16, #tpu.memory_space<vmem>>, vector<1x1x256xbf16>
    %1 = vector.shape_cast %0 : vector<1x1x256xbf16> to vector<1x256xbf16>
    %c0_2 = arith.constant 0 : index
    %c0_3 = arith.constant 0 : index
    %c0_4 = arith.constant 0 : index
    %2 = vector.load %arg2[%c0_2, %c0_3, %c0_4] : memref<1x1x128xbf16, #tpu.memory_space<vmem>>, vector<1x1x128xbf16>
    %3 = vector.shape_cast %2 : vector<1x1x128xbf16> to vector<1x128xbf16>
    %c0_5 = arith.constant 0 : index
    %c0_6 = arith.constant 0 : index
    %4 = vector.load %arg4[%c0_5, %c0_6] : memref<256x256xbf16, #tpu.memory_space<vmem>>, vector<256x256xbf16>
    %cst = arith.constant dense<0.000000e+00> : vector<1x256xf32>
    %5 = tpu.matmul %1, %4, %cst {dimension_numbers = #tpu.dot_dimension_numbers<[1], [0], [0], [1], [0, 0, 1, 1], [], []>} : vector<1x256xbf16>, vector<256x256xbf16>, vector<1x256xf32> -> vector<1x256xf32>
    %c0_7 = arith.constant 0 : index
    %c0_8 = arith.constant 0 : index
    %6 = vector.load %arg5[%c0_7, %c0_8] : memref<128x256xbf16, #tpu.memory_space<vmem>>, vector<128x256xbf16>
    %cst_9 = arith.constant dense<0.000000e+00> : vector<1x256xf32>
    %7 = tpu.matmul %3, %6, %cst_9 {dimension_numbers = #tpu.dot_dimension_numbers<[1], [0], [0], [1], [0, 0, 1, 1], [], []>} : vector<1x128xbf16>, vector<128x256xbf16>, vector<1x256xf32> -> vector<1x256xf32>
    %8 = arith.addf %5, %7 : vector<1x256xf32>
    %c0_10 = arith.constant 0 : index
    %c0_11 = arith.constant 0 : index
    %9 = vector.load %arg6[%c0_10, %c0_11] : memref<1x256xf32, #tpu.memory_space<vmem>>, vector<1x256xf32>
    %10 = arith.addf %8, %9 : vector<1x256xf32>
    %cst_12 = arith.constant 0.000000e+00 : f32
    %11 = vector.broadcast %cst_12 : f32 to vector<1x256xf32>
    %12 = arith.maximumf %10, %11 : vector<1x256xf32>
    %13 = arith.truncf %12 : vector<1x256xf32> to vector<1x256xbf16>
    %c0_13 = arith.constant 0 : index
    %c0_14 = arith.constant 0 : index
    %14 = vector.load %arg7[%c0_13, %c0_14] : memref<256x256xbf16, #tpu.memory_space<vmem>>, vector<256x256xbf16>
    %cst_15 = arith.constant dense<0.000000e+00> : vector<1x256xf32>
    %15 = tpu.matmul %13, %14, %cst_15 {dimension_numbers = #tpu.dot_dimension_numbers<[1], [0], [0], [1], [0, 0, 1, 1], [], []>} : vector<1x256xbf16>, vector<256x256xbf16>, vector<1x256xf32> -> vector<1x256xf32>
    %c0_16 = arith.constant 0 : index
    %c0_17 = arith.constant 0 : index
    %16 = vector.load %arg8[%c0_16, %c0_17] : memref<1x256xf32, #tpu.memory_space<vmem>>, vector<1x256xf32>
    %17 = arith.addf %15, %16 : vector<1x256xf32>
    %cst_18 = arith.constant 0.000000e+00 : f32
    %18 = vector.broadcast %cst_18 : f32 to vector<1x256xf32>
    %19 = arith.maximumf %17, %18 : vector<1x256xf32>
    %20 = arith.truncf %19 : vector<1x256xf32> to vector<1x256xbf16>
    %c0_19 = arith.constant 0 : index
    %c0_20 = arith.constant 0 : index
    %21 = vector.load %arg9[%c0_19, %c0_20] : memref<256x256xbf16, #tpu.memory_space<vmem>>, vector<256x256xbf16>
    %cst_21 = arith.constant dense<0.000000e+00> : vector<1x256xf32>
    %22 = tpu.matmul %20, %21, %cst_21 {dimension_numbers = #tpu.dot_dimension_numbers<[1], [0], [0], [1], [0, 0, 1, 1], [], []>} : vector<1x256xbf16>, vector<256x256xbf16>, vector<1x256xf32> -> vector<1x256xf32>
    %c0_22 = arith.constant 0 : index
    %c0_23 = arith.constant 0 : index
    %23 = vector.load %arg10[%c0_22, %c0_23] : memref<1x256xf32, #tpu.memory_space<vmem>>, vector<1x256xf32>
    %24 = arith.addf %22, %23 : vector<1x256xf32>
    %cst_24 = arith.constant 0.000000e+00 : f32
    %25 = vector.broadcast %cst_24 : f32 to vector<1x256xf32>
    %26 = arith.maximumf %24, %25 : vector<1x256xf32>
    %27 = arith.truncf %26 : vector<1x256xf32> to vector<1x256xbf16>
    %c0_25 = arith.constant 0 : index
    %c0_26 = arith.constant 0 : index
    %28 = vector.load %arg11[%c0_25, %c0_26] : memref<256x512xbf16, #tpu.memory_space<vmem>>, vector<256x512xbf16>
    %cst_27 = arith.constant dense<0.000000e+00> : vector<1x512xf32>
    %29 = tpu.matmul %27, %28, %cst_27 {dimension_numbers = #tpu.dot_dimension_numbers<[1], [0], [0], [1], [0, 0, 1, 1], [], []>} : vector<1x256xbf16>, vector<256x512xbf16>, vector<1x512xf32> -> vector<1x512xf32>
    %c0_28 = arith.constant 0 : index
    %c0_29 = arith.constant 0 : index
    %30 = vector.load %arg12[%c0_28, %c0_29] : memref<1x512xf32, #tpu.memory_space<vmem>>, vector<1x512xf32>
    %31 = arith.addf %29, %30 : vector<1x512xf32>
    %32 = vector.extract_strided_slice %31 {offsets = [0, 0], sizes = [1, 256], strides = [1, 1]} : vector<1x512xf32> to vector<1x256xf32>
    %cst_30 = arith.constant 0.000000e+00 : f32
    %33 = vector.broadcast %cst_30 : f32 to vector<1x256xf32>
    %34 = arith.maximumf %32, %33 : vector<1x256xf32>
    %35 = arith.truncf %34 : vector<1x256xf32> to vector<1x256xbf16>
    %36 = vector.extract_strided_slice %31 {offsets = [0, 256], sizes = [1, 256], strides = [1, 1]} : vector<1x512xf32> to vector<1x256xf32>
    %c0_31 = arith.constant 0 : index
    %c0_32 = arith.constant 0 : index
    %c0_33 = arith.constant 0 : index
    %37 = vector.load %arg3[%c0_31, %c0_32, %c0_33] : memref<1x256x128xbf16, #tpu.memory_space<vmem>>, vector<1x256x128xbf16>
    %38 = vector.shape_cast %37 : vector<1x256x128xbf16> to vector<256x128xbf16>
    %c0_34 = arith.constant 0 : index
    %c0_35 = arith.constant 0 : index
    %39 = vector.load %arg13[%c0_34, %c0_35] : memref<128x128xbf16, #tpu.memory_space<vmem>>, vector<128x128xbf16>
    %cst_36 = arith.constant dense<0.000000e+00> : vector<256x128xf32>
    %40 = tpu.matmul %38, %39, %cst_36 {dimension_numbers = #tpu.dot_dimension_numbers<[1], [0], [0], [1], [0, 0, 1, 1], [], []>} : vector<256x128xbf16>, vector<128x128xbf16>, vector<256x128xf32> -> vector<256x128xf32>
    %c0_37 = arith.constant 0 : index
    %c0_38 = arith.constant 0 : index
    %41 = vector.load %arg16[%c0_37, %c0_38] : memref<3x128xf32, #tpu.memory_space<vmem>>, vector<1x128xf32>
    %42 = vector.broadcast %41 : vector<1x128xf32> to vector<256x128xf32>
    %43 = arith.addf %40, %42 : vector<256x128xf32>
    %cst_39 = arith.constant 0.000000e+00 : f32
    %44 = vector.broadcast %cst_39 : f32 to vector<256x128xf32>
    %45 = arith.cmpf ogt, %43, %44 : vector<256x128xf32>
    %c0_40 = arith.constant 0 : index
    %46 = memref.load %arg17[%c0_40] : memref<3xf32, #tpu.memory_space<smem>>
    %47 = vector.broadcast %46 : f32 to vector<256x128xf32>
    %48 = arith.mulf %43, %47 : vector<256x128xf32>
    %49 = arith.select %45, %43, %48 : vector<256x128xi1>, vector<256x128xf32>
    %50 = tpu.iota {dimensions = array<i32: 0>} : vector<256x1xi32>
    %c15_i32 = arith.constant 15 : i32
    %51 = vector.broadcast %c15_i32 : i32 to vector<256x1xi32>
    %52 = arith.andi %50, %51 : vector<256x1xi32>
    %c255_i32 = arith.constant 255 : i32
    %53 = vector.broadcast %c255_i32 : i32 to vector<256x1xi32>
    %54 = arith.andi %50, %53 : vector<256x1xi32>
    %c4_i32 = arith.constant 4 : i32
    %55 = vector.broadcast %c4_i32 : i32 to vector<256x1xi32>
    %56 = arith.shrsi %54, %55 : vector<256x1xi32>
    %c1_i32 = arith.constant 1 : i32
    %57 = vector.broadcast %c1_i32 : i32 to vector<256x1xi32>
    %58 = arith.cmpi sge, %56, %57 : vector<256x1xi32>
    %c14_i32 = arith.constant 14 : i32
    %59 = vector.broadcast %c14_i32 : i32 to vector<256x1xi32>
    %60 = arith.cmpi sle, %56, %59 : vector<256x1xi32>
    %c1_i32_41 = arith.constant 1 : i32
    %61 = vector.broadcast %c1_i32_41 : i32 to vector<256x1xi32>
    %62 = arith.cmpi sge, %52, %61 : vector<256x1xi32>
    %c14_i32_42 = arith.constant 14 : i32
    %63 = vector.broadcast %c14_i32_42 : i32 to vector<256x1xi32>
    %64 = arith.cmpi sle, %52, %63 : vector<256x1xi32>
    %65 = arith.andi %58, %62 : vector<256x1xi1>
    %66 = arith.extui %65 : vector<256x1xi1> to vector<256x1xi32>
    %67 = arith.sitofp %66 : vector<256x1xi32> to vector<256x1xf32>
    %68 = arith.extui %58 : vector<256x1xi1> to vector<256x1xi32>
    %69 = arith.sitofp %68 : vector<256x1xi32> to vector<256x1xf32>
    %70 = arith.andi %58, %64 : vector<256x1xi1>
    %71 = arith.extui %70 : vector<256x1xi1> to vector<256x1xi32>
    %72 = arith.sitofp %71 : vector<256x1xi32> to vector<256x1xf32>
    %73 = arith.extui %62 : vector<256x1xi1> to vector<256x1xi32>
    %74 = arith.sitofp %73 : vector<256x1xi32> to vector<256x1xf32>
    %75 = arith.extui %64 : vector<256x1xi1> to vector<256x1xi32>
    %76 = arith.sitofp %75 : vector<256x1xi32> to vector<256x1xf32>
    %77 = arith.andi %60, %62 : vector<256x1xi1>
    %78 = arith.extui %77 : vector<256x1xi1> to vector<256x1xi32>
    %79 = arith.sitofp %78 : vector<256x1xi32> to vector<256x1xf32>
    %80 = arith.extui %60 : vector<256x1xi1> to vector<256x1xi32>
    %81 = arith.sitofp %80 : vector<256x1xi32> to vector<256x1xf32>
    %82 = arith.andi %60, %64 : vector<256x1xi1>
    %83 = arith.extui %82 : vector<256x1xi1> to vector<256x1xi32>
    %84 = arith.sitofp %83 : vector<256x1xi32> to vector<256x1xf32>
    %cst_43 = arith.constant 0.000000e+00 : f32
    %85 = vector.broadcast %cst_43 : f32 to vector<256x128xf32>
    %c17_i32 = arith.constant 17 : i32
    %86 = tpu.dynamic_rotate %49 by %c17_i32 dim 0 : vector<256x128xf32>, i32 -> vector<256x128xf32>
    %87 = vector.broadcast %67 : vector<256x1xf32> to vector<256x128xf32>
    %88 = arith.mulf %86, %87 : vector<256x128xf32>
    %89 = arith.truncf %88 : vector<256x128xf32> to vector<256x128xbf16>
    %c0_44 = arith.constant 0 : index
    %c0_45 = arith.constant 0 : index
    %c0_46 = arith.constant 0 : index
    %90 = vector.load %arg14[%c0_44, %c0_45, %c0_46] : memref<9x128x128xbf16, #tpu.memory_space<vmem>>, vector<1x128x128xbf16>
    %91 = vector.shape_cast %90 : vector<1x128x128xbf16> to vector<128x128xbf16>
    %cst_47 = arith.constant dense<0.000000e+00> : vector<256x128xf32>
    %92 = tpu.matmul %89, %91, %cst_47 {dimension_numbers = #tpu.dot_dimension_numbers<[1], [0], [0], [1], [0, 0, 1, 1], [], []>} : vector<256x128xbf16>, vector<128x128xbf16>, vector<256x128xf32> -> vector<256x128xf32>
    %93 = arith.addf %85, %92 : vector<256x128xf32>
    %c16_i32 = arith.constant 16 : i32
    %94 = tpu.dynamic_rotate %49 by %c16_i32 dim 0 : vector<256x128xf32>, i32 -> vector<256x128xf32>
    %95 = vector.broadcast %69 : vector<256x1xf32> to vector<256x128xf32>
    %96 = arith.mulf %94, %95 : vector<256x128xf32>
    %97 = arith.truncf %96 : vector<256x128xf32> to vector<256x128xbf16>
    %c1 = arith.constant 1 : index
    %c0_48 = arith.constant 0 : index
    %c0_49 = arith.constant 0 : index
    %98 = vector.load %arg14[%c1, %c0_48, %c0_49] : memref<9x128x128xbf16, #tpu.memory_space<vmem>>, vector<1x128x128xbf16>
    %99 = vector.shape_cast %98 : vector<1x128x128xbf16> to vector<128x128xbf16>
    %cst_50 = arith.constant dense<0.000000e+00> : vector<256x128xf32>
    %100 = tpu.matmul %97, %99, %cst_50 {dimension_numbers = #tpu.dot_dimension_numbers<[1], [0], [0], [1], [0, 0, 1, 1], [], []>} : vector<256x128xbf16>, vector<128x128xbf16>, vector<256x128xf32> -> vector<256x128xf32>
    %101 = arith.addf %93, %100 : vector<256x128xf32>
    %c15_i32_51 = arith.constant 15 : i32
    %102 = tpu.dynamic_rotate %49 by %c15_i32_51 dim 0 : vector<256x128xf32>, i32 -> vector<256x128xf32>
    %103 = vector.broadcast %72 : vector<256x1xf32> to vector<256x128xf32>
    %104 = arith.mulf %102, %103 : vector<256x128xf32>
    %105 = arith.truncf %104 : vector<256x128xf32> to vector<256x128xbf16>
    %c2 = arith.constant 2 : index
    %c0_52 = arith.constant 0 : index
    %c0_53 = arith.constant 0 : index
    %106 = vector.load %arg14[%c2, %c0_52, %c0_53] : memref<9x128x128xbf16, #tpu.memory_space<vmem>>, vector<1x128x128xbf16>
    %107 = vector.shape_cast %106 : vector<1x128x128xbf16> to vector<128x128xbf16>
    %cst_54 = arith.constant dense<0.000000e+00> : vector<256x128xf32>
    %108 = tpu.matmul %105, %107, %cst_54 {dimension_numbers = #tpu.dot_dimension_numbers<[1], [0], [0], [1], [0, 0, 1, 1], [], []>} : vector<256x128xbf16>, vector<128x128xbf16>, vector<256x128xf32> -> vector<256x128xf32>
    %109 = arith.addf %101, %108 : vector<256x128xf32>
    %c1_i32_55 = arith.constant 1 : i32
    %110 = tpu.dynamic_rotate %49 by %c1_i32_55 dim 0 : vector<256x128xf32>, i32 -> vector<256x128xf32>
    %111 = vector.broadcast %74 : vector<256x1xf32> to vector<256x128xf32>
    %112 = arith.mulf %110, %111 : vector<256x128xf32>
    %113 = arith.truncf %112 : vector<256x128xf32> to vector<256x128xbf16>
    %c3 = arith.constant 3 : index
    %c0_56 = arith.constant 0 : index
    %c0_57 = arith.constant 0 : index
    %114 = vector.load %arg14[%c3, %c0_56, %c0_57] : memref<9x128x128xbf16, #tpu.memory_space<vmem>>, vector<1x128x128xbf16>
    %115 = vector.shape_cast %114 : vector<1x128x128xbf16> to vector<128x128xbf16>
    %cst_58 = arith.constant dense<0.000000e+00> : vector<256x128xf32>
    %116 = tpu.matmul %113, %115, %cst_58 {dimension_numbers = #tpu.dot_dimension_numbers<[1], [0], [0], [1], [0, 0, 1, 1], [], []>} : vector<256x128xbf16>, vector<128x128xbf16>, vector<256x128xf32> -> vector<256x128xf32>
    %117 = arith.addf %109, %116 : vector<256x128xf32>
    %118 = arith.truncf %49 : vector<256x128xf32> to vector<256x128xbf16>
    %c4 = arith.constant 4 : index
    %c0_59 = arith.constant 0 : index
    %c0_60 = arith.constant 0 : index
    %119 = vector.load %arg14[%c4, %c0_59, %c0_60] : memref<9x128x128xbf16, #tpu.memory_space<vmem>>, vector<1x128x128xbf16>
    %120 = vector.shape_cast %119 : vector<1x128x128xbf16> to vector<128x128xbf16>
    %cst_61 = arith.constant dense<0.000000e+00> : vector<256x128xf32>
    %121 = tpu.matmul %118, %120, %cst_61 {dimension_numbers = #tpu.dot_dimension_numbers<[1], [0], [0], [1], [0, 0, 1, 1], [], []>} : vector<256x128xbf16>, vector<128x128xbf16>, vector<256x128xf32> -> vector<256x128xf32>
    %122 = arith.addf %117, %121 : vector<256x128xf32>
    %c255_i32_62 = arith.constant 255 : i32
    %123 = tpu.dynamic_rotate %49 by %c255_i32_62 dim 0 : vector<256x128xf32>, i32 -> vector<256x128xf32>
    %124 = vector.broadcast %76 : vector<256x1xf32> to vector<256x128xf32>
    %125 = arith.mulf %123, %124 : vector<256x128xf32>
    %126 = arith.truncf %125 : vector<256x128xf32> to vector<256x128xbf16>
    %c5 = arith.constant 5 : index
    %c0_63 = arith.constant 0 : index
    %c0_64 = arith.constant 0 : index
    %127 = vector.load %arg14[%c5, %c0_63, %c0_64] : memref<9x128x128xbf16, #tpu.memory_space<vmem>>, vector<1x128x128xbf16>
    %128 = vector.shape_cast %127 : vector<1x128x128xbf16> to vector<128x128xbf16>
    %cst_65 = arith.constant dense<0.000000e+00> : vector<256x128xf32>
    %129 = tpu.matmul %126, %128, %cst_65 {dimension_numbers = #tpu.dot_dimension_numbers<[1], [0], [0], [1], [0, 0, 1, 1], [], []>} : vector<256x128xbf16>, vector<128x128xbf16>, vector<256x128xf32> -> vector<256x128xf32>
    %130 = arith.addf %122, %129 : vector<256x128xf32>
    %c241_i32 = arith.constant 241 : i32
    %131 = tpu.dynamic_rotate %49 by %c241_i32 dim 0 : vector<256x128xf32>, i32 -> vector<256x128xf32>
    %132 = vector.broadcast %79 : vector<256x1xf32> to vector<256x128xf32>
    %133 = arith.mulf %131, %132 : vector<256x128xf32>
    %134 = arith.truncf %133 : vector<256x128xf32> to vector<256x128xbf16>
    %c6 = arith.constant 6 : index
    %c0_66 = arith.constant 0 : index
    %c0_67 = arith.constant 0 : index
    %135 = vector.load %arg14[%c6, %c0_66, %c0_67] : memref<9x128x128xbf16, #tpu.memory_space<vmem>>, vector<1x128x128xbf16>
    %136 = vector.shape_cast %135 : vector<1x128x128xbf16> to vector<128x128xbf16>
    %cst_68 = arith.constant dense<0.000000e+00> : vector<256x128xf32>
    %137 = tpu.matmul %134, %136, %cst_68 {dimension_numbers = #tpu.dot_dimension_numbers<[1], [0], [0], [1], [0, 0, 1, 1], [], []>} : vector<256x128xbf16>, vector<128x128xbf16>, vector<256x128xf32> -> vector<256x128xf32>
    %138 = arith.addf %130, %137 : vector<256x128xf32>
    %c240_i32 = arith.constant 240 : i32
    %139 = tpu.dynamic_rotate %49 by %c240_i32 dim 0 : vector<256x128xf32>, i32 -> vector<256x128xf32>
    %140 = vector.broadcast %81 : vector<256x1xf32> to vector<256x128xf32>
    %141 = arith.mulf %139, %140 : vector<256x128xf32>
    %142 = arith.truncf %141 : vector<256x128xf32> to vector<256x128xbf16>
    %c7 = arith.constant 7 : index
    %c0_69 = arith.constant 0 : index
    %c0_70 = arith.constant 0 : index
    %143 = vector.load %arg14[%c7, %c0_69, %c0_70] : memref<9x128x128xbf16, #tpu.memory_space<vmem>>, vector<1x128x128xbf16>
    %144 = vector.shape_cast %143 : vector<1x128x128xbf16> to vector<128x128xbf16>
    %cst_71 = arith.constant dense<0.000000e+00> : vector<256x128xf32>
    %145 = tpu.matmul %142, %144, %cst_71 {dimension_numbers = #tpu.dot_dimension_numbers<[1], [0], [0], [1], [0, 0, 1, 1], [], []>} : vector<256x128xbf16>, vector<128x128xbf16>, vector<256x128xf32> -> vector<256x128xf32>
    %146 = arith.addf %138, %145 : vector<256x128xf32>
    %c239_i32 = arith.constant 239 : i32
    %147 = tpu.dynamic_rotate %49 by %c239_i32 dim 0 : vector<256x128xf32>, i32 -> vector<256x128xf32>
    %148 = vector.broadcast %84 : vector<256x1xf32> to vector<256x128xf32>
    %149 = arith.mulf %147, %148 : vector<256x128xf32>
    %150 = arith.truncf %149 : vector<256x128xf32> to vector<256x128xbf16>
    %c8 = arith.constant 8 : index
    %c0_72 = arith.constant 0 : index
    %c0_73 = arith.constant 0 : index
    %151 = vector.load %arg14[%c8, %c0_72, %c0_73] : memref<9x128x128xbf16, #tpu.memory_space<vmem>>, vector<1x128x128xbf16>
    %152 = vector.shape_cast %151 : vector<1x128x128xbf16> to vector<128x128xbf16>
    %cst_74 = arith.constant dense<0.000000e+00> : vector<256x128xf32>
    %153 = tpu.matmul %150, %152, %cst_74 {dimension_numbers = #tpu.dot_dimension_numbers<[1], [0], [0], [1], [0, 0, 1, 1], [], []>} : vector<256x128xbf16>, vector<128x128xbf16>, vector<256x128xf32> -> vector<256x128xf32>
    %154 = arith.addf %146, %153 : vector<256x128xf32>
    %c1_75 = arith.constant 1 : index
    %c0_76 = arith.constant 0 : index
    %155 = vector.load %arg16[%c1_75, %c0_76] : memref<3x128xf32, #tpu.memory_space<vmem>>, vector<1x128xf32>
    %156 = vector.broadcast %155 : vector<1x128xf32> to vector<256x128xf32>
    %157 = arith.addf %154, %156 : vector<256x128xf32>
    %c1_77 = arith.constant 1 : index
    %158 = memref.load %arg17[%c1_77] : memref<3xf32, #tpu.memory_space<smem>>
    %cst_78 = arith.constant 0.000000e+00 : f32
    %159 = vector.broadcast %cst_78 : f32 to vector<256x128xf32>
    %160 = arith.cmpf ogt, %157, %159 : vector<256x128xf32>
    %161 = vector.broadcast %158 : f32 to vector<256x128xf32>
    %162 = arith.mulf %157, %161 : vector<256x128xf32>
    %163 = arith.select %160, %157, %162 : vector<256x128xi1>, vector<256x128xf32>
    %cst_79 = arith.constant 0.000000e+00 : f32
    %164 = vector.broadcast %cst_79 : f32 to vector<256x128xf32>
    %c17_i32_80 = arith.constant 17 : i32
    %165 = tpu.dynamic_rotate %163 by %c17_i32_80 dim 0 : vector<256x128xf32>, i32 -> vector<256x128xf32>
    %166 = vector.broadcast %67 : vector<256x1xf32> to vector<256x128xf32>
    %167 = arith.mulf %165, %166 : vector<256x128xf32>
    %168 = arith.truncf %167 : vector<256x128xf32> to vector<256x128xbf16>
    %c0_81 = arith.constant 0 : index
    %c0_82 = arith.constant 0 : index
    %c0_83 = arith.constant 0 : index
    %169 = vector.load %arg15[%c0_81, %c0_82, %c0_83] : memref<9x128x128xbf16, #tpu.memory_space<vmem>>, vector<1x128x128xbf16>
    %170 = vector.shape_cast %169 : vector<1x128x128xbf16> to vector<128x128xbf16>
    %cst_84 = arith.constant dense<0.000000e+00> : vector<256x128xf32>
    %171 = tpu.matmul %168, %170, %cst_84 {dimension_numbers = #tpu.dot_dimension_numbers<[1], [0], [0], [1], [0, 0, 1, 1], [], []>} : vector<256x128xbf16>, vector<128x128xbf16>, vector<256x128xf32> -> vector<256x128xf32>
    %172 = arith.addf %164, %171 : vector<256x128xf32>
    %c16_i32_85 = arith.constant 16 : i32
    %173 = tpu.dynamic_rotate %163 by %c16_i32_85 dim 0 : vector<256x128xf32>, i32 -> vector<256x128xf32>
    %174 = vector.broadcast %69 : vector<256x1xf32> to vector<256x128xf32>
    %175 = arith.mulf %173, %174 : vector<256x128xf32>
    %176 = arith.truncf %175 : vector<256x128xf32> to vector<256x128xbf16>
    %c1_86 = arith.constant 1 : index
    %c0_87 = arith.constant 0 : index
    %c0_88 = arith.constant 0 : index
    %177 = vector.load %arg15[%c1_86, %c0_87, %c0_88] : memref<9x128x128xbf16, #tpu.memory_space<vmem>>, vector<1x128x128xbf16>
    %178 = vector.shape_cast %177 : vector<1x128x128xbf16> to vector<128x128xbf16>
    %cst_89 = arith.constant dense<0.000000e+00> : vector<256x128xf32>
    %179 = tpu.matmul %176, %178, %cst_89 {dimension_numbers = #tpu.dot_dimension_numbers<[1], [0], [0], [1], [0, 0, 1, 1], [], []>} : vector<256x128xbf16>, vector<128x128xbf16>, vector<256x128xf32> -> vector<256x128xf32>
    %180 = arith.addf %172, %179 : vector<256x128xf32>
    %c15_i32_90 = arith.constant 15 : i32
    %181 = tpu.dynamic_rotate %163 by %c15_i32_90 dim 0 : vector<256x128xf32>, i32 -> vector<256x128xf32>
    %182 = vector.broadcast %72 : vector<256x1xf32> to vector<256x128xf32>
    %183 = arith.mulf %181, %182 : vector<256x128xf32>
    %184 = arith.truncf %183 : vector<256x128xf32> to vector<256x128xbf16>
    %c2_91 = arith.constant 2 : index
    %c0_92 = arith.constant 0 : index
    %c0_93 = arith.constant 0 : index
    %185 = vector.load %arg15[%c2_91, %c0_92, %c0_93] : memref<9x128x128xbf16, #tpu.memory_space<vmem>>, vector<1x128x128xbf16>
    %186 = vector.shape_cast %185 : vector<1x128x128xbf16> to vector<128x128xbf16>
    %cst_94 = arith.constant dense<0.000000e+00> : vector<256x128xf32>
    %187 = tpu.matmul %184, %186, %cst_94 {dimension_numbers = #tpu.dot_dimension_numbers<[1], [0], [0], [1], [0, 0, 1, 1], [], []>} : vector<256x128xbf16>, vector<128x128xbf16>, vector<256x128xf32> -> vector<256x128xf32>
    %188 = arith.addf %180, %187 : vector<256x128xf32>
    %c1_i32_95 = arith.constant 1 : i32
    %189 = tpu.dynamic_rotate %163 by %c1_i32_95 dim 0 : vector<256x128xf32>, i32 -> vector<256x128xf32>
    %190 = vector.broadcast %74 : vector<256x1xf32> to vector<256x128xf32>
    %191 = arith.mulf %189, %190 : vector<256x128xf32>
    %192 = arith.truncf %191 : vector<256x128xf32> to vector<256x128xbf16>
    %c3_96 = arith.constant 3 : index
    %c0_97 = arith.constant 0 : index
    %c0_98 = arith.constant 0 : index
    %193 = vector.load %arg15[%c3_96, %c0_97, %c0_98] : memref<9x128x128xbf16, #tpu.memory_space<vmem>>, vector<1x128x128xbf16>
    %194 = vector.shape_cast %193 : vector<1x128x128xbf16> to vector<128x128xbf16>
    %cst_99 = arith.constant dense<0.000000e+00> : vector<256x128xf32>
    %195 = tpu.matmul %192, %194, %cst_99 {dimension_numbers = #tpu.dot_dimension_numbers<[1], [0], [0], [1], [0, 0, 1, 1], [], []>} : vector<256x128xbf16>, vector<128x128xbf16>, vector<256x128xf32> -> vector<256x128xf32>
    %196 = arith.addf %188, %195 : vector<256x128xf32>
    %197 = arith.truncf %163 : vector<256x128xf32> to vector<256x128xbf16>
    %c4_100 = arith.constant 4 : index
    %c0_101 = arith.constant 0 : index
    %c0_102 = arith.constant 0 : index
    %198 = vector.load %arg15[%c4_100, %c0_101, %c0_102] : memref<9x128x128xbf16, #tpu.memory_space<vmem>>, vector<1x128x128xbf16>
    %199 = vector.shape_cast %198 : vector<1x128x128xbf16> to vector<128x128xbf16>
    %cst_103 = arith.constant dense<0.000000e+00> : vector<256x128xf32>
    %200 = tpu.matmul %197, %199, %cst_103 {dimension_numbers = #tpu.dot_dimension_numbers<[1], [0], [0], [1], [0, 0, 1, 1], [], []>} : vector<256x128xbf16>, vector<128x128xbf16>, vector<256x128xf32> -> vector<256x128xf32>
    %201 = arith.addf %196, %200 : vector<256x128xf32>
    %c255_i32_104 = arith.constant 255 : i32
    %202 = tpu.dynamic_rotate %163 by %c255_i32_104 dim 0 : vector<256x128xf32>, i32 -> vector<256x128xf32>
    %203 = vector.broadcast %76 : vector<256x1xf32> to vector<256x128xf32>
    %204 = arith.mulf %202, %203 : vector<256x128xf32>
    %205 = arith.truncf %204 : vector<256x128xf32> to vector<256x128xbf16>
    %c5_105 = arith.constant 5 : index
    %c0_106 = arith.constant 0 : index
    %c0_107 = arith.constant 0 : index
    %206 = vector.load %arg15[%c5_105, %c0_106, %c0_107] : memref<9x128x128xbf16, #tpu.memory_space<vmem>>, vector<1x128x128xbf16>
    %207 = vector.shape_cast %206 : vector<1x128x128xbf16> to vector<128x128xbf16>
    %cst_108 = arith.constant dense<0.000000e+00> : vector<256x128xf32>
    %208 = tpu.matmul %205, %207, %cst_108 {dimension_numbers = #tpu.dot_dimension_numbers<[1], [0], [0], [1], [0, 0, 1, 1], [], []>} : vector<256x128xbf16>, vector<128x128xbf16>, vector<256x128xf32> -> vector<256x128xf32>
    %209 = arith.addf %201, %208 : vector<256x128xf32>
    %c241_i32_109 = arith.constant 241 : i32
    %210 = tpu.dynamic_rotate %163 by %c241_i32_109 dim 0 : vector<256x128xf32>, i32 -> vector<256x128xf32>
    %211 = vector.broadcast %79 : vector<256x1xf32> to vector<256x128xf32>
    %212 = arith.mulf %210, %211 : vector<256x128xf32>
    %213 = arith.truncf %212 : vector<256x128xf32> to vector<256x128xbf16>
    %c6_110 = arith.constant 6 : index
    %c0_111 = arith.constant 0 : index
    %c0_112 = arith.constant 0 : index
    %214 = vector.load %arg15[%c6_110, %c0_111, %c0_112] : memref<9x128x128xbf16, #tpu.memory_space<vmem>>, vector<1x128x128xbf16>
    %215 = vector.shape_cast %214 : vector<1x128x128xbf16> to vector<128x128xbf16>
    %cst_113 = arith.constant dense<0.000000e+00> : vector<256x128xf32>
    %216 = tpu.matmul %213, %215, %cst_113 {dimension_numbers = #tpu.dot_dimension_numbers<[1], [0], [0], [1], [0, 0, 1, 1], [], []>} : vector<256x128xbf16>, vector<128x128xbf16>, vector<256x128xf32> -> vector<256x128xf32>
    %217 = arith.addf %209, %216 : vector<256x128xf32>
    %c240_i32_114 = arith.constant 240 : i32
    %218 = tpu.dynamic_rotate %163 by %c240_i32_114 dim 0 : vector<256x128xf32>, i32 -> vector<256x128xf32>
    %219 = vector.broadcast %81 : vector<256x1xf32> to vector<256x128xf32>
    %220 = arith.mulf %218, %219 : vector<256x128xf32>
    %221 = arith.truncf %220 : vector<256x128xf32> to vector<256x128xbf16>
    %c7_115 = arith.constant 7 : index
    %c0_116 = arith.constant 0 : index
    %c0_117 = arith.constant 0 : index
    %222 = vector.load %arg15[%c7_115, %c0_116, %c0_117] : memref<9x128x128xbf16, #tpu.memory_space<vmem>>, vector<1x128x128xbf16>
    %223 = vector.shape_cast %222 : vector<1x128x128xbf16> to vector<128x128xbf16>
    %cst_118 = arith.constant dense<0.000000e+00> : vector<256x128xf32>
    %224 = tpu.matmul %221, %223, %cst_118 {dimension_numbers = #tpu.dot_dimension_numbers<[1], [0], [0], [1], [0, 0, 1, 1], [], []>} : vector<256x128xbf16>, vector<128x128xbf16>, vector<256x128xf32> -> vector<256x128xf32>
    %225 = arith.addf %217, %224 : vector<256x128xf32>
    %c239_i32_119 = arith.constant 239 : i32
    %226 = tpu.dynamic_rotate %163 by %c239_i32_119 dim 0 : vector<256x128xf32>, i32 -> vector<256x128xf32>
    %227 = vector.broadcast %84 : vector<256x1xf32> to vector<256x128xf32>
    %228 = arith.mulf %226, %227 : vector<256x128xf32>
    %229 = arith.truncf %228 : vector<256x128xf32> to vector<256x128xbf16>
    %c8_120 = arith.constant 8 : index
    %c0_121 = arith.constant 0 : index
    %c0_122 = arith.constant 0 : index
    %230 = vector.load %arg15[%c8_120, %c0_121, %c0_122] : memref<9x128x128xbf16, #tpu.memory_space<vmem>>, vector<1x128x128xbf16>
    %231 = vector.shape_cast %230 : vector<1x128x128xbf16> to vector<128x128xbf16>
    %cst_123 = arith.constant dense<0.000000e+00> : vector<256x128xf32>
    %232 = tpu.matmul %229, %231, %cst_123 {dimension_numbers = #tpu.dot_dimension_numbers<[1], [0], [0], [1], [0, 0, 1, 1], [], []>} : vector<256x128xbf16>, vector<128x128xbf16>, vector<256x128xf32> -> vector<256x128xf32>
    %233 = arith.addf %225, %232 : vector<256x128xf32>
    %c2_124 = arith.constant 2 : index
    %c0_125 = arith.constant 0 : index
    %234 = vector.load %arg16[%c2_124, %c0_125] : memref<3x128xf32, #tpu.memory_space<vmem>>, vector<1x128xf32>
    %235 = vector.broadcast %234 : vector<1x128xf32> to vector<256x128xf32>
    %236 = arith.addf %233, %235 : vector<256x128xf32>
    %c2_126 = arith.constant 2 : index
    %237 = memref.load %arg17[%c2_126] : memref<3xf32, #tpu.memory_space<smem>>
    %cst_127 = arith.constant 0.000000e+00 : f32
    %238 = vector.broadcast %cst_127 : f32 to vector<256x128xf32>
    %239 = arith.cmpf ogt, %236, %238 : vector<256x128xf32>
    %240 = vector.broadcast %237 : f32 to vector<256x128xf32>
    %241 = arith.mulf %236, %240 : vector<256x128xf32>
    %242 = arith.select %239, %236, %241 : vector<256x128xi1>, vector<256x128xf32>
    %243 = arith.truncf %242 : vector<256x128xf32> to vector<256x128xbf16>
    %c0_128 = arith.constant 0 : index
    %c0_129 = arith.constant 0 : index
    %244 = vector.load %arg18[%c0_128, %c0_129] : memref<128x512xbf16, #tpu.memory_space<vmem>>, vector<128x512xbf16>
    %cst_130 = arith.constant dense<0.000000e+00> : vector<256x512xf32>
    %245 = tpu.matmul %243, %244, %cst_130 {dimension_numbers = #tpu.dot_dimension_numbers<[1], [0], [0], [1], [0, 0, 1, 1], [], []>} : vector<256x128xbf16>, vector<128x512xbf16>, vector<256x512xf32> -> vector<256x512xf32>
    %c0_131 = arith.constant 0 : index
    %c0_132 = arith.constant 0 : index
    %246 = vector.load %arg19[%c0_131, %c0_132] : memref<1x512xf32, #tpu.memory_space<vmem>>, vector<1x512xf32>
    %247 = vector.broadcast %246 : vector<1x512xf32> to vector<256x512xf32>
    %248 = arith.addf %245, %247 : vector<256x512xf32>
    %cst_133 = arith.constant 0.000000e+00 : f32
    %249 = vector.broadcast %cst_133 : f32 to vector<256x512xf32>
    %250 = arith.maximumf %248, %249 : vector<256x512xf32>
    %251 = arith.truncf %250 : vector<256x512xf32> to vector<256x512xbf16>
    %252 = vector.shape_cast %251 : vector<256x512xbf16> to vector<1x256x512xbf16>
    %253 = vector.extract_strided_slice %252 {offsets = [0, 0, 0], sizes = [1, 256, 256], strides = [1, 1, 1]} : vector<1x256x512xbf16> to vector<1x256x256xbf16>
    %254 = vector.extract_strided_slice %252 {offsets = [0, 0, 256], sizes = [1, 256, 256], strides = [1, 1, 1]} : vector<1x256x512xbf16> to vector<1x256x256xbf16>
    %255 = vector.shape_cast %35 : vector<1x256xbf16> to vector<1x1x256xbf16>
    "tpu.trace_start"() <{level = 10 : i32, message = "bqd,bsd->bqs"}> : () -> ()
    %cst_134 = arith.constant dense<0.000000e+00> : vector<1x1x256xf32>
    %256 = tpu.matmul %255, %253, %cst_134 {dimension_numbers = #tpu.dot_dimension_numbers<[2], [2], [1], [1], [0, 0, 0, 1, 1, 1], [0], [0]>} : vector<1x1x256xbf16>, vector<1x256x256xbf16>, vector<1x1x256xf32> -> vector<1x1x256xf32>
    "tpu.trace_stop"() : () -> ()
    %cst_135 = arith.constant dense<0xFF800000> : vector<1x1xf32>
    %257 = vector.multi_reduction <maximumf>, %256, %cst_135 [2] : vector<1x1x256xf32> to vector<1x1xf32>
    %258 = vector.shape_cast %257 : vector<1x1xf32> to vector<1x1x1xf32>
    %259 = vector.broadcast %258 : vector<1x1x1xf32> to vector<1x1x256xf32>
    %260 = arith.subf %256, %259 : vector<1x1x256xf32>
    %261 = math.exp %260 : vector<1x1x256xf32>
    %cst_136 = arith.constant dense<0.000000e+00> : vector<1x1xf32>
    %262 = vector.multi_reduction <add>, %261, %cst_136 [2] : vector<1x1x256xf32> to vector<1x1xf32>
    %263 = vector.shape_cast %262 : vector<1x1xf32> to vector<1x1x1xf32>
    %264 = tpu.reciprocal %263 {approx = true} : vector<1x1x1xf32> -> vector<1x1x1xf32>
    %265 = vector.broadcast %264 : vector<1x1x1xf32> to vector<1x1x256xf32>
    %266 = arith.mulf %261, %265 : vector<1x1x256xf32>
    %267 = arith.truncf %266 : vector<1x1x256xf32> to vector<1x1x256xbf16>
    "tpu.trace_start"() <{level = 10 : i32, message = "bqs,bsd->bqd"}> : () -> ()
    %cst_137 = arith.constant dense<0.000000e+00> : vector<1x1x256xf32>
    %268 = tpu.matmul %267, %254, %cst_137 {dimension_numbers = #tpu.dot_dimension_numbers<[2], [1], [1], [2], [0, 0, 0, 1, 1, 2], [0], [0]>} : vector<1x1x256xbf16>, vector<1x256x256xbf16>, vector<1x1x256xf32> -> vector<1x1x256xf32>
    "tpu.trace_stop"() : () -> ()
    %269 = vector.shape_cast %268 : vector<1x1x256xf32> to vector<1x256xf32>
    %270 = vector.shape_cast %242 : vector<256x128xf32> to vector<1x256x128xf32>
    %cst_138 = arith.constant dense<0.000000e+00> : vector<1x128xf32>
    %271 = vector.multi_reduction <add>, %270, %cst_138 [1] : vector<1x256x128xf32> to vector<1x128xf32>
    %cst_139 = arith.constant 3.906250e-03 : f32
    %272 = vector.broadcast %cst_139 : f32 to vector<1x128xf32>
    %273 = arith.mulf %271, %272 : vector<1x128xf32>
    %274 = arith.truncf %269 : vector<1x256xf32> to vector<1x256xbf16>
    %c0_140 = arith.constant 0 : index
    %c0_141 = arith.constant 0 : index
    %275 = vector.load %arg20[%c0_140, %c0_141] : memref<256x256xbf16, #tpu.memory_space<vmem>>, vector<256x256xbf16>
    %cst_142 = arith.constant dense<0.000000e+00> : vector<1x256xf32>
    %276 = tpu.matmul %274, %275, %cst_142 {dimension_numbers = #tpu.dot_dimension_numbers<[1], [0], [0], [1], [0, 0, 1, 1], [], []>} : vector<1x256xbf16>, vector<256x256xbf16>, vector<1x256xf32> -> vector<1x256xf32>
    %277 = arith.addf %36, %276 : vector<1x256xf32>
    %278 = arith.truncf %273 : vector<1x128xf32> to vector<1x128xbf16>
    %c0_143 = arith.constant 0 : index
    %c0_144 = arith.constant 0 : index
    %279 = vector.load %arg21[%c0_143, %c0_144] : memref<128x256xbf16, #tpu.memory_space<vmem>>, vector<128x256xbf16>
    %cst_145 = arith.constant dense<0.000000e+00> : vector<1x256xf32>
    %280 = tpu.matmul %278, %279, %cst_145 {dimension_numbers = #tpu.dot_dimension_numbers<[1], [0], [0], [1], [0, 0, 1, 1], [], []>} : vector<1x128xbf16>, vector<128x256xbf16>, vector<1x256xf32> -> vector<1x256xf32>
    %281 = arith.addf %277, %280 : vector<1x256xf32>
    %cst_146 = arith.constant 0.000000e+00 : f32
    %282 = vector.broadcast %cst_146 : f32 to vector<1x256xf32>
    %283 = arith.maximumf %281, %282 : vector<1x256xf32>
    %284 = vector.shape_cast %283 : vector<1x256xf32> to vector<1x1x256xf32>
    %c0_147 = arith.constant 0 : index
    %c0_148 = arith.constant 0 : index
    %c0_149 = arith.constant 0 : index
    %285 = vector.load %arg22[%c0_147, %c0_148, %c0_149] : memref<1x1x256xf32, #tpu.memory_space<vmem>>, vector<1x1x256xf32>
    tpu.vector_store %arg22[%c0_147, %c0_148, %c0_149], %284 {strides = array<i32>} : memref<1x1x256xf32, #tpu.memory_space<vmem>>, vector<1x1x256xf32>,
    return
  }
  func.func @transform_0(%arg0: i32) -> (i32, i32, i32) {
    %c0_i32 = arith.constant 0 : i32
    %c0_i32_0 = arith.constant 0 : i32
    %c0_i32_1 = arith.constant 0 : i32
    return %arg0, %c0_i32, %c0_i32_0 : i32, i32, i32
  }
  func.func @transform_1(%arg0: i32) -> (i32, i32, i32) {
    %c0_i32 = arith.constant 0 : i32
    %c0_i32_0 = arith.constant 0 : i32
    %c0_i32_1 = arith.constant 0 : i32
    return %arg0, %c0_i32, %c0_i32_0 : i32, i32, i32
  }
  func.func @transform_2(%arg0: i32) -> (i32, i32, i32) {
    %c0_i32 = arith.constant 0 : i32
    %c0_i32_0 = arith.constant 0 : i32
    %c0_i32_1 = arith.constant 0 : i32
    return %arg0, %c0_i32, %c0_i32_0 : i32, i32, i32
  }
  func.func @transform_3(%arg0: i32) -> (i32, i32) {
    %c0_i32 = arith.constant 0 : i32
    %c0_i32_0 = arith.constant 0 : i32
    %c0_i32_1 = arith.constant 0 : i32
    return %c0_i32, %c0_i32_0 : i32, i32
  }
  func.func @transform_4(%arg0: i32) -> (i32, i32) {
    %c0_i32 = arith.constant 0 : i32
    %c0_i32_0 = arith.constant 0 : i32
    %c0_i32_1 = arith.constant 0 : i32
    return %c0_i32, %c0_i32_0 : i32, i32
  }
  func.func @transform_5(%arg0: i32) -> (i32, i32) {
    %c0_i32 = arith.constant 0 : i32
    %c0_i32_0 = arith.constant 0 : i32
    %c0_i32_1 = arith.constant 0 : i32
    return %c0_i32, %c0_i32_0 : i32, i32
  }
  func.func @transform_6(%arg0: i32) -> (i32, i32) {
    %c0_i32 = arith.constant 0 : i32
    %c0_i32_0 = arith.constant 0 : i32
    %c0_i32_1 = arith.constant 0 : i32
    return %c0_i32, %c0_i32_0 : i32, i32
  }
  func.func @transform_7(%arg0: i32) -> (i32, i32) {
    %c0_i32 = arith.constant 0 : i32
    %c0_i32_0 = arith.constant 0 : i32
    %c0_i32_1 = arith.constant 0 : i32
    return %c0_i32, %c0_i32_0 : i32, i32
  }
  func.func @transform_8(%arg0: i32) -> (i32, i32) {
    %c0_i32 = arith.constant 0 : i32
    %c0_i32_0 = arith.constant 0 : i32
    %c0_i32_1 = arith.constant 0 : i32
    return %c0_i32, %c0_i32_0 : i32, i32
  }
  func.func @transform_9(%arg0: i32) -> (i32, i32) {
    %c0_i32 = arith.constant 0 : i32
    %c0_i32_0 = arith.constant 0 : i32
    %c0_i32_1 = arith.constant 0 : i32
    return %c0_i32, %c0_i32_0 : i32, i32
  }
  func.func @transform_10(%arg0: i32) -> (i32, i32) {
    %c0_i32 = arith.constant 0 : i32
    %c0_i32_0 = arith.constant 0 : i32
    %c0_i32_1 = arith.constant 0 : i32
    return %c0_i32, %c0_i32_0 : i32, i32
  }
  func.func @transform_11(%arg0: i32) -> (i32, i32) {
    %c0_i32 = arith.constant 0 : i32
    %c0_i32_0 = arith.constant 0 : i32
    %c0_i32_1 = arith.constant 0 : i32
    return %c0_i32, %c0_i32_0 : i32, i32
  }
  func.func @transform_12(%arg0: i32) -> (i32, i32) {
    %c0_i32 = arith.constant 0 : i32
    %c0_i32_0 = arith.constant 0 : i32
    %c0_i32_1 = arith.constant 0 : i32
    return %c0_i32, %c0_i32_0 : i32, i32
  }
  func.func @transform_13(%arg0: i32) -> (i32, i32, i32) {
    %c0_i32 = arith.constant 0 : i32
    %c0_i32_0 = arith.constant 0 : i32
    %c0_i32_1 = arith.constant 0 : i32
    %c0_i32_2 = arith.constant 0 : i32
    return %c0_i32, %c0_i32_0, %c0_i32_1 : i32, i32, i32
  }
  func.func @transform_14(%arg0: i32) -> (i32, i32, i32) {
    %c0_i32 = arith.constant 0 : i32
    %c0_i32_0 = arith.constant 0 : i32
    %c0_i32_1 = arith.constant 0 : i32
    %c0_i32_2 = arith.constant 0 : i32
    return %c0_i32, %c0_i32_0, %c0_i32_1 : i32, i32, i32
  }
  func.func @transform_15(%arg0: i32) -> (i32, i32) {
    %c0_i32 = arith.constant 0 : i32
    %c0_i32_0 = arith.constant 0 : i32
    %c0_i32_1 = arith.constant 0 : i32
    return %c0_i32, %c0_i32_0 : i32, i32
  }
  func.func @transform_16(%arg0: i32) -> i32 {
    %c0_i32 = arith.constant 0 : i32
    %c0_i32_0 = arith.constant 0 : i32
    return %c0_i32 : i32
  }
  func.func @transform_17(%arg0: i32) -> (i32, i32) {
    %c0_i32 = arith.constant 0 : i32
    %c0_i32_0 = arith.constant 0 : i32
    %c0_i32_1 = arith.constant 0 : i32
    return %c0_i32, %c0_i32_0 : i32, i32
  }
  func.func @transform_18(%arg0: i32) -> (i32, i32) {
    %c0_i32 = arith.constant 0 : i32
    %c0_i32_0 = arith.constant 0 : i32
    %c0_i32_1 = arith.constant 0 : i32
    return %c0_i32, %c0_i32_0 : i32, i32
  }
  func.func @transform_19(%arg0: i32) -> (i32, i32) {
    %c0_i32 = arith.constant 0 : i32
    %c0_i32_0 = arith.constant 0 : i32
    %c0_i32_1 = arith.constant 0 : i32
    return %c0_i32, %c0_i32_0 : i32, i32
  }
  func.func @transform_20(%arg0: i32) -> (i32, i32) {
    %c0_i32 = arith.constant 0 : i32
    %c0_i32_0 = arith.constant 0 : i32
    %c0_i32_1 = arith.constant 0 : i32
    return %c0_i32, %c0_i32_0 : i32, i32
  }
  func.func @transform_21(%arg0: i32) -> (i32, i32, i32) {
    %c0_i32 = arith.constant 0 : i32
    %c0_i32_0 = arith.constant 0 : i32
    %c0_i32_1 = arith.constant 0 : i32
    return %arg0, %c0_i32, %c0_i32_0 : i32, i32, i32
  }
}

</mosaic_0001>

<bundles_post_ra>
// kernel: forward.1
= control target key start
LH: loop header
LB: loop body
LE: loop exit
PB: predicated region body
PF: predicated region fallthrough
CT: control target
= control target key end

     0   :  { %s21032_s0 = inlined_call_operand.vmem [shape: bf16[2,1,256], index: 0, kind: input, shape index: {}]   ;;  %s21033_s1 = inlined_call_operand.vmem [shape: bf16[2,1,128], index: 1, kind: input, shape index: {}]   ;;  %s21034_s2 = inlined_call_operand.vmem [shape: bf16[2,256,128], index: 2, kind: input, shape index: {}]   ;;  %s21035_s3 = inlined_call_operand.vmem [shape: bf16[256,256], index: 3, kind: input, shape index: {}]   ;;  %s21036_s4 = inlined_call_operand.vmem [shape: bf16[128,256], index: 4, kind: input, shape index: {}]   ;;  %s21037_s5 = inlined_call_operand.vmem [shape: f32[1,256], index: 5, kind: input, shape index: {}]   ;;  %s21038_s6 = inlined_call_operand.vmem [shape: bf16[256,256], index: 6, kind: input, shape index: {}]   ;;  %s21039_s7 = inlined_call_operand.vmem [shape: f32[1,256], index: 7, kind: input, shape index: {}]   ;;  %s21040_s8 = inlined_call_operand.vmem [shape: bf16[256,256], index: 8, kind: input, shape index: {}]   ;;  %s21041_s9 = inlined_call_operand.vmem [shape: f32[1,256], index: 9, kind: input, shape index: {}]   ;;  %s21042_s10 = inlined_call_operand.vmem [shape: bf16[256,512], index: 10, kind: input, shape index: {}]   ;;  %s21043_s11 = inlined_call_operand.vmem [shape: f32[1,512], index: 11, kind: input, shape index: {}]   ;;  %s21044_s12 = inlined_call_operand.vmem [shape: bf16[128,128], index: 12, kind: input, shape index: {}]   ;;  %s21045_s13 = inlined_call_operand.vmem [shape: bf16[9,128,128], index: 13, kind: input, shape index: {}]   ;;  %s21046_s14 = inlined_call_operand.vmem [shape: bf16[9,128,128], index: 14, kind: input, shape index: {}]   ;;  %s21047_s15 = inlined_call_operand.vmem [shape: f32[3,128], index: 15, kind: input, shape index: {}]   ;;  %s21048_s16 = inlined_call_operand.vmem [shape: f32[3], index: 16, kind: input, shape index: {}]   ;;  %s21049_s17 = inlined_call_operand.vmem [shape: bf16[128,512], index: 17, kind: input, shape index: {}]   ;;  %s21050_s18 = inlined_call_operand.vmem [shape: f32[1,512], index: 18, kind: input, shape index: {}]   ;;  %s21051_s19 = inlined_call_operand.vmem [shape: bf16[256,256], index: 19, kind: input, shape index: {}]   ;;  %s21052_s20 = inlined_call_operand.vmem [shape: bf16[128,256], index: 20, kind: input, shape index: {}]   ;;  %s21053_s21 = inlined_call_operand.vmem [shape: f32[2,1,256], index: 21, kind: output, shape index: {}]  }
   0x1   :  { %21792 = sst [smem:[#allocation236_spill]] %s21032_s0 }
   0x2   :  { %21793 = sst [smem:[#allocation237_spill]] %s21033_s1 }
   0x3   :  { %21794 = sst [smem:[#allocation238_spill]] %s21034_s2 }
   0x4   :  { %21795 = sst [smem:[#allocation239_spill]] %s21035_s3 }
   0x5   :  { %21796 = sst [smem:[#allocation240_spill]] %s21036_s4 }
   0x6   :  { %21797 = sst [smem:[#allocation241_spill]] %s21037_s5 }
   0x7   :  { %21798 = sst [smem:[#allocation242_spill]] %s21048_s16 }
   0x8   :  { %26 = vsyncpa [#allocation3], 0  ;;  %s13754_s2 = smov 0  }
   0x9 LB: > { %21799 = sst [smem:[#allocation5_spill]] %s13638_s2  ;;  %s13760_s25 = sadd.s32 4294967295, %s13638_s2   ;;  %s13638_s2 = sphi %s13754_s2, %s32_s2  }
   0xa   : > { %p10741_p0 = scmp.ge.s32.totalorder %s13638_s2, 1  ;;  %p519_p1 = scmp.lt.s32.totalorder %s13638_s2, 3 }
   0xb   : > { %s21800_s16 = sld [smem:[#allocation242_spill]]  ;;  %p13039_p3 = scmp.eq.s32.totalorder %s13760_s25, 0 }
   0xc   : > { %p13767_p2 = pnand %p10741_p0, %p519_p1 }
   0xe   : > { %p13035_p4 = pneg %p13767_p2 }
  0x10   : > { %p13036_p5 = pnand %p13039_p3, %p13035_p4 }
  0x11   : > { %s571_s3 = sshll.u32 %s21800_s16, 4  ;;  %s572_s3 = int_to_ptr.vmem [resolvable:$true] %s571_s3 }
  0x12   : > { %s13613_s29 = scalar_lea.vmem %s572_s3, 16  ;;  %p13615_p7 = pneg %p13036_p5 }
  0x13   : > { %p13614_p6 = scmp.ne.s32.totalorder %s572_s3, %s13613_s29  ;;  %p13621_p10 = scmp.lt.s32.totalorder %s572_s3, %s572_s3 }
  0x14   : > { %p13622_p11 = scmp.lt.s32.totalorder %s13613_s29, %s13613_s29 }
  0x15   : > { %p13616_p8 = pnand %p13615_p7, %p13614_p6 }
  0x16   : > { %p13623_p12 = por %p13622_p11, %p13621_p10 }
  0x17   : > { %p13617_p9 = pneg %p13616_p8 }
  0x19   : > { %p13624_p13 = pnand %p13623_p12, %p13617_p9 }
  0x1b   : > { %13627 = shalt.err (!%p13624_p13)
}
  0x1c   : > { %s13640_s0 = smov [#allocation2]   ;;  %617 = sbr.rel (%p13767_p2) target bundleno = 3327 (0xcff), region = 104 }
  0x1d   : > { %13038 = dma.vmem_to_smem (!%p13036_p5), %s572_s3, 16, %s13640_s0, [#allocation3]  }
  0x21   : > { %13633 = dma.done.wait (%p13039_p3), [#allocation3], 16  }
  0x22   : > { %13635 = vsyncadd (%p13039_p3), [#allocation3], 4294967280 }
  0x23   : > { %623 = sfence }
  0x24   : > { %s21802_s5 = sld [smem:[#allocation239_spill]]  ;;  %v21061_v2 = vmov 0   ;;  %p684_p0 = scmp.lt.s32.totalorder %s13760_s25, 1  ;;  %v13642_v24 = vmov 1966171168   ;;  %v21058_v26 = vlaneseq }
  0x25   : > { %863 = vmatprep.mubr.bf16.mxu0 %v21061_v2  ;;  %s21803_s1 = sld [smem:[#allocation240_spill]]  ;;  %v882_v25 = vunpack.c.l.s4 %v13642_v24  ;;  %v13127_v47 = vld [vmem:[%s21038_s6 + $0x74] ss:$8 sps:$4 sm:$0xff]   ;;  %v13125_v51 = vld [vmem:[%s21038_s6 + $0x70] ss:$8 sps:$4 sm:$0xff]  }
  0x26   : > { %s23559_s25 = smov (!%p684_p0, %s13760_s25), 1  ;;  %v13870_v32 = vshrl.u32 %v21058_v26, 7  ;;  %s21805_s26 = sld [smem:[#allocation236_spill]]  ;;  %v13130_v52 = vld [vmem:[%s21038_s6 + $0x64] ss:$8 sps:$4 sm:$0xff]  }
  0x27   : > { %s21057_s3 = sshll.u32 %s23559_s25, 1  ;;  %v883_v31 = vunpack.c.0.s8 %v882_v25  ;;  %s21807_s30 = sld [smem:[#allocation237_spill]]  ;;  %v13128_v55 = vld [vmem:[%s21038_s6 + $0x60] ss:$8 sps:$4 sm:$0xff]   ;;  %v13133_v56 = vld [vmem:[%s21038_s6 + $0x54] ss:$8 sps:$4 sm:$0xff]  }
  0x28   : > { %21804 = vst [vmem:[#allocation6_spill] sm:$0xff] %v13870_v32  ;;  %v13131_v59 = vld [vmem:[%s21038_s6 + $0x50] ss:$8 sps:$4 sm:$0xff]   ;;  %v13136_v60 = vld [vmem:[%s21038_s6 + $0x44] ss:$8 sps:$4 sm:$0xff]   ;;  %s11662_s0 = sshll.u32 %s23559_s25, 7 }
  0x29   : > { %v13890_v37 = vsub.s32 %v883_v31, %v13870_v32  ;;  %v13134_v63 = vld [vmem:[%s21038_s6 + $0x40] ss:$8 sps:$4 sm:$0xff]   ;;  %s21808_s23 = sld [smem:[#allocation238_spill]]  ;;  %v13169_v25 = vld [vmem:[%s21038_s6 + $0x94] ss:$8 sps:$4 sm:$0xff]   ;;  %s23555_s24 = sshll.u32 %s23559_s25, 1 }
  0x2a   : > { %v13053_v0 = vld [vmem:[%s21802_s5 + $0x74] ss:$8 sps:$4 sm:$0xff]   ;;  %v13055_v1 = vld [vmem:[%s21802_s5 + $0x70] ss:$8 sps:$4 sm:$0xff]   ;;  %v13056_v3 = vld [vmem:[%s21802_s5 + $0x64] ss:$8 sps:$4 sm:$0xff]  }
  0x2b   : > { %1057 = vmatprep.subr.bf16.mxu1 %v13053_v0  ;;  %v13058_v4 = vld [vmem:[%s21802_s5 + $0x60] ss:$8 sps:$4 sm:$0xff]   ;;  %v13059_v5 = vld [vmem:[%s21802_s5 + $0x54] ss:$8 sps:$4 sm:$0xff]   ;;  %v13061_v6 = vld [vmem:[%s21802_s5 + $0x50] ss:$8 sps:$4 sm:$0xff]  }
  0x2c   : > { %1058 = vmatpush1.bf16.msra.mxu1 %v13055_v1  ;;  %v13062_v7 = vld [vmem:[%s21802_s5 + $0x44] ss:$8 sps:$4 sm:$0xff]   ;;  %v13074_v8 = vld [vmem:[%s21803_s1 + $0x74] ss:$8 sps:$4 sm:$0xff]   ;;  %v13076_v9 = vld [vmem:[%s21803_s1 + $0x70] ss:$8 sps:$4 sm:$0xff]   ;;  %s687_s27 = scalar_lea.vmem %s21805_s26, %s21057_s3 }
  0x2d   : > { %1059 = vmatprep.subr.bf16.mxu1 %v13056_v3  ;;  %v13064_v10 = vld [vmem:[%s21802_s5 + $0x40] ss:$8 sps:$4 sm:$0xff]   ;;  %v13065_v11 = vld [vmem:[%s21802_s5 + $0x34] ss:$8 sps:$4 sm:$0xff]   ;;  %831 = vmatprep.subr.bf16.mxu0 %v13074_v8  ;;  %v13080_v12 = vld [vmem:[%s21803_s1 + $0x64] ss:$8 sps:$4 sm:$0xff]   ;;  %s690_s22 = scalar_lea.vmem %s21807_s30, %s23559_s25 }
  0x2e   : > { %832 = vmatpush1.bf16.msra.mxu0 %v13076_v9  ;;  %v13082_v13 = vld [vmem:[%s21803_s1 + $0x60] ss:$8 sps:$4 sm:$0xff]   ;;  %v13067_v14 = vld [vmem:[%s21802_s5 + $0x30] ss:$8 sps:$4 sm:$0xff]   ;;  %v13086_v15 = vld [vmem:[%s21803_s1 + $0x54] ss:$8 sps:$4 sm:$0xff]  }
  0x2f   : > { %833 = vmatprep.subr.bf16.mxu0 %v13080_v12  ;;  %v13068_v16 = vld [vmem:[%s21802_s5 + $0x24] ss:$8 sps:$4 sm:$0xff]   ;;  %v13088_v17 = vld [vmem:[%s21803_s1 + $0x50] ss:$8 sps:$4 sm:$0xff]   ;;  %v13070_v19 = vld [vmem:[%s21802_s5 + $0x20] ss:$8 sps:$4 sm:$0xff]  }
  0x30   : > { %1060 = vmatpush1.bf16.msra.mxu1 %v13058_v4  ;;  %v13092_v18 = vld [vmem:[%s21803_s1 + $0x44] ss:$8 sps:$4 sm:$0xff]   ;;  %v13071_v20 = vld [vmem:[%s21802_s5 + $0x14] ss:$8 sps:$4 sm:$0xff]   ;;  %v13094_v21 = vld [vmem:[%s21803_s1 + $0x40] ss:$8 sps:$4 sm:$0xff]  }
  0x31   : > { %1061 = vmatprep.subr.bf16.mxu1 %v13059_v5  ;;  %v13098_v22 = vld [vmem:[%s21803_s1 + $0x34] ss:$8 sps:$4 sm:$0xff]   ;;  %v13073_v23 = vld [vmem:[%s21802_s5 + $0x10] ss:$8 sps:$4 sm:$0xff]   ;;  %v13077_v27 = vld [vmem:[%s21802_s5 + $0x4] ss:$8 sps:$4 sm:$0xff]  }
  0x32   : > { %834 = vmatpush1.bf16.msra.mxu0 %v13082_v13  ;;  %v13100_v28 = vld [vmem:[%s21803_s1 + $0x30] ss:$8 sps:$4 sm:$0xff]   ;;  %v13104_v29 = vld [vmem:[%s21803_s1 + $0x24] ss:$8 sps:$4 sm:$0xff]   ;;  %v13079_v30 = vld [vmem:[%s21802_s5] ss:$8 sps:$4 sm:$0xff]  }
  0x33   : > { %835 = vmatprep.subr.bf16.mxu0 %v13086_v15  ;;  %v13083_v33 = vld [vmem:[%s21802_s5 + $0xf4] ss:$8 sps:$4 sm:$0xff]   ;;  %v13106_v34 = vld [vmem:[%s21803_s1 + $0x20] ss:$8 sps:$4 sm:$0xff]   ;;  %v13085_v36 = vld [vmem:[%s21802_s5 + $0xf0] ss:$8 sps:$4 sm:$0xff]  }
  0x34   : > { %1062 = vmatpush1.bf16.msra.mxu1 %v13061_v6  ;;  %v13110_v35 = vld [vmem:[%s21803_s1 + $0x14] ss:$8 sps:$4 sm:$0xff]   ;;  %21806 = vst [vmem:[#allocation7_spill] sm:$0xff] %v13890_v37  ;;  %v13089_v38 = vld [vmem:[%s21802_s5 + $0xe4] ss:$8 sps:$4 sm:$0xff]   ;;  %s17835_s29 = sld [smem:[#allocation2 + $0x1]] }
  0x35   : > { %1063 = vmatprep.subr.bf16.mxu1 %v13062_v7  ;;  %v13895_v39 = vld.sshfl [vmem:[%s687_s27] sm:$0x11 pattern:$0x75316420]  ;;  %v13112_v40 = vld [vmem:[%s21803_s1 + $0x10] ss:$8 sps:$4 sm:$0xff]  }
  0x36   : > { %836 = vmatpush1.bf16.msra.mxu0 %v13088_v17  ;;  %v880_v41 = vcombine.high %v13895_v39, %v13895_v39  ;;  %v13116_v42 = vld [vmem:[%s21803_s1 + $0x4] ss:$8 sps:$4 sm:$0xff]   ;;  %v13091_v43 = vld [vmem:[%s21802_s5 + $0xe0] ss:$8 sps:$4 sm:$0xff]   ;;  %v13095_v45 = vld [vmem:[%s21802_s5 + $0xd4] ss:$8 sps:$4 sm:$0xff]   ;;  %v887_v9 = vrot.slane %v13895_v39, %v13890_v37 }
  0x37   : > { %837 = vmatprep.subr.bf16.mxu0 %v13092_v18  ;;  %v13118_v46 = vld [vmem:[%s21803_s1] ss:$8 sps:$4 sm:$0xff]   ;;  %v13097_v48 = vld [vmem:[%s21802_s5 + $0xd0] ss:$8 sps:$4 sm:$0xff]   ;;  %v13101_v49 = vld [vmem:[%s21802_s5 + $0xc4] ss:$8 sps:$4 sm:$0xff]  }
  0x38   : > { %1064 = vmatpush1.bf16.msra.mxu1 %v13064_v10  ;;  %v894_v44 = vrot.slane %v880_v41, %v13890_v37  ;;  %v702_v50 = vld [vmem:[%s690_s22] sm:$0x1]  ;;  %v13107_v54 = vld [vmem:[%s21802_s5 + $0xb4] ss:$8 sps:$4 sm:$0xff]   ;;  %v13109_v57 = vld [vmem:[%s21802_s5 + $0xb0] ss:$8 sps:$4 sm:$0xff]   ;;  %s14030_s22 = scalar_lea.vmem %s21808_s23, %s11662_s0 }
  0x39   : > { %1065 = vmatprep.subr.bf16.mxu1 %v13065_v11  ;;  %v13103_v53 = vld [vmem:[%s21802_s5 + $0xc0] ss:$8 sps:$4 sm:$0xff]   ;;  %v13113_v58 = vld [vmem:[%s21802_s5 + $0xa4] ss:$8 sps:$4 sm:$0xff]   ;;  %v13119_v62 = vld [vmem:[%s21802_s5 + $0x94] ss:$8 sps:$4 sm:$0xff]  }
  0x3a   : > { %838 = vmatpush1.bf16.msra.mxu0 %v13094_v21  ;;  %1089 = vmatprep.mubr.bf16.mxu1 %v894_v44  ;;  %v13115_v61 = vld [vmem:[%s21802_s5 + $0xa0] ss:$8 sps:$4 sm:$0xff]   ;;  %v13139_v0 = vld [vmem:[%s21038_s6 + $0x34] ss:$8 sps:$4 sm:$0xff]   ;;  %v13121_v1 = vld [vmem:[%s21802_s5 + $0x90] ss:$8 sps:$4 sm:$0xff]  }
  0x3b   : > { %839 = vmatprep.subr.bf16.mxu0 %v13098_v22  ;;  %v13122_v3 = vld [vmem:[%s21802_s5 + $0x84] ss:$8 sps:$4 sm:$0xff]   ;;  %v13137_v4 = vld [vmem:[%s21038_s6 + $0x30] ss:$8 sps:$4 sm:$0xff]   ;;  %v13124_v6 = vld [vmem:[%s21802_s5 + $0x80] ss:$8 sps:$4 sm:$0xff]  }
  0x3c   : > { %1066 = vmatpush1.bf16.msra.mxu1 %v13067_v14  ;;  %v13142_v5 = vld [vmem:[%s21038_s6 + $0x24] ss:$8 sps:$4 sm:$0xff]   ;;  %v13140_v7 = vld [vmem:[%s21038_s6 + $0x20] ss:$8 sps:$4 sm:$0xff]   ;;  %v13145_v8 = vld [vmem:[%s21038_s6 + $0x14] ss:$8 sps:$4 sm:$0xff]  }
  0x3d   : > { %1067 = vmatprep.subr.bf16.mxu1 %v13068_v16  ;;  %v13143_v10 = vld [vmem:[%s21038_s6 + $0x10] ss:$8 sps:$4 sm:$0xff]   ;;  %v13148_v11 = vld [vmem:[%s21038_s6 + $0x4] ss:$8 sps:$4 sm:$0xff]   ;;  %v13146_v12 = vld [vmem:[%s21038_s6] ss:$8 sps:$4 sm:$0xff]  }
  0x3e   : > { %840 = vmatpush1.bf16.msra.mxu0 %v13100_v28  ;;  %v13151_v13 = vld [vmem:[%s21038_s6 + $0xf4] ss:$8 sps:$4 sm:$0xff]   ;;  %v13149_v14 = vld [vmem:[%s21038_s6 + $0xf0] ss:$8 sps:$4 sm:$0xff]   ;;  %v13154_v15 = vld [vmem:[%s21038_s6 + $0xe4] ss:$8 sps:$4 sm:$0xff]  }
  0x3f   : > { %841 = vmatprep.subr.bf16.mxu0 %v13104_v29  ;;  %v13152_v16 = vld [vmem:[%s21038_s6 + $0xe0] ss:$8 sps:$4 sm:$0xff]   ;;  %v13157_v17 = vld [vmem:[%s21038_s6 + $0xd4] ss:$8 sps:$4 sm:$0xff]   ;;  %v13155_v18 = vld [vmem:[%s21038_s6 + $0xd0] ss:$8 sps:$4 sm:$0xff]  }
  0x40   : > { %1068 = vmatpush1.bf16.msra.mxu1 %v13070_v19  ;;  %v13160_v19 = vld [vmem:[%s21038_s6 + $0xc4] ss:$8 sps:$4 sm:$0xff]   ;;  %v13161_v21 = vld [vmem:[%s21038_s6 + $0xb0] ss:$8 sps:$4 sm:$0xff]   ;;  %v13163_v22 = vld [vmem:[%s21038_s6 + $0xb4] ss:$8 sps:$4 sm:$0xff]  }
  0x41   : > { %1069 = vmatprep.subr.bf16.mxu1 %v13071_v20  ;;  %v13158_v20 = vld [vmem:[%s21038_s6 + $0xc0] ss:$8 sps:$4 sm:$0xff]   ;;  %v13172_v28 = vld [vmem:[%s21038_s6 + $0x84] ss:$8 sps:$4 sm:$0xff]   ;;  %v13175_v31 = vld [vmem:[%s21040_s8 + $0x74] ss:$8 sps:$4 sm:$0xff]  }
  0x42   : > { %842 = vmatpush1.bf16.msra.mxu0 %v13106_v34  ;;  %v13164_v24 = vld [vmem:[%s21038_s6 + $0xa0] ss:$8 sps:$4 sm:$0xff]   ;;  %v13185_v41 = vld [vmem:[%s21040_s8 + $0x30] ss:$8 sps:$4 sm:$0xff]   ;;  %v13193_v44 = vld [vmem:[%s21040_s8 + $0x14] ss:$8 sps:$4 sm:$0xff]  }
  0x43   : > { %843 = vmatprep.subr.bf16.mxu0 %v13110_v35  ;;  %v13170_v29 = vld [vmem:[%s21038_s6 + $0x80] ss:$8 sps:$4 sm:$0xff]   ;;  %v13181_v35 = vld [vmem:[%s21040_s8 + $0x54] ss:$8 sps:$4 sm:$0xff]   ;;  %s21810_s27 = sld [smem:[#allocation241_spill]]  ;;  %v14662_v37 = vadd.s32 136, %v13870_v32 }
  0x44   : > { %1070 = vmatpush1.bf16.msra.mxu1 %v13073_v23  ;;  %v13166_v23 = vld [vmem:[%s21038_s6 + $0xa4] ss:$8 sps:$4 sm:$0xff]   ;;  %v13176_v34 = vld [vmem:[%s21040_s8 + $0x60] ss:$8 sps:$4 sm:$0xff]   ;;  %s11579_s23 = sld [smem:[#allocation2 + $0x2]] }
  0x45   : > { %1071 = vmatprep.subr.bf16.mxu1 %v13077_v27  ;;  %v13167_v27 = vld [vmem:[%s21038_s6 + $0x90] ss:$8 sps:$4 sm:$0xff]   ;;  %v13182_v39 = vld [vmem:[%s21040_s8 + $0x40] ss:$8 sps:$4 sm:$0xff]   ;;  %21863 = vst [vmem:[#allocation47_spill] sm:$0xff] %v14662_v37 }
  0x46   : > { %844 = vmatpush1.bf16.msra.mxu0 %v13112_v40  ;;  %v13187_v40 = vld [vmem:[%s21040_s8 + $0x34] ss:$8 sps:$4 sm:$0xff]  }
  0x47   : > { %845 = vmatprep.subr.bf16.mxu0 %v13116_v42  ;;  %v13190_v42 = vld [vmem:[%s21040_s8 + $0x24] ss:$8 sps:$4 sm:$0xff]  }
  0x48   : > { %1072 = vmatpush1.bf16.msra.mxu1 %v13079_v30  ;;  %v13173_v30 = vld [vmem:[%s21040_s8 + $0x70] ss:$8 sps:$4 sm:$0xff]  }
  0x49   : > { %1073 = vmatprep.subr.bf16.mxu1 %v13083_v33  ;;  %v13178_v33 = vld [vmem:[%s21040_s8 + $0x64] ss:$8 sps:$4 sm:$0xff]  }
  0x4a   : > { %846 = vmatpush1.bf16.msra.mxu0 %v13118_v46  ;;  %v13196_v46 = vld [vmem:[%s21040_s8 + $0x4] ss:$8 sps:$4 sm:$0xff]  }
  0x4b   : > { %1320 = vmatprep.subr.bf16.mxu0 %v13127_v47  ;;  %v13194_v47 = vld [vmem:[%s21040_s8] ss:$8 sps:$4 sm:$0xff]  }
  0x4c   : > { %1074 = vmatpush2.bf16.msra.mxu1 %v13085_v36  ;;  %v13179_v36 = vld [vmem:[%s21040_s8 + $0x50] ss:$8 sps:$4 sm:$0xff]  }
  0x4d   : > { %1075 = vmatprep.subr.bf16.mxu1 %v13089_v38  ;;  %864 = vmatmul.mubr.bf16.vlgmr.msra.gmra.mxu0 %v702_v50  ;;  %v13184_v38 = vld [vmem:[%s21040_s8 + $0x44] ss:$8 sps:$4 sm:$0xff]  }
  0x4e   : > { %1321 = vmatpush1.bf16.msra.mxu0 %v13125_v51  ;;  %v13202_v50 = vld [vmem:[%s21040_s8 + $0xe4] ss:$8 sps:$4 sm:$0xff]   ;;  %v13200_v51 = vld [vmem:[%s21040_s8 + $0xe0] ss:$8 sps:$4 sm:$0xff]  }
  0x4f   : > { %1322 = vmatprep.subr.bf16.mxu0 %v13130_v52  ;;  %v13205_v52 = vld [vmem:[%s21040_s8 + $0xd4] ss:$8 sps:$4 sm:$0xff]  }
  0x50   : > { %1076 = vmatpush2.bf16.msra.mxu1 %v13091_v43  ;;  %v13188_v43 = vld [vmem:[%s21040_s8 + $0x20] ss:$8 sps:$4 sm:$0xff]  }
  0x51   : > { %1077 = vmatprep.subr.bf16.mxu1 %v13095_v45  ;;  %v13191_v45 = vld [vmem:[%s21040_s8 + $0x10] ss:$8 sps:$4 sm:$0xff]  }
  0x52   : > { %1323 = vmatpush1.bf16.msra.mxu0 %v13128_v55  ;;  %v13206_v55 = vld [vmem:[%s21040_s8 + $0xc0] ss:$8 sps:$4 sm:$0xff]  }
  0x53   : > { %1324 = vmatprep.subr.bf16.mxu0 %v13133_v56  ;;  %v13211_v56 = vld [vmem:[%s21040_s8 + $0xb4] ss:$8 sps:$4 sm:$0xff]  }
  0x54   : > { %1078 = vmatpush2.bf16.msra.mxu1 %v13097_v48  ;;  %v13199_v48 = vld [vmem:[%s21040_s8 + $0xf4] ss:$8 sps:$4 sm:$0xff]  }
  0x55   : > { %1079 = vmatprep.subr.bf16.mxu1 %v13101_v49  ;;  %v13197_v49 = vld [vmem:[%s21040_s8 + $0xf0] ss:$8 sps:$4 sm:$0xff]  }
  0x56   : > { %1325 = vmatpush1.bf16.msra.mxu0 %v13131_v59  ;;  %v13212_v59 = vld [vmem:[%s21040_s8 + $0xa0] ss:$8 sps:$4 sm:$0xff]  }
  0x57   : > { %1326 = vmatprep.subr.bf16.mxu0 %v13136_v60 }
  0x58   : > { %1080 = vmatpush2.bf16.msra.mxu1 %v13103_v53  ;;  %v13203_v53 = vld [vmem:[%s21040_s8 + $0xd0] ss:$8 sps:$4 sm:$0xff]  }
  0x59   : > { %1081 = vmatprep.subr.bf16.mxu1 %v13107_v54  ;;  %v13208_v54 = vld [vmem:[%s21040_s8 + $0xc4] ss:$8 sps:$4 sm:$0xff]  }
  0x5a   : > { %1327 = vmatpush1.bf16.msra.mxu0 %v13134_v63 }
  0x5b   : > { %1328 = vmatprep.subr.bf16.mxu0 %v13139_v0  ;;  %v14141_v0 = vsub.s32 0, %v13870_v32 }
  0x5c   : > { %1082 = vmatpush2.bf16.msra.mxu1 %v13109_v57  ;;  %v13209_v57 = vld [vmem:[%s21040_s8 + $0xb0] ss:$8 sps:$4 sm:$0xff]  }
  0x5d   : > { %1083 = vmatprep.subr.bf16.mxu1 %v13113_v58  ;;  %v13214_v58 = vld [vmem:[%s21040_s8 + $0xa4] ss:$8 sps:$4 sm:$0xff]   ;;  %21809 = vst [vmem:[#allocation8_spill] sm:$0xff] %v14141_v0 }
  0x5e   : > { %1329 = vmatpush1.bf16.msra.mxu0 %v13137_v4 }
  0x5f   : > { %1330 = vmatprep.subr.bf16.mxu0 %v13142_v5 }
  0x60   : > { %1084 = vmatpush2.bf16.msra.mxu1 %v13115_v61 }
  0x61   : > { %1085 = vmatprep.subr.bf16.mxu1 %v13119_v62 }
  0x62   : > { %1331 = vmatpush1.bf16.msra.mxu0 %v13140_v7 }
  0x63   : > { %1332 = vmatprep.subr.bf16.mxu0 %v13145_v8 }
  0x64   : > { %1086 = vmatpush2.bf16.msra.mxu1 %v13121_v1  ;;  %v1098_v1 = vld [vmem:[%s21810_s27] sm:$0x3]  ;;  %s2496_s27 = sld [smem:[#allocation2]] }
  0x65   : > { %1087 = vmatprep.subr.bf16.mxu1 %v13122_v3  ;;  %v14147_v3 = vsub.s32 1, %v13870_v32  ;;  %v1103_v4 = vrot.slane %v1098_v1, %v14141_v0 }
  0x66   : > { %1333 = vmatpush1.bf16.msra.mxu0 %v13143_v10 }
  0x67   : > { %1334 = vmatprep.subr.bf16.mxu0 %v13148_v11  ;;  %21811 = vst [vmem:[#allocation9_spill] sm:$0xff] %v14147_v3  ;;  %v1107_v7 = vrot.slane %v1098_v1, %v14147_v3 }
  0x68   : > { %1088 = vmatpush2.bf16.msra.mxu1 %v13124_v6 }
  0x69   : > { %1569 = vmatprep.subr.bf16.mxu1 %v13175_v31  ;;  %v13239_v31 = vld [vmem:[%s21042_s10 + $0x80] ss:$16 sps:$4 sm:$0xff]  }
  0x6a   : > { %1335 = vmatpush1.bf16.msra.mxu0 %v13146_v12 }
  0x6b   : > { %1090 = vmatmul.mubr.bf16.vlgmr.msra.gmra.mxu1 %v887_v9  ;;  %1336 = vmatprep.subr.bf16.mxu0 %v13151_v13 }
  0x6c   : > { %1570 = vmatpush1.bf16.msra.mxu1 %v13173_v30  ;;  %v13241_v30 = vld [vmem:[%s21042_s10 + $0x84] ss:$16 sps:$4 sm:$0xff]  }
  0x6d   : > { %1571 = vmatprep.subr.bf16.mxu1 %v13178_v33  ;;  %v13247_v33 = vld [vmem:[%s21042_s10 + $0x64] ss:$16 sps:$4 sm:$0xff]  }
  0x6e   : > { %1337 = vmatpush2.bf16.msra.mxu0 %v13149_v14 }
  0x6f   : > { %1338 = vmatprep.subr.bf16.mxu0 %v13154_v15 }
  0x70   : > { %1572 = vmatpush1.bf16.msra.mxu1 %v13176_v34  ;;  %v13245_v34 = vld [vmem:[%s21042_s10 + $0x60] ss:$16 sps:$4 sm:$0xff]  }
  0x71   : > { %1573 = vmatprep.subr.bf16.mxu1 %v13181_v35  ;;  %v13253_v35 = vld [vmem:[%s21042_s10 + $0x44] ss:$16 sps:$4 sm:$0xff]  }
  0x72   : > { %1339 = vmatpush2.bf16.msra.mxu0 %v13152_v16 }
  0x73   : > { %1340 = vmatprep.subr.bf16.mxu0 %v13157_v17 }
  0x74   : > { %1574 = vmatpush1.bf16.msra.mxu1 %v13179_v36  ;;  %v13251_v36 = vld [vmem:[%s21042_s10 + $0x40] ss:$16 sps:$4 sm:$0xff]  }
  0x75   : > { %1575 = vmatprep.subr.bf16.mxu1 %v13184_v38  ;;  %v13259_v38 = vld [vmem:[%s21042_s10 + $0x24] ss:$16 sps:$4 sm:$0xff]  }
  0x76   : > { %1341 = vmatpush2.bf16.msra.mxu0 %v13155_v18  ;;  %v13217_v18 = vld [vmem:[%s21040_s8 + $0x94] ss:$8 sps:$4 sm:$0xff]  }
  0x77   : > { %1342 = vmatprep.subr.bf16.mxu0 %v13160_v19  ;;  %v13215_v19 = vld [vmem:[%s21040_s8 + $0x90] ss:$8 sps:$4 sm:$0xff]  }
  0x78   : > { %1576 = vmatpush1.bf16.msra.mxu1 %v13182_v39  ;;  %v13257_v39 = vld [vmem:[%s21042_s10 + $0x20] ss:$16 sps:$4 sm:$0xff]  }
  0x79   : > { %1577 = vmatprep.subr.bf16.mxu1 %v13187_v40  ;;  %v13265_v40 = vld [vmem:[%s21042_s10 + $0x4] ss:$16 sps:$4 sm:$0xff]  }
  0x7a   : > { %1343 = vmatpush2.bf16.msra.mxu0 %v13158_v20  ;;  %v13220_v20 = vld [vmem:[%s21040_s8 + $0x84] ss:$8 sps:$4 sm:$0xff]  }
  0x7b   : > { %1344 = vmatprep.subr.bf16.mxu0 %v13163_v22  ;;  %v13221_v22 = vld [vmem:[%s21042_s10 + $0xe0] ss:$16 sps:$4 sm:$0xff]  }
  0x7c   : > { %1578 = vmatpush1.bf16.msra.mxu1 %v13185_v41  ;;  %v13263_v41 = vld [vmem:[%s21042_s10] ss:$16 sps:$4 sm:$0xff]  }
  0x7d   : > { %1579 = vmatprep.subr.bf16.mxu1 %v13190_v42  ;;  %v13271_v42 = vld [vmem:[%s21042_s10 + $0x1e4] ss:$16 sps:$4 sm:$0xff]  }
  0x7e   : > { %1345 = vmatpush2.bf16.msra.mxu0 %v13161_v21  ;;  %v13218_v21 = vld [vmem:[%s21040_s8 + $0x80] ss:$8 sps:$4 sm:$0xff]  }
  0x7f   : > { %1346 = vmatprep.subr.bf16.mxu0 %v13166_v23  ;;  %v13223_v23 = vld [vmem:[%s21042_s10 + $0xe4] ss:$16 sps:$4 sm:$0xff]  }
  0x80   : > { %1580 = vmatpush1.bf16.msra.mxu1 %v13188_v43  ;;  %v13269_v43 = vld [vmem:[%s21042_s10 + $0x1e0] ss:$16 sps:$4 sm:$0xff]  }
  0x81   : > { %1581 = vmatprep.subr.bf16.mxu1 %v13193_v44  ;;  %v13277_v44 = vld [vmem:[%s21042_s10 + $0x1c4] ss:$16 sps:$4 sm:$0xff]  }
  0x82   : > { %1347 = vmatpush2.bf16.msra.mxu0 %v13164_v24  ;;  %v13226_v24 = vld [vmem:[%s21042_s10 + $0xec] ss:$16 sps:$4 sm:$0xff]  }
  0x83   : > { %1348 = vmatprep.subr.bf16.mxu0 %v13169_v25  ;;  %v13229_v25 = vld [vmem:[%s21042_s10 + $0xc4] ss:$16 sps:$4 sm:$0xff]  }
  0x84   : > { %1582 = vmatpush1.bf16.msra.mxu1 %v13191_v45  ;;  %v13275_v45 = vld [vmem:[%s21042_s10 + $0x1c0] ss:$16 sps:$4 sm:$0xff]  }
  0x85   : > { %1583 = vmatprep.subr.bf16.mxu1 %v13196_v46  ;;  %v13283_v46 = vld [vmem:[%s21042_s10 + $0x1a4] ss:$16 sps:$4 sm:$0xff]  }
  0x86   : > { %1349 = vmatpush2.bf16.msra.mxu0 %v13167_v27  ;;  %v13227_v27 = vld [vmem:[%s21042_s10 + $0xc0] ss:$16 sps:$4 sm:$0xff]  }
  0x87   : > { %1350 = vmatprep.subr.bf16.mxu0 %v13172_v28  ;;  %v13235_v28 = vld [vmem:[%s21042_s10 + $0xa4] ss:$16 sps:$4 sm:$0xff]  }
  0x88   : > { %1584 = vmatpush1.bf16.msra.mxu1 %v13194_v47  ;;  %v13281_v47 = vld [vmem:[%s21042_s10 + $0x1a0] ss:$16 sps:$4 sm:$0xff]  }
  0x89   : > { %1585 = vmatprep.subr.bf16.mxu1 %v13199_v48  ;;  %v13289_v48 = vld [vmem:[%s21042_s10 + $0x184] ss:$16 sps:$4 sm:$0xff]  }
  0x8a   : > { %1351 = vmatpush2.bf16.msra.mxu0 %v13170_v29  ;;  %v13233_v29 = vld [vmem:[%s21042_s10 + $0xa0] ss:$16 sps:$4 sm:$0xff]  }
  0x8b   : > { %2020 = vmatprep.subr.bf16.mxu0 %v13223_v23  ;;  %v13280_v23 = vld [vmem:[%s21042_s10 + $0x1cc] ss:$16 sps:$4 sm:$0xff]  }
  0x8c   : > { %1586 = vmatpush2.bf16.msra.mxu1 %v13197_v49  ;;  %v13287_v49 = vld [vmem:[%s21042_s10 + $0x180] ss:$16 sps:$4 sm:$0xff]  }
  0x8d   : > { %1587 = vmatprep.subr.bf16.mxu1 %v13202_v50  ;;  %v13295_v50 = vld [vmem:[%s21042_s10 + $0x164] ss:$16 sps:$4 sm:$0xff]  }
  0x90   : > { %1588 = vmatpush2.bf16.msra.mxu1 %v13200_v51  ;;  %v13293_v51 = vld [vmem:[%s21042_s10 + $0x160] ss:$16 sps:$4 sm:$0xff]  }
  0x91   : > { %1589 = vmatprep.subr.bf16.mxu1 %v13205_v52  ;;  %v13301_v52 = vld [vmem:[%s21042_s10 + $0x144] ss:$16 sps:$4 sm:$0xff]  }
  0x94   : > { %1590 = vmatpush2.bf16.msra.mxu1 %v13203_v53  ;;  %v13299_v53 = vld [vmem:[%s21042_s10 + $0x140] ss:$16 sps:$4 sm:$0xff]  }
  0x95   : > { %1591 = vmatprep.subr.bf16.mxu1 %v13208_v54  ;;  %v1148_v54 = vld [vmem:[%s21039_s7] sm:$0x3] }
  0x98   : > { %1592 = vmatpush2.bf16.msra.mxu1 %v13206_v55  ;;  %v1313_v55 = vrot.slane %v1148_v54, %v14141_v0 }
  0x99   : > { %1593 = vmatprep.subr.bf16.mxu1 %v13211_v56  ;;  %v1317_v56 = vrot.slane %v1148_v54, %v14147_v3 }
  0x9c   : > { %1594 = vmatpush2.bf16.msra.mxu1 %v13209_v57 }
  0x9d   : > { %1595 = vmatprep.subr.bf16.mxu1 %v13214_v58 }
  0xa0   : > { %1596 = vmatpush2.bf16.msra.mxu1 %v13212_v59 }
  0xa1   : > { %1597 = vmatprep.subr.bf16.mxu1 %v13217_v18  ;;  %v13260_v18 = vld [vmem:[%s21042_s10 + $0x28] ss:$16 sps:$4 sm:$0xff]  }
  0xa4   : > { %1598 = vmatpush2.bf16.msra.mxu1 %v13215_v19  ;;  %v13268_v19 = vld [vmem:[%s21042_s10 + $0xc] ss:$16 sps:$4 sm:$0xff]  }
  0xa5   : > { %1599 = vmatprep.subr.bf16.mxu1 %v13220_v20  ;;  %v13266_v20 = vld [vmem:[%s21042_s10 + $0x8] ss:$16 sps:$4 sm:$0xff]  }
  0xa8   : > { %1600 = vmatpush2.bf16.msra.mxu1 %v13218_v21  ;;  %v13274_v21 = vld [vmem:[%s21042_s10 + $0x1ec] ss:$16 sps:$4 sm:$0xff]  }
  0xa9   : > { %2061 = vmatprep.subr.bf16.mxu1 %v13226_v24  ;;  %v13278_v24 = vld [vmem:[%s21042_s10 + $0x1c8] ss:$16 sps:$4 sm:$0xff]  }
 0x10d   : > { %v865_v60 = vpop.f32.mrf.mxu0 }
 0x10f   : > { %v867_v61 = vpop.f32.mrf.mxu0 }
 0x111   : > { %v869_v62 = vpop.f32.mrf.mxu0 }
 0x113   : > { %v870_v63 = vpop.f32.mrf.mxu0 }
 0x12b   : > { %v1091_v5 = vpop.f32.mrf.mxu1 }
 0x12c   : > { %v1092_v6 = vadd.f32 %v1091_v5, %v865_v60  ;;  %v13224_v5 = vld [vmem:[%s21042_s10 + $0xe8] ss:$16 sps:$4 sm:$0xff]  }
 0x12d   : > { %v1093_v8 = vpop.f32.mrf.mxu1 }
 0x12e   : > { %v1110_v9 = vadd.f32 %v1103_v4, %v1092_v6  ;;  %v1094_v10 = vadd.f32 %v1093_v8, %v867_v61  ;;  %v13230_v8 = vld [vmem:[%s21042_s10 + $0xc8] ss:$16 sps:$4 sm:$0xff]  }
 0x12f   : > { %v1095_v11 = vpop.f32.mrf.mxu1 }
 0x130   : > { %v1111_v12 = vadd.f32 %v1107_v7, %v1094_v10  ;;  %v1112_v13 = vmax.f32 %v1110_v9, 0.0  ;;  %v13232_v7 = vld [vmem:[%s21042_s10 + $0xcc] ss:$16 sps:$4 sm:$0xff]   ;;  %v13236_v10 = vld [vmem:[%s21042_s10 + $0xa8] ss:$16 sps:$4 sm:$0xff]  }
 0x131   : > { %v1096_v14 = vpop.f32.mrf.mxu1  ;;  %v13238_v9 = vld [vmem:[%s21042_s10 + $0xac] ss:$16 sps:$4 sm:$0xff]  }
 0x132   : > { %v1113_v15 = vmax.f32 %v1111_v12, 0.0  ;;  %v1114_v17 = vpack.c.bf16 %v1112_v13, %v1112_v13  ;;  %v13244_v11 = vld [vmem:[%s21042_s10 + $0x8c] ss:$16 sps:$4 sm:$0xff]   ;;  %v13242_v12 = vld [vmem:[%s21042_s10 + $0x88] ss:$16 sps:$4 sm:$0xff]  }
 0x133   : > { %v13250_v13 = vld [vmem:[%s21042_s10 + $0x6c] ss:$16 sps:$4 sm:$0xff]   ;;  %v13248_v14 = vld [vmem:[%s21042_s10 + $0x68] ss:$16 sps:$4 sm:$0xff]  }
 0x134   : > { %v1115_v16 = vpack.c.bf16 %v1113_v15, %v1113_v15  ;;  %v13256_v15 = vld [vmem:[%s21042_s10 + $0x4c] ss:$16 sps:$4 sm:$0xff]  }
 0x136   : > { %1352 = vmatprep.mubr.bf16.mxu0 %v1115_v16  ;;  %v13254_v16 = vld [vmem:[%s21042_s10 + $0x48] ss:$16 sps:$4 sm:$0xff]  }
 0x137   : > { %1353 = vmatmul.mubr.bf16.vlgmr.msra.gmra.mxu0 %v1114_v17  ;;  %v13262_v17 = vld [vmem:[%s21042_s10 + $0x2c] ss:$16 sps:$4 sm:$0xff]  }
 0x138   : > { %2021 = vmatpush1.bf16.msra.mxu0 %v13221_v22  ;;  %v13272_v22 = vld [vmem:[%s21042_s10 + $0x1e8] ss:$16 sps:$4 sm:$0xff]  }
 0x139   : > { %2022 = vmatprep.subr.bf16.mxu0 %v13229_v25  ;;  %v13286_v25 = vld [vmem:[%s21042_s10 + $0x1ac] ss:$16 sps:$4 sm:$0xff]  }
 0x13c   : > { %2023 = vmatpush1.bf16.msra.mxu0 %v13227_v27  ;;  %v13284_v27 = vld [vmem:[%s21042_s10 + $0x1a8] ss:$16 sps:$4 sm:$0xff]  }
 0x13d   : > { %2024 = vmatprep.subr.bf16.mxu0 %v13235_v28  ;;  %v13292_v28 = vld [vmem:[%s21042_s10 + $0x18c] ss:$16 sps:$4 sm:$0xff]  }
 0x140   : > { %2025 = vmatpush1.bf16.msra.mxu0 %v13233_v29  ;;  %v13290_v29 = vld [vmem:[%s21042_s10 + $0x188] ss:$16 sps:$4 sm:$0xff]  }
 0x141   : > { %2026 = vmatprep.subr.bf16.mxu0 %v13241_v30  ;;  %v13298_v30 = vld [vmem:[%s21042_s10 + $0x16c] ss:$16 sps:$4 sm:$0xff]  }
 0x144   : > { %2027 = vmatpush1.bf16.msra.mxu0 %v13239_v31  ;;  %v13296_v31 = vld [vmem:[%s21042_s10 + $0x168] ss:$16 sps:$4 sm:$0xff]  }
 0x145   : > { %2028 = vmatprep.subr.bf16.mxu0 %v13247_v33  ;;  %v13304_v33 = vld [vmem:[%s21042_s10 + $0x14c] ss:$16 sps:$4 sm:$0xff]  }
 0x148   : > { %2029 = vmatpush1.bf16.msra.mxu0 %v13245_v34  ;;  %v13302_v34 = vld [vmem:[%s21042_s10 + $0x148] ss:$16 sps:$4 sm:$0xff]  }
 0x149   : > { %2030 = vmatprep.subr.bf16.mxu0 %v13253_v35  ;;  %v13307_v35 = vld [vmem:[%s21042_s10 + $0x124] ss:$16 sps:$4 sm:$0xff]  }
 0x14c   : > { %2031 = vmatpush1.bf16.msra.mxu0 %v13251_v36  ;;  %v13305_v36 = vld [vmem:[%s21042_s10 + $0x120] ss:$16 sps:$4 sm:$0xff]  }
 0x14d   : > { %2032 = vmatprep.subr.bf16.mxu0 %v13259_v38  ;;  %v13310_v38 = vld [vmem:[%s21042_s10 + $0x12c] ss:$16 sps:$4 sm:$0xff]  }
 0x150   : > { %2033 = vmatpush1.bf16.msra.mxu0 %v13257_v39  ;;  %v13308_v39 = vld [vmem:[%s21042_s10 + $0x128] ss:$16 sps:$4 sm:$0xff]  }
 0x151   : > { %2034 = vmatprep.subr.bf16.mxu0 %v13265_v40  ;;  %v13313_v40 = vld [vmem:[%s21042_s10 + $0x104] ss:$16 sps:$4 sm:$0xff]  }
 0x154   : > { %2035 = vmatpush1.bf16.msra.mxu0 %v13263_v41  ;;  %v13311_v41 = vld [vmem:[%s21042_s10 + $0x100] ss:$16 sps:$4 sm:$0xff]  }
 0x155   : > { %2036 = vmatprep.subr.bf16.mxu0 %v13271_v42  ;;  %v13316_v42 = vld [vmem:[%s21042_s10 + $0x10c] ss:$16 sps:$4 sm:$0xff]  }
 0x158   : > { %2037 = vmatpush2.bf16.msra.mxu0 %v13269_v43  ;;  %v13314_v43 = vld [vmem:[%s21042_s10 + $0x108] ss:$16 sps:$4 sm:$0xff]  }
 0x159   : > { %2038 = vmatprep.subr.bf16.mxu0 %v13277_v44  ;;  %v13317_v44 = vld [vmem:[%s21044_s12 + $0x38] sm:$0xff]  }
 0x15c   : > { %2039 = vmatpush2.bf16.msra.mxu0 %v13275_v45  ;;  %v1397_v45 = vld [vmem:[%s21041_s9] sm:$0x3] }
 0x15d   : > { %2040 = vmatprep.subr.bf16.mxu0 %v13283_v46  ;;  %v1562_v46 = vrot.slane %v1397_v45, %v14141_v0 }
 0x160   : > { %2041 = vmatpush2.bf16.msra.mxu0 %v13281_v47  ;;  %v1566_v47 = vrot.slane %v1397_v45, %v14147_v3  ;;  %v14472_v45 = vld [vmem:[%s21045_s13 + $0xb8] sm:$0xff]  }
 0x161   : > { %2042 = vmatprep.subr.bf16.mxu0 %v13289_v48 }
 0x164   : > { %2043 = vmatpush2.bf16.msra.mxu0 %v13287_v49 }
 0x165   : > { %2044 = vmatprep.subr.bf16.mxu0 %v13295_v50 }
 0x168   : > { %2045 = vmatpush2.bf16.msra.mxu0 %v13293_v51 }
 0x169   : > { %2046 = vmatprep.subr.bf16.mxu0 %v13301_v52 }
 0x16c   : > { %2047 = vmatpush2.bf16.msra.mxu0 %v13299_v53 }
 0x16d   : > { %2048 = vmatprep.subr.bf16.mxu0 %v13307_v35  ;;  %v13348_v35 = vld [vmem:[%s21045_s13 + $0x58] sm:$0xff]  }
 0x170   : > { %2049 = vmatpush2.bf16.msra.mxu0 %v13305_v36  ;;  %v13349_v36 = vld [vmem:[%s21045_s13 + $0x20] sm:$0xff]  }
 0x171   : > { %2050 = vmatprep.subr.bf16.mxu0 %v13313_v40  ;;  %v13352_v40 = vld [vmem:[%s21045_s13 + $0x48] sm:$0xff]  }
 0x174   : > { %2051 = vmatpush2.bf16.msra.mxu0 %v13311_v41  ;;  %v13353_v41 = vld [vmem:[%s21045_s13 + $0x10] sm:$0xff]  }
 0x175   : > { %12119 = vmatprep.subr.bf16.mxu0 %v13317_v44 }
 0x1f7   : > { %v1354_v57 = vpop.f32.mrf.mxu0 }
 0x1f8   : > { %v1355_v58 = vadd.f32 %v1354_v57, %v1313_v55  ;;  %v13325_v57 = vld [vmem:[%s14030_s22] sm:$0xff]  }
 0x1f9   : > { %v1356_v59 = vpop.f32.mrf.mxu0 }
 0x1fa   : > { %v1357_v60 = vadd.f32 %v1356_v59, %v1317_v56  ;;  %v1361_v61 = vmax.f32 %v1355_v58, 0.0  ;;  %v13318_v59 = vld [vmem:[%s21044_s12 + $0x30] sm:$0xff]  }
 0x1fb   : > { %v1358_v62 = vpop.f32.mrf.mxu0 }
 0x1fc   : > { %v1362_v63 = vmax.f32 %v1357_v60, 0.0  ;;  %v1363_v6 = vpack.c.bf16 %v1361_v61, %v1361_v61  ;;  %v13319_v60 = vld [vmem:[%s21044_s12 + $0x28] sm:$0xff]   ;;  %v13320_v61 = vld [vmem:[%s21044_s12 + $0x20] sm:$0xff]   ;;  %v13321_v62 = vld [vmem:[%s21044_s12 + $0x18] sm:$0xff]  }
 0x1fd   : > { %v1359_v1 = vpop.f32.mrf.mxu0 }
 0x1fe   : > { %v1364_v4 = vpack.c.bf16 %v1362_v63, %v1362_v63  ;;  %v13322_v63 = vld [vmem:[%s21044_s12 + $0x10] sm:$0xff]   ;;  %v13323_v1 = vld [vmem:[%s21044_s12 + $0x8] sm:$0xff]  }
 0x200   : > { %1601 = vmatprep.mubr.bf16.mxu1 %v1364_v4  ;;  %v13324_v4 = vld [vmem:[%s21044_s12] sm:$0xff]  }
 0x201   : > { %1602 = vmatmul.mubr.bf16.vlgmr.msra.gmra.mxu1 %v1363_v6  ;;  %v13327_v6 = vld [vmem:[%s14030_s22 + $0x10] sm:$0xff]  }
 0x202   : > { %2062 = vmatpush1.bf16.msra.mxu1 %v13224_v5  ;;  %v13326_v5 = vld [vmem:[%s14030_s22 + $0x8] sm:$0xff]  }
 0x203   : > { %2063 = vmatprep.subr.bf16.mxu1 %v13232_v7  ;;  %v13328_v7 = vld [vmem:[%s14030_s22 + $0x18] sm:$0xff]  }
 0x206   : > { %2064 = vmatpush1.bf16.msra.mxu1 %v13230_v8  ;;  %v13329_v8 = vld [vmem:[%s14030_s22 + $0x20] sm:$0xff]  }
 0x207   : > { %2065 = vmatprep.subr.bf16.mxu1 %v13238_v9  ;;  %v13330_v9 = vld [vmem:[%s14030_s22 + $0x28] sm:$0xff]  }
 0x20a   : > { %2066 = vmatpush1.bf16.msra.mxu1 %v13236_v10  ;;  %v13331_v10 = vld [vmem:[%s14030_s22 + $0x30] sm:$0xff]  }
 0x20b   : > { %2067 = vmatprep.subr.bf16.mxu1 %v13244_v11  ;;  %v13332_v11 = vld [vmem:[%s14030_s22 + $0x38] sm:$0xff]  }
 0x20e   : > { %2068 = vmatpush1.bf16.msra.mxu1 %v13242_v12  ;;  %v13333_v12 = vld [vmem:[%s14030_s22 + $0x40] sm:$0xff]  }
 0x20f   : > { %2069 = vmatprep.subr.bf16.mxu1 %v13250_v13  ;;  %v13334_v13 = vld [vmem:[%s14030_s22 + $0x48] sm:$0xff]  }
 0x212   : > { %2070 = vmatpush1.bf16.msra.mxu1 %v13248_v14  ;;  %v13335_v14 = vld [vmem:[%s14030_s22 + $0x50] sm:$0xff]  }
 0x213   : > { %2071 = vmatprep.subr.bf16.mxu1 %v13256_v15  ;;  %v13336_v15 = vld [vmem:[%s14030_s22 + $0x58] sm:$0xff]  }
 0x216   : > { %2072 = vmatpush1.bf16.msra.mxu1 %v13254_v16  ;;  %v13337_v16 = vld [vmem:[%s14030_s22 + $0x60] sm:$0xff]  }
 0x217   : > { %2073 = vmatprep.subr.bf16.mxu1 %v13262_v17  ;;  %v13338_v17 = vld [vmem:[%s14030_s22 + $0x68] sm:$0xff]  }
 0x21a   : > { %2074 = vmatpush1.bf16.msra.mxu1 %v13260_v18  ;;  %v13339_v18 = vld [vmem:[%s14030_s22 + $0x70] sm:$0xff]  }
 0x21b   : > { %2075 = vmatprep.subr.bf16.mxu1 %v13268_v19  ;;  %v13340_v19 = vld [vmem:[%s14030_s22 + $0x78] sm:$0xff]   ;;  %s699_s22 = scalar_lea.vmem %s21053_s21, %s23555_s24 }
 0x21e   : > { %2076 = vmatpush1.bf16.msra.mxu1 %v13266_v20  ;;  %v2565_v20 = vadd.s32 16, %v13870_v32 }
 0x21f   : > { %2077 = vmatprep.subr.bf16.mxu1 %v13274_v21 }
 0x220   : > { %v2629_v21 = vand.u32 255, %v2565_v20 }
 0x222   : > { %2078 = vmatpush2.bf16.msra.mxu1 %v13272_v22  ;;  %v2597_v22 = vand.u32 15, %v2565_v20 }
 0x223   : > { %2079 = vmatprep.subr.bf16.mxu1 %v13280_v23  ;;  %v14406_v23 = vshra.s32 %v2629_v21, 4 }
 0x224   : > { %vm14409_vm1 = vcmp.ge.s32.totalorder %v2597_v22, 1 }
 0x225   : > { %vm2725_vm0 = vcmp.le.s32.totalorder %v14406_v23, 14  ;;  %vm21092_vm6 = vcmp.ge.s32.totalorder %v14406_v23, 1 }
 0x226   : > { %2080 = vmatpush2.bf16.msra.mxu1 %v13278_v24  ;;  %v21812_v24 = vmov 0  ;;  %vm14417_vm2 = vmand %vm2725_vm0, %vm14409_vm1 }
 0x227   : > { %2081 = vmatprep.subr.bf16.mxu1 %v13286_v25  ;;  %v21813_v24 = vsel %vm14409_vm1, 4294967295, %v21812_v24  ;;  %v21815_v25 = vmov 0 }
 0x228   : > { %21814 = vst [vmem:[#allocation10_spill] sm:$0xff] %v21813_v24  ;;  %v21816_v25 = vsel %vm14417_vm2, 4294967295, %v21815_v25  ;;  %v2585_v24 = vadd.s32 176, %v13870_v32 }
 0x229   : > { %21817 = vst [vmem:[#allocation11_spill] sm:$0xff] %v21816_v25 }
 0x22a   : > { %2082 = vmatpush2.bf16.msra.mxu1 %v13284_v27  ;;  %v13341_v27 = vld [vmem:[%s21045_s13 + $0x78] sm:$0xff]  }
 0x22b   : > { %2083 = vmatprep.subr.bf16.mxu1 %v13292_v28  ;;  %v13342_v28 = vld [vmem:[%s21045_s13 + $0x70] sm:$0xff]  }
 0x22e   : > { %2084 = vmatpush2.bf16.msra.mxu1 %v13290_v29  ;;  %v13343_v29 = vld [vmem:[%s21045_s13 + $0x38] sm:$0xff]  }
 0x22f   : > { %2085 = vmatprep.subr.bf16.mxu1 %v13298_v30  ;;  %v13344_v30 = vld [vmem:[%s21045_s13 + $0x68] sm:$0xff]  }
 0x232   : > { %2086 = vmatpush2.bf16.msra.mxu1 %v13296_v31  ;;  %v13345_v31 = vld [vmem:[%s21045_s13 + $0x30] sm:$0xff]  }
 0x233   : > { %2087 = vmatprep.subr.bf16.mxu1 %v13304_v33  ;;  %v13346_v33 = vld [vmem:[%s21045_s13 + $0x60] sm:$0xff]  }
 0x236   : > { %2088 = vmatpush2.bf16.msra.mxu1 %v13302_v34  ;;  %v13347_v34 = vld [vmem:[%s21045_s13 + $0x28] sm:$0xff]  }
 0x237   : > { %2089 = vmatprep.subr.bf16.mxu1 %v13310_v38  ;;  %v13350_v38 = vld [vmem:[%s21045_s13 + $0x50] sm:$0xff]  }
 0x23a   : > { %2090 = vmatpush2.bf16.msra.mxu1 %v13308_v39  ;;  %v13351_v39 = vld [vmem:[%s21045_s13 + $0x18] sm:$0xff]  }
 0x23b   : > { %2091 = vmatprep.subr.bf16.mxu1 %v13316_v42  ;;  %v13354_v42 = vld [vmem:[%s21045_s13 + $0x40] sm:$0xff]  }
 0x23e   : > { %2092 = vmatpush2.bf16.msra.mxu1 %v13314_v43  ;;  %v13355_v43 = vld [vmem:[%s21045_s13 + $0x8] sm:$0xff]  }
 0x23f   : > { %12167 = vmatprep.subr.bf16.mxu1 %v13341_v27 }
 0x2c1   : > { %v1603_v48 = vpop.f32.mrf.mxu1 }
 0x2c2   : > { %v1604_v49 = vadd.f32 %v1603_v48, %v1562_v46  ;;  %v21060_v46 = vsub.s32 2, %v13870_v32  ;;  %v21059_v48 = vsub.s32 3, %v13870_v32 }
 0x2c3   : > { %v1605_v50 = vpop.f32.mrf.mxu1 }
 0x2c4   : > { %v1606_v51 = vadd.f32 %v1605_v50, %v1566_v47  ;;  %v1610_v52 = vmax.f32 %v1604_v49, 0.0  ;;  %v1678_v47 = vld [vmem:[%s21043_s11] sm:$0xf] }
 0x2c5   : > { %v1607_v53 = vpop.f32.mrf.mxu1  ;;  %v2011_v49 = vrot.slane %v1678_v47, %v21060_v46  ;;  %v2015_v50 = vrot.slane %v1678_v47, %v21059_v48 }
 0x2c6   : > { %v1611_v54 = vmax.f32 %v1606_v51, 0.0  ;;  %v1612_v58 = vpack.c.bf16 %v1610_v52, %v1610_v52 }
 0x2c7   : > { %v1608_v55 = vpop.f32.mrf.mxu1 }
 0x2c8   : > { %v1613_v56 = vpack.c.bf16 %v1611_v54, %v1611_v54 }
 0x2ca   : > { %2052 = vmatprep.mubr.bf16.mxu0 %v1613_v56  ;;  %2093 = vmatprep.mubr.bf16.mxu1 %v1613_v56 }
 0x2cb   : > { %2053 = vmatmul.mubr.bf16.vlgmr.msra.gmra.mxu0 %v1612_v58  ;;  %2094 = vmatmul.mubr.bf16.vlgmr.msra.gmra.mxu1 %v1612_v58 }
 0x2cc   : > { %12120 = vmatpush3.bf16.msra.mxu0 %v13317_v44  ;;  %12135 = vmatprep.mubr.bf16.mxu0 %v13325_v57  ;;  %v13357_v44 = vld [vmem:[%s21045_s13] sm:$0xff]  }
 0x2cd   : > { %12121 = vmatprep.subr.bf16.mxu0 %v13318_v59  ;;  %12168 = vmatpush3.bf16.msra.mxu1 %v13341_v27  ;;  %v14544_v27 = vadd.s32 56, %v13870_v32 }
 0x2ce   : > { %12169 = vmatprep.subr.bf16.mxu1 %v13342_v28 }
 0x2cf   : > { %21834 = vst [vmem:[#allocation24_spill] sm:$0xff] %v14544_v27 }
 0x2d0   : > { %12122 = vmatpush3.bf16.msra.mxu0 %v13318_v59 }
 0x2d1   : > { %12123 = vmatprep.subr.bf16.mxu0 %v13319_v60  ;;  %12170 = vmatpush3.bf16.msra.mxu1 %v13342_v28  ;;  %v14547_v28 = vadd.s32 72, %v13870_v32 }
 0x2d2   : > { %12171 = vmatprep.subr.bf16.mxu1 %v13344_v30 }
 0x2d3   : > { %21835 = vst [vmem:[#allocation25_spill] sm:$0xff] %v14547_v28  ;;  %v2636_v47 = vand.u32 255, %v14547_v28 }
 0x2d4   : > { %12124 = vmatpush3.bf16.msra.mxu0 %v13319_v60 }
 0x2d5   : > { %12125 = vmatprep.subr.bf16.mxu0 %v13320_v61  ;;  %12172 = vmatpush3.bf16.msra.mxu1 %v13344_v30  ;;  %v21836_v30 = vmov 0 }
 0x2d6   : > { %12173 = vmatprep.subr.bf16.mxu1 %v13346_v33 }
 0x2d8   : > { %12126 = vmatpush3.bf16.msra.mxu0 %v13320_v61  ;;  %v14495_v61 = vld [vmem:[%s21045_s13 + $0xf8] sm:$0xff]  }
 0x2d9   : > { %12127 = vmatprep.subr.bf16.mxu0 %v13321_v62  ;;  %12174 = vmatpush3.bf16.msra.mxu1 %v13346_v33  ;;  %v14558_v33 = vstv %s2496_s27 }
 0x2da   : > { %12175 = vmatprep.subr.bf16.mxu1 %v13348_v35 }
 0x2dc   : > { %12128 = vmatpush3.bf16.msra.mxu0 %v13321_v62  ;;  %v2627_v62 = vand.u32 255, %v13870_v32 }
 0x2dd   : > { %12129 = vmatprep.subr.bf16.mxu0 %v13322_v63  ;;  %12176 = vmatpush3.bf16.msra.mxu1 %v13348_v35 }
 0x2de   : > { %12177 = vmatprep.subr.bf16.mxu1 %v13350_v38 }
 0x2e0   : > { %12130 = vmatpush3.bf16.msra.mxu0 %v13322_v63  ;;  %v2595_v63 = vand.u32 15, %v13870_v32 }
 0x2e1   : > { %12131 = vmatprep.subr.bf16.mxu0 %v13323_v1  ;;  %12178 = vmatpush3.bf16.msra.mxu1 %v13350_v38  ;;  %v21063_v38 = vmov 0.0  }
 0x2e2   : > { %12179 = vmatprep.subr.bf16.mxu1 %v13352_v40  ;;  %vm14502_vm3 = vcmp.ge.s32.totalorder %v2595_v63, 1  ;;  %v14616_v63 = vsel %vm2725_vm0, 1.0, %v21063_v38 }
 0x2e3   : > { %21848 = vst [vmem:[#allocation36_spill] sm:$0xff] %v14616_v63 }
 0x2e4   : > { %12132 = vmatpush3.bf16.msra.mxu0 %v13323_v1  ;;  %v14500_v1 = vshra.s32 %v2627_v62, 4 }
 0x2e5   : > { %12133 = vmatprep.subr.bf16.mxu0 %v13324_v4  ;;  %12180 = vmatpush3.bf16.msra.mxu1 %v13352_v40 }
 0x2e6   : > { %12181 = vmatprep.subr.bf16.mxu1 %v13354_v42  ;;  %21822 = vst [vmem:[#allocation16_spill] sm:$0xff] %v14500_v1  ;;  %vm21069_vm4 = vcmp.le.s32.totalorder %v14500_v1, 14 }
 0x2e7   : > { %vm14518_vm5 = vmand %vm21069_vm4, %vm14502_vm3 }
 0x2e8   : > { %12134 = vmatpush3.bf16.msra.mxu0 %v13324_v4  ;;  %v21823_v4 = vmov 0 }
 0x2e9   : > { %12215 = vmatprep.subr.bf16.mxu0 %v13343_v29  ;;  %12182 = vmatpush3.bf16.msra.mxu1 %v13354_v42  ;;  %v21824_v4 = vsel %vm14502_vm3, 4294967295, %v21823_v4 }
 0x2ea   : > { %12263 = vmatprep.subr.bf16.mxu1 %v14472_v45  ;;  %21825 = vst [vmem:[#allocation17_spill] sm:$0xff] %v21824_v4  ;;  %v2617_v4 = vand.u32 15, %v2585_v24 }
 0x2eb   : > { %12136 = vmatmul.mubr.bf16.vlgmr.msra.gmra.mxu0 %v13326_v5  ;;  %v2567_v5 = vadd.s32 32, %v13870_v32 }
 0x2ec   : > { %12139 = vmatprep.mubr.bf16.mxu0 %v13327_v6  ;;  %12216 = vmatpush3.bf16.msra.mxu0 %v13343_v29  ;;  %v14508_v6 = vadd.s32 40, %v13870_v32 }
 0x2ed   : > { %12217 = vmatprep.subr.bf16.mxu0 %v13345_v31 }
 0x2ee   : > { %21826 = vst [vmem:[#allocation18_spill] sm:$0xff] %v14508_v6 }
 0x2f0   : > { %12218 = vmatpush3.bf16.msra.mxu0 %v13345_v31 }
 0x2f1   : > { %12219 = vmatprep.subr.bf16.mxu0 %v13347_v34 }
 0x2f3   : > { %12140 = vmatmul.mubr.bf16.gmra.mxu0 %v13328_v7  ;;  %v14512_v7 = vadd.s32 24, %v13870_v32 }
 0x2f4   : > { %12143 = vmatprep.mubr.bf16.mxu0 %v13329_v8  ;;  %12220 = vmatpush3.bf16.msra.mxu0 %v13347_v34  ;;  %v21827_v8 = vmov 0  ;;  %v14562_v34 = vadd.s32 96, %v13870_v32 }
 0x2f5   : > { %12221 = vmatprep.subr.bf16.mxu0 %v13349_v36  ;;  %v21828_v8 = vsel %vm14518_vm5, 4294967295, %v21827_v8 }
 0x2f6   : > { %21829 = vst [vmem:[#allocation19_spill] sm:$0xff] %v21828_v8  ;;  %v21871_v8 = vmov 0 }
 0x2f8   : > { %12222 = vmatpush3.bf16.msra.mxu0 %v13349_v36 }
 0x2f9   : > { %12223 = vmatprep.subr.bf16.mxu0 %v13351_v39 }
 0x2fb   : > { %12144 = vmatmul.mubr.bf16.gmra.mxu0 %v13330_v9  ;;  %v2631_v9 = vand.u32 255, %v2567_v5 }
 0x2fc   : > { %12147 = vmatprep.mubr.bf16.mxu0 %v13331_v10  ;;  %12224 = vmatpush3.bf16.msra.mxu0 %v13351_v39  ;;  %v2632_v10 = vand.u32 255, %v14508_v6  ;;  %v14571_v39 = vsel %vm21092_vm6, 1.0, %v21063_v38 }
 0x2fd   : > { %12225 = vmatprep.subr.bf16.mxu0 %v13353_v41  ;;  %21841 = vst [vmem:[#allocation29_spill] sm:$0xff] %v14571_v39 }
 0x300   : > { %12226 = vmatpush3.bf16.msra.mxu0 %v13353_v41 }
 0x301   : > { %12227 = vmatprep.subr.bf16.mxu0 %v13355_v43 }
 0x303   : > { %12148 = vmatmul.mubr.bf16.gmra.mxu0 %v13332_v11  ;;  %v14524_v11 = vadd.s32 64, %v13870_v32 }
 0x304   : > { %12151 = vmatprep.mubr.bf16.mxu0 %v13333_v12  ;;  %12228 = vmatpush3.bf16.msra.mxu0 %v13355_v43  ;;  %v2630_v12 = vand.u32 255, %v14512_v7 }
 0x305   : > { %12229 = vmatprep.subr.bf16.mxu0 %v13357_v44 }
 0x308   : > { %12230 = vmatpush3.bf16.msra.mxu0 %v13357_v44  ;;  %v2634_v44 = vand.u32 255, %v14544_v27  ;;  %v21899_v27 = vmov 0 }
 0x309   : > { %12311 = vmatprep.subr.bf16.mxu0 %v14495_v61 }
 0x30b   : > { %12152 = vmatmul.mubr.bf16.gmra.mxu0 %v13334_v13  ;;  %v14528_v13 = vadd.s32 8, %v13870_v32 }
 0x30c   : > { %12155 = vmatprep.mubr.bf16.mxu0 %v13335_v14  ;;  %v2569_v14 = vadd.s32 48, %v13870_v32 }
 0x30d   : > { %21830 = vst [vmem:[#allocation20_spill] sm:$0xff] %v14528_v13  ;;  %v2628_v21 = vand.u32 255, %v14528_v13  ;;  %v2587_v13 = vadd.s32 192, %v13870_v32 }
 0x30e   : > { %v2633_v22 = vand.u32 255, %v2569_v14 }
 0x30f   : > { %v14566_v36 = vshra.s32 %v2628_v21, 4  ;;  %v21854_v21 = vmov 0 }
 0x310   : > { %v14578_v41 = vshra.s32 %v2633_v22, 4 }
 0x311   : > { %21840 = vst [vmem:[#allocation28_spill] sm:$0xff] %v14566_v36 }
 0x312   : > { %21843 = vst [vmem:[#allocation31_spill] sm:$0xff] %v14578_v41  ;;  %vm2697_vm13 = vcmp.ge.s32.totalorder %v14578_v41, 1 }
 0x313   : > { %12156 = vmatmul.mubr.bf16.gmra.mxu0 %v13336_v15  ;;  %v14531_v15 = vshra.s32 %v2631_v9, 4  ;;  %v2603_v9 = vand.u32 15, %v14524_v11 }
 0x314   : > { %12159 = vmatprep.mubr.bf16.mxu0 %v13337_v16  ;;  %v14533_v16 = vshra.s32 %v2632_v10, 4  ;;  %v14623_v10 = vshra.s32 %v2634_v44, 4  ;;  %v14645_v44 = vadd.s32 248, %v13870_v32 }
 0x315   : > { %21831 = vst [vmem:[#allocation21_spill] sm:$0xff] %v14531_v15  ;;  %vm2695_vm7 = vcmp.ge.s32.totalorder %v14531_v15, 1  ;;  %vm14654_vm15 = vcmp.ge.s32.totalorder %v2603_v9, 1 }
 0x316   : > { %21832 = vst [vmem:[#allocation22_spill] sm:$0xff] %v14533_v16  ;;  %vm21072_vm8 = vcmp.ge.s32.totalorder %v14533_v16, 1  ;;  %v14576_v40 = vsel %vm2695_vm7, 1.0, %v21063_v38  ;;  %21850 = vst [vmem:[#allocation38_spill] sm:$0xff] %v14623_v10 }
 0x317   : > { %21842 = vst [vmem:[#allocation30_spill] sm:$0xff] %v14576_v40  ;;  %v14584_v43 = vsel %vm21072_vm8, 1.0, %v21063_v38  ;;  %21857 = vst [vmem:[#allocation43_spill] sm:$0xff] %v14645_v44 }
 0x318   : > { %21844 = vst [vmem:[#allocation32_spill] sm:$0xff] %v14584_v43 }
 0x31b   : > { %12160 = vmatmul.mubr.bf16.gmra.mxu0 %v13338_v17  ;;  %v2599_v17 = vand.u32 15, %v2567_v5 }
 0x31c   : > { %12163 = vmatprep.mubr.bf16.mxu0 %v13339_v18  ;;  %v2635_v18 = vand.u32 255, %v14524_v11  ;;  %v14642_v11 = vadd.s32 112, %v13870_v32 }
 0x31d   : > { %vm14552_vm9 = vcmp.ge.s32.totalorder %v2599_v17, 1  ;;  %v14633_v17 = vadd.s32 240, %v13870_v32 }
 0x31e   : > { %v21837_v30 = vsel %vm14552_vm9, 4294967295, %v21836_v30  ;;  %v14556_v31 = vshra.s32 %v2635_v18, 4  ;;  %vm2823_vm11 = vmand %vm2695_vm7, %vm14552_vm9  ;;  %vm21088_vm7 = vcmp.ge.s32.totalorder %v14623_v10, 1  ;;  %v2641_v0 = vand.u32 255, %v14642_v11 }
 0x31f   : > { %21838 = vst [vmem:[#allocation26_spill] sm:$0xff] %v21837_v30  ;;  %v14619_v5 = vsel %vm2823_vm11, 1.0, %v21063_v38  ;;  %21853 = vst [vmem:[#allocation41_spill] sm:$0xff] %v14633_v17  ;;  %v2657_v9 = vand.u32 255, %v14633_v17 }
 0x320   : > { %21839 = vst [vmem:[#allocation27_spill] sm:$0xff] %v14556_v31  ;;  %vm2699_vm12 = vcmp.ge.s32.totalorder %v14556_v31, 1  ;;  %21849 = vst [vmem:[#allocation37_spill] sm:$0xff] %v14619_v5 }
 0x321   : > { %vm2827_vm4 = vmand %vm2699_vm12, %vm14654_vm15 }
 0x323   : > { %12164 = vmatmul.mubr.bf16.gmra.mxu0 %v13340_v19  ;;  %v14536_v19 = vshra.s32 %v2630_v12, 4  ;;  %v14625_v12 = vshra.s32 %v2636_v47, 4 }
 0x325   : > { %21833 = vst [vmem:[#allocation23_spill] sm:$0xff] %v14536_v19  ;;  %vm21089_vm10 = vcmp.ge.s32.totalorder %v14536_v19, 1  ;;  %21851 = vst [vmem:[#allocation39_spill] sm:$0xff] %v14625_v12  ;;  %vm21084_vm0 = vcmp.ge.s32.totalorder %v14625_v12, 1  ;;  %v14761_v12 = vadd.s32 160, %v13870_v32 }
 0x38b   : > { %v14484_v51 = vpop.f32.mrf.mxu0  ;;  %v2095_v52 = vpop.f32.mrf.mxu1 }
 0x38c   : > { %21818 = vst [vmem:[#allocation12_spill] sm:$0xff] %v14484_v51  ;;  %v14486_v53 = vadd.f32 %v2095_v52, %v2011_v49  ;;  %v2601_v52 = vand.u32 15, %v2569_v14  ;;  %v14630_v14 = vsel %vm2699_vm12, 1.0, %v21063_v38 }
 0x38d   : > { %v14488_v54 = vpop.f32.mrf.mxu0  ;;  %v2097_v55 = vpop.f32.mrf.mxu1  ;;  %21852 = vst [vmem:[#allocation40_spill] sm:$0xff] %v14630_v14 }
 0x38e   : > { %21819 = vst [vmem:[#allocation13_spill] sm:$0xff] %v14486_v53  ;;  %21820 = vst [vmem:[#allocation14_spill] sm:$0xff] %v14488_v54  ;;  %v14490_v56 = vadd.f32 %v2097_v55, %v2015_v50  ;;  %v14597_v50 = vsel %vm21089_vm10, 1.0, %v21063_v38  ;;  %v2573_v55 = vadd.s32 80, %v13870_v32  ;;  %vm14637_vm14 = vcmp.ge.s32.totalorder %v2601_v52, 1 }
 0x38f   : > { %v2058_v57 = vpop.f32.mrf.mxu0  ;;  %v2099_v58 = vpop.f32.mrf.mxu1  ;;  %21845 = vst [vmem:[#allocation33_spill] sm:$0xff] %v14597_v50  ;;  %v21855_v21 = vsel %vm14637_vm14, 4294967295, %v21854_v21  ;;  %v21859_v52 = vmov 0  ;;  %v14659_v38 = vadd.s32 120, %v13870_v32  ;;  %v2607_v53 = vand.u32 15, %v14562_v34  ;;  %vm2825_vm11 = vmand %vm2697_vm13, %vm14637_vm14 }
 0x390   : > { %21821 = vst [vmem:[#allocation15_spill] sm:$0xff] %v14490_v56  ;;  %v14602_v57 = vadd.s32 88, %v13870_v32  ;;  %v14605_v58 = vadd.s32 104, %v13870_v32  ;;  %21856 = vst [vmem:[#allocation42_spill] sm:$0xff] %v21855_v21  ;;  %v2637_v22 = vand.u32 255, %v2573_v55  ;;  %v21860_v52 = vsel %vm14654_vm15, 4294967295, %v21859_v52 }
 0x391   : > { %v2059_v59 = vpop.f32.mrf.mxu0  ;;  %v2100_v60 = vpop.f32.mrf.mxu1  ;;  %21861 = vst [vmem:[#allocation45_spill] sm:$0xff] %v21860_v52  ;;  %v2605_v42 = vand.u32 15, %v2573_v55  ;;  %21862 = vst [vmem:[#allocation46_spill] sm:$0xff] %v14659_v38  ;;  %v21864_v56 = vmov 0.0   ;;  %v2658_v54 = vand.u32 255, %v14645_v44  ;;  %vm14715_vm12 = vcmp.ge.s32.totalorder %v2607_v53, 1 }
 0x392   : > { %21846 = vst [vmem:[#allocation34_spill] sm:$0xff] %v14602_v57  ;;  %21847 = vst [vmem:[#allocation35_spill] sm:$0xff] %v14605_v58  ;;  %v2639_v59 = vand.u32 255, %v14562_v34  ;;  %v14609_v60 = vadd.s32 128, %v13870_v32  ;;  %v2638_v47 = vand.u32 255, %v14602_v57  ;;  %v2640_v26 = vand.u32 255, %v14605_v58 }
 0x393   : > { %v14679_v55 = vshra.s32 %v2637_v22, 4  ;;  %v14699_v22 = vsel %vm21084_vm0, 1.0, %v21864_v56  ;;  %v14713_v31 = vsel %vm2825_vm11, 1.0, %v21864_v56  ;;  %v21876_v44 = vmov 0 }
 0x394   : > { %v14649_v48 = vshra.s32 %v2639_v59, 4  ;;  %v2643_v46 = vand.u32 255, %v14609_v60  ;;  %v14667_v59 = vsel %vm2697_vm13, 1.0, %v21864_v56  ;;  %v14687_v34 = vshra.s32 %v2638_v47, 4  ;;  %21870 = vst [vmem:[#allocation53_spill] sm:$0xff] %v14699_v22  ;;  %21875 = vst [vmem:[#allocation56_spill] sm:$0xff] %v14713_v31 }
 0x395   : > { %21865 = vst [vmem:[#allocation48_spill] sm:$0xff] %v14667_v59  ;;  %21866 = vst [vmem:[#allocation49_spill] sm:$0xff] %v14679_v55  ;;  %v14689_v3 = vshra.s32 %v2640_v26, 4  ;;  %vm14701_vm13 = vcmp.ge.s32.totalorder %v2605_v42, 1  ;;  %v2642_v47 = vand.u32 255, %v14659_v38  ;;  %v2644_v26 = vand.u32 255, %v14662_v37 }
 0x396   : > { %21858 = vst [vmem:[#allocation44_spill] sm:$0xff] %v14649_v48  ;;  %21867 = vst [vmem:[#allocation50_spill] sm:$0xff] %v14687_v34  ;;  %vm2703_vm8 = vcmp.ge.s32.totalorder %v14649_v48, 1  ;;  %v14692_v15 = vshra.s32 %v2643_v46, 4  ;;  %v21872_v8 = vsel %vm14701_vm13, 4294967295, %v21871_v8  ;;  %v14710_v46 = vsel %vm21088_vm7, 1.0, %v21864_v56 }
 0x397   : > { %21868 = vst [vmem:[#allocation51_spill] sm:$0xff] %v14689_v3  ;;  %21873 = vst [vmem:[#allocation54_spill] sm:$0xff] %v21872_v8  ;;  %v21877_v44 = vsel %vm14715_vm12, 4294967295, %v21876_v44  ;;  %v14719_v42 = vshra.s32 %v2657_v9, 4  ;;  %v14724_v38 = vsel %vm2827_vm4, 1.0, %v21864_v56  ;;  %vm2701_vm0 = vcmp.ge.s32.totalorder %v14679_v55, 1 }
 0x398   : > { %21869 = vst [vmem:[#allocation52_spill] sm:$0xff] %v14692_v15  ;;  %21874 = vst [vmem:[#allocation55_spill] sm:$0xff] %v14710_v46  ;;  %v14730_v37 = vsel %vm2703_vm8, 1.0, %v21864_v56  ;;  %v14732_v21 = vshra.s32 %v2641_v0, 4  ;;  %vm21113_vm11 = vcmp.ge.s32.totalorder %v14687_v34, 1  ;;  %vm21112_vm7 = vcmp.ge.s32.totalorder %v14689_v3, 1 }
 0x399   : > { %21878 = vst [vmem:[#allocation57_spill] sm:$0xff] %v21877_v44  ;;  %21879 = vst [vmem:[#allocation58_spill] sm:$0xff] %v14719_v42  ;;  %vm21120_vm4 = vcmp.ge.s32.totalorder %v14692_v15, 1  ;;  %v14743_v9 = vshra.s32 %v2658_v54, 4  ;;  %v14755_v30 = vshra.s32 %v2642_v47, 4  ;;  %v14757_v8 = vshra.s32 %v2644_v26, 4 }
 0x39a   : > { %21880 = vst [vmem:[#allocation59_spill] sm:$0xff] %v14724_v38  ;;  %21881 = vst [vmem:[#allocation60_spill] sm:$0xff] %v14730_v37  ;;  %v2581_v58 = vadd.s32 144, %v13870_v32  ;;  %v14764_v54 = vsel %vm2701_vm0, 1.0, %v21864_v56  ;;  %v2609_v44 = vand.u32 15, %v14642_v11  ;;  %v14768_v48 = vadd.s32 168, %v13870_v32 }
 0x39b   : > { %21882 = vst [vmem:[#allocation61_spill] sm:$0xff] %v14732_v21  ;;  %vm14738_vm10 = vmand %vm2701_vm0, %vm14701_vm13  ;;  %v14776_v47 = vsel %vm21113_vm11, 1.0, %v21864_v56  ;;  %v14781_v26 = vsel %vm21112_vm7, 1.0, %v21864_v56  ;;  %v14785_v11 = vadd.s32 152, %v13870_v32  ;;  %vm2691_vm0 = vcmp.ge.s32.totalorder %v14500_v1, 1 }
 0x39c   : > { %21885 = vst [vmem:[#allocation62_spill] sm:$0xff] %v14743_v9  ;;  %vm14751_vm6 = vmand %vm2703_vm8, %vm14715_vm12  ;;  %vm2705_vm8 = vcmp.ge.s32.totalorder %v14732_v21, 1  ;;  %v14791_v57 = vsel %vm14738_vm10, 1.0, %v21864_v56  ;;  %v14801_v3 = vsel %vm21120_vm4, 1.0, %v21864_v56  ;;  %vm21127_vm7 = vcmp.ge.s32.totalorder %v14755_v30, 1 }
 0x39d   : > { %21888 = vst [vmem:[#allocation63_spill] sm:$0xff] %v14755_v30  ;;  %21889 = vst [vmem:[#allocation64_spill] sm:$0xff] %v14757_v8  ;;  %v14796_v34 = vsel %vm14751_vm6, 1.0, %v21864_v56  ;;  %vm21146_vm11 = vcmp.ge.s32.totalorder %v14757_v8, 1  ;;  %v2645_v28 = vand.u32 255, %v2581_v58  ;;  %v2647_v53 = vand.u32 255, %v14761_v12 }
 0x39e   : > { %21890 = vst [vmem:[#allocation65_spill] sm:$0xff] %v14764_v54  ;;  %21891 = vst [vmem:[#allocation66_spill] sm:$0xff] %v14768_v48  ;;  %v14812_v0 = vsel %vm2705_vm8, 1.0, %v21864_v56  ;;  %vm14814_vm6 = vcmp.ge.s32.totalorder %v2609_v44, 1  ;;  %v2648_v16 = vand.u32 255, %v14768_v48  ;;  %v14824_v9 = vsel %vm2691_vm0, 1.0, %v21864_v56 }
 0x39f   : > { %21892 = vst [vmem:[#allocation67_spill] sm:$0xff] %v14776_v47  ;;  %21893 = vst [vmem:[#allocation68_spill] sm:$0xff] %v14781_v26  ;;  %v21900_v27 = vsel %vm14814_vm6, 4294967295, %v21899_v27  ;;  %vm21903_vm4 = vcmp.ge.s32.totalorder %v14406_v23, 1  ;;  %v2611_v42 = vand.u32 15, %v14609_v60  ;;  %v2646_v44 = vand.u32 255, %v14785_v11 }
 0x3a0   : > { %21894 = vst [vmem:[#allocation69_spill] sm:$0xff] %v14785_v11  ;;  %21895 = vst [vmem:[#allocation70_spill] sm:$0xff] %v14791_v57  ;;  %v14836_v48 = vsel %vm21127_vm7, 1.0, %v21864_v56  ;;  %v14841_v63 = vsel %vm21146_vm11, 1.0, %v21864_v56  ;;  %v14845_v23 = vadd.s32 200, %v13870_v32  ;;  %v14858_v8 = vshra.s32 %v2645_v28, 4 }
 0x3a1   : > { %21896 = vst [vmem:[#allocation71_spill] sm:$0xff] %v14796_v34  ;;  %21897 = vst [vmem:[#allocation72_spill] sm:$0xff] %v14801_v3  ;;  %v14860_v30 = vshra.s32 %v2647_v53, 4  ;;  %v14863_v3 = vadd.s32 184, %v13870_v32  ;;  %v21915_v21 = vmov 0  ;;  %v14879_v28 = vshra.s32 %v2646_v44, 4 }
 0x3a2   : > { %21898 = vst [vmem:[#allocation73_spill] sm:$0xff] %v14812_v0  ;;  %21901 = vst [vmem:[#allocation74_spill] sm:$0xff] %v21900_v27  ;;  %v2615_v53 = vand.u32 15, %v14761_v12  ;;  %v2651_v57 = vand.u32 255, %v2587_v13  ;;  %v14887_v37 = vadd.s32 208, %v13870_v32  ;;  %v14903_v44 = vadd.s32 232, %v13870_v32 }
 0x3a3   : > { %21902 = vst [vmem:[#allocation75_spill] sm:$0xff] %v14824_v9  ;;  %vm2821_vm10 = vmand %vm21903_vm4, %vm14409_vm1  ;;  %vm21907_vm4 = vcmp.ge.s32.totalorder %v14566_v36, 1  ;;  %v2613_v36 = vand.u32 15, %v2581_v58  ;;  %v2652_v58 = vand.u32 255, %v14845_v23  ;;  %v2650_v12 = vand.u32 255, %v14863_v3 }
 0x3a4   : > { %21904 = vst [vmem:[#allocation76_spill] sm:$0xff] %v14836_v48  ;;  %21905 = vst [vmem:[#allocation77_spill] sm:$0xff] %v14841_v63  ;;  %v14852_v11 = vsel %vm21907_vm4, 1.0, %v21864_v56  ;;  %v14866_v0 = vsel %vm2821_vm10, 1.0, %v21864_v56  ;;  %v14868_v63 = vshra.s32 %v2648_v16, 4  ;;  %v14871_v48 = vadd.s32 224, %v13870_v32 }
 0x3a5   : > { %21906 = vst [vmem:[#allocation78_spill] sm:$0xff] %v14845_v23  ;;  %21908 = vst [vmem:[#allocation79_spill] sm:$0xff] %v14852_v11  ;;  %vm14875_vm4 = vcmp.ge.s32.totalorder %v2611_v42, 1  ;;  %v2649_v16 = vand.u32 255, %v2585_v24  ;;  %vm21923_vm11 = vcmp.ge.s32.totalorder %v14692_v15, 1  ;;  %v21926_v1 = vmov 0 }
 0x3a6   : > { %vm2833_vm7 = vmand %vm2705_vm8, %vm14814_vm6  ;;  %21909 = vst [vmem:[#allocation80_spill] sm:$0xff] %v14858_v8  ;;  %v21916_v21 = vsel %vm14875_vm4, 4294967295, %v21915_v21  ;;  %vm14914_vm6 = vcmp.ge.s32.totalorder %v2613_v36, 1  ;;  %vm14922_vm10 = vcmp.ge.s32.totalorder %v2615_v53, 1  ;;  %v14926_v15 = vshra.s32 %v2651_v57, 4 }
 0x3a7   : > { %21910 = vst [vmem:[#allocation81_spill] sm:$0xff] %v14860_v30  ;;  %21911 = vst [vmem:[#allocation82_spill] sm:$0xff] %v14863_v3  ;;  %v14883_v34 = vsel %vm2833_vm7, 1.0, %v21864_v56  ;;  %v21927_v1 = vsel %vm14914_vm6, 4294967295, %v21926_v1  ;;  %v2655_v3 = vand.u32 255, %v14871_v48  ;;  %v2619_v26 = vand.u32 15, %v2587_v13 }
 0x3a8   : > { %21912 = vst [vmem:[#allocation83_spill] sm:$0xff] %v14866_v0  ;;  %21913 = vst [vmem:[#allocation84_spill] sm:$0xff] %v14868_v63  ;;  %v14928_v47 = vshra.s32 %v2649_v16, 4  ;;  %v14930_v36 = vshra.s32 %v2652_v58, 4  ;;  %v14933_v31 = vadd.s32 216, %v13870_v32  ;;  %v2653_v24 = vand.u32 255, %v14887_v37 }
 0x3a9   : > { %21914 = vst [vmem:[#allocation85_spill] sm:$0xff] %v14871_v48  ;;  %21917 = vst [vmem:[#allocation86_spill] sm:$0xff] %v21916_v21  ;;  %v21929_v21 = vmov 0  ;;  %v14948_v57 = vshra.s32 %v2650_v12, 4  ;;  %v2656_v16 = vand.u32 255, %v14903_v44  ;;  %vm14969_vm7 = vcmp.ge.s32.totalorder %v2617_v4, 1 }
 0x3aa   : > { %21918 = vst [vmem:[#allocation87_spill] sm:$0xff] %v14879_v28  ;;  %21919 = vst [vmem:[#allocation88_spill] sm:$0xff] %v14883_v34  ;;  %v21930_v21 = vsel %vm14922_vm10, 4294967295, %v21929_v21  ;;  %v21946_v12 = vmov 0  ;;  %vm15001_vm12 = vcmp.ge.s32.totalorder %v2619_v26, 1  ;;  %vm2713_vm13 = vcmp.ge.s32.totalorder %v14928_v47, 1 }
 0x3ab   : > { %v14538_v20 = vpop.f32.mrf.mxu0  ;;  %vm14895_vm8 = vmand %vm2691_vm0, %vm14502_vm3  ;;  %21922 = vst [vmem:[#allocation89_spill] sm:$0xff] %v14903_v44  ;;  %vm21941_vm0 = vcmp.ge.s32.totalorder %v14860_v30, 1  ;;  %v21947_v12 = vsel %vm14969_vm7, 4294967295, %v21946_v12  ;;  %v14973_v44 = vshra.s32 %v2655_v3, 4 }
 0x3ac   : > { %vm14909_vm5 = vmand %vm21923_vm11, %vm14875_vm4  ;;  %21928 = vst [vmem:[#allocation90_spill] sm:$0xff] %v21927_v1  ;;  %v14941_v53 = vsel %vm14895_vm8, 1.0, %v21864_v56  ;;  %vm21939_vm11 = vcmp.ge.s32.totalorder %v14858_v8, 1  ;;  %v14959_v42 = vsel %vm21941_vm0, 1.0, %v21864_v56  ;;  %vm21950_vm0 = vcmp.ge.s32.totalorder %v14879_v28, 1 }
 0x3ad   : > { %v14549_v29 = vpop.f32.mrf.mxu0  ;;  %21931 = vst [vmem:[#allocation91_spill] sm:$0xff] %v21930_v21  ;;  %21932 = vst [vmem:[#allocation92_spill] sm:$0xff] %v14926_v15  ;;  %v14946_v13 = vsel %vm14909_vm5, 1.0, %v21864_v56  ;;  %v14954_v58 = vsel %vm21939_vm11, 1.0, %v21864_v56  ;;  %v14985_v8 = vsel %vm21950_vm0, 1.0, %v21864_v56  ;;  %vm2715_vm4 = vcmp.ge.s32.totalorder %v14926_v15, 1 }
 0x3ae   : > { %21933 = vst [vmem:[#allocation93_spill] sm:$0xff] %v14928_v47  ;;  %21934 = vst [vmem:[#allocation94_spill] sm:$0xff] %v14930_v36  ;;  %v21957_v1 = vmov 0  ;;  %v21961_v28 = vmov 0  ;;  %v15015_v21 = vshra.s32 %v2653_v24, 4  ;;  %v15064_v3 = vsel %vm2715_vm4, 1.0, %v21864_v56 }
 0x3af   : > { %v14564_v35 = vpop.f32.mrf.mxu0  ;;  %21935 = vst [vmem:[#allocation95_spill] sm:$0xff] %v14933_v31  ;;  %21936 = vst [vmem:[#allocation96_spill] sm:$0xff] %v14941_v53  ;;  %v21958_v1 = vsel %vm15001_vm12, 4294967295, %v21957_v1  ;;  %vm21972_vm0 = vcmp.ge.s32.totalorder %v14948_v57, 1 }
 0x3b0   : > { %21937 = vst [vmem:[#allocation97_spill] sm:$0xff] %v14946_v13  ;;  %21938 = vst [vmem:[#allocation98_spill] sm:$0xff] %v14948_v57 }
 0x3b1   : > { %v14592_v49 = vpop.f32.mrf.mxu0  ;;  %21940 = vst [vmem:[#allocation99_spill] sm:$0xff] %v14954_v58  ;;  %21942 = vst [vmem:[#allocation100_spill] sm:$0xff] %v14959_v42  ;;  %v14978_v58 = vld [vmem:[%s21047_s15] ss:$0 sm:$0xff] }
 0x3b2   : > { %vm21943_vm8 = vmmov %vm21939_vm11  ;;  %21948 = vst [vmem:[#allocation101_spill] sm:$0xff] %v21947_v12  ;;  %vm21952_vm11 = vcmp.ge.s32.totalorder %v14868_v63, 1  ;;  %v21960_v63 = vand.u32 15, %v14512_v7  ;;  %v2349_v26 = vadd.f32 %v14564_v35, %v14978_v58  ;;  %v2346_v24 = vadd.f32 %v14538_v20, %v14978_v58 }
 0x3b3   : > { %v14611_v62 = vpop.f32.mrf.mxu0  ;;  %vm14965_vm5 = vmand %vm21943_vm8, %vm14914_vm6  ;;  %21949 = vst [vmem:[#allocation102_spill] sm:$0xff] %v14973_v44  ;;  %v14990_v4 = vsel %vm21952_vm11, 1.0, %v21864_v56  ;;  %vm21954_vm8 = vcmp.ge.s32.totalorder %v14860_v30, 1  ;;  %v2654_v30 = vand.u32 255, %v14933_v31  ;;  %v2341_v35 = vadd.f32 %v14978_v58, %v14592_v49 }
 0x3b4   : > { %21951 = vst [vmem:[#allocation103_spill] sm:$0xff] %v14985_v8  ;;  %21953 = vst [vmem:[#allocation104_spill] sm:$0xff] %v14990_v4  ;;  %vm15008_vm11 = vcmp.le.s32.totalorder %v21960_v63, 14  ;;  %v15024_v7 = vsel %vm14965_vm5, 1.0, %v21864_v56  ;;  %v15031_v63 = vshra.s32 %v2656_v16, 4  ;;  %v2338_v16 = vadd.f32 %v14978_v58, %v14549_v29 }
 0x3b5   : > { %v14635_v18 = vpop.f32.mrf.mxu0  ;;  %vm14996_vm6 = vmand %vm21954_vm8, %vm14922_vm10  ;;  %21959 = vst [vmem:[#allocation105_spill] sm:$0xff] %v21958_v1  ;;  %v21962_v28 = vsel %vm15008_vm11, 4294967295, %v21961_v28  ;;  %v15054_v20 = vsel %vm2713_vm13, 1.0, %v21864_v56  ;;  %v15069_v29 = vsel %vm21972_vm0, 1.0, %v21864_v56  ;;  %v15074_v47 = vshra.s32 %v2654_v30, 4 }
 0x3b6   : > { %21963 = vst [vmem:[#allocation106_spill] sm:$0xff] %v21962_v28  ;;  %21964 = vst [vmem:[#allocation107_spill] sm:$0xff] %v15015_v21  ;;  %v15040_v23 = vsel %vm14996_vm6, 1.0, %v21864_v56  ;;  %vm21969_vm6 = vcmp.ge.s32.totalorder %v14930_v36, 1  ;;  %v2501_v36 = vmul.f32 %v14558_v33, %v2349_v26  ;;  %vm21977_vm0 = vcmp.ge.s32.totalorder %v14973_v44, 1 }
 0x3b7   : > { %v14652_v2 = vpop.f32.mrf.mxu0  ;;  %21965 = vst [vmem:[#allocation108_spill] sm:$0xff] %v15024_v7  ;;  %vm2841_vm8 = vmand %vm2713_vm13, %vm14969_vm7  ;;  %v15059_v49 = vsel %vm21969_vm6, 1.0, %v21864_v56  ;;  %vm21214_vm13 = vcmp.ge.s32.totalorder %v15015_v21, 1  ;;  %v15087_v57 = vsel %vm21977_vm0, 1.0, %v21864_v56  ;;  %v2499_v30 = vmul.f32 %v14558_v33, %v2341_v35 }
 0x3b8   : > { %21966 = vst [vmem:[#allocation109_spill] sm:$0xff] %v15031_v63  ;;  %21967 = vst [vmem:[#allocation110_spill] sm:$0xff] %v15040_v23  ;;  %v15072_v1 = vsel %vm2841_vm8, 1.0, %v21864_v56  ;;  %vm2467_vm8 = vcmp.gt.f32.partialorder %v2349_v26, 0.0  ;;  %v15099_v44 = vsel %vm21214_vm13, 1.0, %v21864_v56  ;;  %vm2464_vm0 = vcmp.gt.f32.partialorder %v2338_v16, 0.0 }
 0x3b9   : > { %v14672_v51 = vpop.f32.mrf.mxu0  ;;  %vm2843_vm5 = vmand %vm2715_vm4, %vm15001_vm12  ;;  %21968 = vst [vmem:[#allocation111_spill] sm:$0xff] %v15054_v20  ;;  %v2498_v20 = vmul.f32 %v14558_v33, %v2338_v16  ;;  %vm21980_vm6 = vcmp.ge.s32.totalorder %v15031_v63, 1  ;;  %vm21982_vm13 = vcmp.le.s32.totalorder %v14536_v19, 14  ;;  %vm21983_vm12 = vcmp.gt.f32.partialorder %v2346_v24, 0.0 }
 0x3ba   : > { %21970 = vst [vmem:[#allocation112_spill] sm:$0xff] %v15059_v49  ;;  %21971 = vst [vmem:[#allocation113_spill] sm:$0xff] %v15064_v3  ;;  %v15081_v15 = vsel %vm2843_vm5, 1.0, %v21864_v56  ;;  %v2362_v3 = vadd.f32 %v14611_v62, %v14978_v58  ;;  %vm2465_vm5 = vcmp.gt.f32.partialorder %v2341_v35, 0.0  ;;  %v15106_v49 = vsel %vm2467_vm8, %v2349_v26, %v2501_v36 }
 0x3bb   : > { %v14694_v41 = vpop.f32.mrf.mxu0  ;;  %21973 = vst [vmem:[#allocation114_spill] sm:$0xff] %v15069_v29  ;;  %21974 = vst [vmem:[#allocation115_spill] sm:$0xff] %v15072_v1  ;;  %v2500_v1 = vmul.f32 %v14558_v33, %v2346_v24  ;;  %v15113_v21 = vsel %vm21980_vm6, 1.0, %v21864_v56  ;;  %v15124_v36 = vsel %vm2465_vm5, %v2341_v35, %v2499_v30  ;;  %v2365_v62 = vadd.f32 %v14652_v2, %v14978_v58 }
 0x3bc   : > { %21975 = vst [vmem:[#allocation116_spill] sm:$0xff] %v15074_v47  ;;  %21976 = vst [vmem:[#allocation117_spill] sm:$0xff] %v15081_v15  ;;  %v2504_v26 = vmul.f32 %v14558_v33, %v2362_v3  ;;  %v15129_v63 = vsel %vm2464_vm0, %v2338_v16, %v2498_v20  ;;  %vm2470_vm8 = vcmp.gt.f32.partialorder %v2362_v3, 0.0  ;;  %v2357_v7 = vadd.f32 %v14978_v58, %v14672_v51 }
 0x3bd   : > { %v14721_v52 = vpop.f32.mrf.mxu0  ;;  %21978 = vst [vmem:[#allocation118_spill] sm:$0xff] %v15087_v57  ;;  %21979 = vst [vmem:[#allocation119_spill] sm:$0xff] %v15099_v44  ;;  %v2354_v57 = vadd.f32 %v14978_v58, %v14635_v18  ;;  %v15122_v18 = vsel %vm21983_vm12, %v2346_v24, %v2500_v1  ;;  %v2378_v35 = vadd.f32 %v14694_v41, %v14978_v58  ;;  %v3460_v20 = vrot.slane %v15124_v36, 7 }
 0x3be   : > { %21981 = vst [vmem:[#allocation120_spill] sm:$0xff] %v15113_v21  ;;  %vm3366_vm4 = vmand %vm21982_vm13, %vm15008_vm11  ;;  %vm21988_vm13 = vcmp.ge.s32.totalorder %v15074_v47, 1  ;;  %v15145_v2 = vmul.f32 %v14584_v43, %v15106_v49  ;;  %v3461_v51 = vrot.slane %v15122_v18, 7  ;;  %v15156_v47 = vmul.f32 %v14576_v40, %v15122_v18 }
 0x3bf   : > { %v14745_v55 = vpop.f32.mrf.mxu0  ;;  %21984 = vst [vmem:[#allocation121_spill] sm:$0xff] %v15122_v18  ;;  %21985 = vst [vmem:[#allocation122_spill] sm:$0xff] %v15124_v36  ;;  %v15138_v1 = vsel %vm21988_vm13, 1.0, %v21864_v56  ;;  %v2502_v24 = vmul.f32 %v14558_v33, %v2354_v57  ;;  %v15148_v16 = vsel %vm3366_vm4, 1.0, %v21864_v56  ;;  %vm2468_vm12 = vcmp.gt.f32.partialorder %v2354_v57, 0.0 }
 0x3c0   : > { %21986 = vst [vmem:[#allocation123_spill] sm:$0xff] %v15129_v63  ;;  %21989 = vst [vmem:[#allocation125_spill] sm:$0xff] %v15138_v1  ;;  %v15159_v6 = vsel %vm2470_vm8, %v2362_v3, %v2504_v26  ;;  %v2505_v19 = vmul.f32 %v14558_v33, %v2365_v62  ;;  %v15164_v28 = vmul.f32 %v14597_v50, %v15124_v36  ;;  %vm2471_vm4 = vcmp.gt.f32.partialorder %v2365_v62, 0.0 }
 0x3c1   : > { %v14771_v10 = vpop.f32.mrf.mxu0  ;;  %21990 = vst [vmem:[#allocation126_spill] sm:$0xff] %v15148_v16  ;;  %v2503_v1 = vmul.f32 %v14558_v33, %v2357_v7  ;;  %v15172_v40 = vmul.f32 %v14571_v39, %v15129_v63  ;;  %v15174_v41 = vsel %vm2468_vm12, %v2354_v57, %v2502_v24  ;;  %vm2469_vm6 = vcmp.gt.f32.partialorder %v2357_v7, 0.0 }
 0x3c2   : > { %v2508_v3 = vmul.f32 %v14558_v33, %v2378_v35  ;;  %vm2474_vm5 = vcmp.gt.f32.partialorder %v2378_v35, 0.0  ;;  %v2370_v21 = vadd.f32 %v14978_v58, %v14721_v52  ;;  %v21993_v23 = vrot.slane %v15129_v63, 7 }
 0x3c3   : > { %v14803_v25 = vpop.f32.mrf.mxu0  ;;  %vm21994_vm0 = vcmp.lt.s32.totalorder %v13870_v32, 1  ;;  %v15189_v24 = vsel %vm2471_vm4, %v2365_v62, %v2505_v19  ;;  %v3621_v18 = vpack.c.bf16 %v15164_v28, %v15172_v40  ;;  %v15196_v48 = vsel %vm2469_vm6, %v2357_v7, %v2503_v1 }
 0x3c4   : > { %v15186_v39 = vsel %vm21994_vm0, %v21993_v23, %v3460_v20  ;;  %21996 = vst [vmem:[#allocation130_spill] sm:$0xff] %v15196_v48  ;;  %vm21998_vm8 = vmmov %vm21994_vm0  ;;  %v2506_v7 = vmul.f32 %v14558_v33, %v2370_v21  ;;  %vm2472_vm12 = vcmp.gt.f32.partialorder %v2370_v21, 0.0 }
 0x3c5   : > { %v14819_v17 = vpop.f32.mrf.mxu0  ;;  %21995 = vst [vmem:[#allocation129_spill] sm:$0xff] %v15186_v39  ;;  %v15207_v62 = vmul.f32 %v14597_v50, %v15186_v39  ;;  %v15211_v40 = vsel %vm21998_vm8, %v3460_v20, %v3461_v51  ;;  %vm22001_vm4 = vmmov %vm21994_vm0 }
 0x3c6   : > { %21999 = vst [vmem:[#allocation132_spill] sm:$0xff] %v15211_v40  ;;  %v15230_v26 = vmul.f32 %v14619_v5, %v15211_v40 }
 0x3c7   : > { %v14847_v60 = vpop.f32.mrf.mxu0 }
 0x3c9   : > { %v14873_v27 = vpop.f32.mrf.mxu0 }
 0x3cb   : > { %v14889_v54 = vpop.f32.mrf.mxu0 }
 0x3cd   : > { %v14919_v34 = vpop.f32.mrf.mxu0 }
 0x3cf   : > { %v14936_v38 = vpop.f32.mrf.mxu0 }
 0x3d1   : > { %v14980_v42 = vpop.f32.mrf.mxu0 }
 0x3d3   : > { %v15019_v4 = vpop.f32.mrf.mxu0 }
 0x3d5   : > { %v15049_v12 = vpop.f32.mrf.mxu0 }
 0x3d7   : > { %v15078_v31 = vpop.f32.mrf.mxu0 }
 0x3d9   : > { %v15094_v15 = vpop.f32.mrf.mxu0 }
 0x3db   : > { %v15108_v29 = vpop.f32.mrf.mxu0 }
 0x3dd   : > { %v15133_v44 = vpop.f32.mrf.mxu0 }
 0x3de   : > { %21987 = vst [vmem:[#allocation124_spill] sm:$0xff] %v15133_v44  ;;  %v15202_v44 = vsel %vm2474_vm5, %v2378_v35, %v2508_v3  ;;  %v22000_v3 = vrot.slane %v15106_v49, 7 }
 0x3df   : > { %v15152_v30 = vpop.f32.mrf.mxu0  ;;  %21997 = vst [vmem:[#allocation131_spill] sm:$0xff] %v15202_v44 }
 0x3e0   : > { %21991 = vst [vmem:[#allocation127_spill] sm:$0xff] %v15152_v30  ;;  %v15223_v20 = vsel %vm22001_vm4, %v3461_v51, %v22000_v3  ;;  %v15236_v51 = vsel %vm2472_vm12, %v2370_v21, %v2506_v7  ;;  %vm22010_vm12 = vmmov %vm22001_vm4 }
 0x3e1   : > { %v15168_v56 = vpop.f32.mrf.mxu0  ;;  %22002 = vst [vmem:[#allocation133_spill] sm:$0xff] %v15223_v20  ;;  %22004 = vst [vmem:[#allocation135_spill] sm:$0xff] %v15236_v51  ;;  %v15240_v3 = vmul.f32 %v14584_v43, %v15223_v20  ;;  %v2386_v20 = vadd.f32 %v14978_v58, %v14819_v17  ;;  %v3594_v17 = vmul.f32 %v14667_v59, %v15174_v41 }
 0x3e2   : > { %21992 = vst [vmem:[#allocation128_spill] sm:$0xff] %v15168_v56  ;;  %v2381_v56 = vadd.f32 %v14745_v55, %v14978_v58  ;;  %v2373_v55 = vadd.f32 %v14978_v58, %v14771_v10 }
 0x3e3   : > { %v12165_v36 = vpop.f32.mrf.mxu0 }
 0x3e4   : > { %v2458_v30 = vadd.f32 %v12165_v36, %v14978_v58  ;;  %v2509_v28 = vmul.f32 %v14558_v33, %v2381_v56  ;;  %vm2475_vm5 = vcmp.gt.f32.partialorder %v2381_v56, 0.0  ;;  %vm2473_vm0 = vcmp.gt.f32.partialorder %v2373_v55, 0.0 }
 0x3e5   : > { %v15200_v23 = vpop.f32.mrf.mxu0  ;;  %v2507_v52 = vmul.f32 %v14558_v33, %v2373_v55 }
 0x3e6   : > { %v2528_v19 = vmul.f32 %v14558_v33, %v2458_v30  ;;  %vm2494_vm13 = vcmp.gt.f32.partialorder %v2458_v30, 0.0  ;;  %v15254_v43 = vsel %vm2475_vm5, %v2381_v56, %v2509_v28  ;;  %v2397_v56 = vadd.f32 %v14847_v60, %v14978_v58  ;;  %v13358_v28 = vld [vmem:[%s21045_s13 + $0xb0] sm:$0xff]  }
 0x3e7   : > { %v12166_v36 = vpop.f32.mrf.mxu0  ;;  %22006 = vst [vmem:[#allocation137_spill] sm:$0xff] %v15254_v43  ;;  %v15269_v5 = vsel %vm2473_vm0, %v2373_v55, %v2507_v52  ;;  %vm2476_vm5 = vcmp.gt.f32.partialorder %v2386_v20, 0.0 }
 0x3e8   : > { %v2461_v35 = vadd.f32 %v12166_v36, %v14978_v58  ;;  %v15232_v1 = vsel %vm2494_vm13, %v2458_v30, %v2528_v19  ;;  %v2394_v19 = vadd.f32 %v14803_v25, %v14978_v58  ;;  %v22007_v25 = vrot.slane %v15129_v63, 7  ;;  %vm22008_vm13 = vmmov %vm22001_vm4 }
 0x3e9   : > { %v2452_v10 = vpop.f32.mrf.mxu0  ;;  %22003 = vst [vmem:[#allocation134_spill] sm:$0xff] %v15232_v1  ;;  %v3588_v21 = vmul.f32 %v14824_v9, %v15232_v1  ;;  %vm2479_vm0 = vcmp.gt.f32.partialorder %v2397_v56, 0.0 }
 0x3ea   : > { %vm2495_vm6 = vcmp.gt.f32.partialorder %v2461_v35, 0.0  ;;  %v2529_v36 = vmul.f32 %v14558_v33, %v2461_v35  ;;  %v2453_v50 = vadd.f32 %v14978_v58, %v2452_v10  ;;  %vm2478_vm4 = vcmp.gt.f32.partialorder %v2394_v19, 0.0 }
 0x3eb   : > { %v2512_v55 = vmul.f32 %v14558_v33, %v2394_v19 }
 0x3ec   : > { %v15243_v57 = vsel %vm2495_vm6, %v2461_v35, %v2529_v36  ;;  %vm2493_vm8 = vcmp.gt.f32.partialorder %v2453_v50, 0.0  ;;  %v2527_v30 = vmul.f32 %v14558_v33, %v2453_v50  ;;  %v3489_v35 = vrot.slane %v15232_v1, 7  ;;  %vm22012_vm6 = vmmov %vm22010_vm12 }
 0x3ed   : > { %22005 = vst [vmem:[#allocation136_spill] sm:$0xff] %v15243_v57  ;;  %v3490_v10 = vrot.slane %v15243_v57, 7  ;;  %v3589_v7 = vmul.f32 %v14852_v11, %v15243_v57 }
 0x3ee   : > { %v15257_v36 = vsel %vm2493_vm8, %v2453_v50, %v2527_v30  ;;  %v2389_v30 = vadd.f32 %v14978_v58, %v14873_v27  ;;  %v3595_v27 = vmul.f32 %v14710_v46, %v15196_v48  ;;  %vm22017_vm8 = vmmov %vm22012_vm6 }
 0x3ef   : > { %v15265_v40 = vsel %vm22008_vm13, %v3490_v10, %v22007_v25  ;;  %v21250_v39 = vrot.slane %v15257_v36, 7  ;;  %v3620_v9 = vpack.c.bf16 %v3589_v7, %v3588_v21  ;;  %v15275_v50 = vsel %vm22010_vm12, %v3489_v35, %v3490_v10  ;;  %vm22021_vm12 = vmmov %vm22012_vm6 }
 0x3f0   : > { %22009 = vst [vmem:[#allocation138_spill] sm:$0xff] %v15265_v40  ;;  %22011 = vst [vmem:[#allocation139_spill] sm:$0xff] %v15275_v50  ;;  %v3526_v52 = vmul.f32 %v14866_v0, %v15265_v40  ;;  %v3525_v21 = vmul.f32 %v14852_v11, %v15275_v50  ;;  %v22014_v7 = vpack.c.bf16 %v15145_v2, %v15156_v47  ;;  %v22016_v0 = vrot.slane %v15174_v41, 7  ;;  %v13364_v50 = vld [vmem:[%s21045_s13 + $0xf0] sm:$0xff]  }
 0x3f1   : > { %12183 = vmatprep.mubr.bf16.mxu1 %v3620_v9  ;;  %v15288_v60 = vsel %vm22012_vm6, %v21250_v39, %v3489_v35  ;;  %v2510_v9 = vmul.f32 %v14558_v33, %v2386_v20  ;;  %v3597_v35 = vmul.f32 %v14699_v22, %v15189_v24  ;;  %v2513_v25 = vmul.f32 %v14558_v33, %v2397_v56 }
 0x3f2   : > { %22013 = vst [vmem:[#allocation140_spill] sm:$0xff] %v15288_v60  ;;  %12184 = vmatmul.mubr.bf16.vlgmr.msra.gmra.mxu1 %v3621_v18  ;;  %v3524_v10 = vmul.f32 %v14941_v53, %v15288_v60  ;;  %v3596_v18 = vmul.f32 %v14630_v14, %v15159_v6  ;;  %v22015_v53 = vrot.slane %v15196_v48, 7  ;;  %v2511_v2 = vmul.f32 %v14558_v33, %v2389_v30 }
 0x3f3   : > { %12187 = vmatprep.mubr.bf16.mxu1 %v22014_v7  ;;  %12264 = vmatpush3.bf16.msra.mxu1 %v14472_v45  ;;  %v13359_v45 = vld [vmem:[%s21045_s13 + $0xa8] sm:$0xff]   ;;  %v2410_v7 = vadd.f32 %v14889_v54, %v14978_v58  ;;  %v15327_v11 = vsel %vm2478_vm4, %v2394_v19, %v2512_v55  ;;  %vm2477_vm13 = vcmp.gt.f32.partialorder %v2389_v30, 0.0  ;;  %v15336_v60 = vsel %vm2476_vm5, %v2386_v20, %v2510_v9  ;;  %vm22026_vm4 = vmmov %vm22012_vm6  ;;  %v13360_v55 = vld [vmem:[%s21045_s13 + $0xa0] sm:$0xff]  }
 0x3f4   : > { %v3556_v39 = vpack.c.bf16 %v3525_v21, %v3524_v10  ;;  %12265 = vmatprep.subr.bf16.mxu1 %v13358_v28  ;;  %v15315_v47 = vsel %vm22017_vm8, %v22016_v0, %v22015_v53  ;;  %v2402_v10 = vadd.f32 %v14978_v58, %v14919_v34  ;;  %v3557_v21 = vpack.c.bf16 %v15207_v62, %v3526_v52  ;;  %vm22030_vm6 = vmmov %vm22026_vm4 }
 0x3f5   : > { %22018 = vst [vmem:[#allocation141_spill] sm:$0xff] %v15327_v11  ;;  %v3558_v0 = vpack.c.bf16 %v15240_v3, %v15230_v26  ;;  %v3623_v53 = vpack.c.bf16 %v3595_v27, %v3594_v17  ;;  %v3624_v34 = vpack.c.bf16 %v3597_v35, %v3596_v18  ;;  %v22019_v62 = vrot.slane %v15159_v6, 7  ;;  %vm22039_vm8 = vmmov %vm22026_vm4 }
 0x3f6   : > { %12231 = vmatprep.mubr.bf16.mxu0 %v3556_v39  ;;  %v22020_v39 = vrot.slane %v15196_v48, 7  ;;  %v3468_v3 = vrot.slane %v15269_v5, 7  ;;  %v15348_v19 = vsel %vm2479_vm0, %v2397_v56, %v2513_v25  ;;  %v22024_v20 = vrot.slane %v15174_v41, 7 }
 0x3f7   : > { %12232 = vmatmul.mubr.bf16.vlgmr.msra.gmra.mxu0 %v3557_v21  ;;  %12266 = vmatpush3.bf16.msra.mxu1 %v13358_v28  ;;  %22023 = vst [vmem:[#allocation143_spill] sm:$0xff] %v15348_v19  ;;  %v22025_v17 = vrot.slane %v15106_v49, 7  ;;  %v3531_v52 = vmul.f32 %v14710_v46, %v15315_v47  ;;  %v15364_v56 = vsel %vm2477_vm13, %v2389_v30, %v2511_v2  ;;  %v22028_v18 = vrot.slane %v15189_v24, 7  ;;  %v22032_v2 = vld [vmem:[#allocation59_spill] sm:$0xff] }
 0x3f8   : > { %v15344_v26 = vsel %vm22021_vm12, %v22020_v39, %v22019_v62  ;;  %12235 = vmatprep.mubr.bf16.mxu0 %v3558_v0  ;;  %12267 = vmatprep.subr.bf16.mxu1 %v13359_v45  ;;  %22027 = vst [vmem:[#allocation144_spill] sm:$0xff] %v15364_v56  ;;  %v2516_v27 = vmul.f32 %v14558_v33, %v2410_v7  ;;  %v22029_v35 = vmov %v22019_v62  ;;  %vm2482_vm5 = vcmp.gt.f32.partialorder %v2410_v7, 0.0  ;;  %v13365_v0 = vld [vmem:[%s21045_s13 + $0xe8] sm:$0xff]   ;;  %v22036_v39 = vld [vmem:[#allocation68_spill] sm:$0xff]  ;;  %vm22043_vm12 = vmmov %vm22026_vm4 }
 0x3f9   : > { %22022 = vst [vmem:[#allocation142_spill] sm:$0xff] %v15344_v26  ;;  %v15356_v28 = vsel %vm22026_vm4, %v22025_v17, %v22024_v20  ;;  %v2514_v9 = vmul.f32 %v14558_v33, %v2402_v10  ;;  %v15374_v25 = vsel %vm22030_vm6, %v22029_v35, %v22028_v18  ;;  %12312 = vmatpush3.bf16.msra.mxu0 %v14495_v61  ;;  %vm2480_vm0 = vcmp.gt.f32.partialorder %v2402_v10, 0.0  ;;  %v22033_v20 = vld [vmem:[#allocation56_spill] sm:$0xff]  ;;  %v22034_v35 = vld [vmem:[#allocation67_spill] sm:$0xff] }
 0x3fa   : > { %22031 = vst [vmem:[#allocation145_spill] sm:$0xff] %v15374_v25  ;;  %v2405_v30 = vadd.f32 %v14978_v58, %v14980_v42  ;;  %12188 = vmatmul.mubr.bf16.gmra.mxu1 %v3623_v53  ;;  %v3532_v21 = vmul.f32 %v22032_v2, %v15344_v26  ;;  %12313 = vmatprep.subr.bf16.mxu0 %v13364_v50  ;;  %v22038_v46 = vrot.slane %v15236_v51, 7  ;;  %vm21297_vm4 = vcmp.lt.s32.totalorder %v13870_v32, 7 }
 0x3fb   : > { %v2413_v61 = vadd.f32 %v14936_v38, %v14978_v58  ;;  %12191 = vmatprep.mubr.bf16.mxu1 %v3624_v34  ;;  %v3530_v42 = vmul.f32 %v22033_v20, %v15356_v28  ;;  %12268 = vmatpush3.bf16.msra.mxu1 %v13359_v45  ;;  %v3533_v18 = vmul.f32 %v14699_v22, %v15374_v25  ;;  %v13361_v38 = vld [vmem:[%s21045_s13 + $0x98] sm:$0xff]   ;;  %v22061_v25 = vrot.slane %v15336_v60, 7 }
 0x3fc   : > { %v3599_v62 = vmul.f32 %v22034_v35, %v15269_v5  ;;  %12269 = vmatprep.subr.bf16.mxu1 %v13360_v55  ;;  %v15400_v34 = vsel %vm2482_vm5, %v2410_v7, %v2516_v27  ;;  %v15403_v45 = vsel %vm2480_vm0, %v2402_v10, %v2514_v9  ;;  %v3601_v17 = vmul.f32 %v22036_v39, %v15254_v43  ;;  %v22037_v20 = vld [vmem:[#allocation65_spill] sm:$0xff]  ;;  %v13367_v10 = vld [vmem:[%s21045_s13 + $0xe0] sm:$0xff]   ;;  %vm22047_vm5 = vmmov %vm22039_vm8 }
 0x3fd   : > { %22035 = vst [vmem:[#allocation146_spill] sm:$0xff] %v15400_v34  ;;  %v3559_v53 = vpack.c.bf16 %v3531_v52, %v3530_v42  ;;  %12314 = vmatpush3.bf16.msra.mxu0 %v13364_v50  ;;  %v2515_v54 = vmul.f32 %v14558_v33, %v2405_v30  ;;  %v3560_v2 = vpack.c.bf16 %v3533_v18, %v3532_v21  ;;  %vm2481_vm13 = vcmp.gt.f32.partialorder %v2405_v30, 0.0  ;;  %v22041_v50 = vld [vmem:[#allocation60_spill] sm:$0xff]  ;;  %vm22051_vm0 = vmmov %vm22047_vm5 }
 0x3fe   : > { %v3598_v22 = vmul.f32 %v22037_v20, %v15236_v51  ;;  %v15414_v7 = vsel %vm22039_vm8, %v22038_v46, %v3468_v3  ;;  %12315 = vmatprep.subr.bf16.mxu0 %v13365_v0  ;;  %v2517_v52 = vmul.f32 %v14558_v33, %v2413_v61  ;;  %v3600_v27 = vmul.f32 %v22041_v50, %v15202_v44 }
 0x3ff   : > { %22040 = vst [vmem:[#allocation147_spill] sm:$0xff] %v15414_v7  ;;  %12236 = vmatmul.mubr.bf16.gmra.mxu0 %v3559_v53  ;;  %v22042_v9 = vrot.slane %v15202_v44, 7  ;;  %12270 = vmatpush3.bf16.msra.mxu1 %v13360_v55  ;;  %vm2483_vm6 = vcmp.gt.f32.partialorder %v2413_v61, 0.0  ;;  %v2426_v46 = vadd.f32 %v15019_v4, %v14978_v58  ;;  %v22045_v53 = vrot.slane %v15236_v51, 7 }
 0x400   : > { %12239 = vmatprep.mubr.bf16.mxu0 %v3560_v2  ;;  %v3625_v42 = vpack.c.bf16 %v3599_v62, %v3598_v22  ;;  %v22046_v18 = vrot.slane %v15189_v24, 7  ;;  %12271 = vmatprep.subr.bf16.mxu1 %v13361_v38  ;;  %v15444_v55 = vadd.f32 %v14978_v58, %v15049_v12  ;;  %v3626_v4 = vpack.c.bf16 %v3601_v17, %v3600_v27  ;;  %v22054_v17 = vld [vmem:[#allocation71_spill] sm:$0xff] }
 0x401   : > { %v15426_v21 = vsel %vm22043_vm12, %v3468_v3, %v22042_v9  ;;  %v13363_v3 = vld [vmem:[%s21045_s13 + $0x90] sm:$0xff]   ;;  %v3535_v22 = vmul.f32 %v22034_v35, %v15414_v7  ;;  %v22049_v2 = vrot.slane %v15254_v43, 7  ;;  %v22050_v62 = vmov %v22042_v9  ;;  %12316 = vmatpush3.bf16.msra.mxu0 %v13365_v0  ;;  %v13368_v35 = vld [vmem:[%s21045_s13 + $0xd8] sm:$0xff]  }
 0x402   : > { %22044 = vst [vmem:[#allocation148_spill] sm:$0xff] %v15426_v21  ;;  %v15437_v50 = vsel %vm22047_vm5, %v22046_v18, %v22045_v53  ;;  %v15458_v18 = vsel %vm2481_vm13, %v2405_v30, %v2515_v54  ;;  %v2429_v12 = vadd.f32 %v15078_v31, %v14978_v58  ;;  %12192 = vmatmul.mubr.bf16.gmra.mxu1 %v3625_v42  ;;  %v22056_v31 = vld [vmem:[#allocation70_spill] sm:$0xff]  ;;  %vm2486_vm8 = vcmp.gt.f32.partialorder %v2426_v46, 0.0  ;;  %v22057_v53 = vld [vmem:[#allocation76_spill] sm:$0xff]  ;;  %vm22062_vm13 = vmmov %vm22051_vm0 }
 0x403   : > { %22048 = vst [vmem:[#allocation149_spill] sm:$0xff] %v15437_v50  ;;  %v15454_v9 = vsel %vm22051_vm0, %v22050_v62, %v22049_v2  ;;  %22053 = vst [vmem:[#allocation151_spill] sm:$0xff] %v15458_v18  ;;  %v3536_v27 = vmul.f32 %v22054_v17, %v15426_v21  ;;  %12317 = vmatprep.subr.bf16.mxu0 %v13367_v10  ;;  %v15469_v0 = vsel %vm2483_vm6, %v2413_v61, %v2517_v52  ;;  %v13366_v61 = vld [vmem:[%s21045_s13 + $0x88] sm:$0xff]  }
 0x404   : > { %22052 = vst [vmem:[#allocation150_spill] sm:$0xff] %v15454_v9  ;;  %22055 = vst [vmem:[#allocation152_spill] sm:$0xff] %v15469_v0  ;;  %v2421_v54 = vadd.f32 %v14978_v58, %v15094_v15  ;;  %12195 = vmatprep.mubr.bf16.mxu1 %v3626_v4  ;;  %v3534_v30 = vmul.f32 %v22056_v31, %v15437_v50  ;;  %12272 = vmatpush3.bf16.msra.mxu1 %v13361_v38  ;;  %v22058_v4 = vld [vmem:[#allocation77_spill] sm:$0xff]  ;;  %v22060_v7 = vrot.slane %v15364_v56, 7 }
 0x405   : > { %v2520_v42 = vmul.f32 %v14558_v33, %v2426_v46  ;;  %v3537_v62 = vmul.f32 %v22036_v39, %v15454_v9  ;;  %v3603_v2 = vmul.f32 %v22057_v53, %v15364_v56  ;;  %12273 = vmatprep.subr.bf16.mxu1 %v13363_v3  ;;  %v2518_v52 = vmul.f32 %v14558_v33, %v15444_v55  ;;  %v22059_v9 = vld [vmem:[#allocation73_spill] sm:$0xff]  ;;  %vm22067_vm6 = vmmov %vm22051_vm0 }
 0x406   : > { %v3561_v38 = vpack.c.bf16 %v3535_v22, %v3534_v30  ;;  %v3605_v31 = vmul.f32 %v22058_v4, %v15348_v19  ;;  %12318 = vmatpush3.bf16.msra.mxu0 %v13367_v10  ;;  %v2521_v17 = vmul.f32 %v14558_v33, %v2429_v12  ;;  %v3602_v21 = vmul.f32 %v22059_v9, %v15336_v60  ;;  %v13370_v22 = vld [vmem:[%s21045_s13 + $0xd0] sm:$0xff]  }
 0x407   : > { %v3562_v39 = vpack.c.bf16 %v3537_v62, %v3536_v27  ;;  %v15497_v15 = vsel %vm22062_vm13, %v22061_v25, %v22060_v7  ;;  %12319 = vmatprep.subr.bf16.mxu0 %v13368_v35  ;;  %vm2484_vm12 = vcmp.gt.f32.partialorder %v15444_v55, 0.0  ;;  %v2519_v10 = vmul.f32 %v14558_v33, %v2421_v54  ;;  %v22064_v27 = vld [vmem:[#allocation72_spill] sm:$0xff] }
 0x408   : > { %22063 = vst [vmem:[#allocation153_spill] sm:$0xff] %v15497_v15  ;;  %12240 = vmatmul.mubr.bf16.gmra.mxu0 %v3561_v38  ;;  %v3604_v30 = vmul.f32 %v22064_v27, %v15327_v11  ;;  %v22065_v62 = vrot.slane %v15327_v11, 7  ;;  %v22066_v9 = vmov %v22060_v7  ;;  %12274 = vmatpush3.bf16.msra.mxu1 %v13363_v3  ;;  %vm2487_vm5 = vcmp.gt.f32.partialorder %v2429_v12, 0.0 }
 0x409   : > { %12243 = vmatprep.mubr.bf16.mxu0 %v3562_v39  ;;  %v3627_v7 = vpack.c.bf16 %v3603_v2, %v3602_v21  ;;  %v22069_v20 = vrot.slane %v15336_v60, 7  ;;  %v22070_v50 = vrot.slane %v15254_v43, 7  ;;  %12275 = vmatprep.subr.bf16.mxu1 %v13366_v61  ;;  %v22072_v27 = vand.u32 15, %v14887_v37  ;;  %v13369_v39 = vld [vmem:[%s21045_s13 + $0x80] sm:$0xff]  }
 0x40a   : > { %v15512_v25 = vsel %vm22067_vm6, %v22066_v9, %v22065_v62  ;;  %v22073_v56 = vmov 0  ;;  %v22076_v21 = vrot.slane %v15159_v6, 1  ;;  %v22077_v3 = vrot.slane %v15196_v48, 1  ;;  %vm22080_vm6 = vmmov %vm22051_vm0  ;;  %12320 = vmatpush3.bf16.msra.mxu0 %v13368_v35  ;;  %v13371_v35 = vld [vmem:[%s21045_s13 + $0xc8] sm:$0xff]  }
 0x40b   : > { %22068 = vst [vmem:[#allocation154_spill] sm:$0xff] %v15512_v25  ;;  %v15520_v38 = vsel %vm22051_vm0, %v22070_v50, %v22069_v20  ;;  %vm15524_vm13 = vcmp.ge.s32.totalorder %v22072_v27, 1  ;;  %v3628_v20 = vpack.c.bf16 %v3605_v31, %v3604_v30  ;;  %v3539_v37 = vmul.f32 %v22057_v53, %v15497_v15  ;;  %12196 = vmatmul.mubr.bf16.gmra.mxu1 %v3627_v7  ;;  %v22093_v53 = vld [vmem:[#allocation99_spill] sm:$0xff] }
 0x40c   : > { %22071 = vst [vmem:[#allocation155_spill] sm:$0xff] %v15520_v38  ;;  %v22074_v56 = vsel %vm15524_vm13, 4294967295, %v22073_v56  ;;  %v15537_v9 = vsel %vm21297_vm4, %v22077_v3, %v22076_v21  ;;  %v22078_v50 = vrot.slane %v15348_v19, 7  ;;  %v22079_v2 = vmov %v22065_v62  ;;  %12321 = vmatprep.subr.bf16.mxu0 %v13370_v22  ;;  %12276 = vmatpush3.bf16.msra.mxu1 %v13366_v61  ;;  %v15593_v61 = vld [vmem:[%s21045_s13 + $0x138] sm:$0xff]  }
 0x40d   : > { %22075 = vst [vmem:[#allocation156_spill] sm:$0xff] %v22074_v56  ;;  %v22082_v62 = vmov %v22077_v3  ;;  %v22083_v26 = vrot.slane %v15174_v41, 1  ;;  %v15558_v31 = vsel %vm2486_vm8, %v2426_v46, %v2520_v42  ;;  %vm2485_vm0 = vcmp.gt.f32.partialorder %v2421_v54, 0.0  ;;  %v22085_v3 = vld [vmem:[#allocation36_spill] sm:$0xff]  ;;  %12199 = vmatprep.mubr.bf16.mxu1 %v3628_v20  ;;  %12277 = vmatprep.subr.bf16.mxu1 %v13369_v39  ;;  %vm22096_vm8 = vmmov %vm22080_vm6 }
 0x40e   : > { %v15547_v27 = vsel %vm22080_vm6, %v22079_v2, %v22078_v50  ;;  %22084 = vst [vmem:[#allocation158_spill] sm:$0xff] %v15558_v31  ;;  %v3540_v30 = vmul.f32 %v14946_v13, %v15512_v25  ;;  %v15573_v46 = vsel %vm2484_vm12, %v15444_v55, %v2518_v52  ;;  %v22087_v42 = vld [vmem:[#allocation88_spill] sm:$0xff]  ;;  %v15579_v2 = vmul.f32 %v15148_v16, %v15537_v9  ;;  %vm22102_vm12 = vmmov %vm22080_vm6 }
 0x40f   : > { %22081 = vst [vmem:[#allocation157_spill] sm:$0xff] %v15547_v27  ;;  %v15555_v21 = vsel %vm21297_vm4, %v22083_v26, %v22082_v62  ;;  %v3538_v7 = vmul.f32 %v22087_v42, %v15520_v38  ;;  %v15582_v62 = vsel %vm2487_vm5, %v2429_v12, %v2521_v17  ;;  %v2442_v26 = vadd.f32 %v15108_v29, %v14978_v58  ;;  %v22091_v17 = vld [vmem:[#allocation104_spill] sm:$0xff] }
 0x410   : > { %v15567_v50 = vmul.f32 %v22085_v3, %v15555_v21  ;;  %22088 = vst [vmem:[#allocation160_spill] sm:$0xff] %v15579_v2  ;;  %22089 = vst [vmem:[#allocation161_spill] sm:$0xff] %v15582_v62  ;;  %v3541_v13 = vmul.f32 %v22058_v4, %v15547_v27  ;;  %v3607_v55 = vmul.f32 %v14985_v8, %v15458_v18  ;;  %12322 = vmatpush3.bf16.msra.mxu0 %v13370_v22  ;;  %v22092_v16 = vld [vmem:[#allocation124_spill] sm:$0xff]  ;;  %v13373_v22 = vld [vmem:[%s21045_s13 + $0xc0] sm:$0xff]   ;;  %v22106_v2 = vmov 0 }
 0x411   : > { %v15596_v52 = vsel %vm2485_vm0, %v2421_v54, %v2519_v10  ;;  %v3563_v12 = vpack.c.bf16 %v3539_v37, %v3538_v7  ;;  %v3609_v20 = vmul.f32 %v22091_v17, %v15469_v0  ;;  %v2434_v42 = vadd.f32 %v14978_v58, %v22092_v16  ;;  %12323 = vmatprep.subr.bf16.mxu0 %v13371_v35  ;;  %v22098_v37 = vld [vmem:[#allocation128_spill] sm:$0xff]  ;;  %vm22115_vm0 = vmmov %vm22080_vm6 }
 0x412   : > { %22086 = vst [vmem:[#allocation159_spill] sm:$0xff] %v15567_v50  ;;  %22090 = vst [vmem:[#allocation162_spill] sm:$0xff] %v15596_v52  ;;  %v3564_v4 = vpack.c.bf16 %v3541_v13, %v3540_v30  ;;  %v3606_v3 = vmul.f32 %v22093_v53, %v15403_v45  ;;  %v22094_v48 = vrot.slane %v15458_v18, 7  ;;  %v22095_v54 = vrot.slane %v15403_v45, 7  ;;  %v22099_v13 = vld [vmem:[#allocation100_spill] sm:$0xff]  ;;  %12278 = vmatpush3.bf16.msra.mxu1 %v13369_v39 }
 0x413   : > { %v2437_v16 = vadd.f32 %v14978_v58, %v22098_v37  ;;  %12244 = vmatmul.mubr.bf16.gmra.mxu0 %v3563_v12  ;;  %v3608_v30 = vmul.f32 %v22099_v13, %v15400_v34  ;;  %v22100_v7 = vrot.slane %v15400_v34, 7  ;;  %v3481_v12 = vrot.slane %v15558_v31, 7  ;;  %v22109_v37 = vld [vmem:[#allocation127_spill] sm:$0xff]  ;;  %12359 = vmatprep.subr.bf16.mxu1 %v15593_v61 }
 0x414   : > { %v15612_v10 = vsel %vm22096_vm8, %v22095_v54, %v22094_v48  ;;  %v22101_v29 = vmov %v22094_v48  ;;  %v22104_v54 = vld [vmem:[#allocation85_spill] sm:$0xff]  ;;  %v2445_v13 = vadd.f32 %v22109_v37, %v14978_v58  ;;  %12247 = vmatprep.mubr.bf16.mxu0 %v3564_v4  ;;  %v3629_v27 = vpack.c.bf16 %v3607_v55, %v3606_v3  ;;  %12324 = vmatpush3.bf16.msra.mxu0 %v13371_v35  ;;  %v22117_v55 = vld [vmem:[#allocation110_spill] sm:$0xff] }
 0x415   : > { %22097 = vst [vmem:[#allocation124_spill] sm:$0xff] %v15612_v10  ;;  %v15627_v48 = vsel %vm22102_vm12, %v22101_v29, %v22100_v7  ;;  %v22105_v50 = vand.u32 15, %v22104_v54  ;;  %v22110_v53 = vrot.slane %v15403_v45, 7  ;;  %v22111_v25 = vrot.slane %v15348_v19, 7  ;;  %12325 = vmatprep.subr.bf16.mxu0 %v13373_v22 }
 0x416   : > { %22103 = vst [vmem:[#allocation128_spill] sm:$0xff] %v15627_v48  ;;  %v3630_v39 = vpack.c.bf16 %v3609_v20, %v3608_v30  ;;  %v3543_v7 = vmul.f32 %v14985_v8, %v15612_v10  ;;  %v22113_v54 = vrot.slane %v15469_v0, 7  ;;  %v22114_v4 = vrot.slane %v15400_v34, 7  ;;  %12200 = vmatmul.mubr.bf16.gmra.mxu1 %v3629_v27  ;;  %v15665_v30 = vld [vmem:[%s21045_s13 + $0x178] sm:$0xff]   ;;  %v22119_v27 = vld [vmem:[#allocation107_spill] sm:$0xff]  ;;  %v22122_v34 = vld [vmem:[#allocation112_spill] sm:$0xff] }
 0x417   : > { %vm15631_vm5 = vcmp.ge.s32.totalorder %v22105_v50, 1  ;;  %v15644_v29 = vsel %vm22080_vm6, %v22111_v25, %v22110_v53  ;;  %v3479_v50 = vrot.slane %v15573_v46, 7  ;;  %v3480_v25 = vrot.slane %v15596_v52, 7 }
 0x418   : > { %v22107_v2 = vsel %vm15631_vm5, 4294967295, %v22106_v2  ;;  %22112 = vst [vmem:[#allocation127_spill] sm:$0xff] %v15644_v29  ;;  %v15656_v3 = vsel %vm22115_vm0, %v22114_v4, %v22113_v54  ;;  %v3544_v20 = vmul.f32 %v22117_v55, %v15627_v48  ;;  %v2524_v37 = vmul.f32 %v14558_v33, %v2442_v26  ;;  %12203 = vmatprep.mubr.bf16.mxu1 %v3630_v39  ;;  %v22118_v4 = vld [vmem:[#allocation108_spill] sm:$0xff]  ;;  %v22121_v48 = vld [vmem:[#allocation114_spill] sm:$0xff] }
 0x419   : > { %22108 = vst [vmem:[#allocation85_spill] sm:$0xff] %v22107_v2  ;;  %22116 = vst [vmem:[#allocation163_spill] sm:$0xff] %v15656_v3  ;;  %v2522_v54 = vmul.f32 %v14558_v33, %v2434_v42  ;;  %v2523_v35 = vmul.f32 %v14558_v33, %v2437_v16  ;;  %v3542_v53 = vmul.f32 %v22118_v4, %v15644_v29  ;;  %vm22120_vm12 = vcmp.ge.s32.totalorder %v22119_v27, 1  ;;  %v22123_v27 = vld [vmem:[#allocation111_spill] sm:$0xff] }
 0x41a   : > { %vm2845_vm6 = vmand %vm22120_vm12, %vm15524_vm13  ;;  %v2525_v55 = vmul.f32 %v14558_v33, %v2445_v13  ;;  %vm2489_vm0 = vcmp.gt.f32.partialorder %v2437_v16, 0.0  ;;  %v3545_v8 = vmul.f32 %v22091_v17, %v15656_v3  ;;  %v3611_v10 = vmul.f32 %v22121_v48, %v15596_v52  ;;  %12326 = vmatpush3.bf16.msra.mxu0 %v13373_v22  ;;  %v22128_v3 = vld [vmem:[#allocation20_spill] sm:$0xff] }
 0x41b   : > { %v3565_v39 = vpack.c.bf16 %v3543_v7, %v3542_v53  ;;  %v3613_v4 = vmul.f32 %v22122_v34, %v15582_v62  ;;  %v3610_v29 = vmul.f32 %v22123_v27, %v15573_v46  ;;  %vm22124_vm12 = vmmov %vm22096_vm8  ;;  %v22126_v18 = vmov 0.0   ;;  %12407 = vmatprep.subr.bf16.mxu0 %v15665_v30  ;;  %v22135_v7 = vld [vmem:[#allocation113_spill] sm:$0xff] }
 0x41c   : > { %v3566_v56 = vpack.c.bf16 %v3545_v8, %v3544_v20  ;;  %v15687_v15 = vsel %vm22124_vm12, %v3479_v50, %v3480_v25  ;;  %v15690_v17 = vsel %vm2845_vm6, 1.0, %v22126_v18  ;;  %v22129_v52 = vand.u32 15, %v22128_v3  ;;  %vm22136_vm6 = vmmov %vm22124_vm12 }
 0x41d   : > { %22125 = vst [vmem:[#allocation164_spill] sm:$0xff] %v15687_v15  ;;  %22127 = vst [vmem:[#allocation165_spill] sm:$0xff] %v15690_v17  ;;  %v22130_v38 = vmov 0  ;;  %vm22133_vm8 = vcmp.gt.f32.partialorder %v2442_v26, 0.0  ;;  %v15702_v22 = vsel %vm2489_vm0, %v2437_v16, %v2523_v35  ;;  %12248 = vmatmul.mubr.bf16.gmra.mxu0 %v3565_v39  ;;  %v3612_v53 = vmul.f32 %v22135_v7, %v15558_v31 }
 0x41e   : > { %vm15694_vm4 = vcmp.le.s32.totalorder %v22129_v52, 14  ;;  %v15700_v8 = vsel %vm22133_vm8, %v2442_v26, %v2524_v37  ;;  %v15708_v20 = vsel %vm22136_vm6, %v3480_v25, %v3481_v12  ;;  %v22138_v52 = vld [vmem:[#allocation102_spill] sm:$0xff]  ;;  %vm22140_vm7 = vcmp.gt.f32.partialorder %v2434_v42, 0.0  ;;  %12251 = vmatprep.mubr.bf16.mxu0 %v3566_v56  ;;  %vm22144_vm0 = vmmov %vm22136_vm6 }
 0x41f   : > { %v22131_v38 = vsel %vm15694_vm4, 4294967295, %v22130_v38  ;;  %22134 = vst [vmem:[#allocation166_spill] sm:$0xff] %v15700_v8  ;;  %22137 = vst [vmem:[#allocation167_spill] sm:$0xff] %v15708_v20  ;;  %vm22139_vm12 = vcmp.ge.s32.totalorder %v22138_v52, 1  ;;  %v15715_v3 = vsel %vm22140_vm7, %v2434_v42, %v2522_v54  ;;  %vm22142_vm8 = vcmp.gt.f32.partialorder %v2445_v13, 0.0 }
 0x420   : > { %22132 = vst [vmem:[#allocation20_spill] sm:$0xff] %v22131_v38  ;;  %vm2847_vm13 = vmand %vm22139_vm12, %vm15631_vm5  ;;  %v15718_v26 = vsel %vm22142_vm8, %v2445_v13, %v2525_v55  ;;  %v3631_v16 = vpack.c.bf16 %v3611_v10, %v3610_v29  ;;  %v22143_v37 = vrot.slane %v15469_v0, 7  ;;  %v2450_v25 = vadd.f32 %v14978_v58, %v15200_v23  ;;  %v22149_v10 = vld [vmem:[#allocation117_spill] sm:$0xff]  ;;  %v22151_v58 = vld [vmem:[#allocation58_spill] sm:$0xff] }
 0x421   : > { %22141 = vst [vmem:[#allocation168_spill] sm:$0xff] %v15715_v3  ;;  %v3632_v39 = vpack.c.bf16 %v3613_v4, %v3612_v53  ;;  %v3547_v52 = vmul.f32 %v22121_v48, %v15687_v15  ;;  %v22146_v42 = vrot.slane %v15582_v62, 7  ;;  %vm22147_vm7 = vmmov %vm22144_vm0  ;;  %v3484_v56 = vrot.slane %v15702_v22, 7  ;;  %v22152_v55 = vld [vmem:[#allocation115_spill] sm:$0xff]  ;;  %v22153_v4 = vld [vmem:[#allocation62_spill] sm:$0xff] }
 0x422   : > { %v15724_v35 = vsel %vm22144_vm0, %v22143_v37, %v3479_v50  ;;  %12204 = vmatmul.mubr.bf16.gmra.mxu1 %v3631_v16  ;;  %v3548_v29 = vmul.f32 %v22149_v10, %v15708_v20  ;;  %v15740_v50 = vsel %vm2847_vm13, 1.0, %v22126_v18  ;;  %v3485_v23 = vrot.slane %v15700_v8, 7  ;;  %v22155_v10 = vld [vmem:[#allocation125_spill] sm:$0xff]  ;;  %v22157_v15 = vld [vmem:[#allocation119_spill] sm:$0xff]  ;;  %vm22158_vm8 = vmmov %vm22144_vm0 }
 0x423   : > { %22145 = vst [vmem:[#allocation169_spill] sm:$0xff] %v15724_v35  ;;  %v15734_v13 = vsel %vm22147_vm7, %v3481_v12, %v22146_v42  ;;  %22150 = vst [vmem:[#allocation171_spill] sm:$0xff] %v15740_v50  ;;  %12207 = vmatprep.mubr.bf16.mxu1 %v3632_v39  ;;  %v3546_v54 = vmul.f32 %v22152_v55, %v15724_v35  ;;  %vm21337_vm12 = vcmp.ge.s32.totalorder %v22153_v4, 1  ;;  %v22154_v12 = vld [vmem:[#allocation41_spill] sm:$0xff]  ;;  %v3483_v16 = vrot.slane %v15715_v3, 7  ;;  %v22156_v55 = vld [vmem:[#allocation120_spill] sm:$0xff] }
 0x424   : > { %22148 = vst [vmem:[#allocation170_spill] sm:$0xff] %v15734_v13  ;;  %v2625_v53 = vand.u32 15, %v22154_v12  ;;  %v3486_v37 = vrot.slane %v15718_v26, 7  ;;  %v3549_v42 = vmul.f32 %v22122_v34, %v15734_v13  ;;  %v3615_v48 = vmul.f32 %v22155_v10, %v15702_v22  ;;  %v22160_v34 = vld [vmem:[#allocation118_spill] sm:$0xff] }
 0x425   : > { %vm2492_vm13 = vcmp.gt.f32.partialorder %v2450_v25, 0.0  ;;  %v2526_v39 = vmul.f32 %v14558_v33, %v2450_v25  ;;  %v3567_v2 = vpack.c.bf16 %v3547_v52, %v3546_v54  ;;  %v3617_v20 = vmul.f32 %v22156_v55, %v15718_v26 }
 0x426   : > { %v4102_v7 = vrot.slane %v15243_v57, 1  ;;  %v3568_v12 = vpack.c.bf16 %v3549_v42, %v3548_v29  ;;  %v3614_v27 = vmul.f32 %v22157_v15, %v15715_v3  ;;  %v15762_v35 = vsel %vm22158_vm8, %v3483_v16, %v3484_v56  ;;  %v22163_v29 = vld [vmem:[#allocation28_spill] sm:$0xff] }
 0x427   : > { %22159 = vst [vmem:[#allocation41_spill] sm:$0xff] %v15762_v35  ;;  %12252 = vmatmul.mubr.bf16.gmra.mxu0 %v3567_v2  ;;  %v3616_v13 = vmul.f32 %v22160_v34, %v15700_v8  ;;  %v15768_v33 = vsel %vm22144_vm0, %v3484_v56, %v3485_v23  ;;  %v15773_v52 = vsel %vm21337_vm12, 1.0, %v22126_v18  ;;  %vm22164_vm7 = vcmp.ge.s32.totalorder %v22163_v29, 1 }
 0x428   : > { %22161 = vst [vmem:[#allocation172_spill] sm:$0xff] %v15768_v33  ;;  %22162 = vst [vmem:[#allocation173_spill] sm:$0xff] %v15773_v52  ;;  %vm15779_vm8 = vcmp.ge.s32.totalorder %v2625_v53, 1  ;;  %v22165_v54 = vmov 0  ;;  %v4071_v2 = vrot.slane %v15129_v63, 1  ;;  %v21338_v42 = vrot.slane %v15232_v1, 1  ;;  %12255 = vmatprep.mubr.bf16.mxu0 %v3568_v12 }
 0x429   : > { %vm2980_vm6 = vmand %vm22164_vm7, %vm15694_vm4  ;;  %v22166_v54 = vsel %vm15779_vm8, 4294967295, %v22165_v54  ;;  %v3633_v56 = vpack.c.bf16 %v3615_v48, %v3614_v27  ;;  %v22168_v57 = vrot.slane %v15582_v62, 7  ;;  %v15792_v38 = vsel %vm2492_vm13, %v2450_v25, %v2526_v39  ;;  %v22189_v1 = vld [vmem:[#allocation75_spill] sm:$0xff] }
 0x42a   : > { %22167 = vst [vmem:[#allocation174_spill] sm:$0xff] %v22166_v54  ;;  %22170 = vst [vmem:[#allocation176_spill] sm:$0xff] %v15792_v38  ;;  %v3634_v29 = vpack.c.bf16 %v3617_v20, %v3616_v13  ;;  %v3551_v53 = vmul.f32 %v22155_v10, %v15762_v35  ;;  %v3552_v48 = vmul.f32 %v15740_v50, %v15768_v33  ;;  %v15803_v27 = vsel %vm2980_vm6, 1.0, %v22126_v18  ;;  %v22178_v13 = vld [vmem:[#allocation23_spill] sm:$0xff] }
 0x42b   : > { %v15789_v34 = vsel %vm22144_vm0, %v22168_v57, %v3483_v16  ;;  %vm22171_vm7 = vmmov %vm22144_vm0  ;;  %12208 = vmatmul.mubr.bf16.gmra.mxu1 %v3633_v56  ;;  %22172 = vst [vmem:[#allocation177_spill] sm:$0xff] %v15803_v27  ;;  %vm22173_vm13 = vcmp.lt.s32.totalorder %v13870_v32, 7  ;;  %vm22182_vm6 = vcmp.ge.s32.totalorder %v22151_v58, 1  ;;  %v3619_v56 = vmul.f32 %v15773_v52, %v15257_v36 }
 0x42c   : > { %22169 = vst [vmem:[#allocation175_spill] sm:$0xff] %v15789_v34  ;;  %v15798_v63 = vsel %vm22171_vm7, %v3485_v23, %v3486_v37  ;;  %v15809_v57 = vsel %vm22173_vm13, %v21338_v42, %v4102_v7  ;;  %vm22175_vm0 = vmmov %vm22173_vm13  ;;  %vm22179_vm7 = vcmp.ge.s32.totalorder %v22178_v13, 1  ;;  %12211 = vmatprep.mubr.bf16.mxu1 %v3634_v29  ;;  %v3550_v16 = vmul.f32 %v15690_v17, %v15789_v34  ;;  %v22184_v42 = vld [vmem:[#allocation18_spill] sm:$0xff] }
 0x42d   : > { %22174 = vst [vmem:[#allocation178_spill] sm:$0xff] %v15809_v57  ;;  %v15813_v20 = vsel %vm22175_vm0, %v4102_v7, %v4071_v2  ;;  %vm15819_vm12 = vmand %vm22179_vm7, %vm15008_vm11  ;;  %v15828_v39 = vsel %vm22182_vm6, 1.0, %v22126_v18  ;;  %v3487_v7 = vrot.slane %v15792_v38, 7  ;;  %v3553_v12 = vmul.f32 %v22156_v55, %v15798_v63  ;;  %v22188_v17 = vld [vmem:[#allocation122_spill] sm:$0xff] }
 0x42e   : > { %22176 = vst [vmem:[#allocation179_spill] sm:$0xff] %v15813_v20  ;;  %22183 = vst [vmem:[#allocation23_spill] sm:$0xff] %v15828_v39  ;;  %v22185_v50 = vand.u32 15, %v22184_v42  ;;  %v4072_v10 = vrot.slane %v22188_v17, 1  ;;  %v3569_v25 = vpack.c.bf16 %v3551_v53, %v3550_v16  ;;  %v4136_v33 = vmul.f32 %v22189_v1, %v15809_v57 }
 0x42f   : > { %v4137_v35 = vmul.f32 %v15803_v27, %v15813_v20  ;;  %vm22190_vm0 = vmmov %vm22182_vm6  ;;  %v3570_v55 = vpack.c.bf16 %v3553_v12, %v3552_v48  ;;  %v22191_v42 = vrot.slane %v15257_v36, 7  ;;  %vm22192_vm6 = vcmp.lt.s32.totalorder %v13870_v32, 1  ;;  %v22194_v27 = vld [vmem:[#allocation121_spill] sm:$0xff]  ;;  %v22197_v12 = vld [vmem:[#allocation22_spill] sm:$0xff] }
 0x430   : > { %vm15837_vm13 = vcmp.le.s32.totalorder %v22185_v50, 14  ;;  %vm2849_vm7 = vmand %vm22190_vm0, %vm15779_vm8  ;;  %v3618_v50 = vmul.f32 %v15828_v39, %v15792_v38  ;;  %v15861_v16 = vsel %vm15819_vm12, 1.0, %v22126_v18  ;;  %v4073_v1 = vrot.slane %v22194_v27, 1  ;;  %12256 = vmatmul.mubr.bf16.gmra.mxu0 %v3569_v25  ;;  %v22200_v20 = vld [vmem:[#allocation25_spill] sm:$0xff] }
 0x431   : > { %v15856_v53 = vsel %vm22192_vm6, %v3487_v7, %v22191_v42  ;;  %22193 = vst [vmem:[#allocation18_spill] sm:$0xff] %v15861_v16  ;;  %v15867_v48 = vsel %vm14502_vm3, 1.0, %v22126_v18  ;;  %vm22198_vm0 = vcmp.ge.s32.totalorder %v22197_v12, 1  ;;  %v22199_v42 = vld [vmem:[#allocation24_spill] sm:$0xff]  ;;  %v2604_v17 = vand.u32 15, %v22200_v20  ;;  %12259 = vmatprep.mubr.bf16.mxu0 %v3570_v55  ;;  %vm22202_vm12 = vmmov %vm22192_vm6 }
 0x432   : > { %22196 = vst [vmem:[#allocation17_spill] sm:$0xff] %v15867_v48  ;;  %vm2984_vm11 = vmand %vm22198_vm0, %vm15837_vm13  ;;  %v2602_v57 = vand.u32 15, %v22199_v42  ;;  %v4074_v23 = vrot.slane %v15106_v49, 1  ;;  %v3635_v54 = vpack.c.bf16 %v3619_v56, %v3618_v50  ;;  %v15877_v25 = vsel %vm2849_vm7, 1.0, %v22126_v18 }
 0x433   : > { %22201 = vst [vmem:[#allocation24_spill] sm:$0xff] %v15877_v25  ;;  %v15881_v58 = vsel %vm22202_vm12, %v3486_v37, %v3487_v7  ;;  %v4168_v27 = vpack.c.bf16 %v4137_v35, %v4136_v33  ;;  %v3555_v12 = vmul.f32 %v15773_v52, %v15856_v53  ;;  %vm22203_vm3 = vcmp.lt.s32.totalorder %v13870_v32, 7 }
 0x434   : > { %v15887_v42 = vsel %vm22203_vm3, %v4072_v10, %v4073_v1  ;;  %vm22205_vm6 = vmmov %vm22203_vm3  ;;  %vm22207_vm7 = vcmp.le.s32.totalorder %v22178_v13, 14  ;;  %12212 = vmatmul.mubr.bf16.gmra.mxu1 %v3635_v54  ;;  %v4442_v35 = vmul.f32 %v15867_v48, %v15265_v40  ;;  %v15901_v37 = vsel %vm2984_vm11, 1.0, %v22126_v18  ;;  %v22229_v48 = vld [vmem:[#allocation34_spill] sm:$0xff] }
 0x435   : > { %22204 = vst [vmem:[#allocation25_spill] sm:$0xff] %v15887_v42  ;;  %v15891_v20 = vsel %vm22205_vm6, %v4071_v2, %v4072_v10  ;;  %v15896_v55 = vsel %vm22207_vm7, 1.0, %v22126_v18  ;;  %22209 = vst [vmem:[#allocation182_spill] sm:$0xff] %v15901_v37  ;;  %v22210_v33 = vrot.slane %v15174_v41, 1  ;;  %v15912_v2 = vsel %vm14417_vm2, 1.0, %v22126_v18  ;;  %12279 = vmatprep.mubr.bf16.mxu1 %v4168_v27 }
 0x436   : > { %22206 = vst [vmem:[#allocation180_spill] sm:$0xff] %v15891_v20  ;;  %22208 = vst [vmem:[#allocation181_spill] sm:$0xff] %v15896_v55  ;;  %v3554_v54 = vmul.f32 %v15877_v25, %v15881_v58  ;;  %vm15916_vm12 = vcmp.le.s32.totalorder %v2602_v57, 14  ;;  %v22214_v13 = vmov 0  ;;  %vm15920_vm11 = vcmp.le.s32.totalorder %v2604_v17, 14 }
 0x437   : > { %vm22211_vm0 = vmmov %vm22203_vm3  ;;  %22213 = vst [vmem:[#allocation11_spill] sm:$0xff] %v15912_v2  ;;  %v22215_v13 = vsel %vm15916_vm12, 4294967295, %v22214_v13  ;;  %v22217_v56 = vmov 0  ;;  %v15926_v50 = vmul.f32 %v15896_v55, %v15315_v47  ;;  %v4139_v27 = vmul.f32 %v15861_v16, %v15887_v42  ;;  %v22226_v16 = vld [vmem:[#allocation129_spill] sm:$0xff] }
 0x438   : > { %v15907_v7 = vsel %vm22211_vm0, %v4074_v23, %v22210_v33  ;;  %22216 = vst [vmem:[#allocation183_spill] sm:$0xff] %v22215_v13  ;;  %v22218_v56 = vsel %vm15920_vm11, 4294967295, %v22217_v56  ;;  %v22221_v33 = vld [vmem:[#allocation29_spill] sm:$0xff]  ;;  %vm22222_vm2 = vmmov %vm22211_vm0  ;;  %v15939_v17 = vsel %vm14409_vm1, 1.0, %v22126_v18  ;;  %v3571_v25 = vpack.c.bf16 %v3555_v12, %v3554_v54  ;;  %v22230_v12 = vld [vmem:[#allocation30_spill] sm:$0xff] }
 0x439   : > { %22219 = vst [vmem:[#allocation184_spill] sm:$0xff] %v22218_v56  ;;  %22220 = vst [vmem:[#allocation185_spill] sm:$0xff] %v15926_v50  ;;  %v4138_v10 = vmul.f32 %v22221_v33, %v15891_v20  ;;  %v15934_v57 = vsel %vm22222_vm2, %v4073_v1, %v4074_v23  ;;  %v4141_v52 = vmul.f32 %v15901_v37, %v15907_v7  ;;  %v4079_v40 = vrot.slane %v15236_v51, 1  ;;  %v22227_v1 = vld [vmem:[#allocation38_spill] sm:$0xff]  ;;  %v22231_v37 = vld [vmem:[#allocation39_spill] sm:$0xff] }
 0x43a   : > { %22224 = vst [vmem:[#allocation10_spill] sm:$0xff] %v15939_v17  ;;  %v15946_v33 = vmul.f32 %v15912_v2, %v15356_v28  ;;  %v4474_v55 = vpack.c.bf16 %v22226_v16, %v4442_v35  ;;  %vm22228_vm3 = vcmp.ge.s32.totalorder %v22227_v1, 1  ;;  %v2606_v23 = vand.u32 15, %v22229_v48  ;;  %12260 = vmatmul.mubr.bf16.gmra.mxu0 %v3571_v25  ;;  %v22233_v2 = vld [vmem:[#allocation35_spill] sm:$0xff]  ;;  %v13374_v1 = vld [vmem:[%s21045_s13 + $0x130] sm:$0xff]  }
 0x43b   : > { %vm2986_vm6 = vmand %vm22228_vm3, %vm15916_vm12  ;;  %v4140_v54 = vmul.f32 %v22230_v12, %v15934_v57  ;;  %vm22232_vm1 = vcmp.ge.s32.totalorder %v22231_v37, 1  ;;  %v2608_v51 = vand.u32 15, %v22233_v2  ;;  %v4078_v35 = vrot.slane %v15189_v24, 1  ;;  %v22234_v48 = vld [vmem:[#allocation132_spill] sm:$0xff] }
 0x43c   : > { %22225 = vst [vmem:[#allocation186_spill] sm:$0xff] %v15946_v33  ;;  %vm2988_vm7 = vmand %vm22232_vm1, %vm15920_vm11  ;;  %12327 = vmatprep.mubr.bf16.mxu0 %v4474_v55  ;;  %v4169_v16 = vpack.c.bf16 %v4139_v27, %v4138_v10  ;;  %v4444_v12 = vmul.f32 %v15939_v17, %v22234_v48  ;;  %v15972_v13 = vsel %vm14552_vm9, 1.0, %v22126_v18  ;;  %v15975_v2 = vsel %vm2986_vm6, 1.0, %v22126_v18 }
 0x43d   : > { %v4170_v56 = vpack.c.bf16 %v4141_v52, %v4140_v54  ;;  %22236 = vst [vmem:[#allocation34_spill] sm:$0xff] %v15972_v13  ;;  %22237 = vst [vmem:[#allocation35_spill] sm:$0xff] %v15975_v2  ;;  %v15978_v55 = vsel %vm2988_vm7, 1.0, %v22126_v18  ;;  %v15982_v10 = vsel %vm22211_vm0, %v4078_v35, %v4079_v40  ;;  %vm15984_vm2 = vcmp.le.s32.totalorder %v2606_v23, 14 }
 0x43e   : > { %12280 = vmatmul.mubr.bf16.vlgmr.msra.gmra.mxu1 %v4169_v16  ;;  %22238 = vst [vmem:[#allocation187_spill] sm:$0xff] %v15978_v55  ;;  %22239 = vst [vmem:[#allocation188_spill] sm:$0xff] %v15982_v10  ;;  %v22240_v27 = vmov 0  ;;  %vm15989_vm3 = vcmp.le.s32.totalorder %v2608_v51, 14  ;;  %v22243_v52 = vmov 0  ;;  %v4446_v16 = vmul.f32 %v15972_v13, %v15356_v28  ;;  %v13375_v51 = vld [vmem:[%s21045_s13 + $0x128] sm:$0xff]  }
 0x43f   : > { %v22241_v27 = vsel %vm15984_vm2, 4294967295, %v22240_v27  ;;  %12283 = vmatprep.mubr.bf16.mxu1 %v4170_v56  ;;  %12360 = vmatpush3.bf16.msra.mxu1 %v15593_v61  ;;  %v22244_v52 = vsel %vm15989_vm3, 4294967295, %v22243_v52  ;;  %v4142_v54 = vmul.f32 %v14667_v59, %v15555_v21  ;;  %v4143_v25 = vmul.f32 %v15975_v2, %v15537_v9  ;;  %vm22247_vm6 = vmmov %vm22211_vm0  ;;  %v22249_v28 = vld [vmem:[#allocation133_spill] sm:$0xff]  ;;  %v22250_v2 = vld [vmem:[#allocation50_spill] sm:$0xff] }
 0x440   : > { %22242 = vst [vmem:[#allocation189_spill] sm:$0xff] %v22241_v27  ;;  %22245 = vst [vmem:[#allocation190_spill] sm:$0xff] %v22244_v52  ;;  %12361 = vmatprep.subr.bf16.mxu1 %v13374_v1  ;;  %v22246_v23 = vrot.slane %v15159_v6, 1  ;;  %v4080_v61 = vrot.slane %v15269_v5, 1  ;;  %v4475_v13 = vpack.c.bf16 %v22249_v28, %v4444_v12  ;;  %v4145_v17 = vmul.f32 %v15978_v55, %v15982_v10  ;;  %v22256_v12 = vld [vmem:[#allocation46_spill] sm:$0xff]  ;;  %v13380_v55 = vld [vmem:[%s21045_s13 + $0x170] sm:$0xff]  }
 0x441   : > { %vm22251_vm1 = vcmp.ge.s32.totalorder %v22250_v2, 1  ;;  %v16025_v50 = vsel %vm14637_vm14, 1.0, %v22126_v18  ;;  %v2610_v37 = vand.u32 15, %v22256_v12  ;;  %v4081_v2 = vrot.slane %v15202_v44, 1  ;;  %v22470_v27 = vld [vmem:[#allocation144_spill] sm:$0xff] }
 0x442   : > { %v16003_v56 = vsel %vm22247_vm6, %v22246_v23, %v4078_v35  ;;  %vm16016_vm7 = vmand %vm22251_vm1, %vm15984_vm2  ;;  %v4476_v23 = vpack.c.bf16 %v15315_v47, %v4446_v16  ;;  %22255 = vst [vmem:[#allocation192_spill] sm:$0xff] %v16025_v50  ;;  %12328 = vmatmul.mubr.bf16.vlgmr.msra.gmra.mxu0 %v4475_v13  ;;  %v22257_v47 = vld [vmem:[#allocation51_spill] sm:$0xff]  ;;  %v4082_v12 = vrot.slane %v15254_v43, 1  ;;  %v4171_v33 = vpack.c.bf16 %v4143_v25, %v4142_v54 }
 0x443   : > { %22248 = vst [vmem:[#allocation191_spill] sm:$0xff] %v16003_v56  ;;  %v4144_v28 = vmul.f32 %v14630_v14, %v16003_v56  ;;  %12362 = vmatpush3.bf16.msra.mxu1 %v13374_v1  ;;  %vm22258_vm0 = vcmp.ge.s32.totalorder %v22257_v47, 1  ;;  %v22259_v16 = vld [vmem:[#allocation47_spill] sm:$0xff]  ;;  %v16043_v44 = vsel %vm14654_vm15, 1.0, %v22126_v18  ;;  %v16048_v13 = vsel %vm16016_vm7, 1.0, %v22126_v18  ;;  %v13376_v1 = vld [vmem:[%s21045_s13 + $0x120] sm:$0xff]   ;;  %12408 = vmatpush3.bf16.msra.mxu0 %v15665_v30 }
 0x444   : > { %vm2992_vm6 = vmand %vm22258_vm0, %vm15989_vm3  ;;  %v2612_v35 = vand.u32 15, %v22259_v16  ;;  %12331 = vmatprep.mubr.bf16.mxu0 %v4476_v23  ;;  %22261 = vst [vmem:[#allocation46_spill] sm:$0xff] %v16043_v44  ;;  %12363 = vmatprep.subr.bf16.mxu1 %v13375_v51  ;;  %v22263_v14 = vld [vmem:[#allocation142_spill] sm:$0xff]  ;;  %vm22264_vm1 = vcmp.lt.s32.totalorder %v13870_v32, 7  ;;  %v22269_v47 = vrot.slane %v15336_v60, 1  ;;  %vm16073_vm14 = vcmp.le.s32.totalorder %v2610_v37, 14 }
 0x445   : > { %22262 = vst [vmem:[#allocation47_spill] sm:$0xff] %v16048_v13  ;;  %v4172_v16 = vpack.c.bf16 %v4145_v17, %v4144_v28  ;;  %v4448_v23 = vmul.f32 %v16025_v50, %v22263_v14  ;;  %v16057_v25 = vsel %vm22264_vm1, %v4080_v61, %v4081_v2  ;;  %vm22266_vm0 = vmmov %vm22264_vm1  ;;  %v16065_v59 = vsel %vm2992_vm6, 1.0, %v22126_v18  ;;  %12409 = vmatprep.subr.bf16.mxu0 %v13380_v55  ;;  %v22283_v14 = vld [vmem:[#allocation145_spill] sm:$0xff] }
 0x446   : > { %22265 = vst [vmem:[#allocation193_spill] sm:$0xff] %v16057_v25  ;;  %v16061_v54 = vsel %vm22266_vm0, %v4079_v40, %v4080_v61  ;;  %12284 = vmatmul.mubr.bf16.gmra.mxu1 %v4171_v33  ;;  %22268 = vst [vmem:[#allocation195_spill] sm:$0xff] %v16065_v59  ;;  %v22272_v28 = vmov 0  ;;  %v13381_v40 = vld [vmem:[%s21045_s13 + $0x168] sm:$0xff]   ;;  %vm16080_vm1 = vcmp.le.s32.totalorder %v2612_v35, 14  ;;  %v22275_v30 = vmov 0 }
 0x447   : > { %22267 = vst [vmem:[#allocation194_spill] sm:$0xff] %v16061_v54  ;;  %vm22270_vm7 = vmmov %vm22266_vm0  ;;  %v22273_v28 = vsel %vm16073_vm14, 4294967295, %v22272_v28  ;;  %12287 = vmatprep.mubr.bf16.mxu1 %v4172_v16  ;;  %12364 = vmatpush3.bf16.msra.mxu1 %v13375_v51  ;;  %v22276_v30 = vsel %vm16080_vm1, 4294967295, %v22275_v30  ;;  %v22278_v33 = vld [vmem:[#allocation149_spill] sm:$0xff]  ;;  %v4147_v50 = vmul.f32 %v16048_v13, %v16057_v25  ;;  %v22282_v35 = vld [vmem:[#allocation144_spill] sm:$0xff]  ;;  %v4477_v43 = vpack.c.bf16 %v22283_v14, %v4448_v23 }
 0x448   : > { %v16071_v17 = vsel %vm22270_vm7, %v4082_v12, %v22269_v47  ;;  %22274 = vst [vmem:[#allocation197_spill] sm:$0xff] %v22273_v28  ;;  %22277 = vst [vmem:[#allocation198_spill] sm:$0xff] %v22276_v30  ;;  %v4450_v61 = vmul.f32 %v16043_v44, %v22278_v33  ;;  %v22279_v47 = vld [vmem:[#allocation65_spill] sm:$0xff]  ;;  %12365 = vmatprep.subr.bf16.mxu1 %v13376_v1  ;;  %v4084_v16 = vrot.slane %v22282_v35, 1  ;;  %12410 = vmatpush3.bf16.msra.mxu0 %v13380_v55  ;;  %v22289_v35 = vld [vmem:[#allocation54_spill] sm:$0xff] }
 0x449   : > { %22271 = vst [vmem:[#allocation196_spill] sm:$0xff] %v16071_v17  ;;  %v4146_v37 = vmul.f32 %v22279_v47, %v16061_v54  ;;  %vm22280_vm6 = vmmov %vm22266_vm0  ;;  %v13377_v51 = vld [vmem:[%s21045_s13 + $0x118] sm:$0xff]   ;;  %v4149_v44 = vmul.f32 %v16065_v59, %v16071_v17  ;;  %v22284_v47 = vld [vmem:[#allocation63_spill] sm:$0xff]  ;;  %12411 = vmatprep.subr.bf16.mxu0 %v13381_v40  ;;  %v4085_v28 = vrot.slane %v15327_v11, 1  ;;  %v4086_v17 = vrot.slane %v15348_v19, 1 }
 0x44a   : > { %v16092_v48 = vsel %vm22280_vm6, %v4081_v2, %v4082_v12  ;;  %vm22285_vm0 = vcmp.ge.s32.totalorder %v22284_v47, 1  ;;  %v22288_v12 = vld [vmem:[#allocation147_spill] sm:$0xff]  ;;  %vm22290_vm6 = vnez %v22289_v35  ;;  %v22292_v14 = vld [vmem:[#allocation69_spill] sm:$0xff]  ;;  %v13383_v47 = vld [vmem:[%s21045_s13 + $0x160] sm:$0xff]   ;;  %12332 = vmatmul.mubr.bf16.gmra.mxu0 %v4477_v43 }
 0x44b   : > { %22281 = vst [vmem:[#allocation199_spill] sm:$0xff] %v16092_v48  ;;  %vm16105_vm7 = vmand %vm22285_vm0, %vm16073_vm14  ;;  %v4478_v33 = vpack.c.bf16 %v22288_v12, %v4450_v61  ;;  %v16114_v23 = vsel %vm22290_vm6, 1.0, %v22126_v18  ;;  %v2614_v59 = vand.u32 15, %v22292_v14  ;;  %v22293_v55 = vld [vmem:[#allocation60_spill] sm:$0xff]  ;;  %12366 = vmatpush3.bf16.msra.mxu1 %v13376_v1  ;;  %v22298_v14 = vld [vmem:[#allocation66_spill] sm:$0xff]  ;;  %v4173_v52 = vpack.c.bf16 %v4147_v50, %v4146_v37 }
 0x44c   : > { %22291 = vst [vmem:[#allocation200_spill] sm:$0xff] %v16114_v23  ;;  %v4148_v2 = vmul.f32 %v22293_v55, %v16092_v48  ;;  %v22294_v61 = vld [vmem:[#allocation64_spill] sm:$0xff]  ;;  %v2616_v12 = vand.u32 15, %v22298_v14  ;;  %v22299_v43 = vld [vmem:[#allocation57_spill] sm:$0xff]  ;;  %v16141_v55 = vsel %vm16105_vm7, 1.0, %v22126_v18  ;;  %12367 = vmatprep.subr.bf16.mxu1 %v13377_v51  ;;  %v22306_v37 = vrot.slane %v15336_v60, 1  ;;  %12412 = vmatpush3.bf16.msra.mxu0 %v13381_v40 }
 0x44d   : > { %vm22295_vm0 = vcmp.ge.s32.totalorder %v22294_v61, 1  ;;  %12335 = vmatprep.mubr.bf16.mxu0 %v4478_v33  ;;  %vm22300_vm6 = vnez %v22299_v43  ;;  %22302 = vst [vmem:[#allocation66_spill] sm:$0xff] %v16141_v55  ;;  %v13379_v1 = vld [vmem:[%s21045_s13 + $0x110] sm:$0xff]   ;;  %12413 = vmatprep.subr.bf16.mxu0 %v13383_v47  ;;  %v22316_v40 = vmov 0  ;;  %v22319_v35 = vld [vmem:[#allocation155_spill] sm:$0xff]  ;;  %v22324_v19 = vld [vmem:[#allocation150_spill] sm:$0xff] }
 0x44e   : > { %vm16127_vm15 = vmand %vm22295_vm0, %vm16080_vm1  ;;  %v16136_v11 = vsel %vm22300_vm6, 1.0, %v22126_v18  ;;  %v4174_v14 = vpack.c.bf16 %v4149_v44, %v4148_v2  ;;  %v22303_v61 = vld [vmem:[#allocation148_spill] sm:$0xff]  ;;  %vm22304_vm0 = vcmp.lt.s32.totalorder %v13870_v32, 7  ;;  %12288 = vmatmul.mubr.bf16.gmra.mxu1 %v4173_v52  ;;  %v22310_v44 = vrot.slane %v15403_v45, 1  ;;  %v13384_v52 = vld [vmem:[%s21045_s13 + $0x158] sm:$0xff]  }
 0x44f   : > { %22301 = vst [vmem:[#allocation69_spill] sm:$0xff] %v16136_v11  ;;  %v4452_v33 = vmul.f32 %v16114_v23, %v22303_v61  ;;  %v16150_v50 = vsel %vm22304_vm0, %v4084_v16, %v4085_v28  ;;  %vm22307_vm6 = vmmov %vm22304_vm0  ;;  %v16161_v43 = vsel %vm16127_vm15, 1.0, %v22126_v18  ;;  %v22313_v23 = vmov 0  ;;  %12368 = vmatpush3.bf16.msra.mxu1 %v13377_v51 }
 0x450   : > { %22305 = vst [vmem:[#allocation201_spill] sm:$0xff] %v16150_v50  ;;  %v16156_v13 = vsel %vm22307_vm6, %v22306_v37, %v4084_v16  ;;  %22309 = vst [vmem:[#allocation203_spill] sm:$0xff] %v16161_v43  ;;  %12291 = vmatprep.mubr.bf16.mxu1 %v4174_v14  ;;  %vm16176_vm6 = vcmp.le.s32.totalorder %v2616_v12, 14  ;;  %v4454_v16 = vmul.f32 %v16136_v11, %v22319_v35  ;;  %v22320_v37 = vld [vmem:[#allocation73_spill] sm:$0xff]  ;;  %12369 = vmatprep.subr.bf16.mxu1 %v13379_v1  ;;  %v13382_v12 = vld [vmem:[%s21045_s13 + $0x108] sm:$0xff]  }
 0x451   : > { %22308 = vst [vmem:[#allocation202_spill] sm:$0xff] %v16156_v13  ;;  %vm22311_vm7 = vmmov %vm22304_vm0  ;;  %vm16169_vm0 = vcmp.le.s32.totalorder %v2614_v59, 14  ;;  %v22317_v40 = vsel %vm16176_vm6, 4294967295, %v22316_v40  ;;  %v4150_v59 = vmul.f32 %v22320_v37, %v16156_v13  ;;  %v22323_v14 = vld [vmem:[#allocation151_spill] sm:$0xff]  ;;  %v4479_v30 = vpack.c.bf16 %v22324_v19, %v4452_v33  ;;  %12414 = vmatpush3.bf16.msra.mxu0 %v13383_v47  ;;  %v22333_v19 = vld [vmem:[#allocation82_spill] sm:$0xff] }
 0x452   : > { %v16167_v2 = vsel %vm22311_vm7, %v4086_v17, %v22310_v44  ;;  %v22314_v23 = vsel %vm16169_vm0, 4294967295, %v22313_v23  ;;  %22318 = vst [vmem:[#allocation206_spill] sm:$0xff] %v22317_v40  ;;  %v4151_v44 = vmul.f32 %v16141_v55, %v16150_v50  ;;  %vm22321_vm15 = vmmov %vm22311_vm7  ;;  %v4088_v51 = vrot.slane %v22323_v14, 1  ;;  %v22325_v37 = vld [vmem:[#allocation87_spill] sm:$0xff]  ;;  %v22330_v14 = vld [vmem:[#allocation74_spill] sm:$0xff]  ;;  %12415 = vmatprep.subr.bf16.mxu0 %v13384_v52 }
 0x453   : > { %22312 = vst [vmem:[#allocation204_spill] sm:$0xff] %v16167_v2  ;;  %22315 = vst [vmem:[#allocation205_spill] sm:$0xff] %v22314_v23  ;;  %v16188_v61 = vsel %vm22321_vm15, %v4085_v28, %v4086_v17  ;;  %v4153_v11 = vmul.f32 %v16161_v43, %v16167_v2  ;;  %vm22326_vm7 = vcmp.ge.s32.totalorder %v22325_v37, 1  ;;  %v22329_v28 = vld [vmem:[#allocation153_spill] sm:$0xff]  ;;  %vm22331_vm15 = vnez %v22330_v14  ;;  %v13386_v37 = vld [vmem:[%s21045_s13 + $0x150] sm:$0xff]   ;;  %12336 = vmatmul.mubr.bf16.gmra.mxu0 %v4479_v30 }
 0x454   : > { %22322 = vst [vmem:[#allocation207_spill] sm:$0xff] %v16188_v61  ;;  %vm16201_vm9 = vmand %vm22326_vm7, %vm16169_vm0  ;;  %v4480_v35 = vpack.c.bf16 %v22329_v28, %v4454_v16  ;;  %v16210_v33 = vsel %vm22331_vm15, 1.0, %v22126_v18  ;;  %v2618_v43 = vand.u32 15, %v22333_v19  ;;  %v22334_v23 = vld [vmem:[#allocation146_spill] sm:$0xff]  ;;  %v22335_v47 = vld [vmem:[#allocation72_spill] sm:$0xff]  ;;  %12370 = vmatpush3.bf16.msra.mxu1 %v13379_v1  ;;  %v4090_v13 = vrot.slane %v15469_v0, 1 }
 0x455   : > { %22332 = vst [vmem:[#allocation208_spill] sm:$0xff] %v16210_v33  ;;  %v4089_v2 = vrot.slane %v22334_v23, 1  ;;  %v4152_v17 = vmul.f32 %v22335_v47, %v16188_v61  ;;  %v22336_v16 = vld [vmem:[#allocation84_spill] sm:$0xff]  ;;  %v22340_v19 = vld [vmem:[#allocation78_spill] sm:$0xff]  ;;  %v4175_v48 = vpack.c.bf16 %v4151_v44, %v4150_v59  ;;  %v16237_v47 = vsel %vm16201_vm9, 1.0, %v22126_v18  ;;  %12371 = vmatprep.subr.bf16.mxu1 %v13382_v12  ;;  %12416 = vmatpush3.bf16.msra.mxu0 %v13384_v52  ;;  %v22361_v14 = vld [vmem:[#allocation127_spill] sm:$0xff] }
 0x456   : > { %vm22337_vm7 = vcmp.ge.s32.totalorder %v22336_v16, 1  ;;  %v2620_v28 = vand.u32 15, %v22340_v19  ;;  %12339 = vmatprep.mubr.bf16.mxu0 %v4480_v35  ;;  %v22341_v30 = vld [vmem:[#allocation86_spill] sm:$0xff]  ;;  %22344 = vst [vmem:[#allocation78_spill] sm:$0xff] %v16237_v47  ;;  %v22348_v44 = vrot.slane %v15403_v45, 1  ;;  %12417 = vmatprep.subr.bf16.mxu0 %v13386_v37  ;;  %v22358_v52 = vmov 0 }
 0x457   : > { %vm16223_vm0 = vmand %vm22337_vm7, %vm16176_vm6  ;;  %vm22342_vm15 = vnez %v22341_v30  ;;  %v13385_v19 = vld [vmem:[%s21045_s13 + $0x100] sm:$0xff]   ;;  %v4176_v1 = vpack.c.bf16 %v4153_v11, %v4152_v17  ;;  %vm22346_vm7 = vcmp.lt.s32.totalorder %v13870_v32, 7  ;;  %12292 = vmatmul.mubr.bf16.gmra.mxu1 %v4175_v48  ;;  %v22352_v11 = vrot.slane %v15573_v46, 1  ;;  %v13387_v48 = vld [vmem:[%s21045_s13 + $0x148] sm:$0xff]  }
 0x458   : > { %v16232_v23 = vsel %vm22342_vm15, 1.0, %v22126_v18  ;;  %v22345_v16 = vld [vmem:[#allocation154_spill] sm:$0xff]  ;;  %v16246_v59 = vsel %vm22346_vm7, %v4088_v51, %v4089_v2  ;;  %vm22349_vm15 = vmmov %vm22346_vm7  ;;  %v16257_v30 = vsel %vm16223_vm0, 1.0, %v22126_v18  ;;  %12372 = vmatpush3.bf16.msra.mxu1 %v13382_v12  ;;  %v22366_v0 = vld [vmem:[#allocation157_spill] sm:$0xff] }
 0x459   : > { %22343 = vst [vmem:[#allocation82_spill] sm:$0xff] %v16232_v23  ;;  %v4456_v35 = vmul.f32 %v16210_v33, %v22345_v16  ;;  %22347 = vst [vmem:[#allocation209_spill] sm:$0xff] %v16246_v59  ;;  %v16252_v55 = vsel %vm22349_vm15, %v22348_v44, %v4088_v51  ;;  %v22355_v33 = vmov 0  ;;  %12295 = vmatprep.mubr.bf16.mxu1 %v4176_v1  ;;  %vm16272_vm15 = vcmp.le.s32.totalorder %v2620_v28, 14  ;;  %v22362_v44 = vld [vmem:[#allocation99_spill] sm:$0xff]  ;;  %12373 = vmatprep.subr.bf16.mxu1 %v13385_v19  ;;  %v16289_v28 = vld [vmem:[%s21045_s13 + $0x1b8] sm:$0xff]  }
 0x45a   : > { %22350 = vst [vmem:[#allocation210_spill] sm:$0xff] %v16252_v55  ;;  %22351 = vst [vmem:[#allocation211_spill] sm:$0xff] %v16257_v30  ;;  %v22359_v52 = vsel %vm16272_vm15, 4294967295, %v22358_v52  ;;  %v4458_v51 = vmul.f32 %v16232_v23, %v22361_v14  ;;  %v22365_v12 = vld [vmem:[#allocation162_spill] sm:$0xff]  ;;  %12418 = vmatpush3.bf16.msra.mxu0 %v13386_v37  ;;  %v22371_v14 = vld [vmem:[#allocation124_spill] sm:$0xff] }
 0x45b   : > { %vm22353_vm9 = vmmov %vm22346_vm7  ;;  %vm16265_vm7 = vcmp.le.s32.totalorder %v2618_v43, 14  ;;  %22360 = vst [vmem:[#allocation214_spill] sm:$0xff] %v22359_v52  ;;  %v4154_v43 = vmul.f32 %v22362_v44, %v16252_v55  ;;  %v4092_v1 = vrot.slane %v22365_v12, 1  ;;  %v4481_v23 = vpack.c.bf16 %v22366_v0, %v4456_v35  ;;  %v22372_v12 = vld [vmem:[#allocation90_spill] sm:$0xff]  ;;  %v22375_v0 = vld [vmem:[#allocation95_spill] sm:$0xff]  ;;  %12419 = vmatprep.subr.bf16.mxu0 %v13387_v48 }
 0x45c   : > { %v16263_v17 = vsel %vm22353_vm9, %v4090_v13, %v22352_v11  ;;  %v22356_v33 = vsel %vm16265_vm7, 4294967295, %v22355_v33  ;;  %v4155_v11 = vmul.f32 %v16237_v47, %v16246_v59  ;;  %vm22363_vm0 = vmmov %vm22353_vm9  ;;  %v22367_v47 = vld [vmem:[#allocation98_spill] sm:$0xff]  ;;  %v4482_v40 = vpack.c.bf16 %v22371_v14, %v4458_v51  ;;  %v22376_v37 = vld [vmem:[#allocation100_spill] sm:$0xff]  ;;  %12374 = vmatpush3.bf16.msra.mxu1 %v13385_v19 }
 0x45d   : > { %22354 = vst [vmem:[#allocation212_spill] sm:$0xff] %v16263_v17  ;;  %22357 = vst [vmem:[#allocation213_spill] sm:$0xff] %v22356_v33  ;;  %v16284_v16 = vsel %vm22363_vm0, %v4089_v2, %v4090_v13  ;;  %v4157_v44 = vmul.f32 %v16257_v30, %v16263_v17  ;;  %vm22368_vm9 = vcmp.ge.s32.totalorder %v22367_v47, 1  ;;  %v4095_v2 = vrot.slane %v15715_v3, 1  ;;  %v13389_v47 = vld [vmem:[%s21045_s13 + $0x140] sm:$0xff]   ;;  %12340 = vmatmul.mubr.bf16.gmra.mxu0 %v4481_v23  ;;  %v16360_v13 = vld [vmem:[%s21045_s13 + $0x1f8] sm:$0xff]  }
 0x45e   : > { %22364 = vst [vmem:[#allocation215_spill] sm:$0xff] %v16284_v16  ;;  %vm16299_vm6 = vmand %vm22368_vm9, %vm16265_vm7  ;;  %vm22373_vm0 = vnez %v22372_v12  ;;  %v2622_v30 = vand.u32 15, %v22375_v0  ;;  %v4093_v33 = vrot.slane %v15558_v31, 1  ;;  %v4156_v3 = vmul.f32 %v22376_v37, %v16284_v16  ;;  %v22377_v51 = vld [vmem:[#allocation94_spill] sm:$0xff]  ;;  %v22379_v12 = vld [vmem:[#allocation89_spill] sm:$0xff]  ;;  %12343 = vmatprep.mubr.bf16.mxu0 %v4482_v40  ;;  %12455 = vmatprep.subr.bf16.mxu1 %v16289_v28 }
 0x45f   : > { %v16308_v35 = vsel %vm22373_vm0, 1.0, %v22126_v18  ;;  %vm22378_vm9 = vcmp.ge.s32.totalorder %v22377_v51, 1  ;;  %v2624_v14 = vand.u32 15, %v22379_v12  ;;  %v4094_v0 = vrot.slane %v15582_v62, 1  ;;  %v22383_v51 = vld [vmem:[#allocation128_spill] sm:$0xff]  ;;  %12420 = vmatpush3.bf16.msra.mxu0 %v13387_v48  ;;  %v22398_v48 = vld [vmem:[#allocation169_spill] sm:$0xff] }
 0x460   : > { %22374 = vst [vmem:[#allocation216_spill] sm:$0xff] %v16308_v35  ;;  %vm3004_vm7 = vmand %vm22378_vm9, %vm16272_vm15  ;;  %v4177_v17 = vpack.c.bf16 %v4155_v11, %v4154_v43  ;;  %v16326_v31 = vsel %vm14922_vm10, 1.0, %v22126_v18  ;;  %v16331_v23 = vsel %vm16299_vm6, 1.0, %v22126_v18  ;;  %v4178_v37 = vpack.c.bf16 %v4157_v44, %v4156_v3  ;;  %12421 = vmatprep.subr.bf16.mxu0 %v13389_v47 }
 0x461   : > { %22381 = vst [vmem:[#allocation95_spill] sm:$0xff] %v16326_v31  ;;  %22382 = vst [vmem:[#allocation89_spill] sm:$0xff] %v16331_v23  ;;  %v4460_v19 = vmul.f32 %v16308_v35, %v22383_v51  ;;  %vm22384_vm9 = vcmp.lt.s32.totalorder %v13870_v32, 7  ;;  %v22386_v43 = vrot.slane %v15573_v46, 1  ;;  %v16347_v12 = vsel %vm3004_vm7, 1.0, %v22126_v18 }
 0x462   : > { %v16338_v40 = vsel %vm22384_vm9, %v4092_v1, %v4093_v33  ;;  %vm22387_vm0 = vmmov %vm22384_vm9  ;;  %12296 = vmatmul.mubr.bf16.gmra.mxu1 %v4177_v17  ;;  %22389 = vst [vmem:[#allocation219_spill] sm:$0xff] %v16347_v12  ;;  %vm16353_vm10 = vcmp.le.s32.totalorder %v2622_v30, 14  ;;  %v22392_v44 = vmov 0  ;;  %v22395_v17 = vmov 0 }
 0x463   : > { %22385 = vst [vmem:[#allocation217_spill] sm:$0xff] %v16338_v40  ;;  %v16344_v11 = vsel %vm22387_vm0, %v22386_v43, %v4092_v1  ;;  %vm22390_vm6 = vmmov %vm22387_vm0  ;;  %v22393_v44 = vsel %vm16353_vm10, 4294967295, %v22392_v44  ;;  %12299 = vmatprep.mubr.bf16.mxu1 %v4178_v37  ;;  %vm16362_vm0 = vcmp.le.s32.totalorder %v2624_v14, 14  ;;  %v4462_v1 = vmul.f32 %v16326_v31, %v22398_v48  ;;  %v22399_v43 = vld [vmem:[#allocation111_spill] sm:$0xff]  ;;  %v22403_v31 = vld [vmem:[#allocation116_spill] sm:$0xff]  ;;  %12422 = vmatpush3.bf16.msra.mxu0 %v13389_v47 }
 0x464   : > { %22388 = vst [vmem:[#allocation218_spill] sm:$0xff] %v16344_v11  ;;  %v16351_v3 = vsel %vm22390_vm6, %v4094_v0, %v4095_v2  ;;  %22394 = vst [vmem:[#allocation221_spill] sm:$0xff] %v22393_v44  ;;  %v22396_v17 = vsel %vm16362_vm0, 4294967295, %v22395_v17  ;;  %v4158_v30 = vmul.f32 %v22399_v43, %v16344_v11  ;;  %v4159_v35 = vmul.f32 %v16331_v23, %v16338_v40  ;;  %v22402_v37 = vld [vmem:[#allocation163_spill] sm:$0xff]  ;;  %v22405_v23 = vld [vmem:[#allocation164_spill] sm:$0xff] }
 0x465   : > { %22391 = vst [vmem:[#allocation220_spill] sm:$0xff] %v16351_v3  ;;  %22397 = vst [vmem:[#allocation222_spill] sm:$0xff] %v22396_v17  ;;  %v4096_v51 = vrot.slane %v15702_v22, 1  ;;  %v4483_v14 = vpack.c.bf16 %v22402_v37, %v4460_v19  ;;  %v4161_v62 = vmul.f32 %v16347_v12, %v16351_v3  ;;  %vm22404_vm9 = vcmp.ge.s32.totalorder %v22403_v31, 1  ;;  %12503 = vmatprep.subr.bf16.mxu0 %v16360_v13  ;;  %v22409_v12 = vld [vmem:[#allocation113_spill] sm:$0xff]  ;;  %v22412_v31 = vld [vmem:[#allocation43_spill] sm:$0xff] }
 0x466   : > { %vm22400_vm7 = vmmov %vm22390_vm6  ;;  %v4099_v43 = vrot.slane %v15792_v38, 1  ;;  %v4484_v48 = vpack.c.bf16 %v22405_v23, %v4462_v1  ;;  %v4097_v19 = vrot.slane %v15700_v8, 1  ;;  %v22410_v47 = vld [vmem:[#allocation109_spill] sm:$0xff]  ;;  %v2626_v1 = vand.u32 15, %v22412_v31  ;;  %v22417_v8 = vld [vmem:[#allocation167_spill] sm:$0xff] }
 0x467   : > { %v16374_v55 = vsel %vm22400_vm7, %v4093_v33, %v4094_v0  ;;  %vm3006_vm6 = vmand %vm22404_vm9, %vm16353_vm10  ;;  %v22406_v33 = vld [vmem:[#allocation101_spill] sm:$0xff]  ;;  %12344 = vmatmul.mubr.bf16.gmra.mxu0 %v4483_v14  ;;  %vm22411_vm9 = vcmp.ge.s32.totalorder %v22410_v47, 1  ;;  %v4098_v23 = vrot.slane %v15718_v26, 1 }
 0x468   : > { %22401 = vst [vmem:[#allocation223_spill] sm:$0xff] %v16374_v55  ;;  %vm22407_vm7 = vnez %v22406_v33  ;;  %v4160_v37 = vmul.f32 %v22409_v12, %v16374_v55  ;;  %vm3008_vm10 = vmand %vm22411_vm9, %vm16362_vm0  ;;  %12347 = vmatprep.mubr.bf16.mxu0 %v4484_v48  ;;  %v4179_v33 = vpack.c.bf16 %v4159_v35, %v4158_v30  ;;  %v22413_v38 = vld [vmem:[#allocation105_spill] sm:$0xff]  ;;  %v16407_v14 = vsel %vm3006_vm6, 1.0, %v22126_v18 }
 0x469   : > { %v16389_v0 = vsel %vm22407_vm7, 1.0, %v22126_v18  ;;  %vm22414_vm7 = vnez %v22413_v38  ;;  %22416 = vst [vmem:[#allocation225_spill] sm:$0xff] %v16407_v14  ;;  %vm22418_vm9 = vcmp.lt.s32.totalorder %v13870_v32, 7  ;;  %v16420_v35 = vsel %vm3008_vm10, 1.0, %v22126_v18  ;;  %v22453_v32 = vld [vmem:[#allocation139_spill] sm:$0xff] }
 0x46a   : > { %22408 = vst [vmem:[#allocation224_spill] sm:$0xff] %v16389_v0  ;;  %v16404_v44 = vsel %vm22414_vm7, 1.0, %v22126_v18  ;;  %v4180_v12 = vpack.c.bf16 %v4161_v62, %v4160_v37  ;;  %v4464_v17 = vmul.f32 %v16389_v0, %v22417_v8  ;;  %v16413_v47 = vsel %vm22418_vm9, %v4096_v51, %v4097_v19  ;;  %vm22420_vm0 = vmmov %vm22418_vm9  ;;  %12300 = vmatmul.mubr.bf16.gmra.mxu1 %v4179_v33 }
 0x46b   : > { %22415 = vst [vmem:[#allocation43_spill] sm:$0xff] %v16404_v44  ;;  %22419 = vst [vmem:[#allocation226_spill] sm:$0xff] %v16413_v47  ;;  %v16417_v31 = vsel %vm22420_vm0, %v4095_v2, %v4096_v51  ;;  %vm16426_vm6 = vcmp.le.s32.totalorder %v2626_v1, 14  ;;  %v22425_v62 = vmov 0  ;;  %v4466_v30 = vmul.f32 %v16404_v44, %v15789_v34  ;;  %v22432_v44 = vld [vmem:[#allocation41_spill] sm:$0xff] }
 0x46c   : > { %22421 = vst [vmem:[#allocation227_spill] sm:$0xff] %v16417_v31  ;;  %22422 = vst [vmem:[#allocation228_spill] sm:$0xff] %v16420_v35  ;;  %12303 = vmatprep.mubr.bf16.mxu1 %v4180_v12  ;;  %v22426_v62 = vsel %vm16426_vm6, 4294967295, %v22425_v62  ;;  %v4162_v2 = vmul.f32 %v22157_v15, %v16417_v31  ;;  %v4163_v51 = vmul.f32 %v16407_v14, %v16413_v47  ;;  %v4100_v33 = vrot.slane %v15257_v36, 1  ;;  %v22430_v12 = vld [vmem:[#allocation170_spill] sm:$0xff]  ;;  %v22433_v14 = vld [vmem:[#allocation156_spill] sm:$0xff] }
 0x46d   : > { %vm22423_vm7 = vmmov %vm22420_vm0  ;;  %22427 = vst [vmem:[#allocation230_spill] sm:$0xff] %v22426_v62  ;;  %v4485_v1 = vpack.c.bf16 %v22430_v12, %v4464_v17  ;;  %v4486_v15 = vpack.c.bf16 %v22432_v44, %v4466_v30  ;;  %vm22434_vm9 = vnez %v22433_v14  ;;  %v16459_v38 = vsel %vm15631_vm5, 1.0, %v22126_v18  ;;  %v22440_v44 = vld [vmem:[#allocation172_spill] sm:$0xff]  ;;  %v22441_v12 = vld [vmem:[#allocation134_spill] sm:$0xff] }
 0x46e   : > { %v16424_v48 = vsel %vm22423_vm7, %v4098_v23, %v4099_v43  ;;  %vm22428_vm10 = vmmov %vm22420_vm0  ;;  %vm22431_vm0 = vcmp.ge.s32.totalorder %v22153_v4, 1  ;;  %v16452_v34 = vsel %vm22434_vm9, 1.0, %v22126_v18  ;;  %v4181_v17 = vpack.c.bf16 %v4163_v51, %v4162_v2  ;;  %22438 = vst [vmem:[#allocation85_spill] sm:$0xff] %v16459_v38 }
 0x46f   : > { %22424 = vst [vmem:[#allocation229_spill] sm:$0xff] %v16424_v48  ;;  %v16438_v37 = vsel %vm22428_vm10, %v4097_v19, %v4098_v23  ;;  %v4165_v0 = vmul.f32 %v16420_v35, %v16424_v48  ;;  %vm3010_vm7 = vmand %vm22431_vm0, %vm16426_vm6  ;;  %12348 = vmatmul.mubr.bf16.gmra.mxu0 %v4485_v1  ;;  %v22436_v23 = vld [vmem:[#allocation118_spill] sm:$0xff]  ;;  %v4468_v14 = vmul.f32 %v16452_v34, %v22440_v44  ;;  %v22442_v8 = vrot.slane %v22441_v12, 1 }
 0x470   : > { %22429 = vst [vmem:[#allocation231_spill] sm:$0xff] %v16438_v37  ;;  %22435 = vst [vmem:[#allocation232_spill] sm:$0xff] %v16452_v34  ;;  %v4164_v19 = vmul.f32 %v22436_v23, %v16438_v37  ;;  %12351 = vmatprep.mubr.bf16.mxu0 %v4486_v15  ;;  %v16462_v4 = vsel %vm3010_vm7, 1.0, %v22126_v18  ;;  %v4470_v2 = vmul.f32 %v16459_v38, %v15881_v58  ;;  %v22450_v38 = vld [vmem:[#allocation123_spill] sm:$0xff]  ;;  %v22452_v23 = vld [vmem:[#allocation140_spill] sm:$0xff] }
 0x471   : > { %22439 = vst [vmem:[#allocation233_spill] sm:$0xff] %v16462_v4  ;;  %v16470_v1 = vsel %vm22428_vm10, %v4100_v33, %v22442_v8  ;;  %vm22444_vm0 = vmmov %vm22428_vm10  ;;  %v22454_v34 = vld [vmem:[#allocation106_spill] sm:$0xff] }
 0x472   : > { %v4182_v30 = vpack.c.bf16 %v4165_v0, %v4164_v19  ;;  %22443 = vst [vmem:[#allocation172_spill] sm:$0xff] %v16470_v1  ;;  %v16474_v15 = vsel %vm22444_vm0, %v4099_v43, %v4100_v33  ;;  %12304 = vmatmul.mubr.bf16.gmra.mxu1 %v4181_v17  ;;  %v4167_v51 = vmul.f32 %v16462_v4, %v16470_v1  ;;  %v16487_v43 = vsel %vm15779_vm8, 1.0, %v22126_v18 }
 0x473   : > { %22445 = vst [vmem:[#allocation134_spill] sm:$0xff] %v16474_v15  ;;  %v4166_v0 = vmul.f32 %v15828_v39, %v16474_v15  ;;  %v4487_v19 = vpack.c.bf16 %v15798_v63, %v4468_v14  ;;  %v4488_v8 = vpack.c.bf16 %v15856_v53, %v4470_v2  ;;  %22447 = vst [vmem:[#allocation234_spill] sm:$0xff] %v16487_v43  ;;  %v16492_v17 = vsel %vm15694_vm4, 1.0, %v22126_v18  ;;  %v22451_v39 = vld [vmem:[#allocation122_spill] sm:$0xff] }
 0x474   : > { %12307 = vmatprep.mubr.bf16.mxu1 %v4182_v30  ;;  %22449 = vst [vmem:[#allocation235_spill] sm:$0xff] %v16492_v17  ;;  %v4748_v4 = vpack.c.bf16 %v22451_v39, %v22450_v38  ;;  %v4472_v14 = vmul.f32 %v16487_v43, %v22452_v23  ;;  %v5023_v2 = vmul.f32 %v16492_v17, %v15887_v42  ;;  %v16532_v42 = vsel %vm15916_vm12, 1.0, %v22126_v18  ;;  %v22553_v39 = vld [vmem:[#allocation150_spill] sm:$0xff] }
 0x475   : > { %v4183_v30 = vpack.c.bf16 %v4167_v51, %v4166_v0  ;;  %vm22455_vm7 = vnez %v22454_v34  ;;  %v16510_v51 = vsel %vm15837_vm13, 1.0, %v22126_v18  ;;  %22461 = vst [vmem:[#allocation106_spill] sm:$0xff] %v16532_v42 }
 0x476   : > { %v16504_v33 = vsel %vm22455_vm7, 1.0, %v22126_v18  ;;  %v5054_v0 = vpack.c.bf16 %v5023_v2, %v15891_v20  ;;  %22457 = vst [vmem:[#allocation139_spill] sm:$0xff] %v16510_v51  ;;  %v13395_v20 = vld [vmem:[%s21045_s13 + $0x190] sm:$0xff]  }
 0x477   : > { %12352 = vmatmul.mubr.bf16.gmra.mxu0 %v4487_v19  ;;  %v4489_v19 = vpack.c.bf16 %v22453_v32, %v4472_v14  ;;  %22456 = vst [vmem:[#allocation140_spill] sm:$0xff] %v16504_v33  ;;  %v5025_v34 = vmul.f32 %v16504_v33, %v15907_v7  ;;  %v22459_v14 = vld [vmem:[#allocation130_spill] sm:$0xff] }
 0x478   : > { %12355 = vmatprep.mubr.bf16.mxu0 %v4488_v8  ;;  %v22458_v8 = vld [vmem:[#allocation121_spill] sm:$0xff]  ;;  %v4750_v2 = vpack.c.bf16 %v22459_v14, %v15174_v41 }
 0x479   : > { %v5055_v17 = vpack.c.bf16 %v5025_v34, %v15934_v57  ;;  %v13392_v34 = vld [vmem:[%s21045_s13 + $0x1a0] sm:$0xff]  }
 0x47a   : > { %12308 = vmatmul.mubr.bf16.gmra.mxu1 %v4183_v30  ;;  %v4749_v30 = vpack.c.bf16 %v15106_v49, %v22458_v8 }
 0x47b   : > { %12375 = vmatprep.mubr.bf16.mxu1 %v4748_v4  ;;  %v13390_v4 = vld [vmem:[%s21045_s13 + $0x1b0] sm:$0xff]  }
 0x47f   : > { %12356 = vmatmul.mubr.bf16.gmra.mxu0 %v4489_v19  ;;  %v5027_v19 = vmul.f32 %v16510_v51, %v15537_v9  ;;  %v13396_v9 = vld [vmem:[%s21045_s13 + $0x1f0] sm:$0xff]   ;;  %v13393_v51 = vld [vmem:[%s21045_s13 + $0x198] sm:$0xff]  }
 0x480   : > { %12423 = vmatprep.mubr.bf16.mxu0 %v5054_v0  ;;  %v13391_v0 = vld [vmem:[%s21045_s13 + $0x1a8] sm:$0xff]  }
 0x481   : > { %v5056_v43 = vpack.c.bf16 %v5027_v19, %v15555_v21  ;;  %v4751_v21 = vpack.c.bf16 %v15189_v24, %v15159_v6 }
 0x482   : > { %12376 = vmatmul.mubr.bf16.vlgmr.msra.gmra.mxu1 %v4749_v30  ;;  %v16540_v30 = vsel %vm15920_vm11, 1.0, %v22126_v18 }
 0x483   : > { %12379 = vmatprep.mubr.bf16.mxu1 %v4750_v2  ;;  %12456 = vmatpush3.bf16.msra.mxu1 %v16289_v28  ;;  %22463 = vst [vmem:[#allocation121_spill] sm:$0xff] %v16540_v30  ;;  %v22464_v2 = vld [vmem:[#allocation135_spill] sm:$0xff] }
 0x484   : > { %12457 = vmatprep.subr.bf16.mxu1 %v13390_v4  ;;  %v4752_v19 = vpack.c.bf16 %v15269_v5, %v22464_v2  ;;  %v22472_v28 = vld [vmem:[#allocation199_spill] sm:$0xff] }
 0x487   : > { %12424 = vmatmul.mubr.bf16.vlgmr.msra.gmra.mxu0 %v5055_v17  ;;  %12458 = vmatpush3.bf16.msra.mxu1 %v13390_v4  ;;  %v5029_v17 = vmul.f32 %v16532_v42, %v15982_v10  ;;  %v13397_v4 = vld [vmem:[%s21045_s13 + $0x1e8] sm:$0xff]  }
 0x488   : > { %12427 = vmatprep.mubr.bf16.mxu0 %v5056_v43  ;;  %12459 = vmatprep.subr.bf16.mxu1 %v13391_v0  ;;  %v5031_v43 = vmul.f32 %v16540_v30, %v16057_v25  ;;  %v16573_v30 = vsel %vm15989_vm3, 1.0, %v22126_v18  ;;  %v4754_v25 = vpack.c.bf16 %v22470_v27, %v15336_v60 }
 0x489   : > { %12504 = vmatpush3.bf16.msra.mxu0 %v16360_v13  ;;  %v5057_v42 = vpack.c.bf16 %v5029_v17, %v16003_v56  ;;  %22467 = vst [vmem:[#allocation135_spill] sm:$0xff] %v16573_v30  ;;  %v22469_v17 = vld [vmem:[#allocation137_spill] sm:$0xff] }
 0x48a   : > { %12380 = vmatmul.mubr.bf16.gmra.mxu1 %v4751_v21  ;;  %12505 = vmatprep.subr.bf16.mxu0 %v13396_v9  ;;  %v5058_v13 = vpack.c.bf16 %v5031_v43, %v16061_v54  ;;  %v16565_v21 = vsel %vm15984_vm2, 1.0, %v22126_v18  ;;  %v22471_v54 = vld [vmem:[#allocation196_spill] sm:$0xff] }
 0x48b   : > { %12383 = vmatprep.mubr.bf16.mxu1 %v4752_v19  ;;  %12460 = vmatpush3.bf16.msra.mxu1 %v13391_v0  ;;  %22465 = vst [vmem:[#allocation130_spill] sm:$0xff] %v16565_v21  ;;  %v13399_v0 = vld [vmem:[%s21045_s13 + $0x1e0] sm:$0xff]   ;;  %v13398_v19 = vld [vmem:[%s21045_s13 + $0x188] sm:$0xff]  }
 0x48c   : > { %12461 = vmatprep.subr.bf16.mxu1 %v13392_v34 }
 0x48d   : > { %12506 = vmatpush3.bf16.msra.mxu0 %v13396_v9  ;;  %v22468_v9 = vld [vmem:[#allocation131_spill] sm:$0xff] }
 0x48e   : > { %12507 = vmatprep.subr.bf16.mxu0 %v13397_v4  ;;  %v4753_v43 = vpack.c.bf16 %v22469_v17, %v22468_v9 }
 0x48f   : > { %12428 = vmatmul.mubr.bf16.gmra.mxu0 %v5057_v42  ;;  %12462 = vmatpush3.bf16.msra.mxu1 %v13392_v34  ;;  %v5033_v42 = vmul.f32 %v16565_v21, %v22471_v54  ;;  %v5035_v34 = vmul.f32 %v16573_v30, %v16150_v50  ;;  %v16597_v30 = vsel %vm16073_vm14, 1.0, %v22126_v18  ;;  %v16605_v50 = vsel %vm16080_vm1, 1.0, %v22126_v18  ;;  %v13401_v21 = vld [vmem:[%s21045_s13 + $0x180] sm:$0xff]   ;;  %v22481_v54 = vld [vmem:[#allocation204_spill] sm:$0xff] }
 0x490   : > { %12431 = vmatprep.mubr.bf16.mxu0 %v5058_v13  ;;  %12463 = vmatprep.subr.bf16.mxu1 %v13393_v51  ;;  %v13400_v13 = vld [vmem:[%s21045_s13 + $0x1d8] sm:$0xff]   ;;  %22475 = vst [vmem:[#allocation131_spill] sm:$0xff] %v16597_v30  ;;  %22477 = vst [vmem:[#allocation137_spill] sm:$0xff] %v16605_v50 }
 0x491   : > { %12508 = vmatpush3.bf16.msra.mxu0 %v13397_v4  ;;  %v5059_v56 = vpack.c.bf16 %v5033_v42, %v22472_v28  ;;  %v22473_v4 = vld [vmem:[#allocation202_spill] sm:$0xff]  ;;  %v22479_v42 = vld [vmem:[#allocation143_spill] sm:$0xff] }
 0x492   : > { %12384 = vmatmul.mubr.bf16.gmra.mxu1 %v4753_v43  ;;  %12509 = vmatprep.subr.bf16.mxu0 %v13399_v0  ;;  %v5060_v43 = vpack.c.bf16 %v5035_v34, %v22473_v4  ;;  %v22480_v4 = vld [vmem:[#allocation151_spill] sm:$0xff] }
 0x493   : > { %12387 = vmatprep.mubr.bf16.mxu1 %v4754_v25  ;;  %12464 = vmatpush3.bf16.msra.mxu1 %v13393_v51  ;;  %v13402_v25 = vld [vmem:[%s21045_s13 + $0x1d0] sm:$0xff]   ;;  %v4756_v28 = vpack.c.bf16 %v22480_v4, %v15403_v45  ;;  %v16624_v51 = vld [vmem:[%s21045_s13 + $0x238] sm:$0xff]  }
 0x494   : > { %12465 = vmatprep.subr.bf16.mxu1 %v13395_v20 }
 0x495   : > { %12510 = vmatpush3.bf16.msra.mxu0 %v13399_v0  ;;  %v22478_v0 = vld [vmem:[#allocation141_spill] sm:$0xff] }
 0x496   : > { %12511 = vmatprep.subr.bf16.mxu0 %v13400_v13  ;;  %v4755_v34 = vpack.c.bf16 %v22479_v42, %v22478_v0 }
 0x497   : > { %12432 = vmatmul.mubr.bf16.gmra.mxu0 %v5059_v56  ;;  %12466 = vmatpush3.bf16.msra.mxu1 %v13395_v20  ;;  %v5037_v56 = vmul.f32 %v16597_v30, %v22481_v54  ;;  %v5039_v20 = vmul.f32 %v16605_v50, %v16246_v59  ;;  %v22483_v50 = vld [vmem:[#allocation205_spill] sm:$0xff] }
 0x498   : > { %12435 = vmatprep.mubr.bf16.mxu0 %v5060_v43  ;;  %12467 = vmatprep.subr.bf16.mxu1 %v13398_v19  ;;  %v13403_v43 = vld [vmem:[%s21045_s13 + $0x1c8] sm:$0xff]   ;;  %vm22484_vm10 = vnez %v22483_v50  ;;  %v22491_v50 = vld [vmem:[#allocation162_spill] sm:$0xff] }
 0x499   : > { %12512 = vmatpush3.bf16.msra.mxu0 %v13400_v13  ;;  %v5061_v30 = vpack.c.bf16 %v5037_v56, %v16188_v61  ;;  %v22482_v13 = vld [vmem:[#allocation210_spill] sm:$0xff]  ;;  %v16631_v59 = vsel %vm22484_vm10, 1.0, %v22126_v18  ;;  %v22490_v56 = vld [vmem:[#allocation152_spill] sm:$0xff] }
 0x49a   : > { %12388 = vmatmul.mubr.bf16.gmra.mxu1 %v4755_v34  ;;  %12513 = vmatprep.subr.bf16.mxu0 %v13402_v25  ;;  %v5062_v34 = vpack.c.bf16 %v5039_v20, %v22482_v13  ;;  %22485 = vst [vmem:[#allocation144_spill] sm:$0xff] %v16631_v59  ;;  %v4758_v13 = vpack.c.bf16 %v22491_v50, %v15573_v46  ;;  %v22492_v61 = vld [vmem:[#allocation212_spill] sm:$0xff] }
 0x49b   : > { %12391 = vmatprep.mubr.bf16.mxu1 %v4756_v28  ;;  %12468 = vmatpush3.bf16.msra.mxu1 %v13398_v19  ;;  %v13405_v28 = vld [vmem:[%s21045_s13 + $0x1c0] sm:$0xff]   ;;  %v5041_v33 = vmul.f32 %v16631_v59, %v22492_v61  ;;  %v22499_v59 = vld [vmem:[#allocation168_spill] sm:$0xff] }
 0x49c   : > { %12469 = vmatprep.subr.bf16.mxu1 %v13401_v21  ;;  %v22486_v19 = vld [vmem:[#allocation206_spill] sm:$0xff]  ;;  %v22544_v61 = vld [vmem:[#allocation36_spill] sm:$0xff] }
 0x49d   : > { %12514 = vmatpush3.bf16.msra.mxu0 %v13402_v25  ;;  %vm22487_vm0 = vnez %v22486_v19  ;;  %v22489_v25 = vld [vmem:[#allocation146_spill] sm:$0xff]  ;;  %v22493_v19 = vld [vmem:[#allocation213_spill] sm:$0xff] }
 0x49e   : > { %12515 = vmatprep.subr.bf16.mxu0 %v13403_v43  ;;  %v16639_v54 = vsel %vm22487_vm0, 1.0, %v22126_v18  ;;  %v4757_v20 = vpack.c.bf16 %v22490_v56, %v22489_v25  ;;  %vm22494_vm7 = vnez %v22493_v19 }
 0x49f   : > { %12436 = vmatmul.mubr.bf16.gmra.mxu0 %v5061_v30  ;;  %22488 = vst [vmem:[#allocation141_spill] sm:$0xff] %v16639_v54  ;;  %12470 = vmatpush3.bf16.msra.mxu1 %v13401_v21  ;;  %v5043_v30 = vmul.f32 %v16639_v54, %v16338_v40  ;;  %v5063_v21 = vpack.c.bf16 %v5041_v33, %v16284_v16  ;;  %v16655_v10 = vsel %vm22494_vm7, 1.0, %v22126_v18  ;;  %v22498_v54 = vld [vmem:[#allocation161_spill] sm:$0xff]  ;;  %v22503_v40 = vld [vmem:[#allocation222_spill] sm:$0xff] }
 0x4a0   : > { %12439 = vmatprep.mubr.bf16.mxu0 %v5062_v34  ;;  %12551 = vmatprep.subr.bf16.mxu1 %v16624_v51  ;;  %22495 = vst [vmem:[#allocation143_spill] sm:$0xff] %v16655_v10  ;;  %v4760_v33 = vpack.c.bf16 %v15702_v22, %v22499_v59  ;;  %vm22504_vm7 = vnez %v22503_v40 }
 0x4a1   : > { %12516 = vmatpush3.bf16.msra.mxu0 %v13403_v43  ;;  %v5064_v34 = vpack.c.bf16 %v5043_v30, %v16344_v11  ;;  %v16660_v43 = vsel %vm16272_vm15, 1.0, %v22126_v18  ;;  %v16680_v11 = vsel %vm22504_vm7, 1.0, %v22126_v18 }
 0x4a2   : > { %12392 = vmatmul.mubr.bf16.gmra.mxu1 %v4757_v20  ;;  %12517 = vmatprep.subr.bf16.mxu0 %v13405_v28  ;;  %22496 = vst [vmem:[#allocation151_spill] sm:$0xff] %v16660_v43  ;;  %v22497_v20 = vld [vmem:[#allocation158_spill] sm:$0xff]  ;;  %v5047_v30 = vmul.f32 %v16660_v43, %v16413_v47  ;;  %22505 = vst [vmem:[#allocation152_spill] sm:$0xff] %v16680_v11  ;;  %v22512_v47 = vld [vmem:[#allocation132_spill] sm:$0xff] }
 0x4a3   : > { %12395 = vmatprep.mubr.bf16.mxu1 %v4758_v13  ;;  %v4759_v13 = vpack.c.bf16 %v22498_v54, %v22497_v20 }
 0x4a4   : > { %v5066_v52 = vpack.c.bf16 %v5047_v30, %v16417_v31 }
 0x4a5   : > { %12518 = vmatpush3.bf16.msra.mxu0 %v13405_v28  ;;  %v5045_v28 = vmul.f32 %v16655_v10, %v16351_v3  ;;  %v5051_v10 = vmul.f32 %v16680_v11, %v16470_v1  ;;  %v22516_v11 = vld [vmem:[#allocation133_spill] sm:$0xff]  ;;  %v22520_v1 = vld [vmem:[#allocation179_spill] sm:$0xff] }
 0x4a7   : > { %12440 = vmatmul.mubr.bf16.gmra.mxu0 %v5063_v21  ;;  %v5065_v21 = vpack.c.bf16 %v5045_v28, %v16374_v55  ;;  %v5068_v55 = vpack.c.bf16 %v5051_v10, %v16474_v15  ;;  %v22519_v10 = vld [vmem:[#allocation136_spill] sm:$0xff] }
 0x4a8   : > { %12443 = vmatprep.mubr.bf16.mxu0 %v5064_v34  ;;  %v22500_v34 = vld [vmem:[#allocation221_spill] sm:$0xff]  ;;  %v22521_v15 = vld [vmem:[#allocation16_spill] sm:$0xff] }
 0x4a9   : > { %vm22501_vm15 = vnez %v22500_v34 }
 0x4aa   : > { %12396 = vmatmul.mubr.bf16.gmra.mxu1 %v4759_v13  ;;  %v16675_v19 = vsel %vm22501_vm15, 1.0, %v22126_v18  ;;  %v22506_v13 = vld [vmem:[#allocation166_spill] sm:$0xff] }
 0x4ab   : > { %12399 = vmatprep.mubr.bf16.mxu1 %v4760_v33  ;;  %22502 = vst [vmem:[#allocation146_spill] sm:$0xff] %v16675_v19  ;;  %v4761_v43 = vpack.c.bf16 %v15718_v26, %v22506_v13  ;;  %v22507_v33 = vld [vmem:[#allocation176_spill] sm:$0xff]  ;;  %v5049_v30 = vmul.f32 %v16675_v19, %v16424_v48  ;;  %v22517_v19 = vld [vmem:[#allocation26_spill] sm:$0xff]  ;;  %v22531_v48 = vld [vmem:[#allocation31_spill] sm:$0xff] }
 0x4ac   : > { %v4762_v28 = vpack.c.bf16 %v15257_v36, %v22507_v33  ;;  %vm22518_vm0 = vnez %v22517_v19 }
 0x4ad   : > { %v5067_v34 = vpack.c.bf16 %v5049_v30, %v16438_v37 }
 0x4af   : > { %12444 = vmatmul.mubr.bf16.gmra.mxu0 %v5065_v21  ;;  %v22508_v21 = vld [vmem:[#allocation19_spill] sm:$0xff] }
 0x4b0   : > { %12447 = vmatprep.mubr.bf16.mxu0 %v5066_v52  ;;  %vm22509_vm15 = vnez %v22508_v21  ;;  %v22511_v52 = vld [vmem:[#allocation28_spill] sm:$0xff]  ;;  %v16708_v21 = vsel %vm16426_vm6, 1.0, %v22126_v18 }
 0x4b1   : > { %v16693_v40 = vsel %vm22509_vm15, 1.0, %v22126_v18  ;;  %vm21513_vm7 = vcmp.le.s32.totalorder %v22511_v52, 14  ;;  %22514 = vst [vmem:[#allocation161_spill] sm:$0xff] %v16708_v21  ;;  %v5053_v62 = vmul.f32 %v16708_v21, %v22520_v1  ;;  %v22527_v1 = vld [vmem:[#allocation142_spill] sm:$0xff] }
 0x4b2   : > { %12400 = vmatmul.mubr.bf16.gmra.mxu1 %v4761_v43  ;;  %22510 = vst [vmem:[#allocation162_spill] sm:$0xff] %v16693_v40  ;;  %v5328_v31 = vmul.f32 %v16693_v40, %v22512_v47  ;;  %v16703_v43 = vsel %vm21513_vm7, 1.0, %v22126_v18  ;;  %v4763_v47 = vpack.c.bf16 %v22519_v10, %v22441_v12  ;;  %vm22522_vm7 = vcmp.le.s32.totalorder %v22521_v15, 14 }
 0x4b3   : > { %12403 = vmatprep.mubr.bf16.mxu1 %v4762_v28  ;;  %22513 = vst [vmem:[#allocation158_spill] sm:$0xff] %v16703_v43  ;;  %v22515_v28 = vld [vmem:[#allocation21_spill] sm:$0xff]  ;;  %v5329_v30 = vmul.f32 %v16703_v43, %v22516_v11  ;;  %v5635_v11 = vmul.f32 %v16703_v43, %v15106_v49  ;;  %v22529_v49 = vld [vmem:[#allocation27_spill] sm:$0xff] }
 0x4b4   : > { %vm21519_vm15 = vcmp.le.s32.totalorder %v22515_v28, 14  ;;  %vm22538_vm3 = vcmp.le.s32.totalorder %v22515_v28, 14 }
 0x4b5   : > { %vm3207_vm10 = vmand %vm21519_vm15, %vm22518_vm0  ;;  %v5360_v40 = vpack.c.bf16 %v5329_v30, %v5328_v31  ;;  %v22526_v30 = vld [vmem:[#allocation178_spill] sm:$0xff] }
 0x4b6   : > { %v16729_v19 = vsel %vm3207_vm10, 1.0, %v22126_v18  ;;  %v5069_v21 = vpack.c.bf16 %v5053_v62, %v22526_v30  ;;  %vm2731_vm10 = vcmp.le.s32.totalorder %v22529_v49, 14  ;;  %v22534_v62 = vld [vmem:[#allocation38_spill] sm:$0xff] }
 0x4b7   : > { %12448 = vmatmul.mubr.bf16.gmra.mxu0 %v5067_v34  ;;  %v16724_v34 = vsel %vm22522_vm7, 1.0, %v22126_v18  ;;  %22524 = vst [vmem:[#allocation166_spill] sm:$0xff] %v16729_v19  ;;  %v5332_v15 = vmul.f32 %v16729_v19, %v22527_v1  ;;  %vm2729_vm7 = vcmp.le.s32.totalorder %v22531_v48, 14  ;;  %vm2730_vm1 = vcmp.le.s32.totalorder %v22534_v62, 14  ;;  %v22535_v1 = vld [vmem:[#allocation42_spill] sm:$0xff]  ;;  %v22540_v19 = vld [vmem:[#allocation185_spill] sm:$0xff] }
 0x4b8   : > { %12451 = vmatprep.mubr.bf16.mxu0 %v5068_v55  ;;  %22523 = vst [vmem:[#allocation168_spill] sm:$0xff] %v16724_v34  ;;  %v22525_v55 = vld [vmem:[#allocation22_spill] sm:$0xff]  ;;  %v5634_v31 = vmul.f32 %v16724_v34, %v22458_v8  ;;  %v22532_v8 = vld [vmem:[#allocation45_spill] sm:$0xff]  ;;  %vm22536_vm14 = vnez %v22535_v1  ;;  %v16782_v28 = vsel %vm2730_vm1, 1.0, %v22126_v18  ;;  %v16823_v48 = vsel %vm2731_vm10, 1.0, %v22126_v18 }
 0x4b9   : > { %vm21523_vm0 = vcmp.le.s32.totalorder %v22525_v55, 14  ;;  %vm22533_vm15 = vnez %v22532_v8  ;;  %v16763_v8 = vsel %vm22538_vm3, 1.0, %v22126_v18  ;;  %v22541_v30 = vld [vmem:[#allocation186_spill] sm:$0xff]  ;;  %22546 = vst [vmem:[#allocation21_spill] sm:$0xff] %v16782_v28  ;;  %v22550_v62 = vld [vmem:[#allocation149_spill] sm:$0xff]  ;;  %22561 = vst [vmem:[#allocation16_spill] sm:$0xff] %v16823_v48 }
 0x4ba   : > { %12404 = vmatmul.mubr.bf16.gmra.mxu1 %v4763_v47  ;;  %v5666_v37 = vpack.c.bf16 %v5635_v11, %v5634_v31  ;;  %v16740_v47 = vsel %vm21523_vm0, 1.0, %v22126_v18  ;;  %vm3211_vm6 = vmand %vm2731_vm10, %vm22533_vm15  ;;  %v22537_v11 = vld [vmem:[#allocation181_spill] sm:$0xff]  ;;  %22539 = vst [vmem:[#allocation19_spill] sm:$0xff] %v16763_v8  ;;  %v22542_v1 = vpack.c.bf16 %v22540_v19, %v22541_v30  ;;  %v22547_v19 = vld [vmem:[#allocation39_spill] sm:$0xff]  ;;  %v5638_v30 = vmul.f32 %v16763_v8, %v15159_v6  ;;  %v12233_v8 = vpop.f32.mrf.mxu0 }
 0x4bb   : > { %12471 = vmatprep.mubr.bf16.mxu1 %v5360_v40  ;;  %22528 = vst [vmem:[#allocation176_spill] sm:$0xff] %v16740_v47  ;;  %v22530_v40 = vld [vmem:[#allocation145_spill] sm:$0xff]  ;;  %vm3209_vm0 = vmand %vm2729_vm7, %vm22536_vm14  ;;  %v5637_v31 = vmul.f32 %v22537_v11, %v22459_v14  ;;  %v5639_v3 = vmul.f32 %v16740_v47, %v15189_v24  ;;  %v16771_v16 = vsel %vm3211_vm6, 1.0, %v22126_v18  ;;  %v5636_v14 = vmul.f32 %v22544_v61, %v15174_v41 }
 0x4bc   : > { %v5333_v43 = vmul.f32 %v16740_v47, %v22530_v40  ;;  %22543 = vst [vmem:[#allocation28_spill] sm:$0xff] %v16771_v16  ;;  %vm21534_vm14 = vcmp.le.s32.totalorder %v22547_v19, 14 }
 0x4bd   : > { %v5668_v11 = vpack.c.bf16 %v5639_v3, %v5638_v30  ;;  %v16799_v6 = vsel %vm21534_vm14, 1.0, %v22126_v18  ;;  %v16807_v3 = vsel %vm2729_vm7, 1.0, %v22126_v18  ;;  %v22571_v30 = vld [vmem:[#allocation153_spill] sm:$0xff] }
 0x4be   : > { %v5362_v40 = vpack.c.bf16 %v5333_v43, %v5332_v15  ;;  %v16777_v43 = vsel %vm3209_vm0, 1.0, %v22126_v18  ;;  %v22548_v15 = vld [vmem:[#allocation147_spill] sm:$0xff]  ;;  %22551 = vst [vmem:[#allocation133_spill] sm:$0xff] %v16799_v6  ;;  %22554 = vst [vmem:[#allocation26_spill] sm:$0xff] %v16807_v3  ;;  %v5643_v49 = vmul.f32 %v16799_v6, %v22469_v17 }
 0x4bf   : > { %12452 = vmatmul.mubr.bf16.gmra.mxu0 %v5069_v21  ;;  %v13406_v21 = vld [vmem:[%s21045_s13 + $0x230] sm:$0xff]   ;;  %22545 = vst [vmem:[#allocation132_spill] sm:$0xff] %v16777_v43  ;;  %v5335_v41 = vmul.f32 %v16782_v28, %v22548_v15  ;;  %v5334_v38 = vmul.f32 %v16777_v43, %v22550_v62  ;;  %v22556_v62 = vld [vmem:[#allocation57_spill] sm:$0xff]  ;;  %v22563_v43 = vld [vmem:[#allocation54_spill] sm:$0xff] }
 0x4c0   : > { %12519 = vmatprep.mubr.bf16.mxu0 %v5666_v37  ;;  %v12185_v37 = vpop.f32.mrf.mxu1  ;;  %v22552_v15 = vld [vmem:[#allocation44_spill] sm:$0xff]  ;;  %vm22557_vm15 = vnez %v22556_v62  ;;  %vm22564_vm14 = vnez %v22563_v43  ;;  %v5640_v43 = vmul.f32 %v16807_v3, %v22464_v2 }
 0x4c1   : > { %vm2735_vm3 = vcmp.le.s32.totalorder %v22552_v15, 14 }
 0x4c2   : > { %12472 = vmatmul.mubr.bf16.vlgmr.msra.gmra.mxu1 %v22542_v1  ;;  %v3735_v24 = vpop.f32.mrf.mxu1  ;;  %v22549_v1 = vld [vmem:[#allocation148_spill] sm:$0xff]  ;;  %vm16814_vm0 = vmand %vm2735_vm3, %vm22557_vm15 }
 0x4c3   : > { %12475 = vmatprep.mubr.bf16.mxu1 %v5362_v40  ;;  %12552 = vmatpush3.bf16.msra.mxu1 %v16624_v51  ;;  %v13407_v51 = vld [vmem:[%s21045_s13 + $0x228] sm:$0xff]   ;;  %v5667_v40 = vpack.c.bf16 %v5637_v31, %v5636_v14  ;;  %v5336_v47 = vmul.f32 %v16771_v16, %v22549_v1  ;;  %v5337_v31 = vmul.f32 %v16799_v6, %v22553_v39  ;;  %v22555_v14 = vld [vmem:[#allocation49_spill] sm:$0xff]  ;;  %v16844_v16 = vsel %vm16814_vm0, 1.0, %v22126_v18 }
 0x4c4   : > { %12553 = vmatprep.subr.bf16.mxu1 %v13406_v21  ;;  %v12186_v61 = vpop.f32.mrf.mxu1  ;;  %vm2733_vm6 = vcmp.le.s32.totalorder %v22555_v14, 14  ;;  %v5363_v39 = vpack.c.bf16 %v5335_v41, %v5334_v38  ;;  %v5641_v38 = vmul.f32 %v16782_v28, %v15269_v5  ;;  %22566 = vst [vmem:[#allocation142_spill] sm:$0xff] %v16844_v16  ;;  %v5642_v5 = vmul.f32 %v16823_v48, %v22468_v9  ;;  %v13409_v9 = vld [vmem:[%s21045_s13 + $0x218] sm:$0xff]   ;;  %v22572_v28 = vld [vmem:[#allocation154_spill] sm:$0xff] }
 0x4c5   : > { %vm3213_vm15 = vmand %vm2733_vm6, %vm22564_vm14  ;;  %v5340_v48 = vmul.f32 %v16844_v16, %v22572_v28  ;;  %v16881_v28 = vsel %vm2733_vm6, 1.0, %v22126_v18  ;;  %v16897_v14 = vsel %vm2735_vm3, 1.0, %v22126_v18 }
 0x4c6   : > { %v3738_v1 = vpop.f32.mrf.mxu1  ;;  %v5670_v6 = vpack.c.bf16 %v5643_v49, %v5642_v5  ;;  %22577 = vst [vmem:[#allocation42_spill] sm:$0xff] %v16881_v28  ;;  %22583 = vst [vmem:[#allocation185_spill] sm:$0xff] %v16897_v14  ;;  %v22593_v5 = vld [vmem:[#allocation124_spill] sm:$0xff] }
 0x4c7   : > { %12520 = vmatmul.mubr.bf16.vlgmr.msra.gmra.mxu0 %v5667_v40  ;;  %12554 = vmatpush3.bf16.msra.mxu1 %v13406_v21  ;;  %v16818_v40 = vadd.f32 %v12233_v8, %v12185_v37  ;;  %v22562_v21 = vld [vmem:[#allocation50_spill] sm:$0xff]  ;;  %v3944_v37 = vpop.f32.mrf.mxu0 }
 0x4c8   : > { %12523 = vmatprep.mubr.bf16.mxu0 %v5668_v11  ;;  %vm21544_vm7 = vcmp.le.s32.totalorder %v22562_v21, 14  ;;  %12555 = vmatprep.subr.bf16.mxu1 %v13407_v51  ;;  %v13408_v8 = vld [vmem:[%s21045_s13 + $0x220] sm:$0xff]   ;;  %v5364_v11 = vpack.c.bf16 %v5337_v31, %v5336_v47  ;;  %v16837_v41 = vadd.f32 %v3944_v37, %v3735_v24  ;;  %v12189_v62 = vpop.f32.mrf.mxu1  ;;  %v16849_v47 = vsel %vm3213_vm15, 1.0, %v22126_v18  ;;  %v22569_v24 = vld [vmem:[#allocation51_spill] sm:$0xff] }
 0x4c9   : > { %22560 = vst [vmem:[#allocation136_spill] sm:$0xff] %v16818_v40  ;;  %v12234_v40 = vpop.f32.mrf.mxu0  ;;  %22567 = vst [vmem:[#allocation27_spill] sm:$0xff] %v16849_v47  ;;  %v16854_v17 = vsel %vm21544_vm7, 1.0, %v22126_v18  ;;  %vm21543_vm10 = vcmp.le.s32.totalorder %v22569_v24, 14 }
 0x4ca   : > { %22565 = vst [vmem:[#allocation22_spill] sm:$0xff] %v16837_v41  ;;  %12476 = vmatmul.mubr.bf16.gmra.mxu1 %v5363_v39  ;;  %22568 = vst [vmem:[#allocation145_spill] sm:$0xff] %v16854_v17  ;;  %v16857_v2 = vadd.f32 %v12234_v40, %v12186_v61  ;;  %v3751_v31 = vpop.f32.mrf.mxu1  ;;  %v5339_v39 = vmul.f32 %v16854_v17, %v22571_v30  ;;  %v22573_v61 = vld [vmem:[#allocation155_spill] sm:$0xff]  ;;  %v16873_v30 = vsel %vm21543_vm10, 1.0, %v22126_v18 }
 0x4cb   : > { %12479 = vmatprep.mubr.bf16.mxu1 %v5364_v11  ;;  %12556 = vmatpush3.bf16.msra.mxu1 %v13407_v51  ;;  %v3947_v37 = vpop.f32.mrf.mxu0  ;;  %v5669_v11 = vpack.c.bf16 %v5641_v38, %v5640_v43  ;;  %v5338_v40 = vmul.f32 %v16849_v47, %v22573_v61  ;;  %22574 = vst [vmem:[#allocation45_spill] sm:$0xff] %v16873_v30  ;;  %v22576_v38 = vld [vmem:[#allocation157_spill] sm:$0xff]  ;;  %v22579_v43 = vld [vmem:[#allocation86_spill] sm:$0xff] }
 0x4cc   : > { %22570 = vst [vmem:[#allocation31_spill] sm:$0xff] %v16857_v2  ;;  %12557 = vmatprep.subr.bf16.mxu1 %v13408_v8  ;;  %v16866_v21 = vadd.f32 %v3947_v37, %v3738_v1  ;;  %v12190_v51 = vpop.f32.mrf.mxu1  ;;  %v22575_v2 = vld [vmem:[#allocation52_spill] sm:$0xff]  ;;  %v5341_v49 = vmul.f32 %v16873_v30, %v22576_v38  ;;  %v22578_v1 = vld [vmem:[#allocation61_spill] sm:$0xff]  ;;  %vm22580_vm15 = vnez %v22579_v43  ;;  %v22584_v38 = vld [vmem:[#allocation63_spill] sm:$0xff]  ;;  %v5647_v15 = vmul.f32 %v16873_v30, %v22479_v42 }
 0x4cd   : > { %vm2739_vm14 = vcmp.le.s32.totalorder %v22575_v2, 14  ;;  %v12237_v41 = vpop.f32.mrf.mxu0  ;;  %vm2737_vm0 = vcmp.le.s32.totalorder %v22578_v1, 14  ;;  %v5365_v61 = vpack.c.bf16 %v5339_v39, %v5338_v40  ;;  %vm21555_vm6 = vcmp.le.s32.totalorder %v22584_v38, 14  ;;  %v22585_v43 = vld [vmem:[#allocation74_spill] sm:$0xff] }
 0x4ce   : > { %vm16888_vm10 = vmand %vm2739_vm14, %vm22580_vm15  ;;  %v16892_v37 = vadd.f32 %v12237_v41, %v12189_v62  ;;  %vm22586_vm7 = vnez %v22585_v43  ;;  %v5645_v62 = vmul.f32 %v16854_v17, %v22470_v27  ;;  %v5644_v43 = vmul.f32 %v16881_v28, %v15336_v60  ;;  %v22594_v17 = vld [vmem:[#allocation128_spill] sm:$0xff] }
 0x4cf   : > { %12524 = vmatmul.mubr.bf16.gmra.mxu0 %v5669_v11  ;;  %12558 = vmatpush3.bf16.msra.mxu1 %v13408_v8  ;;  %v3754_v11 = vpop.f32.mrf.mxu1  ;;  %vm3217_vm15 = vmand %vm2737_vm0, %vm22586_vm7  ;;  %v13410_v8 = vld [vmem:[%s21045_s13 + $0x210] sm:$0xff]   ;;  %v3960_v41 = vpop.f32.mrf.mxu0  ;;  %v16918_v47 = vsel %vm16888_vm10, 1.0, %v22126_v18  ;;  %v5646_v27 = vmul.f32 %v16897_v14, %v22478_v0  ;;  %v16928_v42 = vsel %vm21555_vm6, 1.0, %v22126_v18  ;;  %v13411_v0 = vld [vmem:[%s21045_s13 + $0x208] sm:$0xff]   ;;  %v16971_v1 = vsel %vm2739_vm14, 1.0, %v22126_v18 }
 0x4d0   : > { %12527 = vmatprep.mubr.bf16.mxu0 %v5670_v6  ;;  %12559 = vmatprep.subr.bf16.mxu1 %v13409_v9  ;;  %v5366_v6 = vpack.c.bf16 %v5341_v49, %v5340_v48  ;;  %v16911_v39 = vadd.f32 %v3960_v41, %v3751_v31  ;;  %22588 = vst [vmem:[#allocation39_spill] sm:$0xff] %v16918_v47  ;;  %v16923_v48 = vsel %vm3217_vm15, 1.0, %v22126_v18  ;;  %22590 = vst [vmem:[#allocation148_spill] sm:$0xff] %v16928_v42  ;;  %v22591_v31 = vld [vmem:[#allocation64_spill] sm:$0xff] }
 0x4d1   : > { %v12193_v40 = vpop.f32.mrf.mxu1  ;;  %v12238_v16 = vpop.f32.mrf.mxu0  ;;  %22589 = vst [vmem:[#allocation147_spill] sm:$0xff] %v16923_v48  ;;  %vm21554_vm3 = vcmp.le.s32.totalorder %v22591_v31, 14  ;;  %v5672_v30 = vpack.c.bf16 %v5647_v15, %v5646_v27  ;;  %v5344_v14 = vmul.f32 %v16918_v47, %v22594_v17  ;;  %v16955_v17 = vsel %vm2737_vm0, 1.0, %v22126_v18  ;;  %22605 = vst [vmem:[#allocation49_spill] sm:$0xff] %v16971_v1  ;;  %v22614_v27 = vld [vmem:[#allocation164_spill] sm:$0xff] }
 0x4d2   : > { %22587 = vst [vmem:[#allocation186_spill] sm:$0xff] %v16911_v39  ;;  %12480 = vmatmul.mubr.bf16.gmra.mxu1 %v5365_v61  ;;  %v16931_v60 = vadd.f32 %v12238_v16, %v12190_v51  ;;  %v5343_v61 = vmul.f32 %v16928_v42, %v22593_v5  ;;  %v22595_v16 = vld [vmem:[#allocation127_spill] sm:$0xff]  ;;  %v16947_v5 = vsel %vm21554_vm3, 1.0, %v22126_v18  ;;  %22599 = vst [vmem:[#allocation150_spill] sm:$0xff] %v16955_v17 }
 0x4d3   : > { %12483 = vmatprep.mubr.bf16.mxu1 %v5366_v6  ;;  %12560 = vmatpush3.bf16.msra.mxu1 %v13409_v9  ;;  %v3767_v49 = vpop.f32.mrf.mxu1  ;;  %v3963_v41 = vpop.f32.mrf.mxu0  ;;  %v5671_v6 = vpack.c.bf16 %v5645_v62, %v5644_v43  ;;  %v5342_v51 = vmul.f32 %v16923_v48, %v22595_v16  ;;  %22596 = vst [vmem:[#allocation44_spill] sm:$0xff] %v16947_v5  ;;  %v22598_v62 = vld [vmem:[#allocation163_spill] sm:$0xff] }
 0x4d4   : > { %22592 = vst [vmem:[#allocation149_spill] sm:$0xff] %v16931_v60  ;;  %12561 = vmatprep.subr.bf16.mxu1 %v13410_v8  ;;  %v16940_v38 = vadd.f32 %v3963_v41, %v3754_v11  ;;  %v22597_v60 = vld [vmem:[#allocation81_spill] sm:$0xff]  ;;  %v5345_v15 = vmul.f32 %v16947_v5, %v22598_v62  ;;  %v22600_v11 = vld [vmem:[#allocation80_spill] sm:$0xff]  ;;  %v22601_v43 = vld [vmem:[#allocation91_spill] sm:$0xff]  ;;  %v5651_v2 = vmul.f32 %v16947_v5, %v22490_v56 }
 0x4d5   : > { %v12194_v9 = vpop.f32.mrf.mxu1  ;;  %vm2743_vm7 = vcmp.le.s32.totalorder %v22597_v60, 14  ;;  %v12241_v39 = vpop.f32.mrf.mxu0  ;;  %vm2741_vm10 = vcmp.le.s32.totalorder %v22600_v11, 14  ;;  %vm22602_vm15 = vnez %v22601_v43  ;;  %v5367_v16 = vpack.c.bf16 %v5343_v61, %v5342_v51  ;;  %v22606_v62 = vld [vmem:[#allocation87_spill] sm:$0xff]  ;;  %v22607_v43 = vld [vmem:[#allocation90_spill] sm:$0xff] }
 0x4d6   : > { %vm16962_vm3 = vmand %vm2743_vm7, %vm22602_vm15  ;;  %v16966_v41 = vadd.f32 %v12241_v39, %v12193_v40  ;;  %vm21568_vm0 = vcmp.le.s32.totalorder %v22606_v62, 14  ;;  %vm22608_vm6 = vnez %v22607_v43  ;;  %v5649_v40 = vmul.f32 %v16928_v42, %v22480_v4  ;;  %v22615_v5 = vld [vmem:[#allocation167_spill] sm:$0xff] }
 0x4d7   : > { %12528 = vmatmul.mubr.bf16.gmra.mxu0 %v5671_v6  ;;  %12562 = vmatpush3.bf16.msra.mxu1 %v13410_v8  ;;  %v3770_v6 = vpop.f32.mrf.mxu1  ;;  %vm3221_vm15 = vmand %vm2741_vm10, %vm22608_vm6  ;;  %v13412_v8 = vld [vmem:[%s21045_s13 + $0x200] sm:$0xff]   ;;  %v3976_v39 = vpop.f32.mrf.mxu0  ;;  %v5648_v43 = vmul.f32 %v16955_v17, %v15403_v45  ;;  %v16992_v48 = vsel %vm16962_vm3, 1.0, %v22126_v18  ;;  %v5650_v4 = vmul.f32 %v16971_v1, %v22489_v25  ;;  %v17002_v56 = vsel %vm21568_vm0, 1.0, %v22126_v18 }
 0x4d8   : > { %12531 = vmatprep.mubr.bf16.mxu0 %v5672_v30  ;;  %12563 = vmatprep.subr.bf16.mxu1 %v13411_v0  ;;  %v5368_v30 = vpack.c.bf16 %v5345_v15, %v5344_v14  ;;  %v16985_v61 = vadd.f32 %v3976_v39, %v3767_v49  ;;  %22610 = vst [vmem:[#allocation54_spill] sm:$0xff] %v16992_v48  ;;  %v16997_v14 = vsel %vm3221_vm15, 1.0, %v22126_v18  ;;  %22612 = vst [vmem:[#allocation153_spill] sm:$0xff] %v17002_v56  ;;  %v22613_v49 = vld [vmem:[#allocation84_spill] sm:$0xff] }
 0x4d9   : > { %v12197_v51 = vpop.f32.mrf.mxu1  ;;  %v12242_v47 = vpop.f32.mrf.mxu0  ;;  %22611 = vst [vmem:[#allocation51_spill] sm:$0xff] %v16997_v14  ;;  %vm21567_vm14 = vcmp.le.s32.totalorder %v22613_v49, 14  ;;  %v5673_v25 = vpack.c.bf16 %v5649_v40, %v5648_v43  ;;  %v5348_v42 = vmul.f32 %v16992_v48, %v22615_v5  ;;  %v22619_v40 = vld [vmem:[#allocation170_spill] sm:$0xff]  ;;  %v17026_v5 = vsel %vm2741_vm10, 1.0, %v22126_v18  ;;  %v22634_v43 = vld [vmem:[#allocation41_spill] sm:$0xff] }
 0x4da   : > { %22609 = vst [vmem:[#allocation57_spill] sm:$0xff] %v16985_v61  ;;  %12484 = vmatmul.mubr.bf16.gmra.mxu1 %v5367_v16  ;;  %v17005_v45 = vadd.f32 %v12242_v47, %v12194_v9  ;;  %v5347_v16 = vmul.f32 %v17002_v56, %v22614_v27  ;;  %v22616_v61 = vld [vmem:[#allocation169_spill] sm:$0xff]  ;;  %v17018_v47 = vsel %vm21567_vm14, 1.0, %v22126_v18  ;;  %22620 = vst [vmem:[#allocation155_spill] sm:$0xff] %v17026_v5  ;;  %v17042_v11 = vsel %vm2743_vm7, 1.0, %v22126_v18 }
 0x4db   : > { %12487 = vmatprep.mubr.bf16.mxu1 %v5368_v30  ;;  %12564 = vmatpush3.bf16.msra.mxu1 %v13411_v0  ;;  %v3783_v15 = vpop.f32.mrf.mxu1  ;;  %v3979_v39 = vpop.f32.mrf.mxu0  ;;  %v5674_v30 = vpack.c.bf16 %v5651_v2, %v5650_v4  ;;  %v5346_v17 = vmul.f32 %v16997_v14, %v22616_v61  ;;  %22617 = vst [vmem:[#allocation154_spill] sm:$0xff] %v17018_v47  ;;  %v22618_v0 = vld [vmem:[#allocation92_spill] sm:$0xff]  ;;  %v22622_v61 = vld [vmem:[#allocation105_spill] sm:$0xff]  ;;  %22626 = vst [vmem:[#allocation52_spill] sm:$0xff] %v17042_v11 }
 0x4dc   : > { %12565 = vmatprep.subr.bf16.mxu1 %v13412_v8  ;;  %v17011_v1 = vadd.f32 %v3979_v39, %v3770_v6  ;;  %vm2747_vm6 = vcmp.le.s32.totalorder %v22618_v0, 14  ;;  %v5349_v2 = vmul.f32 %v17018_v47, %v22619_v40  ;;  %v22621_v6 = vld [vmem:[#allocation93_spill] sm:$0xff]  ;;  %vm22623_vm15 = vnez %v22622_v61  ;;  %v22635_v14 = vld [vmem:[#allocation175_spill] sm:$0xff] }
 0x4dd   : > { %v12198_v62 = vpop.f32.mrf.mxu1  ;;  %v12245_v9 = vpop.f32.mrf.mxu0  ;;  %vm2745_vm3 = vcmp.le.s32.totalorder %v22621_v6, 14  ;;  %vm17033_vm14 = vmand %vm2747_vm6, %vm22623_vm15  ;;  %v5369_v39 = vpack.c.bf16 %v5347_v16, %v5346_v17  ;;  %v22628_v40 = vld [vmem:[#allocation101_spill] sm:$0xff]  ;;  %v5655_v17 = vmul.f32 %v17018_v47, %v22498_v54  ;;  %v5652_v16 = vmul.f32 %v17026_v5, %v15573_v46 }
 0x4de   : > { %v17037_v4 = vadd.f32 %v12245_v9, %v12197_v51  ;;  %vm22629_vm0 = vnez %v22628_v40  ;;  %v5370_v48 = vpack.c.bf16 %v5349_v2, %v5348_v42 }
 0x4df   : > { %12532 = vmatmul.mubr.bf16.gmra.mxu0 %v5673_v25  ;;  %12566 = vmatpush3.bf16.msra.mxu1 %v13412_v8  ;;  %v3786_v27 = vpop.f32.mrf.mxu1  ;;  %v22627_v25 = vld [vmem:[#allocation98_spill] sm:$0xff]  ;;  %vm3225_vm15 = vmand %vm2745_vm3, %vm22629_vm0  ;;  %v3992_v61 = vpop.f32.mrf.mxu0  ;;  %v5653_v8 = vmul.f32 %v17002_v56, %v22491_v50  ;;  %v5654_v50 = vmul.f32 %v17042_v11, %v22497_v20 }
 0x4e0   : > { %12535 = vmatprep.mubr.bf16.mxu0 %v5674_v30  ;;  %vm2746_vm10 = vcmp.le.s32.totalorder %v22627_v25, 14  ;;  %v17053_v51 = vadd.f32 %v3992_v61, %v3783_v15  ;;  %v17060_v30 = vsel %vm17033_vm14, 1.0, %v22126_v18  ;;  %v17065_v42 = vsel %vm3225_vm15, 1.0, %v22126_v18  ;;  %v22633_v15 = vld [vmem:[#allocation94_spill] sm:$0xff] }
 0x4e1   : > { %v12201_v60 = vpop.f32.mrf.mxu1  ;;  %22630 = vst [vmem:[#allocation157_spill] sm:$0xff] %v17060_v30  ;;  %v12246_v9 = vpop.f32.mrf.mxu0  ;;  %22631 = vst [vmem:[#allocation61_spill] sm:$0xff] %v17065_v42  ;;  %v17070_v54 = vsel %vm2746_vm10, 1.0, %v22126_v18  ;;  %vm21577_vm7 = vcmp.le.s32.totalorder %v22633_v15, 14  ;;  %v5675_v40 = vpack.c.bf16 %v5653_v8, %v5652_v16  ;;  %v5676_v61 = vpack.c.bf16 %v5655_v17, %v5654_v50  ;;  %v22638_v17 = vld [vmem:[#allocation107_spill] sm:$0xff]  ;;  %v22642_v50 = vld [vmem:[#allocation116_spill] sm:$0xff] }
 0x4e2   : > { %12488 = vmatmul.mubr.bf16.gmra.mxu1 %v5369_v39  ;;  %22632 = vst [vmem:[#allocation86_spill] sm:$0xff] %v17070_v54  ;;  %v17073_v46 = vadd.f32 %v12246_v9, %v12198_v62  ;;  %v5351_v39 = vmul.f32 %v17070_v54, %v22634_v43  ;;  %v5352_v20 = vmul.f32 %v17060_v30, %v22440_v44  ;;  %v17086_v62 = vsel %vm21577_vm7, 1.0, %v22126_v18  ;;  %v22637_v9 = vld [vmem:[#allocation102_spill] sm:$0xff] }
 0x4e3   : > { %12491 = vmatprep.mubr.bf16.mxu1 %v5370_v48  ;;  %v3799_v2 = vpop.f32.mrf.mxu1  ;;  %v3995_v48 = vpop.f32.mrf.mxu0  ;;  %v5350_v11 = vmul.f32 %v17065_v42, %v22635_v14  ;;  %22636 = vst [vmem:[#allocation74_spill] sm:$0xff] %v17086_v62  ;;  %vm2751_vm0 = vcmp.le.s32.totalorder %v22637_v9, 14  ;;  %v5353_v8 = vmul.f32 %v17086_v62, %v15798_v63  ;;  %vm2749_vm14 = vcmp.le.s32.totalorder %v22638_v17, 14 }
 0x4e4   : > { %v17079_v47 = vadd.f32 %v3995_v48, %v3786_v27  ;;  %vm17096_vm15 = vmand %vm2751_vm0, %vm15631_vm5  ;;  %v17107_v63 = vsel %vm2745_vm3, 1.0, %v22126_v18  ;;  %vm2750_vm7 = vcmp.le.s32.totalorder %v22642_v50, 14 }
 0x4e5   : > { %v12202_v56 = vpop.f32.mrf.mxu1  ;;  %v12249_v43 = vpop.f32.mrf.mxu0  ;;  %v5371_v16 = vpack.c.bf16 %v5351_v39, %v5350_v11  ;;  %22641 = vst [vmem:[#allocation64_spill] sm:$0xff] %v17107_v63  ;;  %vm3229_vm5 = vmand %vm2749_vm14, %vm22434_vm9  ;;  %v17119_v11 = vsel %vm2747_vm6, 1.0, %v22126_v18 }
 0x4e6   : > { %v17100_v14 = vadd.f32 %v12249_v43, %v12201_v60  ;;  %v5657_v60 = vmul.f32 %v17070_v54, %v15702_v22  ;;  %22644 = vst [vmem:[#allocation124_spill] sm:$0xff] %v17119_v11  ;;  %v17128_v43 = vsel %vm17096_vm15, 1.0, %v22126_v18  ;;  %v5656_v22 = vmul.f32 %v17107_v63, %v22499_v59 }
 0x4e7   : > { %12536 = vmatmul.mubr.bf16.gmra.mxu0 %v5675_v40  ;;  %v17102_v27 = vpop.f32.mrf.mxu1  ;;  %v4008_v48 = vpop.f32.mrf.mxu0  ;;  %v5372_v40 = vpack.c.bf16 %v5353_v8, %v5352_v20  ;;  %22645 = vst [vmem:[#allocation128_spill] sm:$0xff] %v17128_v43  ;;  %v17133_v0 = vsel %vm3229_vm5, 1.0, %v22126_v18  ;;  %v22648_v8 = vld [vmem:[#allocation109_spill] sm:$0xff]  ;;  %vm22653_vm15 = vcmp.le.s32.totalorder %v22511_v52, 14 }
 0x4e8   : > { %12539 = vmatprep.mubr.bf16.mxu0 %v5676_v61  ;;  %v17121_v6 = vadd.f32 %v4008_v48, %v3799_v2  ;;  %v5659_v61 = vmul.f32 %v17086_v62, %v15718_v26  ;;  %22646 = vst [vmem:[#allocation127_spill] sm:$0xff] %v17133_v0  ;;  %v17138_v2 = vsel %vm2750_vm7, 1.0, %v22126_v18  ;;  %vm2752_vm9 = vcmp.le.s32.totalorder %v22648_v8, 14  ;;  %v22649_v62 = vld [vmem:[#allocation58_spill] sm:$0xff]  ;;  %vm17169_vm5 = vmand %vm22653_vm15, %vm15694_vm4 }
 0x4e9   : > { %v12205_v39 = vpop.f32.mrf.mxu1  ;;  %v12250_v20 = vpop.f32.mrf.mxu0  ;;  %22647 = vst [vmem:[#allocation81_spill] sm:$0xff] %v17138_v2  ;;  %v5355_v35 = vmul.f32 %v17138_v2, %v15856_v53  ;;  %v5677_v48 = vpack.c.bf16 %v5657_v60, %v5656_v22  ;;  %vm2753_vm6 = vcmp.le.s32.totalorder %v22649_v62, 14  ;;  %v5661_v52 = vmul.f32 %v17138_v2, %v15257_v36 }
 0x4ea   : > { %12492 = vmatmul.mubr.bf16.gmra.mxu1 %v5371_v16  ;;  %v17141_v26 = vadd.f32 %v12250_v20, %v12202_v56  ;;  %v5658_v16 = vmul.f32 %v17119_v11, %v22506_v13  ;;  %v5354_v56 = vmul.f32 %v17133_v0, %v15881_v58  ;;  %v17157_v13 = vsel %vm2752_vm9, 1.0, %v22126_v18  ;;  %vm3233_vm3 = vmand %vm2753_vm6, %vm15779_vm8  ;;  %v22686_v0 = vld [vmem:[#allocation22_spill] sm:$0xff] }
 0x4eb   : > { %12495 = vmatprep.mubr.bf16.mxu1 %v5372_v40  ;;  %v3815_v44 = vpop.f32.mrf.mxu1  ;;  %v17147_v59 = vpop.f32.mrf.mxu0  ;;  %v5356_v40 = vmul.f32 %v17128_v43, %v22452_v23  ;;  %22650 = vst [vmem:[#allocation163_spill] sm:$0xff] %v17157_v13  ;;  %v5357_v23 = vmul.f32 %v17157_v13, %v22453_v32  ;;  %v17187_v60 = vsel %vm2751_vm0, 1.0, %v22126_v18  ;;  %v5663_v17 = vmul.f32 %v17157_v13, %v22519_v10 }
 0x4ec   : > { %v5678_v54 = vpack.c.bf16 %v5659_v61, %v5658_v16  ;;  %v5373_v16 = vpack.c.bf16 %v5355_v35, %v5354_v56  ;;  %22657 = vst [vmem:[#allocation91_spill] sm:$0xff] %v17187_v60  ;;  %v22659_v56 = vld [vmem:[#allocation62_spill] sm:$0xff]  ;;  %v17200_v36 = vsel %vm17169_vm5, 1.0, %v22126_v18  ;;  %vm22664_vm8 = vcmp.le.s32.totalorder %v22525_v55, 14 }
 0x4ed   : > { %v12206_v30 = vpop.f32.mrf.mxu1  ;;  %v12253_v53 = vpop.f32.mrf.mxu0  ;;  %v5374_v20 = vpack.c.bf16 %v5357_v23, %v5356_v40  ;;  %vm2754_vm4 = vcmp.le.s32.totalorder %v22659_v56, 14  ;;  %22660 = vst [vmem:[#allocation84_spill] sm:$0xff] %v17200_v36  ;;  %v5662_v23 = vmul.f32 %v17187_v60, %v22441_v12  ;;  %vm3368_vm0 = vmand %vm22664_vm8, %vm15837_vm13 }
 0x4ee   : > { %v17173_v61 = vadd.f32 %v12253_v53, %v12205_v39  ;;  %v17190_v39 = vsel %vm3233_vm3, 1.0, %v22126_v18  ;;  %v17215_v58 = vsel %vm2754_vm4, 1.0, %v22126_v18  ;;  %vm3370_vm13 = vmand %vm2730_vm1, %vm15916_vm12  ;;  %vm22696_vm3 = vcmp.le.s32.totalorder %v22569_v24, 14 }
 0x4ef   : > { %12540 = vmatmul.mubr.bf16.gmra.mxu0 %v5677_v48  ;;  %v17175_v22 = vpop.f32.mrf.mxu1  ;;  %v17180_v48 = vsel %vm2749_vm14, 1.0, %v22126_v18  ;;  %v4024_v32 = vpop.f32.mrf.mxu0  ;;  %22658 = vst [vmem:[#allocation90_spill] sm:$0xff] %v17190_v39  ;;  %22662 = vst [vmem:[#allocation164_spill] sm:$0xff] %v17215_v58  ;;  %vm22676_vm14 = vcmp.le.s32.totalorder %v22547_v19, 14  ;;  %v22683_v19 = vld [vmem:[#allocation136_spill] sm:$0xff] }
 0x4f0   : > { %12543 = vmatprep.mubr.bf16.mxu0 %v5678_v54  ;;  %22656 = vst [vmem:[#allocation80_spill] sm:$0xff] %v17180_v48  ;;  %v17192_v54 = vadd.f32 %v4024_v32, %v3815_v44  ;;  %v5660_v40 = vmul.f32 %v17180_v48, %v22507_v33  ;;  %v5941_v33 = vmul.f32 %v17200_v36, %v15907_v7  ;;  %v22674_v36 = vld [vmem:[#allocation19_spill] sm:$0xff] }
 0x4f1   : > { %v12209_v35 = vpop.f32.mrf.mxu1  ;;  %v12254_v9 = vpop.f32.mrf.mxu0 }
 0x4f2   : > { %12496 = vmatmul.mubr.bf16.gmra.mxu1 %v5373_v16  ;;  %v17204_v53 = vadd.f32 %v12254_v9, %v12206_v30  ;;  %v22661_v16 = vld [vmem:[#allocation138_spill] sm:$0xff]  ;;  %v5679_v13 = vpack.c.bf16 %v5661_v52, %v5660_v40  ;;  %v22663_v9 = vld [vmem:[#allocation129_spill] sm:$0xff] }
 0x4f3   : > { %12499 = vmatprep.mubr.bf16.mxu1 %v5374_v20  ;;  %v3831_v44 = vpop.f32.mrf.mxu1  ;;  %v5358_v10 = vmul.f32 %v17190_v39, %v22661_v16  ;;  %v17210_v32 = vpop.f32.mrf.mxu0  ;;  %v5680_v20 = vpack.c.bf16 %v5663_v17, %v5662_v23  ;;  %v5359_v43 = vmul.f32 %v17215_v58, %v22663_v9  ;;  %v5940_v16 = vmul.f32 %v16724_v34, %v15934_v57  ;;  %v22666_v9 = vld [vmem:[#allocation122_spill] sm:$0xff]  ;;  %v22680_v34 = vld [vmem:[#allocation159_spill] sm:$0xff] }
 0x4f4   : > { %v17234_v17 = vsel %vm2753_vm6, 1.0, %v22126_v18  ;;  %v5665_v57 = vmul.f32 %v17215_v58, %v22666_v9  ;;  %vm3372_vm6 = vmand %vm22676_vm14, %vm15920_vm11  ;;  %v17266_v9 = vsel %vm3370_vm13, 1.0, %v22126_v18  ;;  %vm22714_vm13 = vcmp.le.s32.totalorder %v22591_v31, 14 }
 0x4f5   : > { %v12210_v30 = vpop.f32.mrf.mxu1  ;;  %v12257_v12 = vpop.f32.mrf.mxu0  ;;  %v5375_v7 = vpack.c.bf16 %v5359_v43, %v5358_v10  ;;  %22665 = vst [vmem:[#allocation167_spill] sm:$0xff] %v17234_v17  ;;  %v5972_v23 = vpack.c.bf16 %v5941_v33, %v5940_v16  ;;  %v22668_v43 = vld [vmem:[#allocation123_spill] sm:$0xff]  ;;  %v22670_v16 = vld [vmem:[#allocation188_spill] sm:$0xff]  ;;  %22678 = vst [vmem:[#allocation93_spill] sm:$0xff] %v17266_v9 }
 0x4f6   : > { %v17227_v52 = vadd.f32 %v12257_v12, %v12209_v35  ;;  %v17241_v35 = vsel %vm3368_vm0, 1.0, %v22126_v18  ;;  %v5664_v10 = vmul.f32 %v17234_v17, %v22668_v43 }
 0x4f7   : > { %12544 = vmatmul.mubr.bf16.gmra.mxu0 %v5679_v13  ;;  %v17229_v40 = vpop.f32.mrf.mxu1  ;;  %v4040_v13 = vpop.f32.mrf.mxu0  ;;  %22667 = vst [vmem:[#allocation169_spill] sm:$0xff] %v17241_v35 }
 0x4f8   : > { %12547 = vmatprep.mubr.bf16.mxu0 %v5680_v20  ;;  %v17238_v29 = vadd.f32 %v4040_v13, %v3831_v44  ;;  %v5681_v33 = vpack.c.bf16 %v5665_v57, %v5664_v10  ;;  %v5945_v44 = vmul.f32 %v17241_v35, %v22670_v16  ;;  %v22679_v35 = vld [vmem:[#allocation160_spill] sm:$0xff] }
 0x4f9   : > { %v12213_v55 = vpop.f32.mrf.mxu1  ;;  %v12258_v12 = vpop.f32.mrf.mxu0 }
 0x4fa   : > { %12500 = vmatmul.mubr.bf16.gmra.mxu1 %v5375_v7  ;;  %v17245_v62 = vadd.f32 %v12258_v12, %v12210_v30  ;;  %v17274_v30 = vsel %vm3372_vm6, 1.0, %v22126_v18 }
 0x4fb   : > { %12567 = vmatprep.mubr.bf16.mxu1 %v5972_v23  ;;  %v3847_v20 = vpop.f32.mrf.mxu1  ;;  %v17247_v39 = vpop.f32.mrf.mxu0  ;;  %v22673_v23 = vld [vmem:[#allocation191_spill] sm:$0xff]  ;;  %22682 = vst [vmem:[#allocation105_spill] sm:$0xff] %v17274_v30 }
 0x4fc   : > { %22669 = vst [vmem:[#allocation92_spill] sm:$0xff] %v17247_v39  ;;  %v5944_v43 = vmul.f32 %v22674_v36, %v22673_v23  ;;  %v22681_v23 = vpack.c.bf16 %v22679_v35, %v22680_v34  ;;  %v22687_v35 = vld [vmem:[#allocation196_spill] sm:$0xff] }
 0x4fd   : > { %v12214_v13 = vpop.f32.mrf.mxu1  ;;  %v12261_v58 = vpop.f32.mrf.mxu0 }
 0x4fe   : > { %v17261_v57 = vadd.f32 %v12261_v58, %v12213_v55  ;;  %v5974_v16 = vpack.c.bf16 %v5945_v44, %v5944_v43  ;;  %v22684_v43 = vld [vmem:[#allocation194_spill] sm:$0xff] }
 0x4ff   : > { %12548 = vmatmul.mubr.bf16.gmra.mxu0 %v5681_v33  ;;  %v17263_v12 = vpop.f32.mrf.mxu1  ;;  %v4056_v10 = vpop.f32.mrf.mxu0  ;;  %v5946_v2 = vmul.f32 %v16807_v3, %v22684_v43  ;;  %v22692_v43 = vld [vmem:[#allocation199_spill] sm:$0xff]  ;;  %v22693_v3 = vld [vmem:[#allocation16_spill] sm:$0xff] }
 0x500   : > { %22677 = vst [vmem:[#allocation170_spill] sm:$0xff] %v17263_v12  ;;  %v17268_v7 = vadd.f32 %v4056_v10, %v3847_v20  ;;  %v22685_v20 = vld [vmem:[#allocation193_spill] sm:$0xff]  ;;  %v5948_v39 = vmul.f32 %v22693_v3, %v22692_v43 }
 0x501   : > { %v12281_v33 = vpop.f32.mrf.mxu1  ;;  %v12262_v55 = vpop.f32.mrf.mxu0  ;;  %v5947_v10 = vmul.f32 %v17266_v9, %v22685_v20  ;;  %v22694_v20 = vld [vmem:[#allocation190_spill] sm:$0xff] }
 0x502   : > { %12568 = vmatmul.mubr.bf16.vlgmr.msra.gmra.mxu1 %v22681_v23  ;;  %v4412_v58 = vadd.f32 %v12281_v33, %v22683_v19  ;;  %v17277_v36 = vadd.f32 %v12262_v55, %v12214_v13  ;;  %v5949_v23 = vmul.f32 %v17274_v30, %v22687_v35  ;;  %v22691_v13 = vld [vmem:[#allocation31_spill] sm:$0xff]  ;;  %vm22695_vm1 = vnez %v22694_v20 }
 0x503   : > { %12571 = vmatprep.mubr.bf16.mxu1 %v5974_v16  ;;  %v4283_v44 = vpop.f32.mrf.mxu1  ;;  %v17284_v34 = vpop.f32.mrf.mxu0  ;;  %v22689_v16 = vld [vmem:[#allocation50_spill] sm:$0xff]  ;;  %vm3376_vm15 = vmand %vm22696_vm3, %vm22695_vm1  ;;  %v5975_v35 = vpack.c.bf16 %v5947_v10, %v5946_v2  ;;  %vm22730_vm3 = vcmp.le.s32.totalorder %v22613_v49, 14 }
 0x504   : > { %v4410_v42 = vadd.f32 %v4283_v44, %v22686_v0  ;;  %vm22690_vm12 = vcmp.le.s32.totalorder %v22689_v16, 14  ;;  %v5976_v30 = vpack.c.bf16 %v5949_v23, %v5948_v39  ;;  %v17310_v20 = vsel %vm3376_vm15, 1.0, %v22126_v18  ;;  %v22700_v10 = vld [vmem:[#allocation202_spill] sm:$0xff]  ;;  %v22701_v23 = vld [vmem:[#allocation201_spill] sm:$0xff] }
 0x505   : > { %v12282_v12 = vpop.f32.mrf.mxu1  ;;  %vm3374_vm11 = vmand %vm22690_vm12, %vm15984_vm2  ;;  %v12329_v55 = vpop.f32.mrf.mxu0  ;;  %22699 = vst [vmem:[#allocation94_spill] sm:$0xff] %v17310_v20  ;;  %v5950_v39 = vmul.f32 %v16881_v28, %v22700_v10  ;;  %v22710_v10 = vld [vmem:[#allocation207_spill] sm:$0xff]  ;;  %v22711_v28 = vld [vmem:[#allocation185_spill] sm:$0xff] }
 0x506   : > { %v4413_v19 = vadd.f32 %v12282_v12, %v22691_v13  ;;  %v17299_v0 = vadd.f32 %v12329_v55, %v4412_v58  ;;  %v17305_v12 = vsel %vm3374_vm11, 1.0, %v22126_v18 }
 0x507   : > { %v4286_v44 = vpop.f32.mrf.mxu1  ;;  %v4589_v16 = vpop.f32.mrf.mxu0  ;;  %22698 = vst [vmem:[#allocation101_spill] sm:$0xff] %v17305_v12  ;;  %v5951_v55 = vmul.f32 %v17305_v12, %v22701_v23  ;;  %v22712_v23 = vld [vmem:[#allocation198_spill] sm:$0xff] }
 0x508   : > { %v17302_v33 = vadd.f32 %v4286_v44, %v16866_v21  ;;  %v17307_v13 = vadd.f32 %v4589_v16, %v4410_v42  ;;  %v22702_v42 = vld [vmem:[#allocation186_spill] sm:$0xff]  ;;  %vm22713_vm0 = vnez %v22712_v23 }
 0x509   : > { %v12285_v43 = vpop.f32.mrf.mxu1  ;;  %v12330_v58 = vpop.f32.mrf.mxu0  ;;  %vm3380_vm14 = vmand %vm22714_vm13, %vm22713_vm0  ;;  %vm22742_vm0 = vcmp.le.s32.totalorder %v22633_v15, 14 }
 0x50a   : > { %22697 = vst [vmem:[#allocation98_spill] sm:$0xff] %v17302_v33  ;;  %12572 = vmatmul.mubr.bf16.gmra.mxu1 %v5975_v35  ;;  %v4416_v24 = vadd.f32 %v12285_v43, %v16892_v37  ;;  %v17313_v2 = vadd.f32 %v12330_v58, %v4413_v19  ;;  %v22704_v35 = vld [vmem:[#allocation204_spill] sm:$0xff]  ;;  %v22705_v37 = vld [vmem:[#allocation197_spill] sm:$0xff]  ;;  %v5952_v33 = vmul.f32 %v22711_v28, %v22710_v10  ;;  %v17346_v23 = vsel %vm3380_vm14, 1.0, %v22126_v18 }
 0x50b   : > { %12575 = vmatprep.mubr.bf16.mxu1 %v5976_v30  ;;  %v4299_v21 = vpop.f32.mrf.mxu1  ;;  %v17320_v16 = vpop.f32.mrf.mxu0  ;;  %v5953_v3 = vmul.f32 %v17310_v20, %v22704_v35  ;;  %vm22706_vm2 = vnez %v22705_v37  ;;  %v22707_v30 = vld [vmem:[#allocation63_spill] sm:$0xff]  ;;  %v22709_v19 = vld [vmem:[#allocation149_spill] sm:$0xff]  ;;  %v5977_v35 = vpack.c.bf16 %v5951_v55, %v5950_v39  ;;  %22716 = vst [vmem:[#allocation102_spill] sm:$0xff] %v17346_v23  ;;  %v22717_v55 = vld [vmem:[#allocation210_spill] sm:$0xff] }
 0x50c   : > { %v4414_v44 = vadd.f32 %v4299_v21, %v22702_v42  ;;  %22703 = vst [vmem:[#allocation41_spill] sm:$0xff] %v17320_v16  ;;  %vm22708_vm5 = vcmp.le.s32.totalorder %v22707_v30, 14 }
 0x50d   : > { %v12286_v9 = vpop.f32.mrf.mxu1  ;;  %vm3378_vm8 = vmand %vm22708_vm5, %vm22706_vm2  ;;  %v12333_v58 = vpop.f32.mrf.mxu0  ;;  %v5978_v20 = vpack.c.bf16 %v5953_v3, %v5952_v33  ;;  %v22719_v33 = vld [vmem:[#allocation209_spill] sm:$0xff] }
 0x50e   : > { %v4417_v43 = vadd.f32 %v12286_v9, %v22709_v19  ;;  %v17335_v21 = vadd.f32 %v12333_v58, %v4416_v24  ;;  %v17341_v9 = vsel %vm3378_vm8, 1.0, %v22126_v18  ;;  %v22718_v58 = vld [vmem:[#allocation150_spill] sm:$0xff] }
 0x50f   : > { %v4302_v42 = vpop.f32.mrf.mxu1  ;;  %v4605_v30 = vpop.f32.mrf.mxu0  ;;  %22715 = vst [vmem:[#allocation175_spill] sm:$0xff] %v17341_v9  ;;  %v5954_v3 = vmul.f32 %v22718_v58, %v22717_v55  ;;  %v22727_v55 = vld [vmem:[#allocation49_spill] sm:$0xff] }
 0x510   : > { %v17338_v37 = vadd.f32 %v4302_v42, %v16940_v38  ;;  %v17343_v19 = vadd.f32 %v4605_v30, %v4414_v44  ;;  %v5955_v42 = vmul.f32 %v17341_v9, %v22719_v33  ;;  %v22720_v44 = vld [vmem:[#allocation57_spill] sm:$0xff]  ;;  %v22728_v33 = vld [vmem:[#allocation206_spill] sm:$0xff] }
 0x511   : > { %v12289_v10 = vpop.f32.mrf.mxu1  ;;  %v12334_v24 = vpop.f32.mrf.mxu0  ;;  %vm22729_vm1 = vnez %v22728_v33 }
 0x512   : > { %12576 = vmatmul.mubr.bf16.gmra.mxu1 %v5977_v35  ;;  %v4420_v31 = vadd.f32 %v12289_v10, %v16966_v41  ;;  %v17349_v39 = vadd.f32 %v12334_v24, %v4417_v43  ;;  %v22721_v35 = vld [vmem:[#allocation212_spill] sm:$0xff]  ;;  %v22722_v41 = vld [vmem:[#allocation205_spill] sm:$0xff]  ;;  %v22726_v24 = vld [vmem:[#allocation215_spill] sm:$0xff] }
 0x513   : > { %12579 = vmatprep.mubr.bf16.mxu1 %v5978_v20  ;;  %v4315_v38 = vpop.f32.mrf.mxu1  ;;  %v17356_v28 = vpop.f32.mrf.mxu0  ;;  %v5957_v12 = vmul.f32 %v17346_v23, %v22721_v35  ;;  %vm22723_vm6 = vnez %v22722_v41  ;;  %v22724_v20 = vld [vmem:[#allocation87_spill] sm:$0xff]  ;;  %v5956_v58 = vmul.f32 %v22727_v55, %v22726_v24  ;;  %vm3384_vm15 = vmand %vm22730_vm3, %vm22729_vm1  ;;  %v5979_v35 = vpack.c.bf16 %v5955_v42, %v5954_v3  ;;  %v22733_v42 = vld [vmem:[#allocation218_spill] sm:$0xff] }
 0x514   : > { %v4418_v30 = vadd.f32 %v4315_v38, %v22720_v44  ;;  %vm22725_vm12 = vcmp.le.s32.totalorder %v22724_v20, 14  ;;  %v17382_v33 = vsel %vm3384_vm15, 1.0, %v22126_v18 }
 0x515   : > { %v12290_v16 = vpop.f32.mrf.mxu1  ;;  %vm3382_vm11 = vmand %vm22725_vm12, %vm22723_vm6  ;;  %v12337_v10 = vpop.f32.mrf.mxu0  ;;  %v5980_v23 = vpack.c.bf16 %v5957_v12, %v5956_v58  ;;  %22732 = vst [vmem:[#allocation116_spill] sm:$0xff] %v17382_v33  ;;  %v5958_v12 = vmul.f32 %v17026_v5, %v22733_v42  ;;  %v22734_v58 = vld [vmem:[#allocation217_spill] sm:$0xff] }
 0x516   : > { %v4421_v43 = vadd.f32 %v12290_v16, %v17005_v45  ;;  %v17371_v38 = vadd.f32 %v12337_v10, %v4420_v31  ;;  %v17377_v45 = vsel %vm3382_vm11, 1.0, %v22126_v18 }
 0x517   : > { %v4318_v44 = vpop.f32.mrf.mxu1  ;;  %v4621_v20 = vpop.f32.mrf.mxu0  ;;  %22731 = vst [vmem:[#allocation107_spill] sm:$0xff] %v17377_v45  ;;  %v5959_v10 = vmul.f32 %v17377_v45, %v22734_v58  ;;  %v22740_v58 = vld [vmem:[#allocation214_spill] sm:$0xff] }
 0x518   : > { %v17374_v41 = vadd.f32 %v4318_v44, %v17011_v1  ;;  %v17379_v16 = vadd.f32 %v4621_v20, %v4418_v30  ;;  %vm22741_vm8 = vnez %v22740_v58 }
 0x519   : > { %v12293_v24 = vpop.f32.mrf.mxu1  ;;  %v12338_v31 = vpop.f32.mrf.mxu0  ;;  %vm3388_vm13 = vmand %vm22742_vm0, %vm22741_vm8 }
 0x51a   : > { %12580 = vmatmul.mubr.bf16.gmra.mxu1 %v5979_v35  ;;  %v4424_v49 = vadd.f32 %v12293_v24, %v17037_v4  ;;  %v17385_v3 = vadd.f32 %v12338_v31, %v4421_v43  ;;  %v22735_v35 = vld [vmem:[#allocation220_spill] sm:$0xff]  ;;  %v22736_v4 = vld [vmem:[#allocation213_spill] sm:$0xff]  ;;  %v22738_v24 = vld [vmem:[#allocation223_spill] sm:$0xff]  ;;  %v17418_v58 = vsel %vm3388_vm13, 1.0, %v22126_v18 }
 0x51b   : > { %12583 = vmatprep.mubr.bf16.mxu1 %v5980_v23  ;;  %v4331_v1 = vpop.f32.mrf.mxu1  ;;  %v17392_v44 = vpop.f32.mrf.mxu0  ;;  %v5961_v20 = vmul.f32 %v17382_v33, %v22735_v35  ;;  %vm22737_vm2 = vnez %v22736_v4  ;;  %v22739_v31 = vld [vmem:[#allocation52_spill] sm:$0xff]  ;;  %v5981_v35 = vpack.c.bf16 %v5959_v10, %v5958_v12  ;;  %22744 = vst [vmem:[#allocation109_spill] sm:$0xff] %v17418_v58  ;;  %v22745_v10 = vld [vmem:[#allocation227_spill] sm:$0xff] }
 0x51c   : > { %v4422_v30 = vadd.f32 %v4331_v1, %v17053_v51  ;;  %vm3386_vm5 = vmand %vm2746_vm10, %vm22737_vm2  ;;  %v5960_v42 = vmul.f32 %v22739_v31, %v22738_v24 }
 0x51d   : > { %v12294_v55 = vpop.f32.mrf.mxu1  ;;  %v12341_v43 = vpop.f32.mrf.mxu0 }
 0x51e   : > { %v4425_v23 = vadd.f32 %v12294_v55, %v17073_v46  ;;  %v17407_v51 = vadd.f32 %v12341_v43, %v4424_v49  ;;  %v5982_v33 = vpack.c.bf16 %v5961_v20, %v5960_v42  ;;  %v17413_v46 = vsel %vm3386_vm5, 1.0, %v22126_v18  ;;  %v22746_v43 = vld [vmem:[#allocation226_spill] sm:$0xff] }
 0x51f   : > { %v4334_v1 = vpop.f32.mrf.mxu1  ;;  %v4637_v25 = vpop.f32.mrf.mxu0  ;;  %22743 = vst [vmem:[#allocation156_spill] sm:$0xff] %v17413_v46  ;;  %v5962_v20 = vmul.f32 %v17107_v63, %v22745_v10  ;;  %v5963_v42 = vmul.f32 %v17413_v46, %v22746_v43  ;;  %v22751_v10 = vld [vmem:[#allocation222_spill] sm:$0xff] }
 0x520   : > { %v17410_v4 = vadd.f32 %v4334_v1, %v17079_v47  ;;  %v17415_v55 = vadd.f32 %v4637_v25, %v4422_v30  ;;  %vm22752_vm6 = vnez %v22751_v10 }
 0x521   : > { %v12342_v49 = vpop.f32.mrf.mxu0  ;;  %vm3392_vm12 = vmand %vm2752_vm9, %vm22752_vm6  ;;  %v5983_v43 = vpack.c.bf16 %v5963_v42, %v5962_v20  ;;  %v22755_v20 = vld [vmem:[#allocation134_spill] sm:$0xff] }
 0x522   : > { %v12297_v24 = vpop.f32.mrf.mxu1  ;;  %12584 = vmatmul.mubr.bf16.gmra.mxu1 %v5981_v35  ;;  %v17421_v12 = vadd.f32 %v12342_v49, %v4425_v23  ;;  %v22747_v35 = vld [vmem:[#allocation229_spill] sm:$0xff]  ;;  %v5966_v42 = vmul.f32 %v17180_v48, %v22755_v20 }
 0x523   : > { %v4428_v15 = vadd.f32 %v12297_v24, %v17100_v14  ;;  %12587 = vmatprep.mubr.bf16.mxu1 %v5982_v33  ;;  %v17428_v1 = vpop.f32.mrf.mxu0  ;;  %v5965_v25 = vmul.f32 %v17418_v58, %v22747_v35  ;;  %v22748_v14 = vld [vmem:[#allocation221_spill] sm:$0xff]  ;;  %v22750_v24 = vld [vmem:[#allocation231_spill] sm:$0xff] }
 0x524   : > { %v4347_v47 = vpop.f32.mrf.mxu1  ;;  %vm22749_vm10 = vnez %v22748_v14  ;;  %v5964_v49 = vmul.f32 %v17119_v11, %v22750_v24  ;;  %v17453_v24 = vsel %vm3392_vm12, 1.0, %v22126_v18  ;;  %v22758_v11 = vld [vmem:[#allocation179_spill] sm:$0xff] }
 0x525   : > { %v4426_v30 = vadd.f32 %v4347_v47, %v17121_v6  ;;  %vm3390_vm14 = vmand %vm2750_vm7, %vm22749_vm10  ;;  %22754 = vst [vmem:[#allocation174_spill] sm:$0xff] %v17453_v24 }
 0x526   : > { %v12298_v31 = vpop.f32.mrf.mxu1  ;;  %v5984_v14 = vpack.c.bf16 %v5965_v25, %v5964_v49  ;;  %v17448_v50 = vsel %vm3390_vm14, 1.0, %v22126_v18  ;;  %v22756_v25 = vld [vmem:[#allocation172_spill] sm:$0xff] }
 0x527   : > { %v4429_v33 = vadd.f32 %v12298_v31, %v17141_v26  ;;  %v12345_v23 = vpop.f32.mrf.mxu0  ;;  %22753 = vst [vmem:[#allocation58_spill] sm:$0xff] %v17448_v50  ;;  %v5967_v49 = vmul.f32 %v17448_v50, %v22756_v25 }
 0x528   : > { %v17443_v6 = vadd.f32 %v12345_v23, %v4428_v15  ;;  %v17445_v47 = vpop.f32.mrf.mxu1 }
 0x529   : > { %v4653_v35 = vpop.f32.mrf.mxu0 }
 0x52a   : > { %v17450_v26 = vadd.f32 %v4653_v35, %v4426_v30  ;;  %v12301_v31 = vpop.f32.mrf.mxu1  ;;  %12588 = vmatmul.mubr.bf16.gmra.mxu1 %v5983_v43  ;;  %v22757_v43 = vld [vmem:[#allocation178_spill] sm:$0xff] }
 0x52b   : > { %v4432_v8 = vadd.f32 %v12301_v31, %v17173_v61  ;;  %v12346_v10 = vpop.f32.mrf.mxu0  ;;  %12591 = vmatprep.mubr.bf16.mxu1 %v5984_v14  ;;  %v5968_v58 = vmul.f32 %v17187_v60, %v22757_v43  ;;  %v5969_v61 = vmul.f32 %v17453_v24, %v22758_v11 }
 0x52c   : > { %v17456_v15 = vadd.f32 %v12346_v10, %v4429_v33  ;;  %v4363_v23 = vpop.f32.mrf.mxu1  ;;  %v22759_v33 = vld [vmem:[#allocation230_spill] sm:$0xff] }
 0x52d   : > { %v4430_v30 = vadd.f32 %v4363_v23, %v17192_v54  ;;  %v17463_v35 = vpop.f32.mrf.mxu0  ;;  %vm22760_vm7 = vnez %v22759_v33  ;;  %v5985_v23 = vpack.c.bf16 %v5967_v49, %v5966_v42  ;;  %v5986_v50 = vpack.c.bf16 %v5969_v61, %v5968_v58  ;;  %v22763_v42 = vld [vmem:[#allocation25_spill] sm:$0xff] }
 0x52e   : > { %v12302_v14 = vpop.f32.mrf.mxu1  ;;  %vm3394_vm9 = vmand %vm2754_vm4, %vm22760_vm7 }
 0x52f   : > { %v4433_v31 = vadd.f32 %v12302_v14, %v17204_v53  ;;  %v12349_v10 = vpop.f32.mrf.mxu0  ;;  %v17479_v43 = vsel %vm3394_vm9, 1.0, %v22126_v18  ;;  %v22762_v14 = vld [vmem:[#allocation180_spill] sm:$0xff] }
 0x530   : > { %v17474_v20 = vadd.f32 %v12349_v10, %v4432_v8  ;;  %v17476_v54 = vpop.f32.mrf.mxu1  ;;  %22761 = vst [vmem:[#allocation20_spill] sm:$0xff] %v17479_v43  ;;  %v5970_v10 = vmul.f32 %v17234_v17, %v22762_v14  ;;  %v5971_v58 = vmul.f32 %v17479_v43, %v22763_v42 }
 0x531   : > { %v4669_v25 = vpop.f32.mrf.mxu0 }
 0x532   : > { %v17481_v11 = vadd.f32 %v4669_v25, %v4430_v30  ;;  %v12305_v24 = vpop.f32.mrf.mxu1  ;;  %12592 = vmatmul.mubr.bf16.gmra.mxu1 %v5985_v23 }
 0x533   : > { %v4436_v56 = vadd.f32 %v12305_v24, %v17227_v52  ;;  %v12350_v33 = vpop.f32.mrf.mxu0  ;;  %12595 = vmatprep.mubr.bf16.mxu1 %v5986_v50  ;;  %v5987_v24 = vpack.c.bf16 %v5971_v58, %v5970_v10 }
 0x534   : > { %v17484_v53 = vadd.f32 %v12350_v33, %v4433_v31  ;;  %v4379_v8 = vpop.f32.mrf.mxu1 }
 0x535   : > { %v4434_v18 = vadd.f32 %v4379_v8, %v17238_v29  ;;  %v17491_v49 = vpop.f32.mrf.mxu0 }
 0x536   : > { %v12306_v30 = vpop.f32.mrf.mxu1 }
 0x537   : > { %v4437_v61 = vadd.f32 %v12306_v30, %v17245_v62  ;;  %v12353_v23 = vpop.f32.mrf.mxu0 }
 0x538   : > { %v17494_v52 = vadd.f32 %v12353_v23, %v4436_v56  ;;  %v17496_v50 = vpop.f32.mrf.mxu1 }
 0x539   : > { %v4685_v31 = vpop.f32.mrf.mxu0 }
 0x53a   : > { %v17498_v25 = vadd.f32 %v4685_v31, %v4434_v18  ;;  %v12309_v33 = vpop.f32.mrf.mxu1  ;;  %12596 = vmatmul.mubr.bf16.gmra.mxu1 %v5987_v24 }
 0x53b   : > { %v4440_v14 = vadd.f32 %v12309_v33, %v17261_v57  ;;  %v12354_v42 = vpop.f32.mrf.mxu0 }
 0x53c   : > { %v17501_v29 = vadd.f32 %v12354_v42, %v4437_v61  ;;  %v4395_v8 = vpop.f32.mrf.mxu1 }
 0x53d   : > { %v4438_v43 = vadd.f32 %v4395_v8, %v17268_v7  ;;  %v17504_v62 = vpop.f32.mrf.mxu0 }
 0x53e   : > { %v12310_v56 = vpop.f32.mrf.mxu1 }
 0x53f   : > { %v4441_v30 = vadd.f32 %v12310_v56, %v17277_v36  ;;  %v12357_v23 = vpop.f32.mrf.mxu0 }
 0x540   : > { %v17507_v10 = vadd.f32 %v12357_v23, %v4440_v14  ;;  %v17509_v58 = vpop.f32.mrf.mxu1 }
 0x541   : > { %v4701_v18 = vpop.f32.mrf.mxu0 }
 0x542   : > { %v17511_v24 = vadd.f32 %v4701_v18, %v4438_v43  ;;  %v12377_v57 = vpop.f32.mrf.mxu1 }
 0x543   : > { %v4992_v61 = vadd.f32 %v12377_v57, %v17299_v0  ;;  %v12358_v31 = vpop.f32.mrf.mxu0 }
 0x544   : > { %v17514_v33 = vadd.f32 %v12358_v31, %v4441_v30  ;;  %v4863_v7 = vpop.f32.mrf.mxu1 }
 0x545   : > { %v4990_v42 = vadd.f32 %v4863_v7, %v17307_v13  ;;  %v17517_v8 = vpop.f32.mrf.mxu0 }
 0x546   : > { %v12378_v36 = vpop.f32.mrf.mxu1 }
 0x547   : > { %v4993_v14 = vadd.f32 %v12378_v36, %v17313_v2  ;;  %v12425_v56 = vpop.f32.mrf.mxu0 }
 0x548   : > { %v17520_v23 = vadd.f32 %v12425_v56, %v4992_v61  ;;  %v17522_v17 = vpop.f32.mrf.mxu1 }
 0x549   : > { %v5169_v43 = vpop.f32.mrf.mxu0 }
 0x54a   : > { %v17524_v18 = vadd.f32 %v5169_v43, %v4990_v42  ;;  %v12381_v0 = vpop.f32.mrf.mxu1 }
 0x54b   : > { %v4996_v30 = vadd.f32 %v12381_v0, %v17335_v21  ;;  %v12426_v57 = vpop.f32.mrf.mxu0 }
 0x54c   : > { %v17527_v31 = vadd.f32 %v12426_v57, %v4993_v14  ;;  %v4879_v13 = vpop.f32.mrf.mxu1 }
 0x54d   : > { %v4994_v7 = vadd.f32 %v4879_v13, %v17343_v19  ;;  %v17530_v60 = vpop.f32.mrf.mxu0  ;;  %v13413_v19 = vld [vmem:[%s21046_s14 + $0x78] sm:$0xff]  }
 0x54e   : > { %22764 = vst [vmem:[#allocation62_spill] sm:$0xff] %v17530_v60  ;;  %v12382_v2 = vpop.f32.mrf.mxu1  ;;  %12599 = vmatprep.subr.bf16.mxu0 %v13413_v19 }
 0x54f   : > { %v4997_v61 = vadd.f32 %v12382_v2, %v17349_v39  ;;  %v12429_v36 = vpop.f32.mrf.mxu0  ;;  %12600 = vmatpush3.bf16.msra.mxu0 %v13413_v19  ;;  %v13414_v19 = vld [vmem:[%s21046_s14 + $0x70] sm:$0xff]  }
 0x550   : > { %v17533_v56 = vadd.f32 %v12429_v36, %v4996_v30  ;;  %v17535_v48 = vpop.f32.mrf.mxu1  ;;  %12601 = vmatprep.subr.bf16.mxu0 %v13414_v19 }
 0x551   : > { %v5185_v42 = vpop.f32.mrf.mxu0 }
 0x552   : > { %v17537_v43 = vadd.f32 %v5185_v42, %v4994_v7  ;;  %v12385_v21 = vpop.f32.mrf.mxu1 }
 0x553   : > { %v5000_v14 = vadd.f32 %v12385_v21, %v17371_v38  ;;  %v12430_v0 = vpop.f32.mrf.mxu0  ;;  %12602 = vmatpush3.bf16.msra.mxu0 %v13414_v19 }
 0x554   : > { %v17543_v57 = vadd.f32 %v12430_v0, %v4997_v61  ;;  %v4895_v13 = vpop.f32.mrf.mxu1 }
 0x555   : > { %v4998_v39 = vadd.f32 %v4895_v13, %v17379_v16  ;;  %v17546_v30 = vpop.f32.mrf.mxu0 }
 0x556   : > { %v12386_v2 = vpop.f32.mrf.mxu1 }
 0x557   : > { %v5001_v7 = vadd.f32 %v12386_v2, %v17385_v3  ;;  %v12433_v36 = vpop.f32.mrf.mxu0 }
 0x558   : > { %v17549_v42 = vadd.f32 %v12433_v36, %v5000_v14  ;;  %v17551_v38 = vpop.f32.mrf.mxu1 }
 0x559   : > { %v5201_v21 = vpop.f32.mrf.mxu0 }
 0x55a   : > { %v17553_v46 = vadd.f32 %v5201_v21, %v4998_v39  ;;  %v12389_v61 = vpop.f32.mrf.mxu1 }
 0x55b   : > { %v5004_v0 = vadd.f32 %v12389_v61, %v17407_v51  ;;  %v12434_v63 = vpop.f32.mrf.mxu0 }
 0x55c   : > { %v17556_v16 = vadd.f32 %v12434_v63, %v5001_v7  ;;  %v4911_v13 = vpop.f32.mrf.mxu1 }
 0x55d   : > { %v5002_v3 = vadd.f32 %v4911_v13, %v17415_v55  ;;  %v17562_v14 = vpop.f32.mrf.mxu0  ;;  %v13415_v55 = vld [vmem:[%s21046_s14 + $0x68] sm:$0xff]  }
 0x55e   : > { %22765 = vst [vmem:[#allocation138_spill] sm:$0xff] %v17562_v14  ;;  %v12390_v2 = vpop.f32.mrf.mxu1  ;;  %12603 = vmatprep.subr.bf16.mxu0 %v13415_v55 }
 0x55f   : > { %v5005_v39 = vadd.f32 %v12390_v2, %v17421_v12  ;;  %v12437_v36 = vpop.f32.mrf.mxu0  ;;  %12604 = vmatpush3.bf16.msra.mxu0 %v13415_v55  ;;  %v13416_v55 = vld [vmem:[%s21046_s14 + $0x60] sm:$0xff]  }
 0x560   : > { %v17565_v21 = vadd.f32 %v12437_v36, %v5004_v0  ;;  %v17567_v51 = vpop.f32.mrf.mxu1  ;;  %12605 = vmatprep.subr.bf16.mxu0 %v13416_v55 }
 0x561   : > { %v5217_v63 = vpop.f32.mrf.mxu0 }
 0x562   : > { %v17569_v7 = vadd.f32 %v5217_v63, %v5002_v3  ;;  %v12393_v61 = vpop.f32.mrf.mxu1 }
 0x563   : > { %v5008_v45 = vadd.f32 %v12393_v61, %v17443_v6  ;;  %v12438_v5 = vpop.f32.mrf.mxu0  ;;  %12606 = vmatpush3.bf16.msra.mxu0 %v13416_v55 }
 0x564   : > { %v17575_v13 = vadd.f32 %v12438_v5, %v5005_v39  ;;  %v4927_v12 = vpop.f32.mrf.mxu1 }
 0x565   : > { %v5006_v19 = vadd.f32 %v4927_v12, %v17450_v26  ;;  %v17578_v0 = vpop.f32.mrf.mxu0 }
 0x566   : > { %22766 = vst [vmem:[#allocation129_spill] sm:$0xff] %v17578_v0  ;;  %v12394_v2 = vpop.f32.mrf.mxu1 }
 0x567   : > { %v5009_v3 = vadd.f32 %v12394_v2, %v17456_v15  ;;  %v12441_v36 = vpop.f32.mrf.mxu0 }
 0x568   : > { %v17581_v63 = vadd.f32 %v12441_v36, %v5008_v45  ;;  %v17583_v6 = vpop.f32.mrf.mxu1 }
 0x569   : > { %v5233_v61 = vpop.f32.mrf.mxu0 }
 0x56a   : > { %v17585_v9 = vadd.f32 %v5233_v61, %v5006_v19  ;;  %v12397_v5 = vpop.f32.mrf.mxu1 }
 0x56b   : > { %v5012_v39 = vadd.f32 %v12397_v5, %v17474_v20  ;;  %v12442_v14 = vpop.f32.mrf.mxu0 }
 0x56c   : > { %v17588_v26 = vadd.f32 %v12442_v14, %v5009_v3  ;;  %v4943_v12 = vpop.f32.mrf.mxu1 }
 0x56d   : > { %v5010_v15 = vadd.f32 %v4943_v12, %v17481_v11  ;;  %v17594_v45 = vpop.f32.mrf.mxu0  ;;  %v13417_v11 = vld [vmem:[%s21046_s14 + $0x58] sm:$0xff]  }
 0x56e   : > { %22767 = vst [vmem:[#allocation122_spill] sm:$0xff] %v17594_v45  ;;  %v12398_v2 = vpop.f32.mrf.mxu1  ;;  %12607 = vmatprep.subr.bf16.mxu0 %v13417_v11 }
 0x56f   : > { %v5013_v19 = vadd.f32 %v12398_v2, %v17484_v53  ;;  %v12445_v36 = vpop.f32.mrf.mxu0  ;;  %12608 = vmatpush3.bf16.msra.mxu0 %v13417_v11 }
 0x570   : > { %v17597_v61 = vadd.f32 %v12445_v36, %v5012_v39  ;;  %v17599_v20 = vpop.f32.mrf.mxu1 }
 0x571   : > { %22768 = vst [vmem:[#allocation123_spill] sm:$0xff] %v17599_v20  ;;  %v5249_v14 = vpop.f32.mrf.mxu0 }
 0x572   : > { %v17601_v3 = vadd.f32 %v5249_v14, %v5010_v15  ;;  %v12401_v5 = vpop.f32.mrf.mxu1 }
 0x573   : > { %v5016_v12 = vadd.f32 %v12401_v5, %v17494_v52  ;;  %v12446_v45 = vpop.f32.mrf.mxu0  ;;  %v13418_v52 = vld [vmem:[%s21046_s14 + $0x38] sm:$0xff]  }
 0x574   : > { %v17607_v0 = vadd.f32 %v12446_v45, %v5013_v19  ;;  %v4959_v53 = vpop.f32.mrf.mxu1  ;;  %12647 = vmatprep.subr.bf16.mxu1 %v13418_v52 }
 0x575   : > { %v5014_v39 = vadd.f32 %v4959_v53, %v17498_v25  ;;  %v17610_v55 = vpop.f32.mrf.mxu0  ;;  %12648 = vmatpush3.bf16.msra.mxu1 %v13418_v52 }
 0x576   : > { %v12402_v2 = vpop.f32.mrf.mxu1 }
 0x577   : > { %v5017_v15 = vadd.f32 %v12402_v2, %v17501_v29  ;;  %v12449_v36 = vpop.f32.mrf.mxu0  ;;  %v13419_v29 = vld [vmem:[%s21046_s14 + $0x50] sm:$0xff]  }
 0x578   : > { %v17613_v14 = vadd.f32 %v12449_v36, %v5016_v12  ;;  %v17615_v60 = vpop.f32.mrf.mxu1  ;;  %12609 = vmatprep.subr.bf16.mxu0 %v13419_v29 }
 0x579   : > { %v5265_v20 = vpop.f32.mrf.mxu0  ;;  %12610 = vmatpush3.bf16.msra.mxu0 %v13419_v29 }
 0x57a   : > { %v17620_v45 = vadd.f32 %v5265_v20, %v5014_v39  ;;  %v12405_v19 = vpop.f32.mrf.mxu1  ;;  %v13420_v20 = vld [vmem:[%s21046_s14 + $0x30] sm:$0xff]  }
 0x57b   : > { %v5020_v25 = vadd.f32 %v12405_v19, %v17507_v10  ;;  %v12450_v5 = vpop.f32.mrf.mxu0  ;;  %12649 = vmatprep.subr.bf16.mxu1 %v13420_v20 }
 0x57c   : > { %v17626_v11 = vadd.f32 %v12450_v5, %v5017_v15  ;;  %v4975_v12 = vpop.f32.mrf.mxu1  ;;  %12650 = vmatpush3.bf16.msra.mxu1 %v13420_v20 }
 0x57d   : > { %v5018_v53 = vadd.f32 %v4975_v12, %v17511_v24  ;;  %v17629_v2 = vpop.f32.mrf.mxu0  ;;  %v13421_v24 = vld [vmem:[%s21046_s14 + $0x28] sm:$0xff]  }
 0x57e   : > { %v12406_v10 = vpop.f32.mrf.mxu1  ;;  %12651 = vmatprep.subr.bf16.mxu1 %v13421_v24 }
 0x57f   : > { %v17635_v39 = vadd.f32 %v12406_v10, %v17514_v33  ;;  %v12453_v36 = vpop.f32.mrf.mxu0  ;;  %v13422_v33 = vld [vmem:[%s21046_s14 + $0x48] sm:$0xff]  }
 0x580   : > { %v17637_v15 = vadd.f32 %v12453_v36, %v5020_v25  ;;  %v17639_v19 = vpop.f32.mrf.mxu1  ;;  %12652 = vmatpush3.bf16.msra.mxu1 %v13421_v24  ;;  %12611 = vmatprep.subr.bf16.mxu0 %v13422_v33 }
 0x581   : > { %22769 = vst [vmem:[#allocation188_spill] sm:$0xff] %v17635_v39  ;;  %v5281_v52 = vpop.f32.mrf.mxu0  ;;  %12612 = vmatpush3.bf16.msra.mxu0 %v13422_v33  ;;  %v13425_v33 = vld [vmem:[%s21046_s14 + $0x40] sm:$0xff]  }
 0x582   : > { %v17644_v5 = vadd.f32 %v5281_v52, %v5018_v53  ;;  %v12473_v12 = vpop.f32.mrf.mxu1  ;;  %v13423_v52 = vld [vmem:[%s21046_s14 + $0x20] sm:$0xff]   ;;  %12613 = vmatprep.subr.bf16.mxu0 %v13425_v33 }
 0x583   : > { %v17650_v29 = vadd.f32 %v12473_v12, %v17520_v23  ;;  %v17652_v25 = vpop.f32.mrf.mxu0  ;;  %12653 = vmatprep.subr.bf16.mxu1 %v13423_v52 }
 0x584   : > { %22771 = vst [vmem:[#allocation38_spill] sm:$0xff] %v17652_v25  ;;  %v5475_v10 = vpop.f32.mrf.mxu1  ;;  %12654 = vmatpush3.bf16.msra.mxu1 %v13423_v52  ;;  %v17688_v52 = vld [vmem:[%s21046_s14 + $0xb8] sm:$0xff]  }
 0x585   : > { %22770 = vst [vmem:[#allocation183_spill] sm:$0xff] %v17650_v29  ;;  %v17655_v20 = vadd.f32 %v5475_v10, %v17524_v18  ;;  %v17657_v36 = vpop.f32.mrf.mxu0  ;;  %v13424_v18 = vld [vmem:[%s21046_s14 + $0x18] sm:$0xff]   ;;  %22778 = vst [vmem:[#allocation193_spill] sm:$0xff] %v17688_v52  ;;  %12614 = vmatpush3.bf16.msra.mxu0 %v13425_v33 }
 0x586   : > { %22773 = vst [vmem:[#allocation184_spill] sm:$0xff] %v17657_v36  ;;  %v12474_v53 = vpop.f32.mrf.mxu1  ;;  %12655 = vmatprep.subr.bf16.mxu1 %v13424_v18  ;;  %12695 = vmatprep.subr.bf16.mxu0 %v17688_v52 }
 0x587   : > { %22772 = vst [vmem:[#allocation191_spill] sm:$0xff] %v17655_v20  ;;  %v17663_v39 = vadd.f32 %v12474_v53, %v17527_v31  ;;  %v17665_v23 = vpop.f32.mrf.mxu0  ;;  %v13426_v31 = vld [vmem:[%s21046_s14 + $0x10] sm:$0xff]  }
 0x588   : > { %22774 = vst [vmem:[#allocation160_spill] sm:$0xff] %v17665_v23  ;;  %v17667_v12 = vpop.f32.mrf.mxu1  ;;  %12656 = vmatpush3.bf16.msra.mxu1 %v13424_v18  ;;  %v13429_v18 = vld [vmem:[%s21046_s14] sm:$0xff]  }
 0x589   : > { %22775 = vst [vmem:[#allocation159_spill] sm:$0xff] %v17667_v12  ;;  %v17669_v24 = vpop.f32.mrf.mxu0  ;;  %12657 = vmatprep.subr.bf16.mxu1 %v13426_v31 }
 0x58a   : > { %22776 = vst [vmem:[#allocation136_spill] sm:$0xff] %v17669_v24  ;;  %v12477_v10 = vpop.f32.mrf.mxu1 }
 0x58b   : > { %v17681_v53 = vadd.f32 %v12477_v10, %v17533_v56  ;;  %v17683_v20 = vpop.f32.mrf.mxu0  ;;  %v13427_v10 = vld [vmem:[%s21046_s14 + $0x8] sm:$0xff]  }
 0x58c   : > { %v5491_v24 = vpop.f32.mrf.mxu1  ;;  %12658 = vmatpush3.bf16.msra.mxu1 %v13426_v31 }
 0x58d   : > { %22777 = vst [vmem:[#allocation194_spill] sm:$0xff] %v17681_v53  ;;  %v17691_v23 = vadd.f32 %v5491_v24, %v17537_v43  ;;  %v17693_v29 = vpop.f32.mrf.mxu0  ;;  %12659 = vmatprep.subr.bf16.mxu1 %v13427_v10 }
 0x58e   : > { %22779 = vst [vmem:[#allocation22_spill] sm:$0xff] %v17693_v29  ;;  %v12478_v56 = vpop.f32.mrf.mxu1 }
 0x58f   : > { %v17700_v53 = vadd.f32 %v12478_v56, %v17543_v57  ;;  %v17702_v36 = vpop.f32.mrf.mxu0 }
 0x590   : > { %22781 = vst [vmem:[#allocation189_spill] sm:$0xff] %v17702_v36  ;;  %v17704_v33 = vpop.f32.mrf.mxu1  ;;  %12660 = vmatpush3.bf16.msra.mxu1 %v13427_v10 }
 0x591   : > { %22780 = vst [vmem:[#allocation196_spill] sm:$0xff] %v17700_v53  ;;  %v17706_v43 = vpop.f32.mrf.mxu0  ;;  %12661 = vmatprep.subr.bf16.mxu1 %v13429_v18 }
 0x592   : > { %v12481_v24 = vpop.f32.mrf.mxu1 }
 0x593   : > { %v17712_v52 = vadd.f32 %v12481_v24, %v17549_v42  ;;  %v17714_v29 = vpop.f32.mrf.mxu0 }
 0x594   : > { %v5507_v57 = vpop.f32.mrf.mxu1  ;;  %12662 = vmatpush3.bf16.msra.mxu1 %v13429_v18 }
 0x595   : > { %22782 = vst [vmem:[#allocation50_spill] sm:$0xff] %v17712_v52  ;;  %v17717_v56 = vadd.f32 %v5507_v57, %v17553_v46  ;;  %v17719_v53 = vpop.f32.mrf.mxu0 }
 0x596   : > { %v12482_v36 = vpop.f32.mrf.mxu1 }
 0x597   : > { %22783 = vst [vmem:[#allocation31_spill] sm:$0xff] %v17717_v56  ;;  %v17722_v31 = vadd.f32 %v12482_v36, %v17556_v16  ;;  %v17724_v12 = vpop.f32.mrf.mxu0 }
 0x598   : > { %v17726_v25 = vpop.f32.mrf.mxu1 }
 0x599   : > { %22784 = vst [vmem:[#allocation199_spill] sm:$0xff] %v17722_v31  ;;  %v17728_v42 = vpop.f32.mrf.mxu0 }
 0x59a   : > { %22785 = vst [vmem:[#allocation190_spill] sm:$0xff] %v17728_v42  ;;  %v12485_v24 = vpop.f32.mrf.mxu1 }
 0x59b   : > { %v17731_v52 = vadd.f32 %v12485_v24, %v17565_v21  ;;  %v17733_v46 = vpop.f32.mrf.mxu0 }
 0x59c   : > { %v5523_v57 = vpop.f32.mrf.mxu1 }
 0x59d   : > { %22786 = vst [vmem:[#allocation202_spill] sm:$0xff] %v17731_v52  ;;  %v17736_v10 = vadd.f32 %v5523_v57, %v17569_v7  ;;  %v17738_v56 = vpop.f32.mrf.mxu0 }
 0x59e   : > { %v12486_v16 = vpop.f32.mrf.mxu1 }
 0x59f   : > { %22787 = vst [vmem:[#allocation201_spill] sm:$0xff] %v17736_v10  ;;  %v17741_v36 = vadd.f32 %v12486_v16, %v17575_v13  ;;  %v17745_v42 = vpop.f32.mrf.mxu0 }
 0x5a0   : > { %v17743_v31 = vpop.f32.mrf.mxu1 }
 0x5a1   : > { %22788 = vst [vmem:[#allocation186_spill] sm:$0xff] %v17741_v36  ;;  %22789 = vst [vmem:[#allocation204_spill] sm:$0xff] %v17743_v31  ;;  %v17750_v52 = vpop.f32.mrf.mxu0 }
 0x5a2   : > { %v12489_v18 = vpop.f32.mrf.mxu1 }
 0x5a3   : > { %v17748_v21 = vadd.f32 %v12489_v18, %v17581_v63  ;;  %v17760_v16 = vpop.f32.mrf.mxu0 }
 0x5a4   : > { %v5539_v24 = vpop.f32.mrf.mxu1 }
 0x5a5   : > { %22790 = vst [vmem:[#allocation197_spill] sm:$0xff] %v17748_v21  ;;  %v17753_v7 = vadd.f32 %v5539_v24, %v17585_v9  ;;  %v17765_v18 = vpop.f32.mrf.mxu0 }
 0x5a6   : > { %v12490_v57 = vpop.f32.mrf.mxu1 }
 0x5a7   : > { %v17756_v10 = vadd.f32 %v12490_v57, %v17588_v26  ;;  %v17775_v57 = vpop.f32.mrf.mxu0 }
 0x5a8   : > { %v17758_v13 = vpop.f32.mrf.mxu1 }
 0x5a9   : > { %22791 = vst [vmem:[#allocation63_spill] sm:$0xff] %v17756_v10  ;;  %v17780_v10 = vld [vmem:[%s21046_s14 + $0xf8] sm:$0xff]  }
 0x5aa   : > { %v12493_v36 = vpop.f32.mrf.mxu1  ;;  %22796 = vst [vmem:[#allocation209_spill] sm:$0xff] %v17780_v10  ;;  %12743 = vmatprep.subr.bf16.mxu1 %v17780_v10 }
 0x5ab   : > { %v17763_v31 = vadd.f32 %v12493_v36, %v17597_v61 }
 0x5ac   : > { %v5555_v63 = vpop.f32.mrf.mxu1 }
 0x5ad   : > { %22792 = vst [vmem:[#allocation149_spill] sm:$0xff] %v17763_v31  ;;  %v17768_v21 = vadd.f32 %v5555_v63, %v17601_v3  ;;  %v17786_v63 = vpop.f32.mrf.mxu0 }
 0x5ae   : > { %v12494_v9 = vpop.f32.mrf.mxu1 }
 0x5af   : > { %22793 = vst [vmem:[#allocation207_spill] sm:$0xff] %v17768_v21  ;;  %v17771_v24 = vadd.f32 %v12494_v9, %v17607_v0  ;;  %v17796_v31 = vpop.f32.mrf.mxu0 }
 0x5b0   : > { %v17773_v26 = vpop.f32.mrf.mxu1  ;;  %22801 = vst [vmem:[#allocation215_spill] sm:$0xff] %v17796_v31 }
 0x5b1   : > { %22794 = vst [vmem:[#allocation198_spill] sm:$0xff] %v17771_v24  ;;  %22795 = vst [vmem:[#allocation210_spill] sm:$0xff] %v17773_v26  ;;  %v17801_v10 = vpop.f32.mrf.mxu0 }
 0x5b2   : > { %v12497_v61 = vpop.f32.mrf.mxu1  ;;  %22803 = vst [vmem:[#allocation218_spill] sm:$0xff] %v17801_v10 }
 0x5b3   : > { %v17783_v36 = vadd.f32 %v12497_v61, %v17613_v14 }
 0x5b4   : > { %v5571_v3 = vpop.f32.mrf.mxu1 }
 0x5b5   : > { %22797 = vst [vmem:[#allocation57_spill] sm:$0xff] %v17783_v36  ;;  %v17789_v0 = vadd.f32 %v5571_v3, %v17620_v45 }
 0x5b6   : > { %v12498_v9 = vpop.f32.mrf.mxu1 }
 0x5b7   : > { %22798 = vst [vmem:[#allocation212_spill] sm:$0xff] %v17789_v0  ;;  %v17792_v24 = vadd.f32 %v12498_v9, %v17626_v11  ;;  %v17810_v11 = vpop.f32.mrf.mxu0 }
 0x5b8   : > { %v17794_v21 = vpop.f32.mrf.mxu1  ;;  %22807 = vst [vmem:[#allocation223_spill] sm:$0xff] %v17810_v11 }
 0x5b9   : > { %22799 = vst [vmem:[#allocation205_spill] sm:$0xff] %v17792_v24  ;;  %22800 = vst [vmem:[#allocation87_spill] sm:$0xff] %v17794_v21  ;;  %v17816_v0 = vpop.f32.mrf.mxu0 }
 0x5ba   : > { %v12501_v26 = vpop.f32.mrf.mxu1  ;;  %22808 = vst [vmem:[#allocation214_spill] sm:$0xff] %v17816_v0 }
 0x5bb   : > { %v17799_v14 = vadd.f32 %v12501_v26, %v17637_v15 }
 0x5bc   : > { %v5587_v61 = vpop.f32.mrf.mxu1 }
 0x5bd   : > { %22802 = vst [vmem:[#allocation206_spill] sm:$0xff] %v17799_v14  ;;  %v17804_v36 = vadd.f32 %v5587_v61, %v17644_v5  ;;  %v17820_v14 = vpop.f32.mrf.mxu0  ;;  %v4721_v5 = vadd.f32 %v17356_v28, %v17338_v37  ;;  %v4012_v28 = vadd.f32 %v17147_v59, %v17102_v27 }
 0x5be   : > { %v17806_v45 = vpop.f32.mrf.mxu1  ;;  %22809 = vst [vmem:[#allocation227_spill] sm:$0xff] %v17820_v14 }
 0x5bf   : > { %22804 = vst [vmem:[#allocation217_spill] sm:$0xff] %v17804_v36  ;;  %22805 = vst [vmem:[#allocation220_spill] sm:$0xff] %v17806_v45  ;;  %v4995_v36 = vadd.f32 %v17535_v48, %v4721_v5  ;;  %v4028_v48 = vadd.f32 %v17210_v32, %v17175_v22  ;;  %v22812_v5 = vld [vmem:[#allocation92_spill] sm:$0xff] }
 0x5c0   : > { %v17808_v3 = vpop.f32.mrf.mxu1 }
 0x5c1   : > { %22806 = vst [vmem:[#allocation213_spill] sm:$0xff] %v17808_v3  ;;  %v17827_v3 = vpop.f32.mrf.mxu0  ;;  %v5301_v11 = vadd.f32 %v17546_v30, %v4995_v36  ;;  %v4044_v30 = vadd.f32 %v22812_v5, %v17229_v40  ;;  %v22813_v36 = vld [vmem:[#allocation170_spill] sm:$0xff]  ;;  %v4431_v27 = vadd.f32 %v17476_v54, %v4028_v48  ;;  %v5911_v40 = vadd.f32 %v17683_v20, %v17663_v39 }
 0x5c2   : > { %v17812_v9 = vpop.f32.mrf.mxu1  ;;  %v4729_v54 = vadd.f32 %v17428_v1, %v17410_v4  ;;  %v17875_v20 = vld [vmem:[%s21047_s15 + $0x1] ss:$0 sm:$0xff] }
 0x5c3   : > { %v5607_v10 = vadd.f32 %v17704_v33, %v5301_v11  ;;  %v17833_v31 = vpop.f32.mrf.mxu0  ;;  %v4060_v33 = vadd.f32 %v17284_v34, %v22813_v36  ;;  %v5912_v11 = vadd.f32 %v17706_v43, %v17691_v23  ;;  %v4435_v32 = vadd.f32 %v17496_v50, %v4044_v30  ;;  %v22814_v23 = vld [vmem:[#allocation98_spill] sm:$0xff]  ;;  %v22815_v43 = vld [vmem:[#allocation41_spill] sm:$0xff] }
 0x5c4   : > { %v17814_v24 = vpop.f32.mrf.mxu1  ;;  %v4717_v5 = vadd.f32 %v22815_v43, %v22814_v23  ;;  %v5003_v4 = vadd.f32 %v17567_v51, %v4729_v54  ;;  %v22818_v30 = vld [vmem:[#allocation138_spill] sm:$0xff]  ;;  %v22819_v36 = vld [vmem:[#allocation129_spill] sm:$0xff] }
 0x5c5   : > { %v5913_v37 = vadd.f32 %v17719_v53, %v5607_v10  ;;  %v17854_v59 = vpop.f32.mrf.mxu0  ;;  %v4439_v53 = vadd.f32 %v17509_v58, %v4060_v33  ;;  %v4737_v58 = vadd.f32 %v17491_v49, %v4431_v27  ;;  %v22822_v23 = vld [vmem:[#allocation38_spill] sm:$0xff] }
 0x5c6   : > { %v12570_v15 = vpop.f32.mrf.mxu1  ;;  %v5309_v51 = vadd.f32 %v22819_v36, %v5003_v4  ;;  %v22829_v4 = vld [vmem:[#allocation22_spill] sm:$0xff] }
 0x5c7   : > { %v4745_v39 = vadd.f32 %v17517_v8, %v4439_v53  ;;  %v17882_v1 = vpop.f32.mrf.mxu0  ;;  %v22833_v36 = vld [vmem:[#allocation50_spill] sm:$0xff] }
 0x5c8   : > { %v17818_v26 = vpop.f32.mrf.mxu1 }
 0x5ca   : > { %v17822_v21 = vpop.f32.mrf.mxu1 }
 0x5cc   : > { %v6103_v61 = vpop.f32.mrf.mxu1 }
 0x5cd   : > { %v6218_v34 = vadd.f32 %v6103_v61, %v5912_v11  ;;  %v6217_v61 = vadd.f32 %v12570_v15, %v5911_v40  ;;  %v22820_v11 = vld [vmem:[#allocation122_spill] sm:$0xff] }
 0x5ce   : > { %v17829_v45 = vpop.f32.mrf.mxu1 }
 0x5cf   : > { %22810 = vst [vmem:[#allocation226_spill] sm:$0xff] %v17829_v45  ;;  %v6255_v15 = vadd.f32 %v17875_v20, %v6218_v34  ;;  %v22821_v34 = vld [vmem:[#allocation188_spill] sm:$0xff] }
 0x5d0   : > { %v6106_v0 = vpop.f32.mrf.mxu1  ;;  %v17908_v43 = vadd.f32 %v22822_v23, %v22821_v34  ;;  %v22834_v23 = vld [vmem:[#allocation31_spill] sm:$0xff] }
 0x5d1   : > { %v6219_v22 = vadd.f32 %v6106_v0, %v5913_v37  ;;  %v4741_v0 = vadd.f32 %v17504_v62, %v4435_v32  ;;  %v22816_v62 = vld [vmem:[#allocation123_spill] sm:$0xff]  ;;  %v22817_v37 = vld [vmem:[#allocation62_spill] sm:$0xff]  ;;  %v6254_v32 = vadd.f32 %v17875_v20, %v6217_v61  ;;  %vm6288_vm11 = vcmp.gt.f32.partialorder %v6255_v15, 0.0 }
 0x5d2   : > { %v17837_v14 = vpop.f32.mrf.mxu1  ;;  %v5011_v8 = vadd.f32 %v22816_v62, %v4737_v58  ;;  %v22826_v58 = vld [vmem:[#allocation160_spill] sm:$0xff]  ;;  %v22827_v61 = vld [vmem:[#allocation191_spill] sm:$0xff]  ;;  %v22830_v62 = vld [vmem:[#allocation194_spill] sm:$0xff] }
 0x5d3   : > { %22811 = vst [vmem:[#allocation229_spill] sm:$0xff] %v17837_v14  ;;  %v4427_v14 = vadd.f32 %v17445_v47, %v4012_v28  ;;  %v4725_v47 = vadd.f32 %v17392_v44, %v17374_v41  ;;  %v4991_v41 = vadd.f32 %v17522_v17, %v4717_v5  ;;  %v5015_v33 = vadd.f32 %v17615_v60, %v4741_v0  ;;  %v22823_v5 = vld [vmem:[#allocation159_spill] sm:$0xff]  ;;  %v17911_v60 = vpop.f32.mrf.mxu0 }
 0x5d4   : > { %v17850_v45 = vpop.f32.mrf.mxu1  ;;  %vm6287_vm1 = vcmp.gt.f32.partialorder %v6254_v32, 0.0 }
 0x5d5   : > { %v4733_v50 = vadd.f32 %v17463_v35, %v4427_v14  ;;  %v4999_v44 = vadd.f32 %v17551_v38, %v4725_v47  ;;  %v6256_v35 = vadd.f32 %v17875_v20, %v6219_v22  ;;  %v17888_v14 = vstv %s17835_s29 }
 0x5d6   : > { %v17860_v10 = vpop.f32.mrf.mxu1  ;;  %v5297_v17 = vadd.f32 %v22817_v37, %v4991_v41  ;;  %v5019_v22 = vadd.f32 %v17639_v19, %v4745_v39  ;;  %v17904_v40 = vadd.f32 %v17629_v2, %v5015_v33  ;;  %v22825_v19 = vld [vmem:[#allocation183_spill] sm:$0xff]  ;;  %v6321_v39 = vmul.f32 %v17888_v14, %v6255_v15  ;;  %v22828_v41 = vld [vmem:[#allocation136_spill] sm:$0xff] }
 0x5d7   : > { %v5007_v49 = vadd.f32 %v17583_v6, %v4733_v50  ;;  %v5305_v38 = vadd.f32 %v22818_v30, %v4999_v44  ;;  %v5317_v6 = vadd.f32 %v17610_v55, %v5011_v8  ;;  %v6322_v54 = vmul.f32 %v17888_v14, %v6256_v35  ;;  %v22824_v55 = vld [vmem:[#allocation184_spill] sm:$0xff]  ;;  %v22831_v8 = vld [vmem:[#allocation189_spill] sm:$0xff] }
 0x5d8   : > { %v17877_v28 = vpop.f32.mrf.mxu1  ;;  %v5603_v47 = vadd.f32 %v22823_v5, %v5297_v17  ;;  %v17915_v50 = vadd.f32 %v22824_v55, %v5019_v22  ;;  %v5910_v0 = vadd.f32 %v22826_v58, %v22825_v19  ;;  %vm6289_vm4 = vcmp.gt.f32.partialorder %v6256_v35, 0.0  ;;  %v22832_v17 = vld [vmem:[#allocation196_spill] sm:$0xff]  ;;  %v22835_v5 = vld [vmem:[#allocation190_spill] sm:$0xff]  ;;  %v12549_v55 = vpop.f32.mrf.mxu0  ;;  %v22837_v58 = vld [vmem:[#allocation199_spill] sm:$0xff] }
 0x5d9   : > { %v5313_v27 = vadd.f32 %v22820_v11, %v5007_v49  ;;  %v5908_v44 = vadd.f32 %v22828_v41, %v22827_v61  ;;  %v5914_v37 = vadd.f32 %v22831_v8, %v22830_v62  ;;  %v17929_v30 = vadd.f32 %v17714_v29, %v22832_v17  ;;  %v22840_v62 = vld [vmem:[#allocation204_spill] sm:$0xff] }
 0x5da   : > { %v17891_v48 = vpop.f32.mrf.mxu1  ;;  %v5909_v49 = vadd.f32 %v22829_v4, %v5603_v47  ;;  %v17933_v33 = vadd.f32 %v17724_v12, %v22833_v36  ;;  %v5611_v11 = vadd.f32 %v17726_v25, %v5305_v38  ;;  %v6320_v22 = vmul.f32 %v17888_v14, %v6254_v32  ;;  %v22838_v38 = vld [vmem:[#allocation202_spill] sm:$0xff] }
 0x5db   : > { %v17941_v47 = vadd.f32 %v22835_v5, %v22834_v23  ;;  %v6216_v19 = vadd.f32 %v17812_v9, %v5910_v0  ;;  %v17944_v29 = vsel %vm6289_vm4, %v6256_v35, %v6322_v54  ;;  %v17948_v12 = vadd.f32 %v17733_v46, %v22837_v58  ;;  %v22841_v0 = vld [vmem:[#allocation201_spill] sm:$0xff]  ;;  %v22847_v36 = vld [vmem:[#allocation218_spill] sm:$0xff]  ;;  %v22850_v58 = vld [vmem:[#allocation223_spill] sm:$0xff] }
 0x5dc   : > { %v17901_v53 = vpop.f32.mrf.mxu1  ;;  %22836 = vst [vmem:[#allocation221_spill] sm:$0xff] %v17944_v29  ;;  %v17951_v25 = vadd.f32 %v17738_v56, %v5611_v11  ;;  %v17955_v61 = vadd.f32 %v17745_v42, %v22838_v38  ;;  %v17957_v41 = vsel %vm6288_vm11, %v6255_v15, %v6321_v39  ;;  %v5615_v9 = vadd.f32 %v22840_v62, %v5309_v51  ;;  %v22842_v56 = vld [vmem:[#allocation186_spill] sm:$0xff]  ;;  %v22851_v62 = vld [vmem:[#allocation207_spill] sm:$0xff] }
 0x5dd   : > { %22839 = vst [vmem:[#allocation231_spill] sm:$0xff] %v17957_v41  ;;  %v17964_v35 = vadd.f32 %v17750_v52, %v22841_v0  ;;  %v6214_v46 = vadd.f32 %v17814_v24, %v5908_v44  ;;  %v6215_v54 = vadd.f32 %v17818_v26, %v5909_v49  ;;  %v17970_v8 = vadd.f32 %v17760_v16, %v22842_v56  ;;  %v22844_v52 = vld [vmem:[#allocation197_spill] sm:$0xff]  ;;  %v5893_v26 = vpop.f32.mrf.mxu0  ;;  %v22853_v56 = vld [vmem:[#allocation198_spill] sm:$0xff] }
 0x5de   : > { %v17920_v2 = vpop.f32.mrf.mxu1  ;;  %v5619_v42 = vadd.f32 %v17758_v13, %v5313_v27  ;;  %v17973_v15 = vsel %vm6287_vm1, %v6254_v32, %v6320_v22  ;;  %v21628_v39 = vrot.slane %v17944_v29, 7  ;;  %v17979_v51 = vadd.f32 %v17765_v18, %v5615_v9  ;;  %v22845_v27 = vld [vmem:[#allocation63_spill] sm:$0xff]  ;;  %v22848_v22 = vld [vmem:[#allocation210_spill] sm:$0xff] }
 0x5df   : > { %22843 = vst [vmem:[#allocation222_spill] sm:$0xff] %v17973_v15  ;;  %v17983_v24 = vadd.f32 %v17775_v57, %v22844_v52  ;;  %v6253_v44 = vadd.f32 %v17875_v20, %v6216_v19  ;;  %v6385_v16 = vrot.slane %v17957_v41, 7  ;;  %v17989_v13 = vadd.f32 %v17786_v63, %v17753_v7  ;;  %v22846_v32 = vld [vmem:[#allocation215_spill] sm:$0xff]  ;;  %v22849_v63 = vld [vmem:[#allocation149_spill] sm:$0xff]  ;;  %v22852_v9 = vld [vmem:[#allocation214_spill] sm:$0xff] }
 0x5e0   : > { %v17937_v34 = vpop.f32.mrf.mxu1  ;;  %v17993_v49 = vadd.f32 %v22846_v32, %v22845_v27  ;;  %v17996_v18 = vadd.f32 %v22847_v36, %v5619_v42  ;;  %v6220_v11 = vadd.f32 %v17822_v21, %v5914_v37  ;;  %v5623_v23 = vadd.f32 %v22848_v22, %v5317_v6  ;;  %v22854_v21 = vld [vmem:[#allocation227_spill] sm:$0xff]  ;;  %v22856_v6 = vld [vmem:[#allocation6_spill] sm:$0xff]  ;;  %v22859_v52 = vld [vmem:[#allocation57_spill] sm:$0xff]  ;;  %v12550_v36 = vpop.f32.mrf.mxu0 }
 0x5e1   : > { %v6251_v5 = vadd.f32 %v17875_v20, %v6214_v46  ;;  %v6252_v19 = vadd.f32 %v17875_v20, %v6215_v54  ;;  %v21629_v7 = vrot.slane %v17973_v15, 7  ;;  %v18007_v38 = vadd.f32 %v22850_v58, %v22849_v63  ;;  %v22862_v63 = vld [vmem:[#allocation87_spill] sm:$0xff] }
 0x5e2   : > { %v17959_v4 = vpop.f32.mrf.mxu1  ;;  %v18011_v0 = vadd.f32 %v22852_v9, %v22851_v62  ;;  %v18015_v37 = vadd.f32 %v22854_v21, %v22853_v56  ;;  %vm22857_vm3 = vcmp.lt.s32.totalorder %v22856_v6, 1  ;;  %v18026_v54 = vadd.f32 %v17827_v3, %v5623_v23  ;;  %v22863_v62 = vld [vmem:[#allocation212_spill] sm:$0xff]  ;;  %v22865_v9 = vld [vmem:[#allocation205_spill] sm:$0xff] }
 0x5e3   : > { %v18023_v46 = vsel %vm22857_vm3, %v6385_v16, %v21628_v39  ;;  %v18030_v27 = vadd.f32 %v17833_v31, %v22859_v52  ;;  %v6319_v32 = vmul.f32 %v17888_v14, %v6253_v44  ;;  %vm22861_vm15 = vmmov %vm22857_vm3  ;;  %v5627_v58 = vadd.f32 %v22862_v63, %v17904_v40  ;;  %v22867_v52 = vld [vmem:[#allocation181_spill] sm:$0xff]  ;;  %v22870_v63 = vld [vmem:[#allocation11_spill] sm:$0xff] }
 0x5e4   : > { %v17976_v17 = vpop.f32.mrf.mxu1  ;;  %22855 = vst [vmem:[#allocation134_spill] sm:$0xff] %v18015_v37  ;;  %22858 = vst [vmem:[#allocation172_spill] sm:$0xff] %v18026_v54  ;;  %v18037_v22 = vsel %vm22861_vm15, %v21629_v7, %v6385_v16  ;;  %v18043_v3 = vadd.f32 %v17854_v59, %v22863_v62  ;;  %vm6286_vm2 = vcmp.gt.f32.partialorder %v6253_v44, 0.0  ;;  %v6257_v31 = vadd.f32 %v17875_v20, %v6220_v11  ;;  %v22873_v39 = vld [vmem:[#allocation206_spill] sm:$0xff] }
 0x5e5   : > { %22860 = vst [vmem:[#allocation178_spill] sm:$0xff] %v18030_v27  ;;  %v18050_v56 = vadd.f32 %v17882_v1, %v22865_v9  ;;  %v6317_v21 = vmul.f32 %v17888_v14, %v6251_v5  ;;  %v6318_v16 = vmul.f32 %v17888_v14, %v6252_v19  ;;  %v18056_v40 = vmul.f32 %v22867_v52, %v18023_v46  ;;  %v22872_v1 = vld [vmem:[#allocation220_spill] sm:$0xff]  ;;  %v5896_v52 = vpop.f32.mrf.mxu0  ;;  %v22877_v27 = vld [vmem:[#allocation217_spill] sm:$0xff]  ;;  %vm22888_vm13 = vmmov %vm22857_vm3 }
 0x5e6   : > { %v17999_v57 = vpop.f32.mrf.mxu1  ;;  %22864 = vst [vmem:[#allocation179_spill] sm:$0xff] %v18043_v3  ;;  %v18059_v59 = vadd.f32 %v17911_v60, %v5627_v58  ;;  %vm6284_vm5 = vcmp.gt.f32.partialorder %v6251_v5, 0.0  ;;  %vm6285_vm8 = vcmp.gt.f32.partialorder %v6252_v19, 0.0  ;;  %v18065_v62 = vmul.f32 %v22870_v63, %v18037_v22  ;;  %v22875_v60 = vld [vmem:[#allocation226_spill] sm:$0xff]  ;;  %vm22890_vm14 = vmmov %vm22857_vm3 }
 0x5e7   : > { %22866 = vst [vmem:[#allocation230_spill] sm:$0xff] %v18050_v56  ;;  %22868 = vst [vmem:[#allocation180_spill] sm:$0xff] %v18056_v40  ;;  %v5633_v9 = vadd.f32 %v22872_v1, %v17908_v43  ;;  %v18070_v7 = vadd.f32 %v12549_v55, %v22873_v39  ;;  %v18072_v56 = vsel %vm6286_vm2, %v6253_v44, %v6319_v32  ;;  %vm6290_vm0 = vcmp.gt.f32.partialorder %v6257_v31, 0.0 }
 0x5e8   : > { %v18017_v42 = vpop.f32.mrf.mxu1  ;;  %22869 = vst [vmem:[#allocation25_spill] sm:$0xff] %v18059_v59  ;;  %22871 = vst [vmem:[#allocation92_spill] sm:$0xff] %v18065_v62  ;;  %v6221_v58 = vadd.f32 %v22875_v60, %v17929_v30  ;;  %v22876_v59 = vld [vmem:[#allocation213_spill] sm:$0xff]  ;;  %v18079_v54 = vadd.f32 %v5893_v26, %v22877_v27  ;;  %v6323_v63 = vmul.f32 %v17888_v14, %v6257_v31  ;;  %v6383_v60 = vrot.slane %v18072_v56, 7 }
 0x5e9   : > { %22874 = vst [vmem:[#allocation170_spill] sm:$0xff] %v18072_v56  ;;  %v5631_v3 = vadd.f32 %v22876_v59, %v17915_v50  ;;  %v18086_v55 = vsel %vm6284_vm5, %v6251_v5, %v6317_v21  ;;  %v18088_v39 = vsel %vm6285_vm8, %v6252_v19, %v6318_v16  ;;  %v22881_v30 = vld [vmem:[#allocation229_spill] sm:$0xff]  ;;  %v18093_v32 = vadd.f32 %v12550_v36, %v5633_v9  ;;  %v22882_v59 = vld [vmem:[#allocation32_spill] sm:$0xff]  ;;  %v22883_v21 = vld [vmem:[#allocation30_spill] sm:$0xff] }
 0x5ea   : > { %v18046_v23 = vpop.f32.mrf.mxu1  ;;  %22878 = vst [vmem:[#allocation98_spill] sm:$0xff] %v18079_v54  ;;  %22879 = vst [vmem:[#allocation41_spill] sm:$0xff] %v18086_v55  ;;  %v6224_v44 = vadd.f32 %v22881_v30, %v17933_v33  ;;  %v18101_v1 = vmul.f32 %v22882_v59, %v17973_v15  ;;  %v6258_v5 = vadd.f32 %v17875_v20, %v6221_v58  ;;  %v6382_v16 = vrot.slane %v18088_v39, 7  ;;  %v22885_v58 = vld [vmem:[#allocation29_spill] sm:$0xff] }
 0x5eb   : > { %22880 = vst [vmem:[#allocation123_spill] sm:$0xff] %v18088_v39  ;;  %v18095_v26 = vadd.f32 %v5896_v52, %v5631_v3  ;;  %v6222_v19 = vadd.f32 %v17850_v45, %v17941_v47  ;;  %v6225_v33 = vadd.f32 %v17860_v10, %v17948_v12  ;;  %v18110_v36 = vmul.f32 %v22883_v21, %v18072_v56  ;;  %v22886_v10 = vld [vmem:[#allocation33_spill] sm:$0xff]  ;;  %vm22897_vm7 = vmmov %vm22857_vm3 }
 0x5ec   : > { %v18061_v11 = vpop.f32.mrf.mxu1  ;;  %v18114_v52 = vsel %vm6290_vm0, %v6257_v31, %v6323_v63  ;;  %v18121_v45 = vmul.f32 %v22885_v58, %v18086_v55  ;;  %v18125_v47 = vmul.f32 %v22886_v10, %v18088_v39  ;;  %v6261_v12 = vadd.f32 %v17875_v20, %v6224_v44 }
 0x5ed   : > { %22884 = vst [vmem:[#allocation62_spill] sm:$0xff] %v18114_v52  ;;  %v6223_v30 = vadd.f32 %v17877_v28, %v17951_v25  ;;  %v6324_v40 = vmul.f32 %v17888_v14, %v6258_v5  ;;  %v6259_v44 = vadd.f32 %v17875_v20, %v6222_v19  ;;  %v6262_v21 = vadd.f32 %v17875_v20, %v6225_v33 }
 0x5ee   : > { %v18082_v37 = vpop.f32.mrf.mxu1  ;;  %v22887_v28 = vrot.slane %v18086_v55, 7  ;;  %vm6291_vm10 = vcmp.gt.f32.partialorder %v6258_v5, 0.0  ;;  %v6228_v50 = vadd.f32 %v17891_v48, %v17955_v61  ;;  %v6226_v3 = vadd.f32 %v17901_v53, %v17964_v35 }
 0x5ef   : > { %v6327_v33 = vmul.f32 %v17888_v14, %v6261_v12  ;;  %v6260_v43 = vadd.f32 %v17875_v20, %v6223_v30  ;;  %v22892_v31 = vrot.slane %v18072_v56, 1  ;;  %v22893_v48 = vrot.slane %v18088_v39, 1 }
 0x5f0   : > { %v18097_v27 = vpop.f32.mrf.mxu1  ;;  %v18145_v25 = vsel %vm22888_vm13, %v22887_v28, %v6382_v16  ;;  %v18159_v28 = vsel %vm22890_vm14, %v6382_v16, %v6383_v60  ;;  %vm22894_vm6 = vcmp.lt.s32.totalorder %v22856_v6, 7  ;;  %vm6294_vm12 = vcmp.gt.f32.partialorder %v6261_v12, 0.0  ;;  %vm22918_vm13 = vmmov %vm22897_vm7 }
 0x5f1   : > { %22889 = vst [vmem:[#allocation138_spill] sm:$0xff] %v18145_v25  ;;  %22891 = vst [vmem:[#allocation129_spill] sm:$0xff] %v18159_v28  ;;  %v18167_v53 = vsel %vm22894_vm6, %v22893_v48, %v22892_v31  ;;  %v6229_v61 = vadd.f32 %v17920_v2, %v17970_v8  ;;  %v22896_v30 = vrot.slane %v17973_v15, 7  ;;  %v18179_v19 = vsel %vm6291_vm10, %v6258_v5, %v6324_v40 }
 0x5f2   : > { %v18116_v9 = vpop.f32.mrf.mxu1  ;;  %22895 = vst [vmem:[#allocation122_spill] sm:$0xff] %v18167_v53  ;;  %22899 = vst [vmem:[#allocation38_spill] sm:$0xff] %v18179_v19  ;;  %vm6292_vm9 = vcmp.gt.f32.partialorder %v6259_v44, 0.0  ;;  %v6325_v58 = vmul.f32 %v17888_v14, %v6259_v44  ;;  %v6328_v31 = vmul.f32 %v17888_v14, %v6262_v21  ;;  %vm6295_vm4 = vcmp.gt.f32.partialorder %v6262_v21, 0.0  ;;  %v22900_v53 = vld [vmem:[#allocation37_spill] sm:$0xff] }
 0x5f3   : > { %v18177_v16 = vsel %vm22897_vm7, %v6383_v60, %v22896_v30  ;;  %v6265_v48 = vadd.f32 %v17875_v20, %v6228_v50  ;;  %v6263_v2 = vadd.f32 %v17875_v20, %v6226_v3  ;;  %v18187_v39 = vmul.f32 %v22900_v53, %v18159_v28  ;;  %vm22921_vm10 = vmmov %vm22897_vm7 }
 0x5f4   : > { %v18131_v63 = vpop.f32.mrf.mxu1  ;;  %22898 = vst [vmem:[#allocation188_spill] sm:$0xff] %v18177_v16  ;;  %v18189_v54 = vsel %vm6294_vm12, %v6261_v12, %v6327_v33  ;;  %v6326_v40 = vmul.f32 %v17888_v14, %v6260_v43  ;;  %v18194_v5 = vmul.f32 %v22886_v10, %v18145_v25  ;;  %v18198_v60 = vmul.f32 %v22882_v59, %v18177_v16  ;;  %v22905_v10 = vld [vmem:[#allocation48_spill] sm:$0xff]  ;;  %v22906_v59 = vld [vmem:[#allocation55_spill] sm:$0xff]  ;;  %vm22926_vm14 = vmmov %vm22897_vm7 }
 0x5f5   : > { %22901 = vst [vmem:[#allocation159_spill] sm:$0xff] %v18189_v54  ;;  %vm6293_vm11 = vcmp.gt.f32.partialorder %v6260_v43, 0.0  ;;  %v6266_v50 = vadd.f32 %v17875_v20, %v6229_v61  ;;  %v6227_v3 = vadd.f32 %v17937_v34, %v17979_v51  ;;  %v18207_v33 = vsel %vm6292_vm9, %v6259_v44, %v6325_v58 }
 0x5f6   : > { %v18151_v62 = vpop.f32.mrf.mxu1  ;;  %22903 = vst [vmem:[#allocation183_spill] sm:$0xff] %v18207_v33  ;;  %v18209_v30 = vsel %vm6295_vm4, %v6262_v21, %v6328_v31  ;;  %v18213_v28 = vmul.f32 %v22905_v10, %v17957_v41  ;;  %v18217_v16 = vmul.f32 %v22906_v59, %v17944_v29  ;;  %v6331_v61 = vmul.f32 %v17888_v14, %v6265_v48 }
 0x5f7   : > { %22904 = vst [vmem:[#allocation160_spill] sm:$0xff] %v18209_v30  ;;  %v6329_v34 = vmul.f32 %v17888_v14, %v6263_v2  ;;  %v18224_v21 = vsel %vm6293_vm11, %v6260_v43, %v6326_v40  ;;  %vm6298_vm1 = vcmp.gt.f32.partialorder %v6265_v48, 0.0  ;;  %vm6296_vm3 = vcmp.gt.f32.partialorder %v6263_v2, 0.0  ;;  %vm22937_vm11 = vmmov %vm22921_vm10 }
 0x5f8   : > { %v18171_v35 = vpop.f32.mrf.mxu1  ;;  %22907 = vst [vmem:[#allocation191_spill] sm:$0xff] %v18224_v21  ;;  %v6332_v31 = vmul.f32 %v17888_v14, %v6266_v50  ;;  %vm6299_vm2 = vcmp.gt.f32.partialorder %v6266_v50, 0.0  ;;  %v18234_v40 = vsel %vm6298_vm1, %v6265_v48, %v6331_v61  ;;  %v6230_v56 = vadd.f32 %v17976_v17, %v17989_v13  ;;  %vm22940_vm1 = vmmov %vm22921_vm10 }
 0x5f9   : > { %22908 = vst [vmem:[#allocation136_spill] sm:$0xff] %v18234_v40  ;;  %v6233_v17 = vadd.f32 %v17999_v57, %v17993_v49  ;;  %v6236_v57 = vadd.f32 %v18046_v23, %v18007_v38  ;;  %v13430_v38 = vld [vmem:[%s21046_s14 + $0xb0] sm:$0xff]  }
 0x5fa   : > { %v12597_v8 = vpop.f32.mrf.mxu1 }
 0x5fb   : > { %v6244_v53 = vadd.f32 %v12597_v8, %v18070_v7  ;;  %v6264_v8 = vadd.f32 %v17875_v20, %v6227_v3  ;;  %v22910_v3 = vld [vmem:[#allocation40_spill] sm:$0xff] }
 0x5fc   : > { %v18204_v12 = vpop.f32.mrf.mxu1 }
 0x5fd   : > { %22902 = vst [vmem:[#allocation184_spill] sm:$0xff] %v18204_v12  ;;  %v6281_v51 = vadd.f32 %v17875_v20, %v6244_v53  ;;  %v6232_v53 = vadd.f32 %v17959_v4, %v17983_v24  ;;  %v18236_v12 = vsel %vm6296_vm3, %v6263_v2, %v6329_v34  ;;  %v18249_v24 = vsel %vm6299_vm2, %v6266_v50, %v6332_v31  ;;  %vm22954_vm2 = vmmov %vm22940_vm1 }
 0x5fe   : > { %v12598_v7 = vpop.f32.mrf.mxu1  ;;  %22909 = vst [vmem:[#allocation22_spill] sm:$0xff] %v18236_v12  ;;  %22912 = vst [vmem:[#allocation189_spill] sm:$0xff] %v18249_v24  ;;  %vm6297_vm8 = vcmp.gt.f32.partialorder %v6264_v8, 0.0  ;;  %v6330_v2 = vmul.f32 %v17888_v14, %v6264_v8  ;;  %v6267_v31 = vadd.f32 %v17875_v20, %v6230_v56 }
 0x5ff   : > { %v6245_v44 = vadd.f32 %v12598_v7, %v18093_v32  ;;  %vm6314_vm15 = vcmp.gt.f32.partialorder %v6281_v51, 0.0  ;;  %v6347_v10 = vmul.f32 %v17888_v14, %v6281_v51  ;;  %v18242_v7 = vmul.f32 %v22910_v3, %v18114_v52 }
 0x600   : > { %v6202_v25 = vpop.f32.mrf.mxu1  ;;  %v6269_v61 = vadd.f32 %v17875_v20, %v6232_v53  ;;  %v6270_v3 = vadd.f32 %v17875_v20, %v6233_v17  ;;  %v18294_v23 = vsel %vm6297_vm8, %v6264_v8, %v6330_v2  ;;  %v22924_v17 = vld [vmem:[#allocation56_spill] sm:$0xff]  ;;  %v22925_v8 = vpack.c.bf16 %v18125_v47, %v18121_v45  ;;  %vm22961_vm8 = vmmov %vm22940_vm1 }
 0x601   : > { %v6282_v58 = vadd.f32 %v17875_v20, %v6245_v44  ;;  %v6243_v43 = vadd.f32 %v6202_v25, %v18095_v26  ;;  %v18246_v15 = vsel %vm6314_vm15, %v6281_v51, %v6347_v10  ;;  %v22913_v25 = vld [vmem:[#allocation53_spill] sm:$0xff]  ;;  %v22915_v10 = vld [vmem:[#allocation75_spill] sm:$0xff]  ;;  %22923 = vst [vmem:[#allocation199_spill] sm:$0xff] %v18294_v23  ;;  %v22931_v45 = vld [vmem:[#allocation96_spill] sm:$0xff]  ;;  %vm6300_vm12 = vcmp.gt.f32.partialorder %v6267_v31, 0.0 }
 0x602   : > { %22911 = vst [vmem:[#allocation194_spill] sm:$0xff] %v18246_v15  ;;  %v18254_v48 = vmul.f32 %v22913_v25, %v18179_v19  ;;  %v6509_v34 = vmul.f32 %v22915_v10, %v18246_v15  ;;  %v22916_v51 = vld [vmem:[#allocation79_spill] sm:$0xff]  ;;  %v6411_v53 = vrot.slane %v18246_v15, 7  ;;  %vm6302_vm6 = vcmp.gt.f32.partialorder %v6269_v61, 0.0 }
 0x603   : > { %vm6315_vm5 = vcmp.gt.f32.partialorder %v6282_v58, 0.0  ;;  %v6348_v4 = vmul.f32 %v17888_v14, %v6282_v58  ;;  %v6280_v26 = vadd.f32 %v17875_v20, %v6243_v43  ;;  %v6231_v43 = vadd.f32 %v18017_v42, %v17996_v18 }
 0x604   : > { %v22920_v42 = vrot.slane %v18086_v55, 7  ;;  %v6387_v32 = vrot.slane %v18114_v52, 7  ;;  %vm6303_vm7 = vcmp.gt.f32.partialorder %v6270_v3, 0.0 }
 0x605   : > { %v18260_v13 = vsel %vm6315_vm5, %v6282_v58, %v6348_v4  ;;  %vm6313_vm0 = vcmp.gt.f32.partialorder %v6280_v26, 0.0  ;;  %v6346_v50 = vmul.f32 %v17888_v14, %v6280_v26  ;;  %vm22957_vm5 = vmmov %vm22940_vm1 }
 0x606   : > { %22914 = vst [vmem:[#allocation196_spill] sm:$0xff] %v18260_v13  ;;  %v6510_v44 = vmul.f32 %v22916_v51, %v18260_v13  ;;  %v6412_v49 = vrot.slane %v18260_v13, 7 }
 0x607   : > { %v18274_v58 = vsel %vm6313_vm0, %v6280_v26, %v6346_v50  ;;  %v6234_v26 = vadd.f32 %v18061_v11, %v18011_v0  ;;  %v18300_v50 = vmul.f32 %v22924_v17, %v18037_v22  ;;  %v22928_v11 = vld [vmem:[#allocation83_spill] sm:$0xff]  ;;  %v6333_v17 = vmul.f32 %v17888_v14, %v6267_v31  ;;  %vm22965_vm0 = vmmov %vm22940_vm1 }
 0x608   : > { %22917 = vst [vmem:[#allocation50_spill] sm:$0xff] %v18274_v58  ;;  %v6541_v4 = vpack.c.bf16 %v6510_v44, %v6509_v34  ;;  %v21645_v56 = vrot.slane %v18274_v58, 7  ;;  %v18282_v18 = vsel %vm22918_vm13, %v6411_v53, %v6412_v49  ;;  %v18288_v10 = vsel %vm22921_vm10, %v6412_v49, %v22920_v42  ;;  %v22930_v42 = vld [vmem:[#allocation193_spill] sm:$0xff]  ;;  %vm22972_vm13 = vmmov %vm22965_vm0 }
 0x609   : > { %22919 = vst [vmem:[#allocation31_spill] sm:$0xff] %v18282_v18  ;;  %22922 = vst [vmem:[#allocation190_spill] sm:$0xff] %v18288_v10  ;;  %v18304_v34 = vmul.f32 %v22906_v59, %v18023_v46  ;;  %v6335_v44 = vmul.f32 %v17888_v14, %v6269_v61  ;;  %v6268_v49 = vadd.f32 %v17875_v20, %v6231_v43 }
 0x60a   : > { %12615 = vmatprep.mubr.bf16.mxu0 %v6541_v4  ;;  %v18315_v0 = vsel %vm22926_vm14, %v21645_v56, %v6411_v53  ;;  %v6447_v2 = vmul.f32 %v22928_v11, %v18288_v10  ;;  %v6273_v4 = vadd.f32 %v17875_v20, %v6236_v57  ;;  %v22929_v43 = vpack.c.bf16 %v18101_v1, %v18110_v36  ;;  %v13431_v1 = vld [vmem:[%s21046_s14 + $0xa8] sm:$0xff]   ;;  %v22932_v57 = vld [vmem:[#allocation134_spill] sm:$0xff]  ;;  %vm22975_vm10 = vmmov %vm22965_vm0 }
 0x60b   : > { %12616 = vmatmul.mubr.bf16.vlgmr.msra.gmra.mxu0 %v22925_v8  ;;  %22927 = vst [vmem:[#allocation202_spill] sm:$0xff] %v18315_v0  ;;  %v6445_v47 = vmul.f32 %v22931_v45, %v18315_v0  ;;  %v6446_v53 = vmul.f32 %v22916_v51, %v18282_v18  ;;  %v6336_v8 = vmul.f32 %v17888_v14, %v6270_v3  ;;  %v22933_v45 = vld [vmem:[#allocation172_spill] sm:$0xff]  ;;  %vm6301_vm9 = vcmp.gt.f32.partialorder %v6268_v49, 0.0 }
 0x60c   : > { %12619 = vmatprep.mubr.bf16.mxu0 %v22929_v43  ;;  %12696 = vmatpush3.bf16.msra.mxu0 %v22930_v42  ;;  %v6271_v36 = vadd.f32 %v17875_v20, %v6234_v26  ;;  %v6237_v11 = vadd.f32 %v18082_v37, %v22932_v57  ;;  %v21648_v42 = vrot.slane %v18179_v19, 7  ;;  %v6334_v51 = vmul.f32 %v17888_v14, %v6268_v49 }
 0x60d   : > { %12697 = vmatprep.subr.bf16.mxu0 %v13430_v38  ;;  %v6477_v43 = vpack.c.bf16 %v6446_v53, %v6445_v47  ;;  %v6235_v56 = vadd.f32 %v18097_v27, %v22933_v45  ;;  %v6478_v59 = vpack.c.bf16 %v18194_v5, %v6447_v2  ;;  %v18343_v18 = vsel %vm6302_vm6, %v6269_v61, %v6335_v44  ;;  %v13432_v44 = vld [vmem:[%s21046_s14 + $0xa0] sm:$0xff]   ;;  %v22942_v47 = vld [vmem:[#allocation209_spill] sm:$0xff]  ;;  %v22950_v45 = vld [vmem:[#allocation67_spill] sm:$0xff] }
 0x60e   : > { %22934 = vst [vmem:[#allocation204_spill] sm:$0xff] %v18343_v18  ;;  %v6339_v26 = vmul.f32 %v17888_v14, %v6273_v4  ;;  %v18347_v37 = vsel %vm6300_vm12, %v6267_v31, %v6333_v17  ;;  %vm6306_vm4 = vcmp.gt.f32.partialorder %v6273_v4, 0.0  ;;  %v6480_v27 = vpack.c.bf16 %v18304_v34, %v18300_v50  ;;  %v13436_v31 = vld [vmem:[%s21046_s14 + $0xf0] sm:$0xff]   ;;  %vm22981_vm12 = vmmov %vm22965_vm0 }
 0x60f   : > { %12663 = vmatprep.mubr.bf16.mxu1 %v6477_v43  ;;  %22935 = vst [vmem:[#allocation201_spill] sm:$0xff] %v18347_v37  ;;  %v22936_v5 = vrot.slane %v17944_v29, 7  ;;  %v6337_v2 = vmul.f32 %v17888_v14, %v6271_v36  ;;  %v18366_v50 = vadd.f32 %v17875_v20, %v6237_v11  ;;  %v22939_v34 = vpack.c.bf16 %v18198_v60, %v18187_v39  ;;  %v13437_v60 = vld [vmem:[%s21046_s14 + $0xe8] sm:$0xff]  }
 0x610   : > { %12698 = vmatpush3.bf16.msra.mxu0 %v13430_v38  ;;  %12664 = vmatmul.mubr.bf16.vlgmr.msra.gmra.mxu1 %v6478_v59  ;;  %v18375_v59 = vsel %vm22940_vm1, %v6387_v32, %v21648_v42  ;;  %v18379_v53 = vsel %vm6303_vm7, %v6270_v3, %v6336_v8  ;;  %v18382_v17 = vsel %vm6301_vm9, %v6268_v49, %v6334_v51  ;;  %vm6304_vm3 = vcmp.gt.f32.partialorder %v6271_v36, 0.0  ;;  %v22946_v3 = vld [vmem:[#allocation178_spill] sm:$0xff]  ;;  %v22949_v51 = vld [vmem:[#allocation65_spill] sm:$0xff]  ;;  %vm22984_vm7 = vmmov %vm22965_vm0 }
 0x611   : > { %v18355_v61 = vsel %vm22937_vm11, %v22936_v5, %v6387_v32  ;;  %12699 = vmatprep.subr.bf16.mxu0 %v13431_v1  ;;  %12667 = vmatprep.mubr.bf16.mxu1 %v22939_v34  ;;  %22941 = vst [vmem:[#allocation197_spill] sm:$0xff] %v18375_v59  ;;  %22943 = vst [vmem:[#allocation63_spill] sm:$0xff] %v18379_v53  ;;  %v6272_v57 = vadd.f32 %v17875_v20, %v6235_v56  ;;  %v6390_v32 = vrot.slane %v18224_v21, 7  ;;  %v22948_v56 = vld [vmem:[#allocation59_spill] sm:$0xff]  ;;  %v22952_v5 = vld [vmem:[#allocation68_spill] sm:$0xff] }
 0x612   : > { %22938 = vst [vmem:[#allocation186_spill] sm:$0xff] %v18355_v61  ;;  %12744 = vmatpush3.bf16.msra.mxu1 %v22942_v47  ;;  %22944 = vst [vmem:[#allocation215_spill] sm:$0xff] %v18382_v17  ;;  %v22945_v39 = vpack.c.bf16 %v18217_v16, %v18213_v28  ;;  %v18393_v11 = vsel %vm6306_vm4, %v6273_v4, %v6339_v26  ;;  %v6240_v49 = vadd.f32 %v18116_v9, %v22946_v3  ;;  %v13433_v9 = vld [vmem:[%s21046_s14 + $0x98] sm:$0xff]  }
 0x613   : > { %v22947_v8 = vpack.c.bf16 %v18254_v48, %v18242_v7  ;;  %v6453_v28 = vmul.f32 %v22948_v56, %v18355_v61  ;;  %v6389_v16 = vrot.slane %v18207_v33, 7  ;;  %v6454_v43 = vmul.f32 %v22913_v25, %v18375_v59  ;;  %12745 = vmatprep.subr.bf16.mxu1 %v13436_v31  ;;  %v22951_v25 = vld [vmem:[#allocation60_spill] sm:$0xff]  ;;  %v22956_v3 = vld [vmem:[#allocation25_spill] sm:$0xff] }
 0x614   : > { %12620 = vmatmul.mubr.bf16.gmra.mxu0 %v22945_v39  ;;  %v6519_v4 = vmul.f32 %v22949_v51, %v18207_v33  ;;  %v6520_v26 = vmul.f32 %v22950_v45, %v18224_v21  ;;  %v18413_v7 = vsel %vm6304_vm3, %v6271_v36, %v6337_v2  ;;  %v18417_v48 = vmul.f32 %v17888_v14, %v18366_v50  ;;  %v13439_v36 = vld [vmem:[%s21046_s14 + $0xe0] sm:$0xff]   ;;  %v22971_v42 = vld [vmem:[#allocation73_spill] sm:$0xff]  ;;  %vm23012_vm3 = vmmov %vm22965_vm0 }
 0x615   : > { %12623 = vmatprep.mubr.bf16.mxu0 %v22947_v8  ;;  %12700 = vmatpush3.bf16.msra.mxu0 %v13431_v1  ;;  %v6521_v1 = vmul.f32 %v22951_v25, %v18189_v54  ;;  %v6522_v34 = vmul.f32 %v22952_v5, %v18209_v30  ;;  %vm6305_vm15 = vcmp.gt.f32.partialorder %v6272_v57, 0.0  ;;  %v6338_v47 = vmul.f32 %v17888_v14, %v6272_v57  ;;  %v22953_v8 = vld [vmem:[#allocation179_spill] sm:$0xff] }
 0x616   : > { %12701 = vmatprep.subr.bf16.mxu0 %v13432_v44  ;;  %12746 = vmatpush3.bf16.msra.mxu1 %v13436_v31  ;;  %v6391_v39 = vrot.slane %v18189_v54, 7  ;;  %v18430_v2 = vadd.f32 %v17875_v20, %v6240_v49  ;;  %v6238_v56 = vadd.f32 %v18131_v63, %v22953_v8  ;;  %v6481_v38 = vpack.c.bf16 %v6454_v43, %v6453_v28  ;;  %v13435_v63 = vld [vmem:[%s21046_s14 + $0x90] sm:$0xff]   ;;  %v22959_v43 = vld [vmem:[#allocation230_spill] sm:$0xff] }
 0x617   : > { %12747 = vmatprep.subr.bf16.mxu1 %v13437_v60  ;;  %v18436_v31 = vsel %vm22954_vm2, %v6389_v16, %v6390_v32  ;;  %v6239_v0 = vadd.f32 %v18171_v35, %v22956_v3  ;;  %v6546_v25 = vpack.c.bf16 %v6520_v26, %v6519_v4  ;;  %v6393_v28 = vrot.slane %v18236_v12, 7  ;;  %v22969_v3 = vld [vmem:[#allocation76_spill] sm:$0xff]  ;;  %vm23014_vm2 = vmmov %vm22965_vm0 }
 0x618   : > { %22955 = vst [vmem:[#allocation218_spill] sm:$0xff] %v18436_v31  ;;  %12668 = vmatmul.mubr.bf16.gmra.mxu1 %v6480_v27  ;;  %v18443_v49 = vsel %vm22957_vm5, %v6390_v32, %v6391_v39  ;;  %v6547_v8 = vpack.c.bf16 %v6522_v34, %v6521_v1  ;;  %v22960_v35 = vrot.slane %v18179_v19, 7  ;;  %v6394_v32 = vrot.slane %v18294_v23, 7 }
 0x619   : > { %12702 = vmatpush3.bf16.msra.mxu0 %v13432_v44  ;;  %22958 = vst [vmem:[#allocation210_spill] sm:$0xff] %v18443_v49  ;;  %v6241_v44 = vadd.f32 %v18151_v62, %v22959_v43  ;;  %12671 = vmatprep.mubr.bf16.mxu1 %v6481_v38  ;;  %v18459_v4 = vsel %vm6305_vm15, %v6272_v57, %v6338_v47  ;;  %v22964_v62 = vrot.slane %v18209_v30, 7  ;;  %v22968_v47 = vld [vmem:[#allocation70_spill] sm:$0xff]  ;;  %vm22979_vm14 = vcmp.lt.s32.totalorder %v22856_v6, 7 }
 0x61a   : > { %12703 = vmatprep.subr.bf16.mxu0 %v13433_v9  ;;  %v18455_v27 = vsel %vm22961_vm8, %v22960_v35, %v6389_v16  ;;  %12748 = vmatpush3.bf16.msra.mxu1 %v13437_v60  ;;  %22963 = vst [vmem:[#allocation223_spill] sm:$0xff] %v18459_v4  ;;  %v6456_v26 = vmul.f32 %v22950_v45, %v18436_v31  ;;  %v13440_v60 = vld [vmem:[%s21046_s14 + $0xd8] sm:$0xff]   ;;  %v22967_v45 = vld [vmem:[#allocation71_spill] sm:$0xff]  ;;  %vm6307_vm6 = vcmp.gt.f32.partialorder %v18366_v50, 0.0  ;;  %v22980_v59 = vrot.slane %v18209_v30, 7  ;;  %vm22992_vm4 = vmmov %vm22979_vm14 }
 0x61b   : > { %22962 = vst [vmem:[#allocation149_spill] sm:$0xff] %v18455_v27  ;;  %v18467_v38 = vsel %vm22965_vm0, %v6391_v39, %v22964_v62  ;;  %12749 = vmatprep.subr.bf16.mxu1 %v13439_v36  ;;  %v18475_v57 = vmul.f32 %v17888_v14, %v18430_v2  ;;  %v6457_v1 = vmul.f32 %v22967_v45, %v18443_v49  ;;  %v6395_v45 = vrot.slane %v18234_v40, 7  ;;  %vm22995_vm11 = vmmov %vm22992_vm4 }
 0x61c   : > { %12624 = vmatmul.mubr.bf16.gmra.mxu0 %v6546_v25  ;;  %22966 = vst [vmem:[#allocation207_spill] sm:$0xff] %v18467_v38  ;;  %v18478_v25 = vadd.f32 %v17875_v20, %v6238_v56  ;;  %v18483_v34 = vadd.f32 %v17875_v20, %v6239_v0  ;;  %v6455_v39 = vmul.f32 %v22968_v47, %v18455_v27  ;;  %v13438_v56 = vld [vmem:[%s21046_s14 + $0x88] sm:$0xff]   ;;  %vm6310_vm9 = vcmp.gt.f32.partialorder %v18430_v2, 0.0  ;;  %vm22998_vm1 = vmmov %vm22992_vm4 }
 0x61d   : > { %12627 = vmatprep.mubr.bf16.mxu0 %v6547_v8  ;;  %12704 = vmatpush3.bf16.msra.mxu0 %v13433_v9  ;;  %v6524_v43 = vmul.f32 %v22969_v3, %v18294_v23  ;;  %v6996_v8 = vrot.slane %v17957_v41, 1  ;;  %v18494_v35 = vadd.f32 %v17875_v20, %v6241_v44  ;;  %v6458_v0 = vmul.f32 %v22952_v5, %v18467_v38  ;;  %v22970_v9 = vld [vmem:[#allocation77_spill] sm:$0xff]  ;;  %v13442_v5 = vld [vmem:[%s21046_s14 + $0xd0] sm:$0xff]   ;;  %v23009_v27 = vld [vmem:[#allocation99_spill] sm:$0xff] }
 0x61e   : > { %12705 = vmatprep.subr.bf16.mxu0 %v13435_v63  ;;  %v6526_v62 = vmul.f32 %v22970_v9, %v18249_v24  ;;  %12750 = vmatpush3.bf16.msra.mxu1 %v13439_v36  ;;  %v6482_v47 = vpack.c.bf16 %v6456_v26, %v6455_v39  ;;  %v6523_v16 = vmul.f32 %v22971_v42, %v18236_v12  ;;  %v22974_v26 = vld [vmem:[#allocation72_spill] sm:$0xff]  ;;  %v6398_v44 = vrot.slane %v18382_v17, 7  ;;  %vm23019_vm8 = vmmov %vm22965_vm0 }
 0x61f   : > { %v18505_v49 = vsel %vm22972_vm13, %v6393_v28, %v6394_v32  ;;  %12751 = vmatprep.subr.bf16.mxu1 %v13440_v60  ;;  %v18513_v41 = vmul.f32 %v17888_v14, %v18478_v25  ;;  %v6483_v36 = vpack.c.bf16 %v6458_v0, %v6457_v1  ;;  %v6525_v39 = vmul.f32 %v22974_v26, %v18234_v40  ;;  %v13441_v1 = vld [vmem:[%s21046_s14 + $0x80] sm:$0xff]  }
 0x620   : > { %22973 = vst [vmem:[#allocation214_spill] sm:$0xff] %v18505_v49  ;;  %v18519_v38 = vsel %vm22975_vm10, %v6394_v32, %v6395_v45  ;;  %v18524_v42 = vmul.f32 %v17888_v14, %v18483_v34  ;;  %12672 = vmatmul.mubr.bf16.gmra.mxu1 %v6482_v47  ;;  %v6548_v31 = vpack.c.bf16 %v6524_v43, %v6523_v16  ;;  %v22977_v0 = vld [vmem:[#allocation222_spill] sm:$0xff]  ;;  %vm6308_vm15 = vcmp.gt.f32.partialorder %v18478_v25, 0.0 }
 0x621   : > { %22976 = vst [vmem:[#allocation198_spill] sm:$0xff] %v18519_v38  ;;  %12706 = vmatpush3.bf16.msra.mxu0 %v13435_v63  ;;  %v22978_v26 = vrot.slane %v22977_v0, 1  ;;  %12675 = vmatprep.mubr.bf16.mxu1 %v6483_v36  ;;  %v6549_v63 = vpack.c.bf16 %v6526_v62, %v6525_v39  ;;  %v18540_v16 = vsel %vm22981_vm12, %v22980_v59, %v6393_v28  ;;  %v22986_v62 = vld [vmem:[#allocation97_spill] sm:$0xff]  ;;  %v13443_v59 = vld [vmem:[%s21046_s14 + $0xc8] sm:$0xff]   ;;  %v22987_v28 = vld [vmem:[#allocation140_spill] sm:$0xff]  ;;  %vm6309_vm5 = vcmp.gt.f32.partialorder %v18483_v34, 0.0 }
 0x622   : > { %12707 = vmatprep.subr.bf16.mxu0 %v13438_v56  ;;  %22982 = vst [vmem:[#allocation227_spill] sm:$0xff] %v18540_v16  ;;  %v6460_v43 = vmul.f32 %v22969_v3, %v18505_v49  ;;  %12752 = vmatpush3.bf16.msra.mxu1 %v13440_v60  ;;  %v6461_v36 = vmul.f32 %v22986_v62, %v18519_v38  ;;  %v22990_v3 = vld [vmem:[#allocation170_spill] sm:$0xff]  ;;  %v22994_v62 = vrot.slane %v17944_v29, 1  ;;  %v23003_v49 = vld [vmem:[#allocation103_spill] sm:$0xff]  ;;  %vm6311_vm13 = vcmp.gt.f32.partialorder %v18494_v35, 0.0  ;;  %vm23034_vm12 = vmmov %vm22965_vm0 }
 0x623   : > { %v18533_v32 = vsel %vm22979_vm14, %v22978_v26, %v6996_v8  ;;  %v22983_v26 = vrot.slane %v18249_v24, 7  ;;  %12753 = vmatprep.subr.bf16.mxu1 %v13442_v5  ;;  %v6528_v38 = vmul.f32 %v23003_v49, %v18382_v17  ;;  %v23007_v29 = vld [vmem:[#allocation126_spill] sm:$0xff]  ;;  %v6527_v61 = vmul.f32 %v23009_v27, %v18347_v37  ;;  %vm23029_vm14 = vmmov %vm22965_vm0 }
 0x624   : > { %12628 = vmatmul.mubr.bf16.gmra.mxu0 %v6548_v31  ;;  %v18558_v60 = vmul.f32 %v22987_v28, %v18533_v32  ;;  %v22989_v31 = vrot.slane %v22977_v0, 1  ;;  %v22997_v47 = vmov %v22994_v62  ;;  %v23001_v0 = vld [vmem:[#allocation184_spill] sm:$0xff] }
 0x625   : > { %v18549_v51 = vsel %vm22984_vm7, %v6395_v45, %v22983_v26  ;;  %12631 = vmatprep.mubr.bf16.mxu0 %v6549_v63  ;;  %12708 = vmatpush3.bf16.msra.mxu0 %v13438_v56  ;;  %v22991_v45 = vrot.slane %v22990_v3, 1  ;;  %v22993_v26 = vrot.slane %v18114_v52, 1  ;;  %v18581_v56 = vsel %vm22998_vm1, %v6996_v8, %v22997_v47  ;;  %v23000_v63 = vld [vmem:[#allocation98_spill] sm:$0xff]  ;;  %vm23036_vm7 = vmmov %vm22965_vm0 }
 0x626   : > { %22985 = vst [vmem:[#allocation57_spill] sm:$0xff] %v18549_v51  ;;  %22988 = vst [vmem:[#allocation87_spill] sm:$0xff] %v18558_v60  ;;  %v6242_v3 = vadd.f32 %v23001_v0, %v23000_v63  ;;  %12709 = vmatprep.subr.bf16.mxu0 %v13441_v1  ;;  %v6462_v8 = vmul.f32 %v22970_v9, %v18549_v51  ;;  %v23004_v0 = vld [vmem:[#allocation104_spill] sm:$0xff]  ;;  %12754 = vmatpush3.bf16.msra.mxu1 %v13442_v5  ;;  %v6400_v9 = vrot.slane %v18379_v53, 7  ;;  %v13445_v5 = vld [vmem:[%s21046_s14 + $0xc0] sm:$0xff]  }
 0x627   : > { %v18567_v39 = vsel %vm22992_vm4, %v22991_v45, %v22989_v31  ;;  %v18575_v28 = vsel %vm22995_vm11, %v22994_v62, %v22993_v26  ;;  %22999 = vst [vmem:[#allocation205_spill] sm:$0xff] %v18581_v56  ;;  %v23002_v31 = vld [vmem:[#allocation88_spill] sm:$0xff]  ;;  %v18592_v26 = vld [vmem:[%s21046_s14 + $0x138] sm:$0xff]   ;;  %v6530_v47 = vmul.f32 %v23004_v0, %v18379_v53  ;;  %v6399_v62 = vrot.slane %v18343_v18, 7  ;;  %12755 = vmatprep.subr.bf16.mxu1 %v13443_v59  ;;  %vm23043_vm4 = vmmov %vm22965_vm0 }
 0x628   : > { %22996 = vst [vmem:[#allocation212_spill] sm:$0xff] %v18575_v28  ;;  %v6459_v45 = vmul.f32 %v23002_v31, %v18540_v16  ;;  %v23005_v63 = vld [vmem:[#allocation36_spill] sm:$0xff]  ;;  %v18606_v16 = vmul.f32 %v23007_v29, %v18575_v28  ;;  %v6485_v60 = vpack.c.bf16 %v6462_v8, %v6461_v36  ;;  %v23011_v29 = vrot.slane %v18347_v37, 7  ;;  %vm23044_vm11 = vmmov %vm22965_vm0 }
 0x629   : > { %v18602_v31 = vmul.f32 %v23005_v63, %v18581_v56  ;;  %v23010_v63 = vld [vmem:[#allocation100_spill] sm:$0xff]  ;;  %12710 = vmatpush3.bf16.msra.mxu0 %v13441_v1  ;;  %v6279_v27 = vadd.f32 %v17875_v20, %v6242_v3  ;;  %v6550_v23 = vpack.c.bf16 %v6528_v38, %v6527_v61  ;;  %v18629_v36 = vsel %vm23014_vm2, %v6398_v44, %v6399_v62  ;;  %vm23047_vm1 = vmmov %vm22965_vm0 }
 0x62a   : > { %23008 = vst [vmem:[#allocation220_spill] sm:$0xff] %v18606_v16  ;;  %v6484_v17 = vpack.c.bf16 %v6460_v43, %v6459_v45  ;;  %v6529_v51 = vmul.f32 %v23010_v63, %v18343_v18  ;;  %v18621_v43 = vsel %vm23012_vm3, %v23011_v29, %v6398_v44  ;;  %23015 = vst [vmem:[#allocation226_spill] sm:$0xff] %v18629_v36  ;;  %12791 = vmatprep.subr.bf16.mxu0 %v18592_v26  ;;  %v18663_v44 = vld [vmem:[%s21046_s14 + $0x178] sm:$0xff]  }
 0x62b   : > { %23006 = vst [vmem:[#allocation11_spill] sm:$0xff] %v18602_v31  ;;  %23013 = vst [vmem:[#allocation206_spill] sm:$0xff] %v18621_v43  ;;  %v18636_v1 = vsel %vm6307_vm6, %v18366_v50, %v18417_v48  ;;  %v23017_v20 = vmov %v23011_v29  ;;  %v23018_v61 = vrot.slane %v18249_v24, 7  ;;  %12756 = vmatpush3.bf16.msra.mxu1 %v13443_v59  ;;  %v6402_v38 = vrot.slane %v18459_v4, 7  ;;  %v23026_v29 = vld [vmem:[#allocation112_spill] sm:$0xff] }
 0x62c   : > { %12676 = vmatmul.mubr.bf16.gmra.mxu1 %v6484_v17  ;;  %23016 = vst [vmem:[#allocation213_spill] sm:$0xff] %v18636_v1  ;;  %v6551_v8 = vpack.c.bf16 %v6530_v47, %v6529_v51  ;;  %v18652_v50 = vsel %vm6310_vm9, %v18430_v2, %v18475_v57  ;;  %12632 = vmatmul.mubr.bf16.gmra.mxu0 %v6550_v23  ;;  %vm6312_vm10 = vcmp.gt.f32.partialorder %v6279_v27, 0.0  ;;  %v23032_v16 = vrot.slane %v18413_v7, 7  ;;  %vm23033_vm6 = vmmov %vm22965_vm0 }
 0x62d   : > { %12679 = vmatprep.mubr.bf16.mxu1 %v6485_v60  ;;  %v18645_v17 = vsel %vm23019_vm8, %v23018_v61, %v23017_v20  ;;  %v6464_v51 = vmul.f32 %v23003_v49, %v18621_v43  ;;  %v18658_v48 = vsel %vm22965_vm0, %v6399_v62, %v6400_v9  ;;  %12757 = vmatprep.subr.bf16.mxu1 %v13445_v5  ;;  %v23022_v49 = vld [vmem:[#allocation110_spill] sm:$0xff]  ;;  %v23024_v60 = vld [vmem:[#allocation108_spill] sm:$0xff]  ;;  %v6404_v20 = vrot.slane %v18636_v1, 7  ;;  %vm23040_vm9 = vmmov %vm22965_vm0 }
 0x62e   : > { %23020 = vst [vmem:[#allocation217_spill] sm:$0xff] %v18645_v17  ;;  %23021 = vst [vmem:[#allocation229_spill] sm:$0xff] %v18658_v48  ;;  %v18669_v2 = vsel %vm6308_vm15, %v18478_v25, %v18513_v41  ;;  %v6344_v23 = vmul.f32 %v17888_v14, %v18494_v35  ;;  %12635 = vmatprep.mubr.bf16.mxu0 %v6551_v8  ;;  %v6465_v57 = vmul.f32 %v23022_v49, %v18629_v36  ;;  %v23025_v25 = vld [vmem:[#allocation114_spill] sm:$0xff] }
 0x62f   : > { %v18680_v59 = vsel %vm6309_vm5, %v18483_v34, %v18524_v42  ;;  %v6463_v41 = vmul.f32 %v23024_v60, %v18645_v17  ;;  %v6532_v3 = vmul.f32 %v23025_v25, %v18459_v4  ;;  %v6345_v62 = vmul.f32 %v17888_v14, %v6279_v27  ;;  %12758 = vmatpush3.bf16.msra.mxu1 %v13445_v5  ;;  %v23027_v34 = vld [vmem:[#allocation111_spill] sm:$0xff]  ;;  %v23049_v17 = vld [vmem:[#allocation165_spill] sm:$0xff]  ;;  %vm23064_vm5 = vmmov %vm22965_vm0 }
 0x630   : > { %23023 = vst [vmem:[#allocation32_spill] sm:$0xff] %v18680_v59  ;;  %v6466_v47 = vmul.f32 %v23004_v0, %v18658_v48  ;;  %v6534_v8 = vmul.f32 %v23026_v29, %v18636_v1  ;;  %v6531_v61 = vmul.f32 %v23027_v34, %v18413_v7  ;;  %v23028_v49 = vrot.slane %v18413_v7, 7  ;;  %12839 = vmatprep.subr.bf16.mxu1 %v18663_v44  ;;  %vm23066_vm8 = vmmov %vm22965_vm0 }
 0x631   : > { %v6486_v42 = vpack.c.bf16 %v6464_v51, %v6463_v41  ;;  %v6403_v14 = vrot.slane %v18393_v11, 7  ;;  %v18705_v0 = vsel %vm6311_vm13, %v18494_v35, %v6344_v23  ;;  %v6406_v5 = vrot.slane %v18680_v59, 7  ;;  %v23031_v41 = vld [vmem:[#allocation113_spill] sm:$0xff] }
 0x632   : > { %v18698_v60 = vsel %vm23029_vm14, %v23028_v49, %v6402_v38  ;;  %23030 = vst [vmem:[#allocation33_spill] sm:$0xff] %v18705_v0  ;;  %v6487_v51 = vpack.c.bf16 %v6466_v47, %v6465_v57  ;;  %v6533_v45 = vmul.f32 %v23031_v41, %v18393_v11  ;;  %v6405_v31 = vrot.slane %v18669_v2, 7 }
 0x633   : > { %v6552_v49 = vpack.c.bf16 %v6532_v3, %v6531_v61  ;;  %v18715_v48 = vsel %vm23033_vm6, %v6400_v9, %v23032_v16  ;;  %v18719_v35 = vsel %vm23034_vm12, %v6402_v38, %v6403_v14  ;;  %v18722_v23 = vsel %vm6312_vm10, %v6279_v27, %v6345_v62  ;;  %v23037_v27 = vld [vmem:[#allocation115_spill] sm:$0xff]  ;;  %v23038_v62 = vld [vmem:[#allocation117_spill] sm:$0xff]  ;;  %v23041_v16 = vld [vmem:[#allocation120_spill] sm:$0xff] }
 0x634   : > { %12680 = vmatmul.mubr.bf16.gmra.mxu1 %v6486_v42  ;;  %23035 = vst [vmem:[#allocation37_spill] sm:$0xff] %v18722_v23  ;;  %v6553_v57 = vpack.c.bf16 %v6534_v8, %v6533_v45  ;;  %v6468_v47 = vmul.f32 %v23025_v25, %v18698_v60  ;;  %v18728_v3 = vsel %vm23036_vm7, %v6403_v14, %v6404_v20  ;;  %v6407_v9 = vrot.slane %v18652_v50, 7  ;;  %v23039_v8 = vld [vmem:[#allocation125_spill] sm:$0xff] }
 0x635   : > { %12683 = vmatprep.mubr.bf16.mxu1 %v6487_v51  ;;  %12636 = vmatmul.mubr.bf16.gmra.mxu0 %v6552_v49  ;;  %v6408_v38 = vrot.slane %v18705_v0, 7  ;;  %v6467_v45 = vmul.f32 %v23037_v27, %v18715_v48  ;;  %v6469_v25 = vmul.f32 %v23038_v62, %v18719_v35  ;;  %v6536_v61 = vmul.f32 %v23039_v8, %v18680_v59  ;;  %v23042_v62 = vld [vmem:[#allocation119_spill] sm:$0xff]  ;;  %v23046_v51 = vld [vmem:[#allocation118_spill] sm:$0xff] }
 0x636   : > { %12639 = vmatprep.mubr.bf16.mxu0 %v6553_v57  ;;  %v18742_v14 = vsel %vm23040_vm9, %v6405_v31, %v6406_v5  ;;  %v6409_v49 = vrot.slane %v18722_v23, 7  ;;  %v6470_v57 = vmul.f32 %v23026_v29, %v18728_v3  ;;  %v6538_v27 = vmul.f32 %v23041_v16, %v18705_v0  ;;  %v23050_v59 = vld [vmem:[#allocation171_spill] sm:$0xff] }
 0x637   : > { %v6488_v42 = vpack.c.bf16 %v6468_v47, %v6467_v45  ;;  %v6535_v41 = vmul.f32 %v23042_v62, %v18669_v2  ;;  %v18754_v34 = vsel %vm23043_vm4, %v6404_v20, %v6405_v31  ;;  %v18758_v36 = vsel %vm23044_vm11, %v6406_v5, %v6407_v9  ;;  %v23051_v62 = vld [vmem:[#allocation23_spill] sm:$0xff] }
 0x638   : > { %23045 = vst [vmem:[#allocation55_spill] sm:$0xff] %v18758_v36  ;;  %v6537_v63 = vmul.f32 %v23046_v51, %v18652_v50  ;;  %v6472_v29 = vmul.f32 %v23039_v8, %v18742_v14  ;;  %v18766_v47 = vsel %vm23047_vm1, %v6407_v9, %v6408_v38  ;;  %v7023_v45 = vrot.slane %v18260_v13, 1 }
 0x639   : > { %23048 = vst [vmem:[#allocation53_spill] sm:$0xff] %v18766_v47  ;;  %v6489_v31 = vpack.c.bf16 %v6470_v57, %v6469_v25  ;;  %v6554_v20 = vpack.c.bf16 %v6536_v61, %v6535_v41  ;;  %v7022_v43 = vrot.slane %v18246_v15, 1  ;;  %v6471_v51 = vmul.f32 %v23049_v17, %v18754_v34  ;;  %v23052_v17 = vld [vmem:[#allocation173_spill] sm:$0xff] }
 0x63a   : > { %v6555_v5 = vpack.c.bf16 %v6538_v27, %v6537_v63  ;;  %v6473_v8 = vmul.f32 %v23050_v59, %v18758_v36  ;;  %v6474_v9 = vmul.f32 %v23041_v16, %v18766_v47  ;;  %v6539_v25 = vmul.f32 %v23051_v62, %v18722_v23  ;;  %v23058_v27 = vld [vmem:[#allocation123_spill] sm:$0xff] }
 0x63b   : > { %v6999_v41 = vrot.slane %v18179_v19, 1  ;;  %v6490_v63 = vpack.c.bf16 %v6472_v29, %v6471_v51  ;;  %v6540_v61 = vmul.f32 %v23052_v17, %v18274_v58  ;;  %vm23053_vm3 = vcmp.lt.s32.totalorder %v22856_v6, 7  ;;  %v23219_v6 = vld [vmem:[#allocation101_spill] sm:$0xff] }
 0x63c   : > { %12684 = vmatmul.mubr.bf16.gmra.mxu1 %v6488_v42  ;;  %v18786_v59 = vsel %vm23053_vm3, %v7022_v43, %v7023_v45  ;;  %v23055_v57 = vrot.slane %v18086_v55, 1  ;;  %vm23056_vm15 = vmmov %vm23053_vm3  ;;  %v23063_v29 = vrot.slane %v18274_v58, 7  ;;  %v7003_v4 = vrot.slane %v18209_v30, 1  ;;  %v23070_v30 = vld [vmem:[#allocation177_spill] sm:$0xff]  ;;  %v23113_v55 = vld [vmem:[#allocation30_spill] sm:$0xff] }
 0x63d   : > { %12687 = vmatprep.mubr.bf16.mxu1 %v6489_v31  ;;  %12640 = vmatmul.mubr.bf16.gmra.mxu0 %v6554_v20  ;;  %23054 = vst [vmem:[#allocation79_spill] sm:$0xff] %v18786_v59  ;;  %v23059_v31 = vrot.slane %v23058_v27, 1  ;;  %vm23061_vm2 = vmmov %vm23053_vm3  ;;  %v23067_v13 = vrot.slane %v18207_v33, 1  ;;  %v23103_v27 = vld [vmem:[#allocation182_spill] sm:$0xff]  ;;  %v23107_v62 = vrot.slane %v18393_v11, 1 }
 0x63e   : > { %v18792_v16 = vsel %vm23056_vm15, %v7023_v45, %v23055_v57  ;;  %12643 = vmatprep.mubr.bf16.mxu0 %v6555_v5  ;;  %v23060_v42 = vmov %v23055_v57  ;;  %v18806_v20 = vsel %vm23064_vm5, %v6409_v49, %v23063_v29  ;;  %v6491_v57 = vpack.c.bf16 %v6474_v9, %v6473_v8  ;;  %vm23068_vm0 = vmmov %vm23061_vm2  ;;  %v23069_v29 = vld [vmem:[#allocation75_spill] sm:$0xff] }
 0x63f   : > { %23057 = vst [vmem:[#allocation56_spill] sm:$0xff] %v18792_v16  ;;  %v18800_v51 = vsel %vm23061_vm2, %v23060_v42, %v23059_v31  ;;  %23065 = vst [vmem:[#allocation193_spill] sm:$0xff] %v18806_v20  ;;  %v18812_v5 = vsel %vm23066_vm8, %v6408_v38, %v6409_v49  ;;  %v18818_v42 = vsel %vm23068_vm0, %v6999_v41, %v23067_v13  ;;  %v23071_v8 = vrot.slane %v18236_v12, 1 }
 0x640   : > { %23062 = vst [vmem:[#allocation83_spill] sm:$0xff] %v18800_v51  ;;  %v7056_v15 = vmul.f32 %v23069_v29, %v18786_v59  ;;  %v7057_v19 = vmul.f32 %v23070_v30, %v18792_v16  ;;  %vm23072_vm13 = vmmov %vm23068_vm0  ;;  %v7007_v49 = vrot.slane %v18249_v24, 1  ;;  %v6556_v9 = vpack.c.bf16 %v6540_v61, %v6539_v25  ;;  %v23073_v29 = vld [vmem:[#allocation24_spill] sm:$0xff]  ;;  %v23076_v25 = vld [vmem:[#allocation106_spill] sm:$0xff] }
 0x641   : > { %v18829_v38 = vsel %vm23072_vm13, %v7003_v4, %v23071_v8  ;;  %v6476_v13 = vmul.f32 %v23052_v17, %v18806_v20  ;;  %v7011_v31 = vrot.slane %v18379_v53, 1  ;;  %v6475_v59 = vmul.f32 %v23073_v29, %v18812_v5  ;;  %vm23075_vm10 = vmmov %vm23068_vm0 }
 0x642   : > { %v23074_v30 = vrot.slane %v18347_v37, 1  ;;  %v7020_v8 = vrot.slane %v18722_v23, 1  ;;  %v18847_v61 = vmul.f32 %v23076_v25, %v18818_v42  ;;  %v23078_v17 = vrot.slane %v18114_v52, 1  ;;  %vm23079_vm14 = vmmov %vm23068_vm0  ;;  %v23082_v23 = vld [vmem:[#allocation130_spill] sm:$0xff] }
 0x643   : > { %v23080_v29 = vrot.slane %v18413_v7, 1  ;;  %vm23081_vm6 = vmmov %vm23068_vm0  ;;  %v18864_v24 = vmul.f32 %v23082_v23, %v18829_v38  ;;  %v23084_v25 = vrot.slane %v18189_v54, 1  ;;  %v23087_v23 = vrot.slane %v18669_v2, 1 }
 0x644   : > { %v18842_v16 = vsel %vm23075_vm10, %v7007_v49, %v23074_v30  ;;  %23077 = vst [vmem:[#allocation96_spill] sm:$0xff] %v18847_v61  ;;  %12688 = vmatmul.mubr.bf16.gmra.mxu1 %v6490_v63  ;;  %v18853_v45 = vsel %vm23079_vm14, %v23078_v17, %v6999_v41  ;;  %v7015_v30 = vrot.slane %v18636_v1, 1  ;;  %v7088_v63 = vpack.c.bf16 %v7057_v19, %v7056_v15  ;;  %vm23085_vm12 = vmmov %vm23068_vm0  ;;  %v23086_v1 = vld [vmem:[#allocation17_spill] sm:$0xff] }
 0x645   : > { %v18859_v53 = vsel %vm23081_vm6, %v7011_v31, %v23080_v29  ;;  %23083 = vst [vmem:[#allocation134_spill] sm:$0xff] %v18864_v24  ;;  %12691 = vmatprep.mubr.bf16.mxu1 %v6491_v57  ;;  %v18870_v41 = vsel %vm23085_vm12, %v23084_v25, %v7003_v4  ;;  %v7019_v17 = vrot.slane %v18705_v0, 1  ;;  %12644 = vmatmul.mubr.bf16.gmra.mxu0 %v6556_v9  ;;  %vm23088_vm7 = vmmov %vm23068_vm0  ;;  %v23089_v4 = vld [vmem:[#allocation131_spill] sm:$0xff]  ;;  %v23091_v25 = vrot.slane %v18234_v40, 1  ;;  %v23099_v0 = vld [vmem:[#allocation122_spill] sm:$0xff] }
 0x646   : > { %v7362_v52 = vmul.f32 %v23086_v1, %v18288_v10  ;;  %v18881_v15 = vsel %vm23088_vm7, %v7015_v30, %v23087_v23  ;;  %v18887_v57 = vmul.f32 %v23089_v4, %v18842_v16  ;;  %12711 = vmatprep.mubr.bf16.mxu0 %v7088_v63  ;;  %vm23092_vm9 = vmmov %vm23068_vm0  ;;  %v23094_v23 = vrot.slane %v18274_v58, 1  ;;  %v23096_v4 = vld [vmem:[#allocation144_spill] sm:$0xff]  ;;  %v23098_v63 = vld [vmem:[#allocation29_spill] sm:$0xff] }
 0x647   : > { %v18893_v9 = vsel %vm23092_vm9, %v23091_v25, %v7007_v49  ;;  %vm23093_vm4 = vmmov %vm23068_vm0  ;;  %v18907_v29 = vmul.f32 %v23096_v4, %v18859_v53  ;;  %v7058_v10 = vmul.f32 %v23098_v63, %v18800_v51  ;;  %v23100_v49 = vld [vmem:[#allocation18_spill] sm:$0xff]  ;;  %v23101_v24 = vrot.slane %v18343_v18, 1  ;;  %v23104_v63 = vld [vmem:[#allocation143_spill] sm:$0xff] }
 0x648   : > { %23090 = vst [vmem:[#allocation172_spill] sm:$0xff] %v18887_v57  ;;  %v18897_v1 = vsel %vm23093_vm4, %v7019_v17, %v7020_v8  ;;  %vm23095_vm11 = vmmov %vm23068_vm0  ;;  %v7059_v25 = vmul.f32 %v23100_v49, %v23099_v0  ;;  %v7061_v4 = vmul.f32 %v23103_v27, %v18533_v32  ;;  %v18927_v51 = vmul.f32 %v23104_v63, %v18881_v15  ;;  %v23106_v49 = vld [vmem:[#allocation138_spill] sm:$0xff]  ;;  %v23111_v27 = vld [vmem:[#allocation152_spill] sm:$0xff] }
 0x649   : > { %v18903_v19 = vsel %vm23095_vm11, %v23094_v23, %v7022_v43  ;;  %23097 = vst [vmem:[#allocation209_spill] sm:$0xff] %v18907_v29  ;;  %vm23102_vm1 = vmmov %vm23068_vm0  ;;  %v6492_v23 = vpack.c.bf16 %v6476_v13, %v6475_v59  ;;  %v7394_v0 = vpack.c.bf16 %v23106_v49, %v7362_v52  ;;  %v23109_v59 = vld [vmem:[#allocation146_spill] sm:$0xff]  ;;  %v7060_v63 = vmul.f32 %v23113_v55, %v18567_v39  ;;  %v13446_v55 = vld [vmem:[%s21046_s14 + $0x130] sm:$0xff]  }
 0x64a   : > { %v18917_v61 = vsel %vm23102_vm1, %v23101_v24, %v7011_v31  ;;  %23105 = vst [vmem:[#allocation178_spill] sm:$0xff] %v18927_v51  ;;  %vm23108_vm3 = vmmov %vm23068_vm0  ;;  %v18938_v31 = vmul.f32 %v23109_v59, %v18897_v1  ;;  %v18942_v13 = vmul.f32 %v23111_v27, %v18903_v19  ;;  %v23114_v43 = vrot.slane %v18652_v50, 1  ;;  %v23133_v51 = vld [vmem:[#allocation149_spill] sm:$0xff]  ;;  %v23143_v57 = vld [vmem:[#allocation210_spill] sm:$0xff] }
 0x64b   : > { %v18934_v24 = vsel %vm23108_vm3, %v23107_v62, %v7015_v30  ;;  %vm23115_vm15 = vmmov %vm23068_vm0  ;;  %v23116_v62 = vrot.slane %v18274_v58, 1  ;;  %v7089_v27 = vpack.c.bf16 %v7059_v25, %v7058_v10  ;;  %v23118_v58 = vld [vmem:[#allocation129_spill] sm:$0xff]  ;;  %v7001_v59 = vrot.slane %v18224_v21, 1  ;;  %v23120_v10 = vld [vmem:[#allocation48_spill] sm:$0xff] }
 0x64c   : > { %23110 = vst [vmem:[#allocation59_spill] sm:$0xff] %v18938_v31  ;;  %23112 = vst [vmem:[#allocation67_spill] sm:$0xff] %v18942_v13  ;;  %v18950_v52 = vsel %vm23115_vm15, %v23114_v43, %v7019_v17  ;;  %12692 = vmatmul.mubr.bf16.gmra.mxu1 %v6492_v23  ;;  %v7090_v43 = vpack.c.bf16 %v7061_v4, %v7060_v63  ;;  %v7062_v25 = vmul.f32 %v23120_v10, %v18581_v56  ;;  %v23121_v23 = vld [vmem:[#allocation35_spill] sm:$0xff]  ;;  %v23122_v4 = vld [vmem:[#allocation34_spill] sm:$0xff] }
 0x64d   : > { %vm23117_vm2 = vmmov %vm23068_vm0  ;;  %12759 = vmatprep.mubr.bf16.mxu1 %v7394_v0  ;;  %12712 = vmatmul.mubr.bf16.vlgmr.msra.gmra.mxu0 %v7089_v27  ;;  %v7063_v49 = vmul.f32 %v23121_v23, %v18575_v28  ;;  %v13447_v0 = vld [vmem:[%s21046_s14 + $0x128] sm:$0xff]   ;;  %v7366_v63 = vmul.f32 %v23122_v4, %v18037_v22  ;;  %v23125_v23 = vld [vmem:[#allocation40_spill] sm:$0xff]  ;;  %v23126_v31 = vrot.slane %v18189_v54, 1  ;;  %v23128_v4 = vrot.slane %v18207_v33, 1 }
 0x64e   : > { %v18956_v30 = vsel %vm23117_vm2, %v7020_v8, %v23116_v62  ;;  %v23119_v8 = vld [vmem:[#allocation10_spill] sm:$0xff]  ;;  %12715 = vmatprep.mubr.bf16.mxu0 %v7090_v43  ;;  %12792 = vmatpush3.bf16.msra.mxu0 %v18592_v26  ;;  %v23123_v27 = vld [vmem:[#allocation187_spill] sm:$0xff]  ;;  %v23124_v43 = vld [vmem:[#allocation188_spill] sm:$0xff]  ;;  %v7064_v13 = vmul.f32 %v23125_v23, %v18853_v45 }
 0x64f   : > { %v7364_v62 = vmul.f32 %v23119_v8, %v23118_v58  ;;  %12793 = vmatprep.subr.bf16.mxu0 %v13446_v55  ;;  %v7065_v8 = vmul.f32 %v23123_v27, %v18818_v42  ;;  %v13452_v26 = vld [vmem:[%s21046_s14 + $0x170] sm:$0xff]   ;;  %v7396_v10 = vpack.c.bf16 %v18023_v46, %v7366_v63  ;;  %vm23127_vm5 = vmmov %vm23068_vm0  ;;  %v23130_v27 = vld [vmem:[#allocation199_spill] sm:$0xff]  ;;  %v7091_v46 = vpack.c.bf16 %v7063_v49, %v7062_v25 }
 0x650   : > { %v18993_v22 = vsel %vm23127_vm5, %v7001_v59, %v23126_v31  ;;  %vm23129_vm8 = vmmov %vm23068_vm0  ;;  %v23131_v63 = vld [vmem:[#allocation186_spill] sm:$0xff]  ;;  %v23132_v58 = vld [vmem:[#allocation192_spill] sm:$0xff] }
 0x651   : > { %v7395_v17 = vpack.c.bf16 %v23124_v43, %v7364_v62  ;;  %v18999_v62 = vsel %vm23129_vm8, %v23128_v4, %v7001_v59  ;;  %v7005_v43 = vrot.slane %v23130_v27, 1  ;;  %v7368_v23 = vmul.f32 %v23132_v58, %v23131_v63  ;;  %v23134_v59 = vld [vmem:[#allocation46_spill] sm:$0xff]  ;;  %v23135_v29 = vld [vmem:[#allocation65_spill] sm:$0xff]  ;;  %v23136_v49 = vld [vmem:[#allocation47_spill] sm:$0xff] }
 0x652   : > { %12794 = vmatpush3.bf16.msra.mxu0 %v13446_v55  ;;  %v13448_v55 = vld [vmem:[%s21046_s14 + $0x120] sm:$0xff]   ;;  %v7092_v31 = vpack.c.bf16 %v7065_v8, %v7064_v13  ;;  %v7370_v4 = vmul.f32 %v23134_v59, %v23133_v51  ;;  %v7067_v25 = vmul.f32 %v23136_v49, %v18993_v22  ;;  %v13453_v58 = vld [vmem:[%s21046_s14 + $0x168] sm:$0xff]   ;;  %v23150_v54 = vld [vmem:[#allocation69_spill] sm:$0xff] }
 0x653   : > { %12795 = vmatprep.subr.bf16.mxu0 %v13447_v0  ;;  %v23137_v13 = vld [vmem:[#allocation195_spill] sm:$0xff]  ;;  %v23140_v51 = vld [vmem:[#allocation218_spill] sm:$0xff]  ;;  %vm23156_vm13 = vmmov %vm23068_vm0 }
 0x654   : > { %12760 = vmatmul.mubr.bf16.vlgmr.msra.gmra.mxu1 %v7395_v17  ;;  %v7066_v17 = vmul.f32 %v23135_v29, %v18999_v62  ;;  %v7069_v8 = vmul.f32 %v23137_v13, %v18829_v38  ;;  %v7398_v63 = vpack.c.bf16 %v23140_v51, %v7370_v4  ;;  %v23141_v29 = vrot.slane %v18236_v12, 1  ;;  %v23142_v13 = vld [vmem:[#allocation60_spill] sm:$0xff]  ;;  %v23147_v51 = vld [vmem:[#allocation153_spill] sm:$0xff]  ;;  %v23149_v12 = vld [vmem:[#allocation227_spill] sm:$0xff] }
 0x655   : > { %12763 = vmatprep.mubr.bf16.mxu1 %v7396_v10  ;;  %12840 = vmatpush3.bf16.msra.mxu1 %v18663_v44  ;;  %v23138_v44 = vld [vmem:[#allocation215_spill] sm:$0xff]  ;;  %v7374_v21 = vmul.f32 %v23150_v54, %v23149_v12  ;;  %v23157_v54 = vld [vmem:[#allocation73_spill] sm:$0xff]  ;;  %vm23159_vm10 = vmmov %vm23068_vm0 }
 0x656   : > { %12716 = vmatmul.mubr.bf16.gmra.mxu0 %v7091_v46  ;;  %12841 = vmatprep.subr.bf16.mxu1 %v13452_v26  ;;  %v7009_v10 = vrot.slane %v23138_v44, 1  ;;  %v23139_v46 = vld [vmem:[#allocation197_spill] sm:$0xff]  ;;  %v19026_v49 = vsel %vm23068_vm0, %v23141_v29, %v7005_v43  ;;  %v23144_v44 = vld [vmem:[#allocation200_spill] sm:$0xff]  ;;  %v19041_v29 = vmul.f32 %v23147_v51, %v18698_v60  ;;  %v23155_v51 = vrot.slane %v18234_v40, 1  ;;  %vm23161_vm14 = vmmov %vm23068_vm0 }
 0x657   : > { %12719 = vmatprep.mubr.bf16.mxu0 %v7092_v31  ;;  %12796 = vmatpush3.bf16.msra.mxu0 %v13447_v0  ;;  %v7397_v59 = vpack.c.bf16 %v23139_v46, %v7368_v23  ;;  %v13449_v31 = vld [vmem:[%s21046_s14 + $0x118] sm:$0xff]   ;;  %v7068_v0 = vmul.f32 %v23142_v13, %v18870_v41  ;;  %v7372_v27 = vmul.f32 %v23144_v44, %v23143_v57  ;;  %v23145_v23 = vld [vmem:[#allocation51_spill] sm:$0xff]  ;;  %v13455_v13 = vld [vmem:[%s21046_s14 + $0x160] sm:$0xff]  }
 0x658   : > { %12797 = vmatprep.subr.bf16.mxu0 %v13448_v55  ;;  %v19037_v4 = vmul.f32 %v23145_v23, %v18715_v48  ;;  %23148 = vst [vmem:[#allocation179_spill] sm:$0xff] %v19041_v29  ;;  %v7093_v46 = vpack.c.bf16 %v7067_v25, %v7066_v17  ;;  %v23151_v44 = vld [vmem:[#allocation54_spill] sm:$0xff]  ;;  %v19060_v17 = vsel %vm23156_vm13, %v7005_v43, %v23155_v51  ;;  %v13451_v43 = vld [vmem:[%s21046_s14 + $0x110] sm:$0xff]   ;;  %v23168_v12 = vld [vmem:[#allocation223_spill] sm:$0xff] }
 0x659   : > { %12842 = vmatpush3.bf16.msra.mxu1 %v13452_v26  ;;  %v19050_v26 = vmul.f32 %v23151_v44, %v18719_v35  ;;  %v23153_v23 = vld [vmem:[#allocation154_spill] sm:$0xff]  ;;  %v7094_v33 = vpack.c.bf16 %v7069_v8, %v7068_v0  ;;  %v7070_v25 = vmul.f32 %v23157_v54, %v19026_v49  ;;  %v23158_v44 = vrot.slane %v18343_v18, 1  ;;  %v23184_v56 = vld [vmem:[#allocation217_spill] sm:$0xff]  ;;  %vm23198_vm6 = vmmov %vm23068_vm0 }
 0x65a   : > { %23146 = vst [vmem:[#allocation68_spill] sm:$0xff] %v19037_v4  ;;  %12843 = vmatprep.subr.bf16.mxu1 %v13453_v58  ;;  %v19054_v57 = vmul.f32 %v23153_v23, %v18728_v3  ;;  %v23160_v8 = vrot.slane %v18347_v37, 1  ;;  %v23164_v54 = vld [vmem:[#allocation86_spill] sm:$0xff]  ;;  %v7013_v4 = vrot.slane %v23168_v12, 1  ;;  %vm23200_vm12 = vmmov %vm23068_vm0 }
 0x65b   : > { %23152 = vst [vmem:[#allocation25_spill] sm:$0xff] %v19050_v26  ;;  %12798 = vmatpush3.bf16.msra.mxu0 %v13448_v55  ;;  %v19070_v23 = vsel %vm23159_vm10, %v7009_v10, %v23158_v44  ;;  %v19089_v44 = vmul.f32 %v23164_v54, %v18742_v14  ;;  %v23169_v29 = vld [vmem:[#allocation66_spill] sm:$0xff]  ;;  %vm23202_vm7 = vmmov %vm23068_vm0 }
 0x65c   : > { %23154 = vst [vmem:[#allocation230_spill] sm:$0xff] %v19054_v57  ;;  %12764 = vmatmul.mubr.bf16.gmra.mxu1 %v7397_v59  ;;  %v19076_v51 = vsel %vm23161_vm14, %v23160_v8, %v7009_v10  ;;  %12799 = vmatprep.subr.bf16.mxu0 %v13449_v31  ;;  %v23162_v59 = vld [vmem:[#allocation61_spill] sm:$0xff]  ;;  %v7071_v55 = vmul.f32 %v23169_v29, %v19060_v17  ;;  %v23172_v54 = vld [vmem:[#allocation74_spill] sm:$0xff]  ;;  %v23176_v29 = vld [vmem:[#allocation99_spill] sm:$0xff] }
 0x65d   : > { %12767 = vmatprep.mubr.bf16.mxu1 %v7398_v63  ;;  %12844 = vmatpush3.bf16.msra.mxu1 %v13453_v58  ;;  %v19085_v0 = vmul.f32 %v23162_v59, %v18754_v34  ;;  %23165 = vst [vmem:[#allocation70_spill] sm:$0xff] %v19089_v44  ;;  %v23166_v10 = vld [vmem:[#allocation157_spill] sm:$0xff]  ;;  %v23170_v63 = vld [vmem:[#allocation198_spill] sm:$0xff]  ;;  %v23171_v58 = vld [vmem:[#allocation208_spill] sm:$0xff]  ;;  %v19107_v57 = vmul.f32 %v23172_v54, %v18766_v47 }
 0x65e   : > { %v19093_v8 = vmul.f32 %v23166_v10, %v18758_v36  ;;  %12720 = vmatmul.mubr.bf16.gmra.mxu0 %v7093_v46  ;;  %v19100_v26 = vmul.f32 %v23171_v58, %v23170_v63  ;;  %12845 = vmatprep.subr.bf16.mxu1 %v13455_v13  ;;  %v13456_v59 = vld [vmem:[%s21046_s14 + $0x158] sm:$0xff]   ;;  %v23174_v10 = vld [vmem:[#allocation32_spill] sm:$0xff]  ;;  %v23175_v46 = vld [vmem:[#allocation203_spill] sm:$0xff]  ;;  %v19114_v37 = vmul.f32 %v23176_v29, %v19076_v51 }
 0x65f   : > { %23163 = vst [vmem:[#allocation71_spill] sm:$0xff] %v19085_v0  ;;  %23173 = vst [vmem:[#allocation77_spill] sm:$0xff] %v19107_v57  ;;  %v7017_v18 = vrot.slane %v23174_v10, 1  ;;  %12723 = vmatprep.mubr.bf16.mxu0 %v7094_v33  ;;  %v7073_v12 = vmul.f32 %v23175_v46, %v18842_v16  ;;  %12800 = vmatpush3.bf16.msra.mxu0 %v13449_v31  ;;  %v23177_v63 = vld [vmem:[#allocation78_spill] sm:$0xff]  ;;  %v13454_v33 = vld [vmem:[%s21046_s14 + $0x108] sm:$0xff]   ;;  %v7095_v57 = vpack.c.bf16 %v7071_v55, %v7070_v25 }
 0x660   : > { %23167 = vst [vmem:[#allocation76_spill] sm:$0xff] %v19093_v8  ;;  %v19120_v40 = vmul.f32 %v23177_v63, %v19070_v23  ;;  %12801 = vmatprep.subr.bf16.mxu0 %v13451_v43  ;;  %v23178_v54 = vld [vmem:[#allocation127_spill] sm:$0xff]  ;;  %v23180_v31 = vld [vmem:[#allocation81_spill] sm:$0xff]  ;;  %v23183_v63 = vld [vmem:[#allocation72_spill] sm:$0xff] }
 0x661   : > { %v19129_v29 = vmul.f32 %v23178_v54, %v18812_v5  ;;  %v19133_v10 = vmul.f32 %v23180_v31, %v18806_v20  ;;  %v23182_v58 = vld [vmem:[#allocation207_spill] sm:$0xff]  ;;  %v7072_v44 = vmul.f32 %v23183_v63, %v18893_v9  ;;  %v23185_v28 = vld [vmem:[#allocation82_spill] sm:$0xff]  ;;  %12846 = vmatpush3.bf16.msra.mxu1 %v13455_v13  ;;  %v23188_v31 = vld [vmem:[#allocation57_spill] sm:$0xff] }
 0x662   : > { %v7399_v0 = vpack.c.bf16 %v23182_v58, %v7372_v27  ;;  %v19140_v47 = vmul.f32 %v23185_v28, %v23184_v56  ;;  %v23186_v36 = vld [vmem:[#allocation211_spill] sm:$0xff]  ;;  %v23187_v54 = vld [vmem:[#allocation214_spill] sm:$0xff]  ;;  %v7401_v20 = vpack.c.bf16 %v23188_v31, %v19100_v26  ;;  %12847 = vmatprep.subr.bf16.mxu1 %v13456_v59  ;;  %v13458_v27 = vld [vmem:[%s21046_s14 + $0x150] sm:$0xff]   ;;  %v7097_v26 = vpack.c.bf16 %v19120_v40, %v19114_v37 }
 0x663   : > { %23179 = vst [vmem:[#allocation97_spill] sm:$0xff] %v19129_v29  ;;  %23181 = vst [vmem:[#allocation140_spill] sm:$0xff] %v19133_v10  ;;  %v19144_v46 = vmul.f32 %v23186_v36, %v18859_v53  ;;  %v7400_v8 = vpack.c.bf16 %v23187_v54, %v7374_v21  ;;  %v7096_v63 = vpack.c.bf16 %v7073_v12, %v7072_v44  ;;  %v23189_v56 = vld [vmem:[#allocation206_spill] sm:$0xff]  ;;  %v23190_v13 = vld [vmem:[#allocation100_spill] sm:$0xff]  ;;  %12802 = vmatpush3.bf16.msra.mxu0 %v13451_v43 }
 0x664   : > { %v7402_v36 = vpack.c.bf16 %v23189_v56, %v19140_v47  ;;  %v19158_v58 = vmul.f32 %v23190_v13, %v18917_v61  ;;  %v23191_v21 = vld [vmem:[#allocation226_spill] sm:$0xff]  ;;  %v23192_v25 = vld [vmem:[#allocation216_spill] sm:$0xff]  ;;  %12768 = vmatmul.mubr.bf16.gmra.mxu1 %v7399_v0  ;;  %12803 = vmatprep.subr.bf16.mxu0 %v13454_v33  ;;  %v23197_v0 = vrot.slane %v18393_v11, 1  ;;  %v23199_v37 = vrot.slane %v18413_v7, 1  ;;  %vm23212_vm9 = vmmov %vm23068_vm0 }
 0x665   : > { %v19162_v55 = vmul.f32 %v23192_v25, %v23191_v21  ;;  %v13457_v12 = vld [vmem:[%s21046_s14 + $0x100] sm:$0xff]   ;;  %v23193_v47 = vld [vmem:[#allocation168_spill] sm:$0xff]  ;;  %12771 = vmatprep.mubr.bf16.mxu1 %v7400_v8  ;;  %12848 = vmatpush3.bf16.msra.mxu1 %v13456_v59  ;;  %v19247_v21 = vmul.f32 %v23219_v6, %v19060_v17  ;;  %v23221_v56 = vld [vmem:[#allocation185_spill] sm:$0xff] }
 0x666   : > { %v19171_v44 = vmul.f32 %v23193_v47, %v18567_v39  ;;  %v23195_v13 = vld [vmem:[#allocation84_spill] sm:$0xff]  ;;  %v7098_v43 = vpack.c.bf16 %v19144_v46, %v19158_v58  ;;  %v19183_v40 = vsel %vm23198_vm6, %v7013_v4, %v23197_v0  ;;  %v19189_v25 = vsel %vm23200_vm12, %v23199_v37, %v7013_v4  ;;  %12724 = vmatmul.mubr.bf16.gmra.mxu0 %v7095_v57  ;;  %v13459_v58 = vld [vmem:[%s21046_s14 + $0x148] sm:$0xff]   ;;  %v23205_v57 = vld [vmem:[#allocation169_spill] sm:$0xff] }
 0x667   : > { %v19175_v28 = vmul.f32 %v23195_v13, %v18533_v32  ;;  %v23201_v32 = vrot.slane %v18652_v50, 1  ;;  %12849 = vmatprep.subr.bf16.mxu1 %v13458_v27  ;;  %v23203_v13 = vld [vmem:[#allocation19_spill] sm:$0xff]  ;;  %12727 = vmatprep.mubr.bf16.mxu0 %v7096_v63  ;;  %v19208_v59 = vmul.f32 %v23205_v57, %v18818_v42  ;;  %v23207_v0 = vld [vmem:[#allocation26_spill] sm:$0xff]  ;;  %v23211_v46 = vrot.slane %v18669_v2, 1  ;;  %v19227_v42 = vld [vmem:[%s21046_s14 + $0x1b8] sm:$0xff]   ;;  %23220 = vst [vmem:[#allocation112_spill] sm:$0xff] %v19247_v21 }
 0x668   : > { %23194 = vst [vmem:[#allocation98_spill] sm:$0xff] %v19171_v44  ;;  %v19204_v4 = vmul.f32 %v23203_v13, %v18853_v45  ;;  %12804 = vmatpush3.bf16.msra.mxu0 %v13454_v33  ;;  %v19212_v37 = vmul.f32 %v23207_v0, %v18999_v62  ;;  %v23213_v33 = vld [vmem:[#allocation16_spill] sm:$0xff]  ;;  %v23215_v57 = vld [vmem:[#allocation105_spill] sm:$0xff]  ;;  %v19251_v31 = vmul.f32 %v23221_v56, %v18893_v9 }
 0x669   : > { %23196 = vst [vmem:[#allocation184_spill] sm:$0xff] %v19175_v28  ;;  %v19195_v8 = vsel %vm23202_vm7, %v7017_v18, %v23201_v32  ;;  %23206 = vst [vmem:[#allocation103_spill] sm:$0xff] %v19208_v59  ;;  %v23209_v32 = vld [vmem:[#allocation93_spill] sm:$0xff]  ;;  %v19222_v44 = vsel %vm23212_vm9, %v23211_v46, %v7017_v18  ;;  %12805 = vmatprep.subr.bf16.mxu0 %v13457_v12  ;;  %v19231_v63 = vmul.f32 %v23213_v33, %v18870_v41  ;;  %v23217_v28 = vld [vmem:[#allocation42_spill] sm:$0xff] }
 0x66a   : > { %23204 = vst [vmem:[#allocation88_spill] sm:$0xff] %v19204_v4  ;;  %23208 = vst [vmem:[#allocation104_spill] sm:$0xff] %v19212_v37  ;;  %v19216_v29 = vmul.f32 %v23209_v32, %v18993_v22  ;;  %v19235_v32 = vmul.f32 %v23215_v57, %v18829_v38  ;;  %v19239_v10 = vmul.f32 %v23217_v28, %v19026_v49  ;;  %12850 = vmatpush3.bf16.msra.mxu1 %v13458_v27  ;;  %v13461_v38 = vld [vmem:[%s21046_s14 + $0x140] sm:$0xff]   ;;  %v23227_v37 = vld [vmem:[#allocation175_spill] sm:$0xff] }
 0x66b   : > { %23214 = vst [vmem:[#allocation110_spill] sm:$0xff] %v19231_v63  ;;  %23222 = vst [vmem:[#allocation115_spill] sm:$0xff] %v19251_v31  ;;  %12851 = vmatprep.subr.bf16.mxu1 %v13459_v58  ;;  %v23223_v57 = vld [vmem:[#allocation94_spill] sm:$0xff]  ;;  %v23229_v59 = vld [vmem:[#allocation49_spill] sm:$0xff] }
 0x66c   : > { %23210 = vst [vmem:[#allocation126_spill] sm:$0xff] %v19216_v29  ;;  %23216 = vst [vmem:[#allocation108_spill] sm:$0xff] %v19235_v32  ;;  %v19260_v18 = vmul.f32 %v23223_v57, %v18842_v16  ;;  %v23225_v46 = vld [vmem:[#allocation150_spill] sm:$0xff]  ;;  %v19268_v29 = vmul.f32 %v23227_v37, %v19070_v23  ;;  %12806 = vmatpush3.bf16.msra.mxu0 %v13457_v12  ;;  %v19274_v56 = vmul.f32 %v23229_v59, %v18917_v61  ;;  %v23233_v57 = vld [vmem:[#allocation155_spill] sm:$0xff] }
 0x66d   : > { %23218 = vst [vmem:[#allocation114_spill] sm:$0xff] %v19239_v10  ;;  %v19264_v6 = vmul.f32 %v23225_v46, %v19076_v51  ;;  %v23231_v27 = vld [vmem:[#allocation102_spill] sm:$0xff]  ;;  %v19282_v63 = vmul.f32 %v23233_v57, %v19189_v25  ;;  %12772 = vmatmul.mubr.bf16.gmra.mxu1 %v7401_v20  ;;  %12887 = vmatprep.subr.bf16.mxu0 %v19227_v42  ;;  %v23235_v4 = vld [vmem:[#allocation107_spill] sm:$0xff]  ;;  %v23239_v21 = vld [vmem:[#allocation116_spill] sm:$0xff] }
 0x66e   : > { %23224 = vst [vmem:[#allocation117_spill] sm:$0xff] %v19260_v18  ;;  %23228 = vst [vmem:[#allocation120_spill] sm:$0xff] %v19268_v29  ;;  %v19278_v16 = vmul.f32 %v23231_v27, %v18859_v53  ;;  %v19291_v10 = vmul.f32 %v23235_v4, %v19183_v40  ;;  %12775 = vmatprep.mubr.bf16.mxu1 %v7402_v36  ;;  %12852 = vmatpush3.bf16.msra.mxu1 %v13459_v58  ;;  %v23237_v27 = vld [vmem:[#allocation52_spill] sm:$0xff]  ;;  %v19306_v4 = vld [vmem:[%s21046_s14 + $0x1f8] sm:$0xff]  }
 0x66f   : > { %23226 = vst [vmem:[#allocation125_spill] sm:$0xff] %v19264_v6  ;;  %23230 = vst [vmem:[#allocation165_spill] sm:$0xff] %v19274_v56  ;;  %v19297_v20 = vmul.f32 %v23237_v27, %v18934_v24  ;;  %v19301_v32 = vmul.f32 %v23239_v21, %v18881_v15  ;;  %12728 = vmatmul.mubr.bf16.gmra.mxu0 %v7097_v26  ;;  %12853 = vmatprep.subr.bf16.mxu1 %v13461_v38  ;;  %v23241_v58 = vld [vmem:[#allocation64_spill] sm:$0xff]  ;;  %v23256_v18 = vld [vmem:[#allocation219_spill] sm:$0xff] }
 0x670   : > { %23232 = vst [vmem:[#allocation171_spill] sm:$0xff] %v19278_v16  ;;  %23234 = vst [vmem:[#allocation173_spill] sm:$0xff] %v19282_v63  ;;  %v19312_v53 = vmul.f32 %v23241_v58, %v19222_v44  ;;  %v23243_v37 = vld [vmem:[#allocation156_spill] sm:$0xff]  ;;  %12731 = vmatprep.mubr.bf16.mxu0 %v7098_v43  ;;  %v23247_v16 = vld [vmem:[#allocation109_spill] sm:$0xff] }
 0x671   : > { %23236 = vst [vmem:[#allocation75_spill] sm:$0xff] %v19291_v10  ;;  %23238 = vst [vmem:[#allocation177_spill] sm:$0xff] %v19297_v20  ;;  %v19316_v12 = vmul.f32 %v23243_v37, %v19195_v8  ;;  %v23245_v26 = vld [vmem:[#allocation124_spill] sm:$0xff]  ;;  %v19326_v6 = vmul.f32 %v23247_v16, %v18897_v1  ;;  %v23251_v10 = vld [vmem:[#allocation111_spill] sm:$0xff] }
 0x672   : > { %23240 = vst [vmem:[#allocation24_spill] sm:$0xff] %v19301_v32  ;;  %23242 = vst [vmem:[#allocation106_spill] sm:$0xff] %v19312_v53  ;;  %v19322_v56 = vmul.f32 %v23245_v26, %v18950_v52  ;;  %v23249_v36 = vld [vmem:[#allocation80_spill] sm:$0xff]  ;;  %v7078_v37 = vmul.f32 %v23251_v10, %v19189_v25  ;;  %v23252_v43 = vld [vmem:[#allocation89_spill] sm:$0xff]  ;;  %12854 = vmatpush3.bf16.msra.mxu1 %v13461_v38 }
 0x673   : > { %23244 = vst [vmem:[#allocation130_spill] sm:$0xff] %v19316_v12  ;;  %23248 = vst [vmem:[#allocation131_spill] sm:$0xff] %v19326_v6  ;;  %v19330_v63 = vmul.f32 %v23249_v36, %v18956_v30  ;;  %v7079_v29 = vmul.f32 %v23252_v43, %v19183_v40  ;;  %v23253_v20 = vld [vmem:[#allocation58_spill] sm:$0xff]  ;;  %v23255_v16 = vld [vmem:[#allocation95_spill] sm:$0xff]  ;;  %v7081_v36 = vmul.f32 %v23256_v18, %v18881_v15  ;;  %12935 = vmatprep.subr.bf16.mxu1 %v19306_v4 }
 0x674   : > { %23246 = vst [vmem:[#allocation17_spill] sm:$0xff] %v19322_v56  ;;  %v19340_v32 = vmul.f32 %v23253_v20, %v18903_v19  ;;  %v7382_v31 = vmul.f32 %v23255_v16, %v18715_v48  ;;  %v23257_v26 = vld [vmem:[#allocation229_spill] sm:$0xff]  ;;  %v23259_v18 = vld [vmem:[#allocation224_spill] sm:$0xff] }
 0x675   : > { %23250 = vst [vmem:[#allocation144_spill] sm:$0xff] %v19330_v63  ;;  %v7403_v43 = vpack.c.bf16 %v23257_v26, %v19162_v55  ;;  %v23258_v53 = vld [vmem:[#allocation113_spill] sm:$0xff]  ;;  %v7099_v16 = vpack.c.bf16 %v7079_v29, %v7078_v37  ;;  %v7384_v38 = vmul.f32 %v23259_v18, %v18719_v35  ;;  %v23260_v55 = vld [vmem:[#allocation119_spill] sm:$0xff]  ;;  %v23264_v37 = vld [vmem:[#allocation118_spill] sm:$0xff] }
 0x676   : > { %23254 = vst [vmem:[#allocation29_spill] sm:$0xff] %v19340_v32  ;;  %v7404_v20 = vpack.c.bf16 %v18698_v60, %v7382_v31  ;;  %v7080_v48 = vmul.f32 %v23258_v53, %v18934_v24  ;;  %v7082_v10 = vmul.f32 %v23260_v55, %v19222_v44  ;;  %v23261_v56 = vld [vmem:[#allocation225_spill] sm:$0xff]  ;;  %v23262_v60 = vld [vmem:[#allocation43_spill] sm:$0xff]  ;;  %v23263_v53 = vld [vmem:[#allocation228_spill] sm:$0xff]  ;;  %v7084_v35 = vmul.f32 %v23264_v37, %v18950_v52 }
 0x677   : > { %12776 = vmatmul.mubr.bf16.gmra.mxu1 %v7403_v43  ;;  %12732 = vmatmul.mubr.bf16.gmra.mxu0 %v7099_v16  ;;  %v7083_v21 = vmul.f32 %v23261_v56, %v19195_v8  ;;  %v7386_v31 = vmul.f32 %v23262_v60, %v18754_v34  ;;  %v7085_v43 = vmul.f32 %v23263_v53, %v18897_v1  ;;  %v23265_v16 = vld [vmem:[#allocation55_spill] sm:$0xff]  ;;  %v23266_v56 = vld [vmem:[#allocation232_spill] sm:$0xff]  ;;  %v23268_v1 = vld [vmem:[#allocation233_spill] sm:$0xff] }
 0x678   : > { %12779 = vmatprep.mubr.bf16.mxu1 %v7404_v20  ;;  %v7100_v15 = vpack.c.bf16 %v7081_v36, %v7080_v48  ;;  %v7405_v29 = vpack.c.bf16 %v18728_v3, %v7384_v38  ;;  %v23267_v34 = vld [vmem:[#allocation23_spill] sm:$0xff]  ;;  %v7087_v3 = vmul.f32 %v23268_v1, %v18903_v19  ;;  %v23270_v55 = vld [vmem:[#allocation53_spill] sm:$0xff]  ;;  %v23275_v37 = vld [vmem:[#allocation234_spill] sm:$0xff] }
 0x679   : > { %v7406_v36 = vpack.c.bf16 %v18742_v14, %v7386_v31  ;;  %v7101_v20 = vpack.c.bf16 %v7083_v21, %v7082_v10  ;;  %v7102_v48 = vpack.c.bf16 %v7085_v43, %v7084_v35  ;;  %v7086_v18 = vmul.f32 %v23267_v34, %v18956_v30  ;;  %v23269_v14 = vld [vmem:[#allocation85_spill] sm:$0xff]  ;;  %v23273_v43 = vld [vmem:[#allocation123_spill] sm:$0xff]  ;;  %v23280_v34 = vld [vmem:[#allocation170_spill] sm:$0xff] }
 0x67a   : > { %12735 = vmatprep.mubr.bf16.mxu0 %v7100_v15  ;;  %v7388_v15 = vmul.f32 %v23266_v56, %v23265_v16  ;;  %v7390_v38 = vmul.f32 %v23269_v14, %v18812_v5  ;;  %v23271_v31 = vld [vmem:[#allocation193_spill] sm:$0xff]  ;;  %v23277_v19 = vld [vmem:[#allocation235_spill] sm:$0xff]  ;;  %v23281_v1 = vld [vmem:[#allocation222_spill] sm:$0xff] }
 0x67b   : > { %v7103_v10 = vpack.c.bf16 %v7087_v3, %v7086_v18  ;;  %v23272_v53 = vld [vmem:[#allocation41_spill] sm:$0xff]  ;;  %v23278_v16 = vld [vmem:[#allocation31_spill] sm:$0xff]  ;;  %v7669_v14 = vpack.c.bf16 %v23281_v1, %v23280_v34  ;;  %v13462_v18 = vld [vmem:[%s21046_s14 + $0x1b0] sm:$0xff]  }
 0x67c   : > { %v7407_v60 = vpack.c.bf16 %v23270_v55, %v7388_v15  ;;  %v7408_v21 = vpack.c.bf16 %v23271_v31, %v7390_v38  ;;  %v23279_v56 = vld [vmem:[#allocation83_spill] sm:$0xff]  ;;  %v23283_v38 = vld [vmem:[#allocation221_spill] sm:$0xff]  ;;  %v23326_v63 = vld [vmem:[#allocation188_spill] sm:$0xff] }
 0x67d   : > { %v23282_v3 = vld [vmem:[#allocation231_spill] sm:$0xff] }
 0x67e   : > { %v7670_v55 = vpack.c.bf16 %v23283_v38, %v23282_v3  ;;  %v23285_v31 = vld [vmem:[#allocation139_spill] sm:$0xff] }
 0x67f   : > { %12780 = vmatmul.mubr.bf16.gmra.mxu1 %v7405_v29  ;;  %12736 = vmatmul.mubr.bf16.gmra.mxu0 %v7101_v20  ;;  %v7668_v29 = vpack.c.bf16 %v23273_v43, %v23272_v53  ;;  %v23276_v20 = vld [vmem:[#allocation122_spill] sm:$0xff]  ;;  %v23332_v32 = vld [vmem:[#allocation67_spill] sm:$0xff] }
 0x680   : > { %12783 = vmatprep.mubr.bf16.mxu1 %v7406_v36  ;;  %12739 = vmatprep.mubr.bf16.mxu0 %v7102_v48  ;;  %v23274_v36 = vld [vmem:[#allocation202_spill] sm:$0xff]  ;;  %v7943_v48 = vmul.f32 %v23277_v19, %v23276_v20  ;;  %v23287_v19 = vld [vmem:[#allocation87_spill] sm:$0xff] }
 0x681   : > { %v7392_v35 = vmul.f32 %v23275_v37, %v23274_v36  ;;  %v23286_v37 = vld [vmem:[#allocation205_spill] sm:$0xff] }
 0x682   : > { %v7974_v15 = vpack.c.bf16 %v7943_v48, %v23279_v56  ;;  %v23288_v48 = vpack.c.bf16 %v23287_v19, %v18567_v39  ;;  %v13469_v39 = vld [vmem:[%s21046_s14 + $0x1e8] sm:$0xff]   ;;  %v23294_v19 = vld [vmem:[#allocation96_spill] sm:$0xff] }
 0x683   : > { %v7409_v5 = vpack.c.bf16 %v23278_v16, %v7392_v35 }
 0x687   : > { %12784 = vmatmul.mubr.bf16.gmra.mxu1 %v7407_v60  ;;  %12740 = vmatmul.mubr.bf16.gmra.mxu0 %v7103_v10  ;;  %v23284_v60 = vld [vmem:[#allocation212_spill] sm:$0xff]  ;;  %v13463_v10 = vld [vmem:[%s21046_s14 + $0x1a8] sm:$0xff]  }
 0x688   : > { %12787 = vmatprep.mubr.bf16.mxu1 %v7408_v21  ;;  %12807 = vmatprep.mubr.bf16.mxu0 %v7668_v29  ;;  %v7947_v21 = vmul.f32 %v23285_v31, %v23284_v60  ;;  %v13468_v29 = vld [vmem:[%s21046_s14 + $0x1f0] sm:$0xff]   ;;  %v23292_v60 = vld [vmem:[#allocation191_spill] sm:$0xff] }
 0x68a   : > { %v7976_v35 = vpack.c.bf16 %v7947_v21, %v23286_v37  ;;  %v13465_v37 = vld [vmem:[%s21046_s14 + $0x198] sm:$0xff]  }
 0x68f   : > { %12788 = vmatmul.mubr.bf16.gmra.mxu1 %v7409_v5  ;;  %12808 = vmatmul.mubr.bf16.vlgmr.msra.gmra.mxu0 %v7669_v14  ;;  %v23290_v5 = vld [vmem:[#allocation38_spill] sm:$0xff] }
 0x690   : > { %12855 = vmatprep.mubr.bf16.mxu1 %v7974_v15  ;;  %12811 = vmatprep.mubr.bf16.mxu0 %v7670_v55  ;;  %v13464_v14 = vld [vmem:[%s21046_s14 + $0x1a0] sm:$0xff]   ;;  %v23291_v55 = vld [vmem:[#allocation183_spill] sm:$0xff] }
 0x691   : > { %12888 = vmatpush3.bf16.msra.mxu0 %v19227_v42  ;;  %v23289_v42 = vld [vmem:[#allocation62_spill] sm:$0xff]  ;;  %v7672_v31 = vpack.c.bf16 %v23292_v60, %v23291_v55 }
 0x692   : > { %12889 = vmatprep.subr.bf16.mxu0 %v13462_v18  ;;  %v7671_v15 = vpack.c.bf16 %v23290_v5, %v23289_v42 }
 0x695   : > { %12890 = vmatpush3.bf16.msra.mxu0 %v13462_v18  ;;  %v23293_v18 = vld [vmem:[#allocation121_spill] sm:$0xff] }
 0x696   : > { %12891 = vmatprep.subr.bf16.mxu0 %v13463_v10  ;;  %v7951_v21 = vmul.f32 %v23293_v18, %v18993_v22  ;;  %v23296_v22 = vld [vmem:[#allocation159_spill] sm:$0xff] }
 0x697   : > { %12856 = vmatmul.mubr.bf16.vlgmr.msra.gmra.mxu1 %v23288_v48  ;;  %12812 = vmatmul.mubr.bf16.gmra.mxu0 %v7671_v15  ;;  %v23295_v48 = vpack.c.bf16 %v23294_v19, %v18853_v45  ;;  %v23299_v18 = vld [vmem:[#allocation199_spill] sm:$0xff]  ;;  %v13472_v45 = vld [vmem:[%s21046_s14 + $0x1d8] sm:$0xff]   ;;  %v23301_v19 = vld [vmem:[#allocation134_spill] sm:$0xff] }
 0x698   : > { %12859 = vmatprep.mubr.bf16.mxu1 %v7976_v35  ;;  %12936 = vmatpush3.bf16.msra.mxu1 %v19306_v4  ;;  %v13471_v4 = vld [vmem:[%s21046_s14 + $0x1e0] sm:$0xff]   ;;  %v7978_v35 = vpack.c.bf16 %v7951_v21, %v18999_v62  ;;  %v23300_v62 = vld [vmem:[#allocation135_spill] sm:$0xff] }
 0x699   : > { %12937 = vmatprep.subr.bf16.mxu1 %v13468_v29  ;;  %12815 = vmatprep.mubr.bf16.mxu0 %v7672_v31  ;;  %v23298_v31 = vld [vmem:[#allocation22_spill] sm:$0xff]  ;;  %v13470_v21 = vld [vmem:[%s21046_s14 + $0x188] sm:$0xff]  }
 0x69a   : > { %12892 = vmatpush3.bf16.msra.mxu0 %v13463_v10  ;;  %v23297_v10 = vld [vmem:[#allocation160_spill] sm:$0xff]  ;;  %v7674_v20 = vpack.c.bf16 %v23299_v18, %v23298_v31 }
 0x69b   : > { %12893 = vmatprep.subr.bf16.mxu0 %v13464_v14  ;;  %v7673_v15 = vpack.c.bf16 %v23297_v10, %v23296_v22 }
 0x69c   : > { %12938 = vmatpush3.bf16.msra.mxu1 %v13468_v29  ;;  %v13467_v29 = vld [vmem:[%s21046_s14 + $0x190] sm:$0xff]  }
 0x69d   : > { %12939 = vmatprep.subr.bf16.mxu1 %v13469_v39 }
 0x69e   : > { %12894 = vmatpush3.bf16.msra.mxu0 %v13464_v14  ;;  %v7955_v14 = vmul.f32 %v23300_v62, %v19060_v17  ;;  %v23303_v17 = vld [vmem:[#allocation136_spill] sm:$0xff]  ;;  %v23306_v62 = vld [vmem:[#allocation215_spill] sm:$0xff] }
 0x69f   : > { %12860 = vmatmul.mubr.bf16.gmra.mxu1 %v23295_v48  ;;  %12895 = vmatprep.subr.bf16.mxu0 %v13465_v37 }
 0x6a0   : > { %12863 = vmatprep.mubr.bf16.mxu1 %v7978_v35  ;;  %12940 = vmatpush3.bf16.msra.mxu1 %v13469_v39  ;;  %v13474_v39 = vld [vmem:[%s21046_s14 + $0x1d0] sm:$0xff]   ;;  %v7980_v35 = vpack.c.bf16 %v7955_v14, %v19026_v49  ;;  %v23307_v49 = vld [vmem:[#allocation137_spill] sm:$0xff] }
 0x6a1   : > { %12816 = vmatmul.mubr.bf16.gmra.mxu0 %v7673_v15  ;;  %12941 = vmatprep.subr.bf16.mxu1 %v13471_v4  ;;  %v23305_v15 = vld [vmem:[#allocation201_spill] sm:$0xff] }
 0x6a2   : > { %12819 = vmatprep.mubr.bf16.mxu0 %v7674_v20  ;;  %12896 = vmatpush3.bf16.msra.mxu0 %v13465_v37  ;;  %v23302_v20 = vpack.c.bf16 %v23301_v19, %v18870_v41  ;;  %v23304_v37 = vld [vmem:[#allocation189_spill] sm:$0xff]  ;;  %v7676_v56 = vpack.c.bf16 %v23306_v62, %v23305_v15  ;;  %v13475_v41 = vld [vmem:[%s21046_s14 + $0x1c8] sm:$0xff]   ;;  %v23308_v19 = vld [vmem:[#allocation172_spill] sm:$0xff] }
 0x6a3   : > { %12897 = vmatprep.subr.bf16.mxu0 %v13467_v29  ;;  %v7675_v48 = vpack.c.bf16 %v23304_v37, %v23303_v17  ;;  %v13476_v14 = vld [vmem:[%s21046_s14 + $0x238] sm:$0xff]  }
 0x6a4   : > { %12942 = vmatpush3.bf16.msra.mxu1 %v13471_v4  ;;  %v13473_v4 = vld [vmem:[%s21046_s14 + $0x180] sm:$0xff]  }
 0x6a5   : > { %12943 = vmatprep.subr.bf16.mxu1 %v13472_v45 }
 0x6a6   : > { %12898 = vmatpush3.bf16.msra.mxu0 %v13467_v29  ;;  %v7959_v29 = vmul.f32 %v23307_v49, %v19070_v23  ;;  %v23310_v23 = vld [vmem:[#allocation204_spill] sm:$0xff]  ;;  %v23313_v49 = vld [vmem:[#allocation141_spill] sm:$0xff] }
 0x6a7   : > { %12864 = vmatmul.mubr.bf16.gmra.mxu1 %v23302_v20  ;;  %12899 = vmatprep.subr.bf16.mxu0 %v13470_v21 }
 0x6a8   : > { %12867 = vmatprep.mubr.bf16.mxu1 %v7980_v35  ;;  %12944 = vmatpush3.bf16.msra.mxu1 %v13472_v45  ;;  %v13477_v45 = vld [vmem:[%s21046_s14 + $0x1c0] sm:$0xff]   ;;  %v7982_v35 = vpack.c.bf16 %v7959_v29, %v19076_v51  ;;  %v7963_v51 = vmul.f32 %v23313_v49, %v19183_v40 }
 0x6a9   : > { %12820 = vmatmul.mubr.bf16.gmra.mxu0 %v7675_v48  ;;  %12945 = vmatprep.subr.bf16.mxu1 %v13474_v39  ;;  %v23312_v48 = vld [vmem:[#allocation223_spill] sm:$0xff] }
 0x6aa   : > { %12823 = vmatprep.mubr.bf16.mxu0 %v7676_v56  ;;  %12900 = vmatpush3.bf16.msra.mxu0 %v13470_v21  ;;  %v23309_v56 = vpack.c.bf16 %v23308_v19, %v18893_v9  ;;  %v23311_v21 = vld [vmem:[#allocation63_spill] sm:$0xff]  ;;  %v23314_v9 = vld [vmem:[#allocation209_spill] sm:$0xff] }
 0x6ab   : > { %12901 = vmatprep.subr.bf16.mxu0 %v13473_v4  ;;  %v7677_v20 = vpack.c.bf16 %v23311_v21, %v23310_v23  ;;  %v23315_v29 = vpack.c.bf16 %v23314_v9, %v18917_v61  ;;  %v23316_v19 = vld [vmem:[#allocation213_spill] sm:$0xff] }
 0x6ac   : > { %12946 = vmatpush3.bf16.msra.mxu1 %v13474_v39  ;;  %v7678_v39 = vpack.c.bf16 %v23312_v48, %v18413_v7  ;;  %v23321_v61 = vld [vmem:[#allocation33_spill] sm:$0xff] }
 0x6ad   : > { %12947 = vmatprep.subr.bf16.mxu1 %v13475_v41  ;;  %v7681_v49 = vpack.c.bf16 %v23321_v61, %v18652_v50 }
 0x6ae   : > { %12902 = vmatpush3.bf16.msra.mxu0 %v13473_v4  ;;  %v7984_v4 = vpack.c.bf16 %v7963_v51, %v19189_v25  ;;  %v23322_v51 = vld [vmem:[#allocation37_spill] sm:$0xff] }
 0x6af   : > { %12868 = vmatmul.mubr.bf16.gmra.mxu1 %v23309_v56  ;;  %12983 = vmatprep.subr.bf16.mxu0 %v13476_v14  ;;  %v23317_v56 = vld [vmem:[#allocation32_spill] sm:$0xff] }
 0x6b0   : > { %12871 = vmatprep.mubr.bf16.mxu1 %v7982_v35  ;;  %12948 = vmatpush3.bf16.msra.mxu1 %v13475_v41  ;;  %v7679_v35 = vpack.c.bf16 %v23316_v19, %v18393_v11  ;;  %v7680_v41 = vpack.c.bf16 %v23317_v56, %v18669_v2 }
 0x6b1   : > { %12824 = vmatmul.mubr.bf16.gmra.mxu0 %v7677_v20  ;;  %12949 = vmatprep.subr.bf16.mxu1 %v13477_v45  ;;  %v23318_v20 = vld [vmem:[#allocation151_spill] sm:$0xff] }
 0x6b2   : > { %12827 = vmatprep.mubr.bf16.mxu0 %v7678_v39  ;;  %v7967_v39 = vmul.f32 %v23318_v20, %v19195_v8  ;;  %v23327_v8 = vld [vmem:[#allocation158_spill] sm:$0xff] }
 0x6b3   : > { %v8249_v20 = vmul.f32 %v23327_v8, %v23326_v63  ;;  %v8555_v63 = vmul.f32 %v23327_v8, %v23281_v1  ;;  %v23341_v1 = vld [vmem:[#allocation181_spill] sm:$0xff] }
 0x6b4   : > { %12950 = vmatpush3.bf16.msra.mxu1 %v13477_v45  ;;  %v7986_v40 = vpack.c.bf16 %v7967_v39, %v19222_v44  ;;  %v23319_v45 = vld [vmem:[#allocation178_spill] sm:$0xff]  ;;  %v23328_v44 = vld [vmem:[#allocation59_spill] sm:$0xff]  ;;  %v8557_v8 = vmul.f32 %v23341_v1, %v23283_v38 }
 0x6b5   : > { %v23320_v25 = vpack.c.bf16 %v23319_v45, %v18934_v24  ;;  %v23329_v39 = vpack.c.bf16 %v23328_v44, %v18950_v52  ;;  %v23330_v24 = vld [vmem:[#allocation194_spill] sm:$0xff]  ;;  %v23331_v45 = vld [vmem:[#allocation196_spill] sm:$0xff]  ;;  %v8554_v52 = vmul.f32 %v23193_v47, %v23280_v34  ;;  %v13479_v38 = vld [vmem:[%s21046_s14 + $0x228] sm:$0xff]  }
 0x6b6   : > { %v23342_v34 = vld [vmem:[#allocation180_spill] sm:$0xff] }
 0x6b7   : > { %12872 = vmatmul.mubr.bf16.gmra.mxu1 %v23315_v29  ;;  %v23324_v29 = vld [vmem:[#allocation129_spill] sm:$0xff]  ;;  %v8586_v43 = vpack.c.bf16 %v8555_v63, %v8554_v52  ;;  %v23346_v52 = vld [vmem:[#allocation218_spill] sm:$0xff] }
 0x6b8   : > { %12875 = vmatprep.mubr.bf16.mxu1 %v7984_v4  ;;  %v23323_v4 = vld [vmem:[#allocation50_spill] sm:$0xff] }
 0x6b9   : > { %12828 = vmatmul.mubr.bf16.gmra.mxu0 %v7679_v35  ;;  %v7682_v9 = vpack.c.bf16 %v23323_v4, %v23322_v51  ;;  %v23325_v35 = vld [vmem:[#allocation162_spill] sm:$0xff] }
 0x6ba   : > { %12831 = vmatprep.mubr.bf16.mxu0 %v7680_v41  ;;  %v8248_v41 = vmul.f32 %v23325_v35, %v23324_v29  ;;  %v23336_v29 = vld [vmem:[#allocation186_spill] sm:$0xff] }
 0x6bb   : > { %v23337_v35 = vld [vmem:[#allocation166_spill] sm:$0xff] }
 0x6bc   : > { %v8280_v6 = vpack.c.bf16 %v8249_v20, %v8248_v41  ;;  %v8252_v44 = vmul.f32 %v23337_v35, %v23336_v29  ;;  %v8558_v35 = vmul.f32 %v23203_v13, %v23289_v42  ;;  %v13480_v13 = vld [vmem:[%s21046_s14 + $0x220] sm:$0xff]  }
 0x6bf   : > { %12876 = vmatmul.mubr.bf16.gmra.mxu1 %v23320_v25  ;;  %v7683_v25 = vpack.c.bf16 %v23331_v45, %v23330_v24 }
 0x6c0   : > { %12879 = vmatprep.mubr.bf16.mxu1 %v7986_v40  ;;  %v23333_v40 = vpack.c.bf16 %v23332_v32, %v18956_v30  ;;  %v23339_v30 = vld [vmem:[#allocation197_spill] sm:$0xff]  ;;  %v23340_v32 = vld [vmem:[#allocation176_spill] sm:$0xff] }
 0x6c1   : > { %12832 = vmatmul.mubr.bf16.gmra.mxu0 %v7681_v49  ;;  %v23334_v49 = vld [vmem:[#allocation56_spill] sm:$0xff]  ;;  %v8253_v41 = vmul.f32 %v23340_v32, %v23339_v30 }
 0x6c2   : > { %12835 = vmatprep.mubr.bf16.mxu0 %v7682_v9  ;;  %v23335_v9 = vld [vmem:[#allocation161_spill] sm:$0xff] }
 0x6c3   : > { %v7973_v12 = vmul.f32 %v23335_v9, %v23334_v49  ;;  %v8282_v20 = vpack.c.bf16 %v8253_v41, %v8252_v44  ;;  %v23348_v44 = vld [vmem:[#allocation210_spill] sm:$0xff] }
 0x6c7   : > { %12880 = vmatmul.mubr.bf16.gmra.mxu1 %v23329_v39  ;;  %v23338_v39 = vld [vmem:[#allocation79_spill] sm:$0xff] }
 0x6c8   : > { %12883 = vmatprep.mubr.bf16.mxu1 %v23333_v40  ;;  %v7989_v53 = vpack.c.bf16 %v7973_v12, %v23338_v39  ;;  %v8559_v12 = vmul.f32 %v23340_v32, %v23290_v5  ;;  %v23350_v32 = vld [vmem:[#allocation149_spill] sm:$0xff] }
 0x6c9   : > { %12836 = vmatmul.mubr.bf16.gmra.mxu0 %v7683_v25  ;;  %v23343_v25 = vld [vmem:[#allocation92_spill] sm:$0xff] }
 0x6ca   : > { %12903 = vmatprep.mubr.bf16.mxu0 %v8280_v6  ;;  %v13478_v6 = vld [vmem:[%s21046_s14 + $0x230] sm:$0xff]   ;;  %v23344_v40 = vpack.c.bf16 %v23342_v34, %v23343_v25  ;;  %v8588_v1 = vpack.c.bf16 %v8559_v12, %v8558_v35  ;;  %v23352_v34 = vld [vmem:[#allocation207_spill] sm:$0xff]  ;;  %v23353_v25 = vld [vmem:[#allocation133_spill] sm:$0xff] }
 0x6cb   : > { %v12617_v47 = vpop.f32.mrf.mxu0 }
 0x6cd   : > { %v6656_v63 = vpop.f32.mrf.mxu0 }
 0x6cf   : > { %12884 = vmatmul.mubr.bf16.gmra.mxu1 %v7989_v53  ;;  %v23345_v53 = vld [vmem:[#allocation36_spill] sm:$0xff]  ;;  %v12618_v5 = vpop.f32.mrf.mxu0 }
 0x6d0   : > { %12951 = vmatprep.mubr.bf16.mxu1 %v8586_v43  ;;  %v8556_v9 = vmul.f32 %v23345_v53, %v23282_v3  ;;  %v23347_v43 = vld [vmem:[#allocation21_spill] sm:$0xff]  ;;  %v12665_v53 = vpop.f32.mrf.mxu1 }
 0x6d1   : > { %12904 = vmatmul.mubr.bf16.vlgmr.msra.gmra.mxu0 %v23344_v40  ;;  %v8255_v29 = vmul.f32 %v23347_v43, %v23346_v52  ;;  %v8257_v40 = vmul.f32 %v23353_v25, %v23352_v34  ;;  %v6659_v52 = vpop.f32.mrf.mxu0  ;;  %v19550_v42 = vadd.f32 %v12665_v53, %v12617_v47  ;;  %v8561_v12 = vmul.f32 %v23347_v43, %v23292_v60  ;;  %v13481_v60 = vld [vmem:[%s21046_s14 + $0x218] sm:$0xff]   ;;  %v23356_v43 = vld [vmem:[#allocation142_spill] sm:$0xff] }
 0x6d2   : > { %12907 = vmatprep.mubr.bf16.mxu0 %v8282_v20  ;;  %12984 = vmatpush3.bf16.msra.mxu0 %v13476_v14  ;;  %v23349_v14 = vld [vmem:[#allocation28_spill] sm:$0xff]  ;;  %v8587_v41 = vpack.c.bf16 %v8557_v8, %v8556_v9  ;;  %v6865_v9 = vpop.f32.mrf.mxu1  ;;  %v8560_v47 = vmul.f32 %v23207_v0, %v23291_v55  ;;  %v23357_v0 = vld [vmem:[#allocation227_spill] sm:$0xff] }
 0x6d3   : > { %12985 = vmatprep.subr.bf16.mxu0 %v13478_v6  ;;  %v8256_v30 = vmul.f32 %v23349_v14, %v23348_v44  ;;  %v23351_v20 = vld [vmem:[#allocation132_spill] sm:$0xff]  ;;  %v23358_v55 = vld [vmem:[#allocation27_spill] sm:$0xff] }
 0x6d4   : > { %v8254_v3 = vmul.f32 %v23351_v20, %v23350_v32  ;;  %v12621_v44 = vpop.f32.mrf.mxu0  ;;  %v12666_v35 = vpop.f32.mrf.mxu1 }
 0x6d5   : > { %v8284_v8 = vpack.c.bf16 %v8257_v40, %v8256_v30  ;;  %v23354_v30 = vld [vmem:[#allocation145_spill] sm:$0xff] }
 0x6d6   : > { %12986 = vmatpush3.bf16.msra.mxu0 %v13478_v6  ;;  %v8283_v49 = vpack.c.bf16 %v8255_v29, %v8254_v3  ;;  %v19554_v6 = vadd.f32 %v6865_v9, %v6656_v63  ;;  %v8563_v29 = vmul.f32 %v23353_v25, %v23297_v10  ;;  %v6672_v14 = vpop.f32.mrf.mxu0  ;;  %v8562_v63 = vmul.f32 %v23213_v33, %v23296_v22  ;;  %v23355_v10 = vld [vmem:[#allocation198_spill] sm:$0xff]  ;;  %v6868_v32 = vpop.f32.mrf.mxu1  ;;  %v23359_v25 = vld [vmem:[#allocation57_spill] sm:$0xff]  ;;  %v13482_v22 = vld [vmem:[%s21046_s14 + $0x210] sm:$0xff]  }
 0x6d7   : > { %12952 = vmatmul.mubr.bf16.vlgmr.msra.gmra.mxu1 %v8587_v41  ;;  %12987 = vmatprep.subr.bf16.mxu0 %v13479_v38  ;;  %v8259_v41 = vmul.f32 %v23354_v30, %v23187_v54  ;;  %v8589_v3 = vpack.c.bf16 %v8561_v12, %v8560_v47  ;;  %v19573_v54 = vadd.f32 %v6868_v32, %v6659_v52  ;;  %v23360_v40 = vld [vmem:[#allocation45_spill] sm:$0xff] }
 0x6d8   : > { %12955 = vmatprep.mubr.bf16.mxu1 %v8588_v1  ;;  %v12622_v20 = vpop.f32.mrf.mxu0  ;;  %v8258_v1 = vmul.f32 %v23358_v55, %v23357_v0  ;;  %v8590_v34 = vpack.c.bf16 %v8563_v29, %v8562_v63  ;;  %v8261_v53 = vmul.f32 %v23360_v40, %v23359_v25  ;;  %v8565_v29 = vmul.f32 %v23354_v30, %v23299_v18  ;;  %v13483_v18 = vld [vmem:[%s21046_s14 + $0x208] sm:$0xff]   ;;  %v23363_v30 = vld [vmem:[#allocation185_spill] sm:$0xff] }
 0x6d9   : > { %12908 = vmatmul.mubr.bf16.gmra.mxu0 %v8283_v49  ;;  %v19565_v49 = vadd.f32 %v12666_v35, %v12618_v5  ;;  %v12669_v5 = vpop.f32.mrf.mxu1  ;;  %v8567_v47 = vmul.f32 %v23360_v40, %v23304_v37  ;;  %v8566_v32 = vmul.f32 %v23363_v30, %v23303_v17  ;;  %v23364_v37 = vld [vmem:[#allocation226_spill] sm:$0xff]  ;;  %v8570_v30 = vmul.f32 %v23229_v59, %v23310_v23  ;;  %v23372_v59 = vld [vmem:[#allocation153_spill] sm:$0xff] }
 0x6da   : > { %12911 = vmatprep.mubr.bf16.mxu0 %v8284_v8  ;;  %12988 = vmatpush3.bf16.msra.mxu0 %v13479_v38  ;;  %v8260_v38 = vmul.f32 %v23356_v43, %v23355_v10  ;;  %v6675_v8 = vpop.f32.mrf.mxu0  ;;  %v8285_v33 = vpack.c.bf16 %v8259_v41, %v8258_v1  ;;  %v19580_v9 = vadd.f32 %v12669_v5, %v12621_v44  ;;  %v23361_v10 = vld [vmem:[#allocation206_spill] sm:$0xff]  ;;  %v23362_v43 = vld [vmem:[#allocation148_spill] sm:$0xff] }
 0x6db   : > { %12989 = vmatprep.subr.bf16.mxu0 %v13480_v13  ;;  %v6881_v52 = vpop.f32.mrf.mxu1  ;;  %v8564_v44 = vmul.f32 %v23217_v28, %v23298_v31  ;;  %v23366_v28 = vld [vmem:[#allocation217_spill] sm:$0xff]  ;;  %v23367_v31 = vld [vmem:[#allocation147_spill] sm:$0xff]  ;;  %v8592_v40 = vpack.c.bf16 %v8567_v47, %v8566_v32  ;;  %v8573_v23 = vmul.f32 %v23372_v59, %v23312_v48 }
 0x6dc   : > { %v8286_v12 = vpack.c.bf16 %v8261_v53, %v8260_v38  ;;  %v12625_v35 = vpop.f32.mrf.mxu0  ;;  %v8263_v38 = vmul.f32 %v23362_v43, %v23361_v10  ;;  %v23368_v53 = vld [vmem:[#allocation44_spill] sm:$0xff] }
 0x6dd   : > { %v12670_v41 = vpop.f32.mrf.mxu1  ;;  %v8591_v1 = vpack.c.bf16 %v8565_v29, %v8564_v44  ;;  %v8265_v5 = vmul.f32 %v23368_v53, %v23257_v26  ;;  %v8569_v26 = vmul.f32 %v23362_v43, %v23306_v62  ;;  %v8571_v47 = vmul.f32 %v23368_v53, %v23311_v21 }
 0x6de   : > { %12990 = vmatpush3.bf16.msra.mxu0 %v13480_v13  ;;  %v19584_v13 = vadd.f32 %v6881_v52, %v6672_v14  ;;  %v6688_v63 = vpop.f32.mrf.mxu0  ;;  %v19595_v14 = vadd.f32 %v12670_v41, %v12622_v20 }
 0x6df   : > { %12956 = vmatmul.mubr.bf16.gmra.mxu1 %v8589_v3  ;;  %12991 = vmatprep.subr.bf16.mxu0 %v13481_v60  ;;  %v6884_v0 = vpop.f32.mrf.mxu1 }
 0x6e0   : > { %12959 = vmatprep.mubr.bf16.mxu1 %v8590_v34  ;;  %v12626_v55 = vpop.f32.mrf.mxu0  ;;  %v8262_v34 = vmul.f32 %v23367_v31, %v23366_v28  ;;  %v19603_v25 = vadd.f32 %v6884_v0, %v6675_v8  ;;  %v23370_v0 = vld [vmem:[#allocation68_spill] sm:$0xff]  ;;  %v23373_v28 = vld [vmem:[#allocation230_spill] sm:$0xff]  ;;  %v23374_v31 = vld [vmem:[#allocation25_spill] sm:$0xff] }
 0x6e1   : > { %12912 = vmatmul.mubr.bf16.gmra.mxu0 %v8285_v33  ;;  %v12673_v20 = vpop.f32.mrf.mxu1 }
 0x6e2   : > { %12915 = vmatprep.mubr.bf16.mxu0 %v8286_v12  ;;  %12992 = vmatpush3.bf16.msra.mxu0 %v13481_v60  ;;  %v23365_v60 = vld [vmem:[#allocation39_spill] sm:$0xff]  ;;  %v6691_v33 = vpop.f32.mrf.mxu0  ;;  %v8287_v17 = vpack.c.bf16 %v8263_v38, %v8262_v34  ;;  %v13484_v12 = vld [vmem:[%s21046_s14 + $0x200] sm:$0xff]   ;;  %v19610_v52 = vadd.f32 %v12673_v20, %v12625_v35  ;;  %v8568_v35 = vmul.f32 %v23225_v46, %v23305_v15 }
 0x6e3   : > { %12993 = vmatprep.subr.bf16.mxu0 %v13482_v22  ;;  %v8264_v3 = vmul.f32 %v23365_v60, %v23364_v37  ;;  %v6897_v8 = vpop.f32.mrf.mxu1  ;;  %v8594_v37 = vpack.c.bf16 %v8571_v47, %v8570_v30  ;;  %v23375_v34 = vpack.c.bf16 %v23373_v28, %v23374_v31 }
 0x6e4   : > { %v12629_v41 = vpop.f32.mrf.mxu0 }
 0x6e5   : > { %v8288_v29 = vpack.c.bf16 %v8265_v5, %v8264_v3  ;;  %v12674_v44 = vpop.f32.mrf.mxu1  ;;  %v23369_v3 = vld [vmem:[#allocation179_spill] sm:$0xff] }
 0x6e6   : > { %12994 = vmatpush3.bf16.msra.mxu0 %v13482_v22  ;;  %v19614_v22 = vadd.f32 %v6897_v8, %v6688_v63  ;;  %v6704_v10 = vpop.f32.mrf.mxu0  ;;  %v19620_v38 = vadd.f32 %v12674_v44, %v12626_v55  ;;  %v8593_v63 = vpack.c.bf16 %v8569_v26, %v8568_v35  ;;  %v23371_v55 = vpack.c.bf16 %v23369_v3, %v23370_v0  ;;  %v23378_v35 = vld [vmem:[#allocation71_spill] sm:$0xff] }
 0x6e7   : > { %12960 = vmatmul.mubr.bf16.gmra.mxu1 %v8591_v1  ;;  %12995 = vmatprep.subr.bf16.mxu0 %v13483_v18  ;;  %v6900_v32 = vpop.f32.mrf.mxu1  ;;  %v8576_v3 = vmul.f32 %v23241_v58, %v18669_v2 }
 0x6e8   : > { %12963 = vmatprep.mubr.bf16.mxu1 %v8592_v40  ;;  %v12630_v62 = vpop.f32.mrf.mxu0  ;;  %v19624_v43 = vadd.f32 %v6900_v32, %v6691_v33  ;;  %v23376_v40 = vld [vmem:[#allocation154_spill] sm:$0xff]  ;;  %v8572_v33 = vmul.f32 %v23233_v57, %v18413_v7 }
 0x6e9   : > { %12916 = vmatmul.mubr.bf16.gmra.mxu0 %v8287_v17  ;;  %v8575_v53 = vmul.f32 %v23376_v40, %v23316_v19  ;;  %v23377_v57 = vld [vmem:[#allocation70_spill] sm:$0xff] }
 0x6ea   : > { %12919 = vmatprep.mubr.bf16.mxu0 %v8288_v29  ;;  %12996 = vmatpush3.bf16.msra.mxu0 %v13483_v18  ;;  %v6707_v18 = vpop.f32.mrf.mxu0  ;;  %v8595_v8 = vpack.c.bf16 %v8573_v23, %v8572_v33  ;;  %v23379_v30 = vpack.c.bf16 %v23377_v57, %v23378_v35  ;;  %v23393_v35 = vld [vmem:[#allocation190_spill] sm:$0xff] }
 0x6eb   : > { %12997 = vmatprep.subr.bf16.mxu0 %v13484_v12 }
 0x6ec   : > { %v12677_v21 = vpop.f32.mrf.mxu1  ;;  %v12633_v15 = vpop.f32.mrf.mxu0 }
 0x6ed   : > { %v19626_v60 = vadd.f32 %v12677_v21, %v12629_v41  ;;  %v23384_v21 = vld [vmem:[#allocation74_spill] sm:$0xff] }
 0x6ee   : > { %12998 = vmatpush3.bf16.msra.mxu0 %v13484_v12  ;;  %v6913_v46 = vpop.f32.mrf.mxu1  ;;  %v6720_v20 = vpop.f32.mrf.mxu0  ;;  %v8574_v12 = vmul.f32 %v23237_v27, %v18393_v11  ;;  %v23380_v11 = vld [vmem:[#allocation86_spill] sm:$0xff] }
 0x6ef   : > { %12964 = vmatmul.mubr.bf16.gmra.mxu1 %v8593_v63  ;;  %v19633_v1 = vadd.f32 %v6913_v46, %v6704_v10  ;;  %v8577_v27 = vmul.f32 %v23380_v11, %v23317_v56  ;;  %v23382_v63 = vld [vmem:[#allocation76_spill] sm:$0xff] }
 0x6f0   : > { %12967 = vmatprep.mubr.bf16.mxu1 %v8594_v37  ;;  %v12678_v5 = vpop.f32.mrf.mxu1  ;;  %v12634_v29 = vpop.f32.mrf.mxu0  ;;  %v8596_v26 = vpack.c.bf16 %v8575_v53, %v8574_v12  ;;  %v23386_v56 = vld [vmem:[#allocation128_spill] sm:$0xff] }
 0x6f1   : > { %12920 = vmatmul.mubr.bf16.gmra.mxu0 %v23371_v55  ;;  %v19642_v17 = vadd.f32 %v12678_v5, %v12630_v62  ;;  %v23381_v62 = vld [vmem:[#allocation77_spill] sm:$0xff]  ;;  %v23385_v55 = vld [vmem:[#allocation124_spill] sm:$0xff]  ;;  %v8276_v23 = vmul.f32 %v23386_v56, %v23274_v36 }
 0x6f2   : > { %12923 = vmatprep.mubr.bf16.mxu0 %v23375_v34  ;;  %v6916_v48 = vpop.f32.mrf.mxu1  ;;  %v19648_v44 = vpop.f32.mrf.mxu0  ;;  %v23383_v37 = vpack.c.bf16 %v23381_v62, %v23382_v63  ;;  %v8578_v59 = vmul.f32 %v23385_v55, %v18652_v50  ;;  %v8597_v34 = vpack.c.bf16 %v8577_v27, %v8576_v3  ;;  %v23388_v12 = vld [vmem:[#allocation140_spill] sm:$0xff]  ;;  %v23389_v36 = vld [vmem:[#allocation97_spill] sm:$0xff]  ;;  %v23395_v62 = vld [vmem:[#allocation91_spill] sm:$0xff] }
 0x6f3   : > { %v19646_v41 = vadd.f32 %v6916_v48, %v6707_v18  ;;  %v8579_v18 = vmul.f32 %v23384_v21, %v23321_v61  ;;  %v23387_v61 = vld [vmem:[#allocation163_spill] sm:$0xff]  ;;  %v23390_v48 = vpack.c.bf16 %v23388_v12, %v23389_v36  ;;  %v8582_v63 = vmul.f32 %v23395_v62, %v23330_v24 }
 0x6f4   : > { %v12681_v47 = vpop.f32.mrf.mxu1  ;;  %v8277_v53 = vmul.f32 %v23387_v61, %v23278_v16  ;;  %v8583_v16 = vmul.f32 %v23387_v61, %v23331_v45  ;;  %v23398_v24 = vld [vmem:[#allocation123_spill] sm:$0xff]  ;;  %v23400_v61 = vld [vmem:[#allocation98_spill] sm:$0xff] }
 0x6f5   : > { %v19650_v19 = vadd.f32 %v12681_v47, %v12633_v15  ;;  %v12637_v7 = vpop.f32.mrf.mxu0  ;;  %v8598_v40 = vpack.c.bf16 %v8579_v18, %v8578_v59  ;;  %v23396_v18 = vld [vmem:[#allocation138_spill] sm:$0xff]  ;;  %v23403_v12 = vld [vmem:[#allocation167_spill] sm:$0xff] }
 0x6f6   : > { %v6929_v10 = vpop.f32.mrf.mxu1  ;;  %v8294_v58 = vpack.c.bf16 %v8277_v53, %v8276_v23 }
 0x6f7   : > { %12968 = vmatmul.mubr.bf16.gmra.mxu1 %v8595_v8  ;;  %v19657_v32 = vadd.f32 %v6929_v10, %v6720_v20  ;;  %v6736_v15 = vpop.f32.mrf.mxu0 }
 0x6f8   : > { %12971 = vmatprep.mubr.bf16.mxu1 %v8596_v26  ;;  %v12682_v46 = vpop.f32.mrf.mxu1 }
 0x6f9   : > { %12924 = vmatmul.mubr.bf16.gmra.mxu0 %v23379_v30  ;;  %v19666_v0 = vadd.f32 %v12682_v46, %v12634_v29  ;;  %v12638_v31 = vpop.f32.mrf.mxu0  ;;  %v23391_v29 = vld [vmem:[#allocation81_spill] sm:$0xff]  ;;  %v23394_v30 = vld [vmem:[#allocation90_spill] sm:$0xff]  ;;  %v23397_v46 = vld [vmem:[#allocation164_spill] sm:$0xff] }
 0x6fa   : > { %12927 = vmatprep.mubr.bf16.mxu0 %v23383_v37  ;;  %v19672_v28 = vpop.f32.mrf.mxu1  ;;  %v8581_v8 = vmul.f32 %v23391_v29, %v23323_v4  ;;  %v8278_v11 = vmul.f32 %v23394_v30, %v23393_v35  ;;  %v8279_v45 = vmul.f32 %v23397_v46, %v23396_v18  ;;  %v23405_v30 = vld [vmem:[#allocation220_spill] sm:$0xff]  ;;  %v23408_v18 = vld [vmem:[#allocation103_spill] sm:$0xff] }
 0x6fb   : > { %v19676_v20 = vpop.f32.mrf.mxu0 }
 0x6fc   : > { %v12685_v5 = vpop.f32.mrf.mxu1 }
 0x6fd   : > { %v19678_v2 = vadd.f32 %v12685_v5, %v12637_v7  ;;  %v12641_v33 = vpop.f32.mrf.mxu0  ;;  %v23392_v7 = vld [vmem:[#allocation80_spill] sm:$0xff] }
 0x6fe   : > { %v6945_v50 = vpop.f32.mrf.mxu1  ;;  %v8580_v57 = vmul.f32 %v23392_v7, %v23322_v51  ;;  %v8295_v51 = vpack.c.bf16 %v8279_v45, %v8278_v11  ;;  %v23404_v7 = vmov 0   ;;  %v23406_v11 = vld [vmem:[#allocation11_spill] sm:$0xff] }
 0x6ff   : > { %12972 = vmatmul.mubr.bf16.gmra.mxu1 %v8597_v34  ;;  %v19685_v26 = vadd.f32 %v6945_v50, %v6736_v15  ;;  %v6752_v10 = vpop.f32.mrf.mxu0  ;;  %v8600_v15 = vpack.c.bf16 %v8583_v16, %v8582_v63  ;;  %v23402_v50 = vld [vmem:[#allocation41_spill] sm:$0xff]  ;;  %v23407_v63 = vpack.c.bf16 %v23405_v30, %v23406_v11 }
 0x700   : > { %12975 = vmatprep.mubr.bf16.mxu1 %v8598_v40  ;;  %v12686_v47 = vpop.f32.mrf.mxu1  ;;  %v8599_v21 = vpack.c.bf16 %v8581_v8, %v8580_v57  ;;  %v23399_v40 = vld [vmem:[#allocation184_spill] sm:$0xff]  ;;  %v8584_v36 = vmul.f32 %v23403_v12, %v23402_v50  ;;  %v23411_v50 = vld [vmem:[#allocation126_spill] sm:$0xff] }
 0x701   : > { %12928 = vmatmul.mubr.bf16.gmra.mxu0 %v23390_v48  ;;  %v19693_v27 = vadd.f32 %v12686_v47, %v12638_v31  ;;  %v12642_v37 = vpop.f32.mrf.mxu0  ;;  %v8585_v31 = vmul.f32 %v23397_v46, %v23398_v24  ;;  %v23401_v53 = vpack.c.bf16 %v23399_v40, %v23400_v61  ;;  %v23409_v46 = vld [vmem:[#allocation88_spill] sm:$0xff] }
 0x702   : > { %12931 = vmatprep.mubr.bf16.mxu0 %v8294_v58  ;;  %v19697_v4 = vpop.f32.mrf.mxu1  ;;  %v23410_v45 = vpack.c.bf16 %v23408_v18, %v23409_v46 }
 0x703   : > { %v19701_v55 = vpop.f32.mrf.mxu0  ;;  %v8601_v8 = vpack.c.bf16 %v8585_v31, %v8584_v36  ;;  %v23412_v36 = vld [vmem:[#allocation104_spill] sm:$0xff] }
 0x704   : > { %v12689_v3 = vpop.f32.mrf.mxu1 }
 0x705   : > { %v19703_v59 = vadd.f32 %v12689_v3, %v12641_v33  ;;  %v12645_v23 = vpop.f32.mrf.mxu0 }
 0x706   : > { %v6961_v56 = vpop.f32.mrf.mxu1 }
 0x707   : > { %12976 = vmatmul.mubr.bf16.gmra.mxu1 %v8599_v21  ;;  %v19707_v34 = vadd.f32 %v6961_v56, %v6752_v10  ;;  %v6768_v58 = vpop.f32.mrf.mxu0 }
 0x708   : > { %12979 = vmatprep.mubr.bf16.mxu1 %v8600_v15  ;;  %v12690_v5 = vpop.f32.mrf.mxu1 }
 0x709   : > { %12932 = vmatmul.mubr.bf16.gmra.mxu0 %v8295_v51  ;;  %v19714_v33 = vadd.f32 %v12690_v5, %v12642_v37  ;;  %v12646_v29 = vpop.f32.mrf.mxu0 }
 0x70a   : > { %12999 = vmatprep.mubr.bf16.mxu0 %v23401_v53  ;;  %v19716_v48 = vpop.f32.mrf.mxu1 }
 0x70b   : > { %v19718_v47 = vpop.f32.mrf.mxu0 }
 0x70c   : > { %v12693_v16 = vpop.f32.mrf.mxu1 }
 0x70d   : > { %v19720_v10 = vadd.f32 %v12693_v16, %v12645_v23  ;;  %v12713_v35 = vpop.f32.mrf.mxu0  ;;  %v23414_v16 = vld [vmem:[#allocation108_spill] sm:$0xff] }
 0x70e   : > { %v6977_v57 = vpop.f32.mrf.mxu1  ;;  %v7332_v21 = vadd.f32 %v12713_v35, %v19550_v42 }
 0x70f   : > { %12980 = vmatmul.mubr.bf16.gmra.mxu1 %v8601_v8  ;;  %v19726_v37 = vadd.f32 %v6977_v57, %v6768_v58  ;;  %v7203_v3 = vpop.f32.mrf.mxu0  ;;  %v23415_v57 = vld [vmem:[#allocation110_spill] sm:$0xff] }
 0x710   : > { %9563 = vmatprep.mubr.bf16.mxu1 %v23404_v7  ;;  %v12694_v15 = vpop.f32.mrf.mxu1  ;;  %v7330_v56 = vadd.f32 %v7203_v3, %v19554_v6 }
 0x711   : > { %13000 = vmatmul.mubr.bf16.vlgmr.msra.gmra.mxu0 %v23407_v63  ;;  %v19732_v51 = vadd.f32 %v12694_v15, %v12646_v29  ;;  %v12714_v24 = vpop.f32.mrf.mxu0  ;;  %v23413_v29 = vpack.c.bf16 %v23411_v50, %v23412_v36  ;;  %v13485_v50 = vld [vmem:[%s21049_s17 + $0xe0] ss:$16 sps:$4 sm:$0xff]  }
 0x712   : > { %13003 = vmatprep.mubr.bf16.mxu0 %v23410_v45  ;;  %v19735_v23 = vpop.f32.mrf.mxu1  ;;  %v7333_v31 = vadd.f32 %v12714_v24, %v19565_v49  ;;  %v23416_v49 = vpack.c.bf16 %v23414_v16, %v23415_v57  ;;  %v23417_v24 = vld [vmem:[#allocation112_spill] sm:$0xff] }
 0x713   : > { %v7206_v61 = vpop.f32.mrf.mxu0 }
 0x714   : > { %v12761_v40 = vpop.f32.mrf.mxu1  ;;  %v19741_v42 = vadd.f32 %v7206_v61, %v19573_v54 }
 0x715   : > { %v19738_v53 = vadd.f32 %v12761_v40, %v7332_v21  ;;  %v23418_v40 = vld [vmem:[#allocation114_spill] sm:$0xff] }
 0x716   : > { %v7509_v5 = vpop.f32.mrf.mxu1  ;;  %v12717_v58 = vpop.f32.mrf.mxu0 }
 0x717   : > { %v19746_v8 = vadd.f32 %v7509_v5, %v7330_v56  ;;  %v7336_v6 = vadd.f32 %v12717_v58, %v19580_v9  ;;  %v23420_v5 = vld [vmem:[#allocation117_spill] sm:$0xff]  ;;  %v23421_v58 = vld [vmem:[#allocation115_spill] sm:$0xff] }
 0x718   : > { %v12762_v35 = vpop.f32.mrf.mxu1  ;;  %v7219_v30 = vpop.f32.mrf.mxu0 }
 0x719   : > { %13004 = vmatmul.mubr.bf16.gmra.mxu0 %v23413_v29  ;;  %v19752_v11 = vadd.f32 %v12762_v35, %v7333_v31  ;;  %v7334_v54 = vadd.f32 %v7219_v30, %v19584_v13  ;;  %v23419_v31 = vpack.c.bf16 %v23417_v24, %v23418_v40  ;;  %v23426_v40 = vld [vmem:[#allocation171_spill] sm:$0xff] }
 0x71a   : > { %13007 = vmatprep.mubr.bf16.mxu0 %v23416_v49  ;;  %v19755_v63 = vpop.f32.mrf.mxu1  ;;  %v12718_v21 = vpop.f32.mrf.mxu0 }
 0x71b   : > { %v7337_v18 = vadd.f32 %v12718_v21, %v19595_v14  ;;  %v23422_v14 = vpack.c.bf16 %v23420_v5, %v23421_v58 }
 0x71c   : > { %v12765_v46 = vpop.f32.mrf.mxu1  ;;  %v7222_v45 = vpop.f32.mrf.mxu0 }
 0x71d   : > { %v19758_v15 = vadd.f32 %v12765_v46, %v7336_v6  ;;  %v19761_v9 = vadd.f32 %v7222_v45, %v19603_v25  ;;  %v13487_v25 = vld [vmem:[%s21049_s17 + $0xe4] ss:$16 sps:$4 sm:$0xff]  }
 0x71e   : > { %v7525_v3 = vpop.f32.mrf.mxu1  ;;  %v12721_v56 = vpop.f32.mrf.mxu0  ;;  %9531 = vmatprep.subr.bf16.mxu1 %v13487_v25 }
 0x71f   : > { %v19766_v61 = vadd.f32 %v7525_v3, %v7334_v54  ;;  %v7340_v13 = vadd.f32 %v12721_v56, %v19610_v52  ;;  %9532 = vmatpush1.bf16.msra.mxu1 %v13485_v50  ;;  %v23424_v3 = vld [vmem:[#allocation125_spill] sm:$0xff] }
 0x720   : > { %v12766_v36 = vpop.f32.mrf.mxu1  ;;  %v7235_v29 = vpop.f32.mrf.mxu0 }
 0x721   : > { %13008 = vmatmul.mubr.bf16.gmra.mxu0 %v23419_v31  ;;  %v19778_v6 = vadd.f32 %v12766_v36, %v7337_v18  ;;  %v7338_v16 = vadd.f32 %v7235_v29, %v19614_v22  ;;  %v23423_v18 = vld [vmem:[#allocation120_spill] sm:$0xff]  ;;  %v23427_v31 = vld [vmem:[#allocation165_spill] sm:$0xff] }
 0x722   : > { %13011 = vmatprep.mubr.bf16.mxu0 %v23422_v14  ;;  %v19781_v52 = vpop.f32.mrf.mxu1  ;;  %v12722_v57 = vpop.f32.mrf.mxu0  ;;  %v23425_v56 = vpack.c.bf16 %v23423_v18, %v23424_v3 }
 0x723   : > { %v7341_v49 = vadd.f32 %v12722_v57, %v19620_v38  ;;  %v23428_v38 = vpack.c.bf16 %v23426_v40, %v23427_v31  ;;  %v23433_v40 = vld [vmem:[#allocation177_spill] sm:$0xff] }
 0x724   : > { %v12769_v35 = vpop.f32.mrf.mxu1  ;;  %v7238_v30 = vpop.f32.mrf.mxu0 }
 0x725   : > { %v19784_v54 = vadd.f32 %v12769_v35, %v7340_v13  ;;  %v19787_v21 = vadd.f32 %v7238_v30, %v19624_v43  ;;  %v13488_v13 = vld [vmem:[%s21049_s17 + $0xc0] ss:$16 sps:$4 sm:$0xff]   ;;  %v13490_v43 = vld [vmem:[%s21049_s17 + $0xc4] ss:$16 sps:$4 sm:$0xff]  }
 0x726   : > { %v7541_v46 = vpop.f32.mrf.mxu1  ;;  %v12725_v45 = vpop.f32.mrf.mxu0  ;;  %9533 = vmatprep.subr.bf16.mxu1 %v13490_v43 }
 0x727   : > { %v19792_v22 = vadd.f32 %v7541_v46, %v7338_v16  ;;  %v7344_v24 = vadd.f32 %v12725_v45, %v19626_v60  ;;  %9534 = vmatpush1.bf16.msra.mxu1 %v13488_v13  ;;  %v23430_v45 = vld [vmem:[#allocation173_spill] sm:$0xff] }
 0x728   : > { %v12770_v5 = vpop.f32.mrf.mxu1  ;;  %v7251_v58 = vpop.f32.mrf.mxu0 }
 0x729   : > { %13012 = vmatmul.mubr.bf16.gmra.mxu0 %v23425_v56  ;;  %v19804_v14 = vadd.f32 %v12770_v5, %v7341_v49  ;;  %v7342_v50 = vadd.f32 %v7251_v58, %v19633_v1  ;;  %v23429_v49 = vld [vmem:[#allocation75_spill] sm:$0xff]  ;;  %v23432_v56 = vld [vmem:[#allocation24_spill] sm:$0xff] }
 0x72a   : > { %13015 = vmatprep.mubr.bf16.mxu0 %v23428_v38  ;;  %v19807_v60 = vpop.f32.mrf.mxu1  ;;  %v12726_v25 = vpop.f32.mrf.mxu0  ;;  %v23431_v18 = vpack.c.bf16 %v23429_v49, %v23430_v45  ;;  %v23436_v49 = vld [vmem:[#allocation106_spill] sm:$0xff] }
 0x72b   : > { %v7345_v36 = vadd.f32 %v12726_v25, %v19642_v17  ;;  %v23434_v17 = vpack.c.bf16 %v23432_v56, %v23433_v40  ;;  %v23439_v56 = vld [vmem:[#allocation17_spill] sm:$0xff] }
 0x72c   : > { %v7254_v16 = vpop.f32.mrf.mxu0 }
 0x72d   : > { %v12773_v29 = vpop.f32.mrf.mxu1  ;;  %v19813_v35 = vadd.f32 %v7254_v16, %v19646_v41  ;;  %v13493_v41 = vld [vmem:[%s21049_s17 + $0xa4] ss:$16 sps:$4 sm:$0xff]  }
 0x72e   : > { %v19810_v57 = vadd.f32 %v12773_v29, %v7344_v24  ;;  %v13491_v24 = vld [vmem:[%s21049_s17 + $0xa0] ss:$16 sps:$4 sm:$0xff]   ;;  %9535 = vmatprep.subr.bf16.mxu1 %v13493_v41 }
 0x72f   : > { %v7557_v30 = vpop.f32.mrf.mxu1  ;;  %v12729_v46 = vpop.f32.mrf.mxu0  ;;  %9536 = vmatpush1.bf16.msra.mxu1 %v13491_v24 }
 0x730   : > { %v19818_v1 = vadd.f32 %v7557_v30, %v7342_v50  ;;  %v7348_v3 = vadd.f32 %v12729_v46, %v19650_v19  ;;  %v23435_v46 = vld [vmem:[#allocation130_spill] sm:$0xff] }
 0x731   : > { %13016 = vmatmul.mubr.bf16.gmra.mxu0 %v23431_v18  ;;  %v12774_v31 = vpop.f32.mrf.mxu1  ;;  %v7267_v38 = vpop.f32.mrf.mxu0  ;;  %v23438_v18 = vld [vmem:[#allocation131_spill] sm:$0xff] }
 0x732   : > { %13019 = vmatprep.mubr.bf16.mxu0 %v23434_v17  ;;  %v19830_v13 = vadd.f32 %v12774_v31, %v7345_v36  ;;  %v7346_v43 = vadd.f32 %v7267_v38, %v19657_v32  ;;  %v23437_v36 = vpack.c.bf16 %v23435_v46, %v23436_v49  ;;  %v23440_v40 = vpack.c.bf16 %v23438_v18, %v23439_v56  ;;  %v23441_v38 = vld [vmem:[#allocation56_spill] sm:$0xff]  ;;  %v23444_v56 = vld [vmem:[#allocation29_spill] sm:$0xff] }
 0x733   : > { %v19833_v19 = vpop.f32.mrf.mxu1  ;;  %v12730_v5 = vpop.f32.mrf.mxu0 }
 0x734   : > { %v7349_v58 = vadd.f32 %v12730_v5, %v19666_v0  ;;  %v13494_v0 = vld [vmem:[%s21049_s17 + $0x80] ss:$16 sps:$4 sm:$0xff]  }
 0x735   : > { %v19836_v25 = vpop.f32.mrf.mxu0 }
 0x737   : > { %v12777_v50 = vpop.f32.mrf.mxu1  ;;  %v12733_v30 = vpop.f32.mrf.mxu0 }
 0x738   : > { %v19838_v29 = vadd.f32 %v12777_v50, %v7348_v3  ;;  %v7352_v32 = vadd.f32 %v12733_v30, %v19678_v2  ;;  %v13496_v3 = vld [vmem:[%s21049_s17 + $0x84] ss:$16 sps:$4 sm:$0xff]   ;;  %v8888_v2 = vmul.f32 %v23395_v62, %v23338_v39 }
 0x739   : > { %v7573_v16 = vpop.f32.mrf.mxu1  ;;  %13020 = vmatmul.mubr.bf16.gmra.mxu0 %v23437_v36  ;;  %v7283_v24 = vpop.f32.mrf.mxu0  ;;  %9537 = vmatprep.subr.bf16.mxu1 %v13496_v3  ;;  %v23445_v39 = vld [vmem:[#allocation144_spill] sm:$0xff] }
 0x73a   : > { %v19843_v45 = vadd.f32 %v7573_v16, %v7346_v43  ;;  %13023 = vmatprep.mubr.bf16.mxu0 %v23440_v40  ;;  %v7350_v31 = vadd.f32 %v7283_v24, %v19685_v26  ;;  %v23442_v43 = vld [vmem:[#allocation174_spill] sm:$0xff]  ;;  %9538 = vmatpush1.bf16.msra.mxu1 %v13494_v0  ;;  %v23446_v62 = vpack.c.bf16 %v23444_v56, %v23445_v39  ;;  %v13500_v0 = vld [vmem:[%s21049_s17 + $0xe8] ss:$16 sps:$4 sm:$0xff]  }
 0x73b   : > { %v12778_v17 = vpop.f32.mrf.mxu1  ;;  %v8889_v5 = vmul.f32 %v23442_v43, %v23441_v38  ;;  %v12734_v16 = vpop.f32.mrf.mxu0  ;;  %v23448_v38 = vld [vmem:[#allocation122_spill] sm:$0xff] }
 0x73c   : > { %v19855_v41 = vadd.f32 %v12778_v17, %v7349_v58  ;;  %v7353_v30 = vadd.f32 %v12734_v16, %v19693_v27  ;;  %v13497_v27 = vld [vmem:[%s21049_s17 + $0x60] ss:$16 sps:$4 sm:$0xff]  }
 0x73d   : > { %v19862_v50 = vpop.f32.mrf.mxu1  ;;  %v19865_v49 = vpop.f32.mrf.mxu0  ;;  %v8906_v36 = vpack.c.bf16 %v8889_v5, %v8888_v2  ;;  %v23447_v2 = vld [vmem:[#allocation83_spill] sm:$0xff] }
 0x73e   : > { %23443 = vst [vmem:[#allocation18_spill] sm:$0xff] %v19862_v50  ;;  %v13502_v5 = vld [vmem:[%s21049_s17 + $0xec] ss:$16 sps:$4 sm:$0xff]  }
 0x73f   : > { %v12781_v46 = vpop.f32.mrf.mxu1  ;;  %v12737_v18 = vpop.f32.mrf.mxu0  ;;  %9724 = vmatprep.subr.bf16.mxu0 %v13502_v5 }
 0x740   : > { %v19867_v58 = vadd.f32 %v12781_v46, %v7352_v32  ;;  %v7356_v3 = vadd.f32 %v12737_v18, %v19703_v59  ;;  %v13499_v32 = vld [vmem:[%s21049_s17 + $0x64] ss:$16 sps:$4 sm:$0xff]   ;;  %9725 = vmatpush1.bf16.msra.mxu0 %v13500_v0 }
 0x741   : > { %v7589_v26 = vpop.f32.mrf.mxu1  ;;  %13024 = vmatmul.mubr.bf16.gmra.mxu0 %v23446_v62  ;;  %v7299_v24 = vpop.f32.mrf.mxu0  ;;  %v23449_v59 = vld [vmem:[#allocation20_spill] sm:$0xff]  ;;  %9539 = vmatprep.subr.bf16.mxu1 %v13499_v32 }
 0x742   : > { %v19872_v40 = vadd.f32 %v7589_v26, %v7350_v31  ;;  %13027 = vmatprep.mubr.bf16.mxu0 %v8906_v36  ;;  %v8890_v31 = vmul.f32 %v23403_v12, %v23447_v2  ;;  %v8891_v43 = vmul.f32 %v23449_v59, %v23448_v38  ;;  %v7354_v46 = vadd.f32 %v7299_v24, %v19707_v34  ;;  %v13503_v12 = vld [vmem:[%s21049_s17 + $0xc8] ss:$16 sps:$4 sm:$0xff]   ;;  %v13508_v24 = vld [vmem:[%s21049_s17 + $0x44] ss:$16 sps:$4 sm:$0xff]  }
 0x743   : > { %v12782_v17 = vpop.f32.mrf.mxu1  ;;  %v12738_v26 = vpop.f32.mrf.mxu0  ;;  %9540 = vmatpush1.bf16.msra.mxu1 %v13497_v27 }
 0x744   : > { %v19891_v16 = vadd.f32 %v12782_v17, %v7353_v30  ;;  %v7357_v18 = vadd.f32 %v12738_v26, %v19714_v33  ;;  %v13505_v30 = vld [vmem:[%s21049_s17 + $0xcc] ss:$16 sps:$4 sm:$0xff]   ;;  %v8907_v34 = vpack.c.bf16 %v8891_v43, %v8890_v31  ;;  %v13506_v17 = vld [vmem:[%s21049_s17 + $0x40] ss:$16 sps:$4 sm:$0xff]   ;;  %9541 = vmatprep.subr.bf16.mxu1 %v13508_v24  ;;  %v13512_v26 = vld [vmem:[%s21049_s17 + $0x88] ss:$16 sps:$4 sm:$0xff]  }
 0x745   : > { %v19894_v36 = vpop.f32.mrf.mxu1  ;;  %v19903_v39 = vpop.f32.mrf.mxu0  ;;  %9726 = vmatprep.subr.bf16.mxu0 %v13505_v30 }
 0x746   : > { %23450 = vst [vmem:[#allocation182_spill] sm:$0xff] %v19894_v36  ;;  %9727 = vmatpush1.bf16.msra.mxu0 %v13503_v12 }
 0x747   : > { %v12785_v56 = vpop.f32.mrf.mxu1  ;;  %v12741_v27 = vpop.f32.mrf.mxu0  ;;  %9542 = vmatpush1.bf16.msra.mxu1 %v13506_v17 }
 0x748   : > { %v19905_v62 = vadd.f32 %v12785_v56, %v7356_v3  ;;  %v7360_v0 = vadd.f32 %v12741_v27, %v19720_v10  ;;  %v13509_v3 = vld [vmem:[%s21049_s17 + $0xa8] ss:$16 sps:$4 sm:$0xff]   ;;  %v13511_v10 = vld [vmem:[%s21049_s17 + $0xac] ss:$16 sps:$4 sm:$0xff]  }
 0x749   : > { %v7605_v32 = vpop.f32.mrf.mxu1  ;;  %13028 = vmatmul.mubr.bf16.gmra.mxu0 %v8907_v34  ;;  %v7315_v31 = vpop.f32.mrf.mxu0  ;;  %9728 = vmatprep.subr.bf16.mxu0 %v13511_v10 }
 0x74a   : > { %v19907_v33 = vadd.f32 %v7605_v32, %v7354_v46  ;;  %9756 = vmatprep.mubr.bf16.mxu0 %v23404_v7  ;;  %v7358_v59 = vadd.f32 %v7315_v31, %v19726_v37  ;;  %9729 = vmatpush1.bf16.msra.mxu0 %v13509_v3 }
 0x74b   : > { %v12786_v2 = vpop.f32.mrf.mxu1  ;;  %v12742_v5 = vpop.f32.mrf.mxu0 }
 0x74c   : > { %v19923_v38 = vadd.f32 %v12786_v2, %v7357_v18  ;;  %v7361_v46 = vadd.f32 %v12742_v5, %v19732_v51  ;;  %v13514_v18 = vld [vmem:[%s21049_s17 + $0x8c] ss:$16 sps:$4 sm:$0xff]  }
 0x74d   : > { %v19926_v43 = vpop.f32.mrf.mxu1  ;;  %v19935_v30 = vpop.f32.mrf.mxu0  ;;  %9730 = vmatprep.subr.bf16.mxu0 %v13514_v18 }
 0x74e   : > { %9731 = vmatpush1.bf16.msra.mxu0 %v13512_v26 }
 0x74f   : > { %v12789_v12 = vpop.f32.mrf.mxu1  ;;  %v12809_v34 = vpop.f32.mrf.mxu0 }
 0x750   : > { %v19937_v37 = vadd.f32 %v12789_v12, %v7360_v0  ;;  %v7912_v51 = vadd.f32 %v12809_v34, %v19738_v53  ;;  %v13515_v53 = vld [vmem:[%s21049_s17 + $0x20] ss:$16 sps:$4 sm:$0xff]  }
 0x751   : > { %v7621_v56 = vpop.f32.mrf.mxu1  ;;  %v7783_v17 = vpop.f32.mrf.mxu0 }
 0x752   : > { %v19939_v32 = vadd.f32 %v7621_v56, %v7358_v59  ;;  %v7910_v3 = vadd.f32 %v7783_v17, %v19746_v8  ;;  %v13517_v59 = vld [vmem:[%s21049_s17 + $0x24] ss:$16 sps:$4 sm:$0xff]   ;;  %v13518_v8 = vld [vmem:[%s21049_s17 + $0x68] ss:$16 sps:$4 sm:$0xff]  }
 0x753   : > { %v12790_v27 = vpop.f32.mrf.mxu1  ;;  %v12810_v31 = vpop.f32.mrf.mxu0  ;;  %9543 = vmatprep.subr.bf16.mxu1 %v13517_v59 }
 0x754   : > { %v19942_v24 = vadd.f32 %v12790_v27, %v7361_v46  ;;  %v7913_v0 = vadd.f32 %v12810_v31, %v19752_v11  ;;  %v13520_v11 = vld [vmem:[%s21049_s17 + $0x6c] ss:$16 sps:$4 sm:$0xff]   ;;  %9544 = vmatpush1.bf16.msra.mxu1 %v13515_v53 }
 0x755   : > { %v19945_v2 = vpop.f32.mrf.mxu1  ;;  %v19948_v5 = vpop.f32.mrf.mxu0  ;;  %9732 = vmatprep.subr.bf16.mxu0 %v13520_v11  ;;  %v13526_v11 = vld [vmem:[%s21049_s17 + $0x4] ss:$16 sps:$4 sm:$0xff]  }
 0x756   : > { %9733 = vmatpush1.bf16.msra.mxu0 %v13518_v8  ;;  %9545 = vmatprep.subr.bf16.mxu1 %v13526_v11 }
 0x757   : > { %v12857_v10 = vpop.f32.mrf.mxu1  ;;  %v12813_v26 = vpop.f32.mrf.mxu0 }
 0x758   : > { %v19950_v18 = vadd.f32 %v12857_v10, %v7912_v51  ;;  %v7916_v56 = vadd.f32 %v12813_v26, %v19758_v15  ;;  %v13523_v15 = vld [vmem:[%s21049_s17 + $0x4c] ss:$16 sps:$4 sm:$0xff]   ;;  %v13524_v26 = vld [vmem:[%s21049_s17] ss:$16 sps:$4 sm:$0xff]  }
 0x759   : > { %v8089_v46 = vpop.f32.mrf.mxu1  ;;  %v7799_v51 = vpop.f32.mrf.mxu0  ;;  %9734 = vmatprep.subr.bf16.mxu0 %v13523_v15  ;;  %9546 = vmatpush1.bf16.msra.mxu1 %v13524_v26 }
 0x75a   : > { %v19964_v12 = vadd.f32 %v8089_v46, %v7910_v3  ;;  %v7914_v17 = vadd.f32 %v7799_v51, %v19766_v61  ;;  %v13521_v3 = vld [vmem:[%s21049_s17 + $0x48] ss:$16 sps:$4 sm:$0xff]   ;;  %v13529_v51 = vld [vmem:[%s21049_s17 + $0x2c] ss:$16 sps:$4 sm:$0xff]  }
 0x75b   : > { %v12858_v34 = vpop.f32.mrf.mxu1  ;;  %v12814_v10 = vpop.f32.mrf.mxu0  ;;  %9735 = vmatpush1.bf16.msra.mxu0 %v13521_v3 }
 0x75c   : > { %v19967_v27 = vadd.f32 %v12858_v34, %v7913_v0  ;;  %v7917_v59 = vadd.f32 %v12814_v10, %v19778_v6  ;;  %v13527_v6 = vld [vmem:[%s21049_s17 + $0x28] ss:$16 sps:$4 sm:$0xff]   ;;  %9736 = vmatprep.subr.bf16.mxu0 %v13529_v51 }
 0x75d   : > { %v19970_v31 = vpop.f32.mrf.mxu1  ;;  %v19979_v53 = vpop.f32.mrf.mxu0 }
 0x75f   : > { %v12861_v46 = vpop.f32.mrf.mxu1  ;;  %9737 = vmatpush1.bf16.msra.mxu0 %v13527_v6 }
 0x760   : > { %v19981_v0 = vadd.f32 %v12861_v46, %v7916_v56 }
 0x761   : > { %v8105_v61 = vpop.f32.mrf.mxu1  ;;  %v12817_v8 = vpop.f32.mrf.mxu0 }
 0x762   : > { %v19992_v34 = vadd.f32 %v8105_v61, %v7914_v17  ;;  %v7920_v56 = vadd.f32 %v12817_v8, %v19784_v54  ;;  %v13530_v54 = vld [vmem:[%s21049_s17 + $0x8] ss:$16 sps:$4 sm:$0xff]   ;;  %v13532_v17 = vld [vmem:[%s21049_s17 + $0xc] ss:$16 sps:$4 sm:$0xff]  }
 0x763   : > { %v12862_v10 = vpop.f32.mrf.mxu1  ;;  %v7815_v3 = vpop.f32.mrf.mxu0  ;;  %9738 = vmatprep.subr.bf16.mxu0 %v13532_v17 }
 0x764   : > { %v19998_v15 = vadd.f32 %v12862_v10, %v7917_v59  ;;  %v7918_v46 = vadd.f32 %v7815_v3, %v19792_v22  ;;  %9739 = vmatpush1.bf16.msra.mxu0 %v13530_v54 }
 0x765   : > { %v20001_v7 = vpop.f32.mrf.mxu1  ;;  %v12818_v36 = vpop.f32.mrf.mxu0 }
 0x766   : > { %23451 = vst [vmem:[#allocation143_spill] sm:$0xff] %v20001_v7  ;;  %v7921_v61 = vadd.f32 %v12818_v36, %v19804_v14 }
 0x767   : > { %v12865_v59 = vpop.f32.mrf.mxu1  ;;  %v20010_v8 = vpop.f32.mrf.mxu0 }
 0x768   : > { %23452 = vst [vmem:[#allocation146_spill] sm:$0xff] %v20010_v8  ;;  %v20012_v22 = vadd.f32 %v12865_v59, %v7920_v56 }
 0x769   : > { %v8121_v26 = vpop.f32.mrf.mxu1  ;;  %v12821_v11 = vpop.f32.mrf.mxu0 }
 0x76a   : > { %v20014_v6 = vadd.f32 %v8121_v26, %v7918_v46  ;;  %v7924_v51 = vadd.f32 %v12821_v11, %v19810_v57 }
 0x76b   : > { %v12866_v10 = vpop.f32.mrf.mxu1  ;;  %v7831_v3 = vpop.f32.mrf.mxu0 }
 0x76c   : > { %v20017_v7 = vadd.f32 %v12866_v10, %v7921_v61  ;;  %v7922_v50 = vadd.f32 %v7831_v3, %v19818_v1 }
 0x76d   : > { %v20020_v14 = vpop.f32.mrf.mxu1  ;;  %v12822_v36 = vpop.f32.mrf.mxu0 }
 0x76e   : > { %23453 = vst [vmem:[#allocation152_spill] sm:$0xff] %v20020_v14  ;;  %v7925_v17 = vadd.f32 %v12822_v36, %v19830_v13 }
 0x76f   : > { %v12869_v56 = vpop.f32.mrf.mxu1  ;;  %v20023_v59 = vpop.f32.mrf.mxu0 }
 0x770   : > { %23454 = vst [vmem:[#allocation30_spill] sm:$0xff] %v20023_v59  ;;  %v20025_v8 = vadd.f32 %v12869_v56, %v7924_v51 }
 0x771   : > { %v8137_v46 = vpop.f32.mrf.mxu1  ;;  %v12825_v54 = vpop.f32.mrf.mxu0 }
 0x772   : > { %v20027_v26 = vadd.f32 %v8137_v46, %v7922_v50  ;;  %v7928_v57 = vadd.f32 %v12825_v54, %v19838_v29 }
 0x773   : > { %v12870_v61 = vpop.f32.mrf.mxu1  ;;  %v7847_v11 = vpop.f32.mrf.mxu0 }
 0x774   : > { %v20030_v10 = vadd.f32 %v12870_v61, %v7925_v17  ;;  %v7926_v1 = vadd.f32 %v7847_v11, %v19843_v45 }
 0x775   : > { %v20033_v3 = vpop.f32.mrf.mxu1  ;;  %v12826_v13 = vpop.f32.mrf.mxu0 }
 0x776   : > { %23455 = vst [vmem:[#allocation10_spill] sm:$0xff] %v20033_v3  ;;  %v7929_v36 = vadd.f32 %v12826_v13, %v19855_v41 }
 0x777   : > { %v12873_v14 = vpop.f32.mrf.mxu1  ;;  %v20036_v51 = vpop.f32.mrf.mxu0 }
 0x778   : > { %23456 = vst [vmem:[#allocation48_spill] sm:$0xff] %v20036_v51  ;;  %v20038_v56 = vadd.f32 %v12873_v14, %v7928_v57 }
 0x779   : > { %v8153_v50 = vpop.f32.mrf.mxu1  ;;  %v12829_v46 = vpop.f32.mrf.mxu0 }
 0x77a   : > { %v20040_v59 = vadd.f32 %v8153_v50, %v7926_v1  ;;  %v7932_v29 = vadd.f32 %v12829_v46, %v19867_v58 }
 0x77b   : > { %v12874_v17 = vpop.f32.mrf.mxu1  ;;  %v7863_v54 = vpop.f32.mrf.mxu0 }
 0x77c   : > { %v20043_v61 = vadd.f32 %v12874_v17, %v7929_v36  ;;  %v7930_v45 = vadd.f32 %v7863_v54, %v19872_v40 }
 0x77d   : > { %v20046_v11 = vpop.f32.mrf.mxu1  ;;  %v12830_v41 = vpop.f32.mrf.mxu0 }
 0x77e   : > { %23457 = vst [vmem:[#allocation35_spill] sm:$0xff] %v20046_v11  ;;  %v7933_v13 = vadd.f32 %v12830_v41, %v19891_v16  ;;  %v6965_v41 = vadd.f32 %v19716_v48, %v19701_v55 }
 0x77f   : > { %v12877_v3 = vpop.f32.mrf.mxu1  ;;  %v20049_v14 = vpop.f32.mrf.mxu0 }
 0x780   : > { %23458 = vst [vmem:[#allocation34_spill] sm:$0xff] %v20049_v14  ;;  %v20051_v57 = vadd.f32 %v12877_v3, %v7932_v29 }
 0x781   : > { %v8169_v1 = vpop.f32.mrf.mxu1  ;;  %v12833_v50 = vpop.f32.mrf.mxu0 }
 0x782   : > { %v20053_v51 = vadd.f32 %v8169_v1, %v7930_v45  ;;  %v7936_v58 = vadd.f32 %v12833_v50, %v19905_v62  ;;  %v7355_v45 = vadd.f32 %v19903_v39, %v6965_v41  ;;  %v6981_v39 = vadd.f32 %v19735_v23, %v19718_v47 }
 0x783   : > { %v12878_v36 = vpop.f32.mrf.mxu1  ;;  %v7879_v46 = vpop.f32.mrf.mxu0 }
 0x784   : > { %v20056_v17 = vadd.f32 %v12878_v36, %v7933_v13  ;;  %v7934_v40 = vadd.f32 %v7879_v46, %v19907_v33  ;;  %v7661_v13 = vadd.f32 %v19926_v43, %v7355_v45 }
 0x785   : > { %v20059_v54 = vpop.f32.mrf.mxu1  ;;  %v12834_v16 = vpop.f32.mrf.mxu0 }
 0x786   : > { %23459 = vst [vmem:[#allocation187_spill] sm:$0xff] %v20059_v54  ;;  %v7937_v3 = vadd.f32 %v12834_v16, %v19923_v38 }
 0x787   : > { %v12881_v29 = vpop.f32.mrf.mxu1  ;;  %v7882_v11 = vpop.f32.mrf.mxu0 }
 0x788   : > { %v20065_v1 = vadd.f32 %v12881_v29, %v7936_v58  ;;  %v7935_v14 = vadd.f32 %v7882_v11, %v7661_v13 }
 0x789   : > { %v8185_v62 = vpop.f32.mrf.mxu1  ;;  %v12837_v50 = vpop.f32.mrf.mxu0 }
 0x78a   : > { %v20068_v36 = vadd.f32 %v8185_v62, %v7934_v40  ;;  %v7940_v33 = vadd.f32 %v12837_v50, %v19937_v37  ;;  %v7359_v37 = vadd.f32 %v19935_v30, %v6981_v39 }
 0x78b   : > { %v12882_v46 = vpop.f32.mrf.mxu1  ;;  %v7895_v54 = vpop.f32.mrf.mxu0 }
 0x78c   : > { %v20071_v55 = vadd.f32 %v12882_v46, %v7937_v3  ;;  %v7938_v48 = vadd.f32 %v7895_v54, %v19939_v32  ;;  %v7665_v45 = vadd.f32 %v19945_v2, %v7359_v37 }
 0x78d   : > { %v8188_v38 = vpop.f32.mrf.mxu1  ;;  %v12838_v16 = vpop.f32.mrf.mxu0 }
 0x78e   : > { %v20076_v58 = vadd.f32 %v8188_v38, %v7935_v14  ;;  %v7941_v43 = vadd.f32 %v12838_v16, %v19942_v24 }
 0x78f   : > { %v12885_v40 = vpop.f32.mrf.mxu1  ;;  %v7898_v41 = vpop.f32.mrf.mxu0 }
 0x790   : > { %v20080_v29 = vadd.f32 %v12885_v40, %v7940_v33  ;;  %v7939_v14 = vadd.f32 %v7898_v41, %v7665_v45 }
 0x791   : > { %v8201_v11 = vpop.f32.mrf.mxu1  ;;  %v12905_v3 = vpop.f32.mrf.mxu0 }
 0x792   : > { %v20083_v32 = vadd.f32 %v8201_v11, %v7938_v48  ;;  %v20086_v54 = vadd.f32 %v12905_v3, %v19950_v18 }
 0x793   : > { %v12886_v47 = vpop.f32.mrf.mxu1  ;;  %v8395_v23 = vpop.f32.mrf.mxu0 }
 0x794   : > { %v20088_v62 = vadd.f32 %v12886_v47, %v7941_v43  ;;  %v20091_v24 = vadd.f32 %v8395_v23, %v19964_v12 }
 0x795   : > { %v8204_v30 = vpop.f32.mrf.mxu1  ;;  %v12906_v50 = vpop.f32.mrf.mxu0 }
 0x796   : > { %v20093_v13 = vadd.f32 %v8204_v30, %v7939_v14  ;;  %v20096_v33 = vadd.f32 %v12906_v50, %v19967_v27 }
 0x797   : > { %v20098_v2 = vpop.f32.mrf.mxu1  ;;  %v20100_v46 = vpop.f32.mrf.mxu0 }
 0x799   : > { %v20102_v18 = vpop.f32.mrf.mxu1  ;;  %v12909_v48 = vpop.f32.mrf.mxu0 }
 0x79a   : > { %v20105_v38 = vadd.f32 %v12909_v48, %v19981_v0 }
 0x79b   : > { %v20107_v16 = vpop.f32.mrf.mxu1  ;;  %v8411_v12 = vpop.f32.mrf.mxu0 }
 0x79c   : > { %v20110_v39 = vadd.f32 %v8411_v12, %v19992_v34 }
 0x79d   : > { %v20112_v43 = vpop.f32.mrf.mxu1  ;;  %v12910_v27 = vpop.f32.mrf.mxu0 }
 0x79e   : > { %v20115_v40 = vadd.f32 %v12910_v27, %v19998_v15 }
 0x79f   : > { %v20117_v41 = vpop.f32.mrf.mxu1  ;;  %v20119_v37 = vpop.f32.mrf.mxu0 }
 0x7a1   : > { %v12913_v11 = vpop.f32.mrf.mxu0  ;;  %v20121_v3 = vpop.f32.mrf.mxu1 }
 0x7a2   : > { %v20124_v0 = vadd.f32 %v12913_v11, %v20012_v22 }
 0x7a3   : > { %v8427_v45 = vpop.f32.mrf.mxu0  ;;  %v20129_v23 = vpop.f32.mrf.mxu1 }
 0x7a4   : > { %v20127_v34 = vadd.f32 %v8427_v45, %v20014_v6 }
 0x7a5   : > { %v12914_v47 = vpop.f32.mrf.mxu0  ;;  %v20136_v50 = vpop.f32.mrf.mxu1 }
 0x7a6   : > { %v20132_v15 = vadd.f32 %v12914_v47, %v20017_v7 }
 0x7a7   : > { %v20134_v14 = vpop.f32.mrf.mxu0  ;;  %v20144_v27 = vpop.f32.mrf.mxu1 }
 0x7a8   : > { %23460 = vst [vmem:[#allocation40_spill] sm:$0xff] %v20132_v15 }
 0x7a9   : > { %v12917_v30 = vpop.f32.mrf.mxu0  ;;  %v20151_v47 = vpop.f32.mrf.mxu1 }
 0x7aa   : > { %v20139_v48 = vadd.f32 %v12917_v30, %v20025_v8 }
 0x7ab   : > { %v8443_v22 = vpop.f32.mrf.mxu0 }
 0x7ac   : > { %v20142_v12 = vadd.f32 %v8443_v22, %v20027_v26  ;;  %v20159_v22 = vpop.f32.mrf.mxu1 }
 0x7ad   : > { %v12918_v6 = vpop.f32.mrf.mxu0 }
 0x7ae   : > { %23461 = vst [vmem:[#allocation192_spill] sm:$0xff] %v20142_v12  ;;  %v20147_v11 = vadd.f32 %v12918_v6, %v20030_v10 }
 0x7af   : > { %v20149_v7 = vpop.f32.mrf.mxu0 }
 0x7b0   : > { %23462 = vst [vmem:[#allocation46_spill] sm:$0xff] %v20147_v11  ;;  %23463 = vst [vmem:[#allocation65_spill] sm:$0xff] %v20149_v7  ;;  %v20166_v11 = vpop.f32.mrf.mxu1 }
 0x7b1   : > { %v12921_v45 = vpop.f32.mrf.mxu0 }
 0x7b2   : > { %v20154_v15 = vadd.f32 %v12921_v45, %v20038_v56 }
 0x7b3   : > { %v8459_v8 = vpop.f32.mrf.mxu0 }
 0x7b4   : > { %v20157_v30 = vadd.f32 %v8459_v8, %v20040_v59  ;;  %v20174_v8 = vpop.f32.mrf.mxu1 }
 0x7b5   : > { %v12922_v26 = vpop.f32.mrf.mxu0 }
 0x7b6   : > { %23464 = vst [vmem:[#allocation47_spill] sm:$0xff] %v20157_v30  ;;  %v20162_v12 = vadd.f32 %v12922_v26, %v20043_v61 }
 0x7b7   : > { %v20164_v10 = vpop.f32.mrf.mxu0 }
 0x7b8   : > { %23465 = vst [vmem:[#allocation195_spill] sm:$0xff] %v20162_v12  ;;  %23466 = vst [vmem:[#allocation60_spill] sm:$0xff] %v20164_v10  ;;  %v20181_v12 = vpop.f32.mrf.mxu1 }
 0x7b9   : > { %v12925_v6 = vpop.f32.mrf.mxu0 }
 0x7ba   : > { %v20169_v7 = vadd.f32 %v12925_v6, %v20051_v57 }
 0x7bb   : > { %v8475_v56 = vpop.f32.mrf.mxu0 }
 0x7bc   : > { %v20172_v45 = vadd.f32 %v8475_v56, %v20053_v51  ;;  %v20189_v56 = vpop.f32.mrf.mxu1 }
 0x7bd   : > { %v12926_v59 = vpop.f32.mrf.mxu0 }
 0x7be   : > { %23467 = vst [vmem:[#allocation200_spill] sm:$0xff] %v20172_v45  ;;  %v20177_v30 = vadd.f32 %v12926_v59, %v20056_v17 }
 0x7bf   : > { %v20179_v61 = vpop.f32.mrf.mxu0 }
 0x7c0   : > { %23468 = vst [vmem:[#allocation51_spill] sm:$0xff] %v20177_v30  ;;  %23469 = vst [vmem:[#allocation69_spill] sm:$0xff] %v20179_v61  ;;  %v20197_v61 = vpop.f32.mrf.mxu1 }
 0x7c1   : > { %v12929_v26 = vpop.f32.mrf.mxu0 }
 0x7c2   : > { %v20184_v10 = vadd.f32 %v12929_v26, %v20065_v1 }
 0x7c3   : > { %v8491_v57 = vpop.f32.mrf.mxu0 }
 0x7c4   : > { %v20187_v6 = vadd.f32 %v8491_v57, %v20068_v36 }
 0x7c5   : > { %v12930_v51 = vpop.f32.mrf.mxu0 }
 0x7c6   : > { %v20192_v45 = vadd.f32 %v12930_v51, %v20071_v55  ;;  %v7637_v55 = vadd.f32 %v19755_v63, %v19741_v42  ;;  %v20207_v51 = vpop.f32.mrf.mxu1  ;;  %v8830_v42 = vadd.f32 %v20098_v2, %v20086_v54  ;;  %v20243_v2 = vstv %s11579_s23 }
 0x7c7   : > { %v8494_v17 = vpop.f32.mrf.mxu0 }
 0x7c8   : > { %v20195_v59 = vadd.f32 %v8494_v17, %v20076_v58  ;;  %v6933_v17 = vadd.f32 %v19672_v28, %v19648_v44 }
 0x7c9   : > { %v12933_v30 = vpop.f32.mrf.mxu0 }
 0x7ca   : > { %v20200_v1 = vadd.f32 %v12933_v30, %v20080_v29  ;;  %v6949_v29 = vadd.f32 %v19697_v4, %v19676_v20  ;;  %v7347_v44 = vadd.f32 %v19836_v25, %v6933_v17 }
 0x7cb   : > { %v8507_v26 = vpop.f32.mrf.mxu0 }
 0x7cc   : > { %v20203_v36 = vadd.f32 %v8507_v26, %v20083_v32  ;;  %v7641_v32 = vadd.f32 %v19781_v52, %v19761_v9  ;;  %v7911_v26 = vadd.f32 %v19948_v5, %v7637_v55  ;;  %v7351_v28 = vadd.f32 %v19865_v49, %v6949_v29  ;;  %v20232_v5 = vpop.f32.mrf.mxu1  ;;  %v23471_v49 = vld [vmem:[#allocation182_spill] sm:$0xff] }
 0x7cd   : > { %v12934_v57 = vpop.f32.mrf.mxu0  ;;  %v8828_v52 = vadd.f32 %v20102_v18, %v20091_v24  ;;  %v23473_v18 = vld [vmem:[#allocation146_spill] sm:$0xff] }
 0x7ce   : > { %v20210_v58 = vadd.f32 %v12934_v57, %v20088_v62  ;;  %v7645_v62 = vadd.f32 %v19807_v60, %v19787_v21  ;;  %v8217_v4 = vadd.f32 %v19970_v31, %v7911_v26  ;;  %v7915_v9 = vadd.f32 %v19979_v53, %v7641_v32  ;;  %v23470_v60 = vld [vmem:[#allocation18_spill] sm:$0xff]  ;;  %v23472_v57 = vld [vmem:[#allocation143_spill] sm:$0xff]  ;;  %v23475_v26 = vld [vmem:[#allocation48_spill] sm:$0xff] }
 0x7cf   : > { %v8510_v30 = vpop.f32.mrf.mxu0  ;;  %v7649_v21 = vadd.f32 %v19833_v19, %v19813_v35  ;;  %v7653_v25 = vadd.f32 %v23470_v60, %v7347_v44  ;;  %v7657_v31 = vadd.f32 %v23471_v49, %v7351_v28  ;;  %v8831_v35 = vadd.f32 %v20107_v16, %v20096_v33  ;;  %v23476_v28 = vld [vmem:[#allocation152_spill] sm:$0xff]  ;;  %v23477_v60 = vld [vmem:[#allocation34_spill] sm:$0xff] }
 0x7d0   : > { %v20222_v63 = vadd.f32 %v8510_v30, %v20093_v13  ;;  %v20237_v13 = vld [vmem:[%s21047_s15 + $0x2] ss:$0 sm:$0xff]  ;;  %v8221_v24 = vadd.f32 %v23472_v57, %v7915_v9  ;;  %v7919_v55 = vadd.f32 %v23473_v18, %v7645_v62  ;;  %v8523_v17 = vadd.f32 %v20100_v46, %v8217_v4  ;;  %v20256_v62 = vpop.f32.mrf.mxu1 }
 0x7d1   : > { %v13001_v20 = vpop.f32.mrf.mxu0  ;;  %v23474_v30 = vld [vmem:[#allocation30_spill] sm:$0xff]  ;;  %v7931_v49 = vadd.f32 %v23477_v60, %v7657_v31  ;;  %v8834_v31 = vadd.f32 %v20117_v41, %v20105_v38 }
 0x7d2   : > { %v9136_v54 = vadd.f32 %v13001_v20, %v8830_v42  ;;  %v7923_v32 = vadd.f32 %v23474_v30, %v7649_v21  ;;  %v7927_v42 = vadd.f32 %v23475_v26, %v7653_v25  ;;  %v8225_v20 = vadd.f32 %v23476_v28, %v7919_v55  ;;  %v23478_v4 = vld [vmem:[#allocation10_spill] sm:$0xff]  ;;  %v23479_v21 = vld [vmem:[#allocation35_spill] sm:$0xff]  ;;  %v20276_v30 = vpop.f32.mrf.mxu1 }
 0x7d3   : > { %v9007_v53 = vpop.f32.mrf.mxu0  ;;  %v8829_v9 = vadd.f32 %v20112_v43, %v8523_v17  ;;  %v8527_v33 = vadd.f32 %v20119_v37, %v8221_v24  ;;  %v8832_v43 = vadd.f32 %v20121_v3, %v20110_v39  ;;  %v8835_v55 = vadd.f32 %v20129_v23, %v20115_v40 }
 0x7d4   : > { %v9134_v29 = vadd.f32 %v9007_v53, %v8828_v52  ;;  %v9173_v19 = vadd.f32 %v20237_v13, %v9136_v54  ;;  %v8229_v52 = vadd.f32 %v23478_v4, %v7923_v32  ;;  %v20261_v25 = vadd.f32 %v23479_v21, %v7927_v42  ;;  %v23480_v53 = vld [vmem:[#allocation187_spill] sm:$0xff] }
 0x7d5   : > { %v13002_v44 = vpop.f32.mrf.mxu0  ;;  %v20265_v57 = vadd.f32 %v23480_v53, %v7931_v49  ;;  %v8833_v17 = vadd.f32 %v20136_v50, %v8527_v33  ;;  %v8838_v39 = vadd.f32 %v20144_v27, %v20124_v0  ;;  %v8531_v23 = vadd.f32 %v20134_v14, %v8225_v20  ;;  %v20289_v27 = vpop.f32.mrf.mxu1  ;;  %v23482_v53 = vld [vmem:[#allocation65_spill] sm:$0xff] }
 0x7d6   : > { %v9171_v46 = vadd.f32 %v20237_v13, %v9134_v29  ;;  %v9137_v16 = vadd.f32 %v13002_v44, %v8831_v35  ;;  %v9239_v29 = vmul.f32 %v20243_v2, %v9173_v19  ;;  %vm9206_vm4 = vcmp.gt.f32.partialorder %v9173_v19, 0.0  ;;  %v23481_v35 = vld [vmem:[#allocation40_spill] sm:$0xff] }
 0x7d7   : > { %v9010_v54 = vpop.f32.mrf.mxu0  ;;  %v8836_v42 = vadd.f32 %v20151_v47, %v20127_v34  ;;  %v8839_v44 = vadd.f32 %v20159_v22, %v23481_v35  ;;  %v8837_v34 = vadd.f32 %v20166_v11, %v8531_v23  ;;  %v8842_v47 = vadd.f32 %v20174_v8, %v20139_v48 }
 0x7d8   : > { %v9135_v18 = vadd.f32 %v9010_v54, %v8829_v9  ;;  %v9174_v37 = vadd.f32 %v20237_v13, %v9137_v16  ;;  %v9237_v32 = vmul.f32 %v20243_v2, %v9171_v46  ;;  %vm9204_vm11 = vcmp.gt.f32.partialorder %v9171_v46, 0.0 }
 0x7d9   : > { %v13005_v24 = vpop.f32.mrf.mxu0  ;;  %v9271_v28 = vsel %vm9206_vm4, %v9173_v19, %v9239_v29  ;;  %v23483_v48 = vmov 0  }
 0x7da   : > { %v9172_v38 = vadd.f32 %v20237_v13, %v9135_v18  ;;  %v9140_v41 = vadd.f32 %v13005_v24, %v8834_v31  ;;  %vm9207_vm1 = vcmp.gt.f32.partialorder %v9174_v37, 0.0  ;;  %v9240_v40 = vmul.f32 %v20243_v2, %v9174_v37 }
 0x7db   : > { %v9023_v3 = vpop.f32.mrf.mxu0  ;;  %v9269_v49 = vsel %vm9204_vm11, %v9171_v46, %v9237_v32  ;;  %v8535_v46 = vadd.f32 %v23482_v53, %v8229_v52 }
 0x7dc   : > { %vm9205_vm3 = vcmp.gt.f32.partialorder %v9172_v38, 0.0  ;;  %v9238_v50 = vmul.f32 %v20243_v2, %v9172_v38  ;;  %v9138_v26 = vadd.f32 %v9023_v3, %v8832_v43  ;;  %v9272_v60 = vsel %vm9207_vm1, %v9174_v37, %v9240_v40 }
 0x7dd   : > { %v13006_v0 = vpop.f32.mrf.mxu0  ;;  %v9177_v4 = vadd.f32 %v20237_v13, %v9140_v41  ;;  %v9302_v54 = vpack.c.bf16 %v9272_v60, %v9271_v28  ;;  %v23484_v41 = vld [vmem:[#allocation192_spill] sm:$0xff] }
 0x7de   : > { %v9270_v9 = vsel %vm9205_vm3, %v9172_v38, %v9238_v50  ;;  %v9175_v14 = vadd.f32 %v20237_v13, %v9138_v26  ;;  %v9141_v33 = vadd.f32 %v13006_v0, %v8835_v55  ;;  %v20299_v55 = vpop.f32.mrf.mxu1  ;;  %v8840_v40 = vadd.f32 %v20181_v12, %v23484_v41 }
 0x7df   : > { %v9301_v20 = vpack.c.bf16 %v9270_v9, %v9269_v49  ;;  %v10213_v21 = vadd.f32 %v9270_v9, %v9269_v49  ;;  %v9026_v16 = vpop.f32.mrf.mxu0  ;;  %v9243_v29 = vmul.f32 %v20243_v2, %v9177_v4  ;;  %vm9210_vm2 = vcmp.gt.f32.partialorder %v9177_v4, 0.0 }
 0x7e0   : > { %v9241_v22 = vmul.f32 %v20243_v2, %v9175_v14  ;;  %v9139_v19 = vadd.f32 %v9026_v16, %v8833_v17  ;;  %vm9208_vm15 = vcmp.gt.f32.partialorder %v9175_v14, 0.0  ;;  %v9178_v43 = vadd.f32 %v20237_v13, %v9141_v33  ;;  %v20312_v35 = vpop.f32.mrf.mxu1 }
 0x7e1   : > { %v10214_v31 = vadd.f32 %v10213_v21, %v9271_v28  ;;  %v13009_v18 = vpop.f32.mrf.mxu0  ;;  %9564 = vmatmul.mubr.bf16.vlgmr.msra.gmra.mxu1 %v9301_v20  ;;  %9757 = vmatmul.mubr.bf16.vlgmr.msra.gmra.mxu0 %v9301_v20  ;;  %v9275_v28 = vsel %vm9210_vm2, %v9177_v4, %v9243_v29  ;;  %v8841_v12 = vadd.f32 %v20197_v61, %v8535_v46  ;;  %v23486_v4 = vld [vmem:[#allocation60_spill] sm:$0xff]  ;;  %v23487_v29 = vld [vmem:[#allocation47_spill] sm:$0xff] }
 0x7e2   : > { %v9176_v11 = vadd.f32 %v20237_v13, %v9139_v19  ;;  %v9144_v37 = vadd.f32 %v13009_v18, %v8838_v39  ;;  %9573 = vmatprep.mubr.bf16.mxu1 %v23483_v48  ;;  %9766 = vmatprep.mubr.bf16.mxu0 %v23483_v48  ;;  %vm9211_vm5 = vcmp.gt.f32.partialorder %v9178_v43, 0.0  ;;  %v9244_v52 = vmul.f32 %v20243_v2, %v9178_v43  ;;  %v23485_v39 = vld [vmem:[#allocation46_spill] sm:$0xff] }
 0x7e3   : > { %v10215_v8 = vadd.f32 %v10214_v31, %v9272_v60  ;;  %v9039_v17 = vpop.f32.mrf.mxu0  ;;  %v9273_v24 = vsel %vm9208_vm15, %v9175_v14, %v9241_v22  ;;  %v8843_v3 = vadd.f32 %v20189_v56, %v23485_v39  ;;  %v8846_v56 = vadd.f32 %v20207_v51, %v20154_v15  ;;  %v20325_v31 = vpop.f32.mrf.mxu1 }
 0x7e4   : > { %vm9209_vm8 = vcmp.gt.f32.partialorder %v9176_v11, 0.0  ;;  %v9242_v32 = vmul.f32 %v20243_v2, %v9176_v11  ;;  %v9142_v38 = vadd.f32 %v9039_v17, %v8836_v42  ;;  %v9276_v50 = vsel %vm9211_vm5, %v9178_v43, %v9244_v52  ;;  %v23488_v17 = vld [vmem:[#allocation195_spill] sm:$0xff] }
 0x7e5   : > { %v10216_v23 = vadd.f32 %v10215_v8, %v9273_v24  ;;  %v13010_v26 = vpop.f32.mrf.mxu0  ;;  %v9181_v0 = vadd.f32 %v20237_v13, %v9144_v37  ;;  %v20316_v21 = vpack.c.bf16 %v9276_v50, %v9275_v28  ;;  %v8539_v22 = vadd.f32 %v23486_v4, %v20261_v25 }
 0x7e6   : > { %v9274_v60 = vsel %vm9209_vm8, %v9176_v11, %v9242_v32  ;;  %v9179_v49 = vadd.f32 %v20237_v13, %v9142_v38  ;;  %v9145_v14 = vadd.f32 %v13010_v26, %v8839_v44  ;;  %v8844_v11 = vadd.f32 %v20232_v5, %v23487_v29  ;;  %v20339_v32 = vpop.f32.mrf.mxu1 }
 0x7e7   : > { %v10217_v9 = vadd.f32 %v10216_v23, %v9274_v60  ;;  %v9042_v42 = vpop.f32.mrf.mxu0  ;;  %v9303_v20 = vpack.c.bf16 %v9274_v60, %v9273_v24  ;;  %v9247_v61 = vmul.f32 %v20243_v2, %v9181_v0  ;;  %vm9214_vm13 = vcmp.gt.f32.partialorder %v9181_v0, 0.0 }
 0x7e8   : > { %v9245_v33 = vmul.f32 %v20243_v2, %v9179_v49  ;;  %v9143_v16 = vadd.f32 %v9042_v42, %v8837_v34  ;;  %vm9212_vm0 = vcmp.gt.f32.partialorder %v9179_v49, 0.0  ;;  %v9182_v53 = vadd.f32 %v20237_v13, %v9145_v14  ;;  %v20353_v42 = vpop.f32.mrf.mxu1 }
 0x7e9   : > { %v10218_v19 = vadd.f32 %v10217_v9, %v9275_v28  ;;  %v13013_v44 = vpop.f32.mrf.mxu0  ;;  %9574 = vmatmul.mubr.bf16.gmra.mxu1 %v9302_v54  ;;  %9767 = vmatmul.mubr.bf16.gmra.mxu0 %v9302_v54  ;;  %v8847_v24 = vadd.f32 %v20256_v62, %v23488_v17  ;;  %v9279_v38 = vsel %vm9214_vm13, %v9181_v0, %v9247_v61 }
 0x7ea   : > { %v9180_v46 = vadd.f32 %v20237_v13, %v9143_v16  ;;  %v9148_v15 = vadd.f32 %v13013_v44, %v8842_v47  ;;  %9583 = vmatprep.mubr.bf16.mxu1 %v23483_v48  ;;  %9776 = vmatprep.mubr.bf16.mxu0 %v23483_v48  ;;  %vm9215_vm10 = vcmp.gt.f32.partialorder %v9182_v53, 0.0  ;;  %v9248_v25 = vmul.f32 %v20243_v2, %v9182_v53 }
 0x7eb   : > { %v10219_v51 = vadd.f32 %v10218_v19, %v9276_v50  ;;  %v9055_v34 = vpop.f32.mrf.mxu0  ;;  %v9277_v43 = vsel %vm9212_vm0, %v9179_v49, %v9245_v33  ;;  %v8845_v28 = vadd.f32 %v20276_v30, %v8539_v22  ;;  %v23489_v19 = vld [vmem:[#allocation69_spill] sm:$0xff] }
 0x7ec   : > { %vm9213_vm14 = vcmp.gt.f32.partialorder %v9180_v46, 0.0  ;;  %v9246_v54 = vmul.f32 %v20243_v2, %v9180_v46  ;;  %v9146_v18 = vadd.f32 %v9055_v34, %v8840_v40  ;;  %v9280_v37 = vsel %vm9215_vm10, %v9182_v53, %v9248_v25 }
 0x7ed   : > { %v10220_v47 = vadd.f32 %v10219_v51, %v9277_v43  ;;  %v9185_v8 = vadd.f32 %v20237_v13, %v9148_v15  ;;  %v13014_v52 = vpop.f32.mrf.mxu0  ;;  %v20345_v5 = vpack.c.bf16 %v9280_v37, %v9279_v38  ;;  %v20364_v15 = vpop.f32.mrf.mxu1 }
 0x7ee   : > { %v9278_v41 = vsel %vm9213_vm14, %v9180_v46, %v9246_v54  ;;  %v9183_v39 = vadd.f32 %v20237_v13, %v9146_v18  ;;  %v9149_v40 = vadd.f32 %v13014_v52, %v8843_v3  ;;  %v8850_v3 = vadd.f32 %v20289_v27, %v20169_v7 }
 0x7ef   : > { %v10221_v23 = vadd.f32 %v10220_v47, %v9278_v41  ;;  %v9058_v50 = vpop.f32.mrf.mxu0  ;;  %v20343_v26 = vpack.c.bf16 %v9278_v41, %v9277_v43  ;;  %v9251_v9 = vmul.f32 %v20243_v2, %v9185_v8  ;;  %vm9218_vm12 = vcmp.gt.f32.partialorder %v9185_v8, 0.0 }
 0x7f0   : > { %vm9216_vm6 = vcmp.gt.f32.partialorder %v9183_v39, 0.0  ;;  %v9249_v60 = vmul.f32 %v20243_v2, %v9183_v39  ;;  %v9147_v62 = vadd.f32 %v9058_v50, %v8841_v12  ;;  %v9186_v0 = vadd.f32 %v20237_v13, %v9149_v40  ;;  %v23491_v50 = vld [vmem:[#allocation51_spill] sm:$0xff] }
 0x7f1   : > { %v10222_v49 = vadd.f32 %v10221_v23, %v9279_v38  ;;  %v13017_v14 = vpop.f32.mrf.mxu0  ;;  %9584 = vmatmul.mubr.bf16.gmra.mxu1 %v9303_v20  ;;  %9777 = vmatmul.mubr.bf16.gmra.mxu0 %v9303_v20  ;;  %v9283_v53 = vsel %vm9218_vm12, %v9185_v8, %v9251_v9  ;;  %v23490_v8 = vld [vmem:[#allocation200_spill] sm:$0xff] }
 0x7f2   : > { %v9184_v30 = vadd.f32 %v20237_v13, %v9147_v62  ;;  %v9152_v33 = vadd.f32 %v13017_v14, %v8846_v56  ;;  %9593 = vmatprep.mubr.bf16.mxu1 %v23483_v48  ;;  %9786 = vmatprep.mubr.bf16.mxu0 %v23483_v48  ;;  %v9281_v12 = vsel %vm9216_vm6, %v9183_v39, %v9249_v60  ;;  %vm9219_vm7 = vcmp.gt.f32.partialorder %v9186_v0, 0.0 }
 0x7f3   : > { %v10223_v16 = vadd.f32 %v10222_v49, %v9280_v37  ;;  %v9252_v4 = vmul.f32 %v20243_v2, %v9186_v0  ;;  %v9071_v20 = vpop.f32.mrf.mxu0  ;;  %v8543_v56 = vadd.f32 %v23489_v19, %v20265_v57  ;;  %v8848_v52 = vadd.f32 %v20299_v55, %v23490_v8 }
 0x7f4   : > { %vm9217_vm9 = vcmp.gt.f32.partialorder %v9184_v30, 0.0  ;;  %v9250_v7 = vmul.f32 %v20243_v2, %v9184_v30  ;;  %v9189_v27 = vadd.f32 %v20237_v13, %v9152_v33  ;;  %v9150_v22 = vadd.f32 %v9071_v20, %v8844_v11 }
 0x7f5   : > { %v10224_v44 = vadd.f32 %v10223_v16, %v9281_v12  ;;  %v9284_v61 = vsel %vm9219_vm7, %v9186_v0, %v9252_v4  ;;  %v13018_v46 = vpop.f32.mrf.mxu0  ;;  %v8851_v55 = vadd.f32 %v20312_v35, %v23491_v50  ;;  %v8849_v0 = vadd.f32 %v20325_v31, %v8543_v56 }
 0x7f6   : > { %v9282_v51 = vsel %vm9217_vm9, %v9184_v30, %v9250_v7  ;;  %vm9222_vm4 = vcmp.gt.f32.partialorder %v9189_v27, 0.0  ;;  %v9255_v25 = vmul.f32 %v20243_v2, %v9189_v27  ;;  %v9187_v34 = vadd.f32 %v20237_v13, %v9150_v22 }
 0x7f7   : > { %v10225_v43 = vadd.f32 %v10224_v44, %v9282_v51  ;;  %v9153_v54 = vadd.f32 %v13018_v46, %v8847_v24  ;;  %v9074_v18 = vpop.f32.mrf.mxu0  ;;  %v20368_v29 = vpack.c.bf16 %v9282_v51, %v9281_v12  ;;  %v20370_v11 = vpack.c.bf16 %v9284_v61, %v9283_v53  ;;  %v8800_v24 = vpop.f32.mrf.mxu1 }
 0x7f8   : > { %v9287_v57 = vsel %vm9222_vm4, %v9189_v27, %v9255_v25  ;;  %vm9220_vm11 = vcmp.gt.f32.partialorder %v9187_v34, 0.0  ;;  %v9253_v47 = vmul.f32 %v20243_v2, %v9187_v34  ;;  %v9151_v37 = vadd.f32 %v9074_v18, %v8845_v28 }
 0x7f9   : > { %v10226_v17 = vadd.f32 %v10225_v43, %v9283_v53  ;;  %v9190_v38 = vadd.f32 %v20237_v13, %v9153_v54  ;;  %v13021_v41 = vpop.f32.mrf.mxu0  ;;  %9594 = vmatmul.mubr.bf16.gmra.mxu1 %v20316_v21  ;;  %9787 = vmatmul.mubr.bf16.gmra.mxu0 %v20316_v21  ;;  %v8854_v14 = vadd.f32 %v20339_v32, %v20184_v10  ;;  %v12981_v35 = vpop.f32.mrf.mxu1  ;;  %vm10150_vm4 = vcmask 1040384  }
 0x7fa   : > { %v9285_v39 = vsel %vm9220_vm11, %v9187_v34, %v9253_v47  ;;  %v9188_v23 = vadd.f32 %v20237_v13, %v9151_v37  ;;  %v9156_v40 = vadd.f32 %v13021_v41, %v8850_v3  ;;  %9603 = vmatprep.mubr.bf16.mxu1 %v23483_v48  ;;  %9796 = vmatprep.mubr.bf16.mxu0 %v23483_v48 }
 0x7fb   : > { %v10227_v28 = vadd.f32 %v10226_v17, %v9284_v61  ;;  %vm9223_vm1 = vcmp.gt.f32.partialorder %v9190_v38, 0.0  ;;  %v9256_v60 = vmul.f32 %v20243_v2, %v9190_v38  ;;  %v9087_v62 = vpop.f32.mrf.mxu0  ;;  %v8852_v56 = vadd.f32 %v20353_v42, %v20187_v6  ;;  %v8813_v46 = vpop.f32.mrf.mxu1 }
 0x7fc   : > { %vm9221_vm3 = vcmp.gt.f32.partialorder %v9188_v23, 0.0  ;;  %v9254_v21 = vmul.f32 %v20243_v2, %v9188_v23  ;;  %v9193_v49 = vadd.f32 %v20237_v13, %v9156_v40  ;;  %v9154_v9 = vadd.f32 %v9087_v62, %v8848_v52 }
 0x7fd   : > { %v10228_v3 = vadd.f32 %v10227_v28, %v9285_v39  ;;  %v9288_v30 = vsel %vm9223_vm1, %v9190_v38, %v9256_v60  ;;  %v13022_v33 = vpop.f32.mrf.mxu0  ;;  %v8855_v6 = vadd.f32 %v20364_v15, %v20192_v45  ;;  %v8853_v47 = vadd.f32 %v8800_v24, %v20195_v59  ;;  %v12982_v38 = vpop.f32.mrf.mxu1 }
 0x7fe   : > { %v9286_v12 = vsel %vm9221_vm3, %v9188_v23, %v9254_v21  ;;  %vm9226_vm15 = vcmp.gt.f32.partialorder %v9193_v49, 0.0  ;;  %v9259_v16 = vmul.f32 %v20243_v2, %v9193_v49  ;;  %v9191_v4 = vadd.f32 %v20237_v13, %v9154_v9 }
 0x7ff   : > { %v10229_v20 = vadd.f32 %v10228_v3, %v9286_v12  ;;  %v9157_v7 = vadd.f32 %v13022_v33, %v8851_v55  ;;  %v9090_v27 = vpop.f32.mrf.mxu0  ;;  %v20391_v22 = vpack.c.bf16 %v9286_v12, %v9285_v39  ;;  %v20393_v19 = vpack.c.bf16 %v9288_v30, %v9287_v57 }
 0x800   : > { %v9291_v31 = vsel %vm9226_vm15, %v9193_v49, %v9259_v16  ;;  %vm9224_vm2 = vcmp.gt.f32.partialorder %v9191_v4, 0.0  ;;  %v9257_v10 = vmul.f32 %v20243_v2, %v9191_v4  ;;  %v9155_v32 = vadd.f32 %v9090_v27, %v8849_v0  ;;  %v8816_v49 = vpop.f32.mrf.mxu1 }
 0x801   : > { %v10230_v53 = vadd.f32 %v10229_v20, %v9287_v57  ;;  %v9194_v44 = vadd.f32 %v20237_v13, %v9157_v7  ;;  %v13025_v61 = vpop.f32.mrf.mxu0  ;;  %9604 = vmatmul.mubr.bf16.gmra.mxu1 %v20343_v26  ;;  %9797 = vmatmul.mubr.bf16.gmra.mxu0 %v20343_v26  ;;  %v8858_v37 = vadd.f32 %v12981_v35, %v20200_v1 }
 0x802   : > { %v9289_v51 = vsel %vm9224_vm2, %v9191_v4, %v9257_v10  ;;  %v9192_v25 = vadd.f32 %v20237_v13, %v9155_v32  ;;  %v9160_v34 = vadd.f32 %v13025_v61, %v8854_v14  ;;  %9613 = vmatprep.mubr.bf16.mxu1 %v23483_v48  ;;  %9806 = vmatprep.mubr.bf16.mxu0 %v23483_v48 }
 0x803   : > { %v10231_v42 = vadd.f32 %v10230_v53, %v9288_v30  ;;  %vm9227_vm5 = vcmp.gt.f32.partialorder %v9194_v44, 0.0  ;;  %v9260_v43 = vmul.f32 %v20243_v2, %v9194_v44  ;;  %v9103_v54 = vpop.f32.mrf.mxu0  ;;  %v8856_v28 = vadd.f32 %v8813_v46, %v20203_v36 }
 0x804   : > { %vm9225_vm8 = vcmp.gt.f32.partialorder %v9192_v25, 0.0  ;;  %v9258_v26 = vmul.f32 %v20243_v2, %v9192_v25  ;;  %v9197_v18 = vadd.f32 %v20237_v13, %v9160_v34  ;;  %v9158_v57 = vadd.f32 %v9103_v54, %v8852_v56 }
 0x805   : > { %v10232_v8 = vadd.f32 %v10231_v42, %v9289_v51  ;;  %v9292_v52 = vsel %vm9227_vm5, %v9194_v44, %v9260_v43  ;;  %v13026_v17 = vpop.f32.mrf.mxu0  ;;  %v8859_v12 = vadd.f32 %v12982_v38, %v20210_v58  ;;  %v8857_v16 = vadd.f32 %v8816_v49, %v20222_v63 }
 0x806   : > { %v9290_v45 = vsel %vm9225_vm8, %v9192_v25, %v9258_v26  ;;  %vm9230_vm0 = vcmp.gt.f32.partialorder %v9197_v18, 0.0  ;;  %v9263_v15 = vmul.f32 %v20243_v2, %v9197_v18  ;;  %v9195_v41 = vadd.f32 %v20237_v13, %v9158_v57 }
 0x807   : > { %v10233_v39 = vadd.f32 %v10232_v8, %v9290_v45  ;;  %v9161_v23 = vadd.f32 %v13026_v17, %v8855_v6  ;;  %v9106_v40 = vpop.f32.mrf.mxu0  ;;  %v20413_v50 = vpack.c.bf16 %v9290_v45, %v9289_v51  ;;  %v20415_v55 = vpack.c.bf16 %v9292_v52, %v9291_v31  ;;  %v9349_v45 = vld [vmem:[%s21050_s18] sm:$0xf] }
 0x808   : > { %v9295_v59 = vsel %vm9230_vm0, %v9197_v18, %v9263_v15  ;;  %vm9228_vm13 = vcmp.gt.f32.partialorder %v9195_v41, 0.0  ;;  %v9261_v1 = vmul.f32 %v20243_v2, %v9195_v41  ;;  %v9159_v24 = vadd.f32 %v9106_v40, %v8853_v47  ;;  %v23495_v15 = vld [vmem:[#allocation8_spill] sm:$0xff] }
 0x809   : > { %v10234_v60 = vadd.f32 %v10233_v39, %v9291_v31  ;;  %v9198_v62 = vadd.f32 %v20237_v13, %v9161_v23  ;;  %v13029_v21 = vpop.f32.mrf.mxu0  ;;  %9614 = vmatmul.mubr.bf16.gmra.mxu1 %v20345_v5  ;;  %9807 = vmatmul.mubr.bf16.gmra.mxu0 %v20345_v5  ;;  %v23496_v39 = vld [vmem:[#allocation6_spill] sm:$0xff] }
 0x80a   : > { %v9293_v9 = vsel %vm9228_vm13, %v9195_v41, %v9261_v1  ;;  %v9196_v0 = vadd.f32 %v20237_v13, %v9159_v24  ;;  %v9164_v14 = vadd.f32 %v13029_v21, %v8858_v37  ;;  %9623 = vmatprep.mubr.bf16.mxu1 %v23483_v48  ;;  %9816 = vmatprep.mubr.bf16.mxu0 %v23483_v48  ;;  %v23497_v23 = vsub.s32 2, %v23496_v39 }
 0x80b   : > { %v10235_v3 = vadd.f32 %v10234_v60, %v9292_v52  ;;  %vm9231_vm10 = vcmp.gt.f32.partialorder %v9198_v62, 0.0  ;;  %v9264_v36 = vmul.f32 %v20243_v2, %v9198_v62  ;;  %v9119_v30 = vpop.f32.mrf.mxu0  ;;  %v20478_v41 = vrot.slane %v9349_v45, %v23495_v15 }
 0x80c   : > { %vm9229_vm14 = vcmp.gt.f32.partialorder %v9196_v0, 0.0  ;;  %v9262_v33 = vmul.f32 %v20243_v2, %v9196_v0  ;;  %v9201_v35 = vadd.f32 %v20237_v13, %v9164_v14  ;;  %v9162_v5 = vadd.f32 %v9119_v30, %v8856_v28 }
 0x80d   : > { %v10236_v4 = vadd.f32 %v10235_v3, %v9293_v9  ;;  %v9296_v20 = vsel %vm9231_vm10, %v9198_v62, %v9264_v36  ;;  %v13030_v7 = vpop.f32.mrf.mxu0  ;;  %v20482_v40 = vrot.slane %v9349_v45, %v23497_v23 }
 0x80e   : > { %v9294_v27 = vsel %vm9229_vm14, %v9196_v0, %v9262_v33  ;;  %vm9234_vm6 = vcmp.gt.f32.partialorder %v9201_v35, 0.0  ;;  %v9267_v31 = vmul.f32 %v20243_v2, %v9201_v35  ;;  %v9199_v10 = vadd.f32 %v20237_v13, %v9162_v5 }
 0x80f   : > { %v10237_v32 = vadd.f32 %v10236_v4, %v9294_v27  ;;  %v9165_v56 = vadd.f32 %v13030_v7, %v8859_v12  ;;  %v9122_v53 = vpop.f32.mrf.mxu0  ;;  %v9313_v44 = vpack.c.bf16 %v9294_v27, %v9293_v9  ;;  %v9314_v61 = vpack.c.bf16 %v9296_v20, %v9295_v59 }
 0x810   : > { %v9299_v46 = vsel %vm9234_vm6, %v9201_v35, %v9267_v31  ;;  %vm9232_vm12 = vcmp.gt.f32.partialorder %v9199_v10, 0.0  ;;  %v9265_v58 = vmul.f32 %v20243_v2, %v9199_v10  ;;  %v9163_v51 = vadd.f32 %v9122_v53, %v8857_v16 }
 0x811   : > { %v10238_v63 = vadd.f32 %v10237_v32, %v9295_v59  ;;  %v9202_v25 = vadd.f32 %v20237_v13, %v9165_v56  ;;  %9624 = vmatmul.mubr.bf16.gmra.mxu1 %v20368_v29  ;;  %9817 = vmatmul.mubr.bf16.gmra.mxu0 %v20368_v29 }
 0x812   : > { %v9297_v34 = vsel %vm9232_vm12, %v9199_v10, %v9265_v58  ;;  %v9200_v6 = vadd.f32 %v20237_v13, %v9163_v51  ;;  %9633 = vmatprep.mubr.bf16.mxu1 %v23483_v48  ;;  %9826 = vmatprep.mubr.bf16.mxu0 %v23483_v48 }
 0x813   : > { %v10239_v42 = vadd.f32 %v10238_v63, %v9296_v20  ;;  %vm9235_vm7 = vcmp.gt.f32.partialorder %v9202_v25, 0.0  ;;  %v9268_v43 = vmul.f32 %v20243_v2, %v9202_v25 }
 0x814   : > { %vm9233_vm9 = vcmp.gt.f32.partialorder %v9200_v6, 0.0  ;;  %v9266_v54 = vmul.f32 %v20243_v2, %v9200_v6  ;;  %v13611_v2 = vld [vmem:[%s21043_s11] sm:$0xf] }
 0x815   : > { %v10240_v26 = vadd.f32 %v10239_v42, %v9297_v34  ;;  %v9300_v18 = vsel %vm9235_vm7, %v9202_v25, %v9268_v43 }
 0x816   : > { %v9298_v57 = vsel %vm9233_vm9, %v9200_v6, %v9266_v54  ;;  %v9316_v47 = vpack.c.bf16 %v9300_v18, %v9299_v46 }
 0x817   : > { %v10241_v37 = vadd.f32 %v10240_v26, %v9298_v57  ;;  %v9315_v29 = vpack.c.bf16 %v9298_v57, %v9297_v34 }
 0x819   : > { %v10242_v8 = vadd.f32 %v10241_v37, %v9299_v46  ;;  %9634 = vmatmul.mubr.bf16.gmra.mxu1 %v20370_v11  ;;  %9827 = vmatmul.mubr.bf16.gmra.mxu0 %v20370_v11  ;;  %v23493_v11 = vld [vmem:[#allocation9_spill] sm:$0xff] }
 0x81a   : > { %9643 = vmatprep.mubr.bf16.mxu1 %v23483_v48  ;;  %9836 = vmatprep.mubr.bf16.mxu0 %v23483_v48 }
 0x81b   : > { %v20445_v13 = vadd.f32 %v10242_v8, %v9300_v18 }
 0x81d   : > { %23492 = vst [vmem:[#allocation54_spill] sm:$0xff] %v20445_v13 }
 0x821   : > { %9644 = vmatmul.mubr.bf16.gmra.mxu1 %v20391_v22  ;;  %9837 = vmatmul.mubr.bf16.gmra.mxu0 %v20391_v22  ;;  %v2007_v22 = vrot.slane %v13611_v2, %v23493_v11 }
 0x822   : > { %9653 = vmatprep.mubr.bf16.mxu1 %v23483_v48  ;;  %9846 = vmatprep.mubr.bf16.mxu0 %v23483_v48 }
 0x829   : > { %9654 = vmatmul.mubr.bf16.gmra.mxu1 %v20393_v19  ;;  %9847 = vmatmul.mubr.bf16.gmra.mxu0 %v20393_v19  ;;  %v23494_v19 = vld [vmem:[#allocation14_spill] sm:$0xff] }
 0x82a   : > { %9663 = vmatprep.mubr.bf16.mxu1 %v23483_v48  ;;  %9856 = vmatprep.mubr.bf16.mxu0 %v23483_v48  ;;  %v2057_v52 = vadd.f32 %v23494_v19, %v2007_v22 }
 0x82c   : > { %v2103_v17 = vmax.f32 %v2057_v52, 0.0 }
 0x82e   : > { %v2105_v38 = vpack.c.bf16 %v2103_v17, %v2103_v17 }
 0x831   : > { %9664 = vmatmul.mubr.bf16.gmra.mxu1 %v20413_v50  ;;  %9857 = vmatmul.mubr.bf16.gmra.mxu0 %v20413_v50  ;;  %v20485_v50 = vrot.slane %v9349_v45, %v23493_v11 }
 0x832   : > { %9673 = vmatprep.mubr.bf16.mxu1 %v23483_v48  ;;  %9866 = vmatprep.mubr.bf16.mxu0 %v23483_v48 }
 0x839   : > { %9674 = vmatmul.mubr.bf16.gmra.mxu1 %v20415_v55  ;;  %9867 = vmatmul.mubr.bf16.gmra.mxu0 %v20415_v55  ;;  %v23498_v55 = vsub.s32 3, %v23496_v39 }
 0x83a   : > { %9683 = vmatprep.mubr.bf16.mxu1 %v23483_v48  ;;  %9876 = vmatprep.mubr.bf16.mxu0 %v23483_v48 }
 0x83b   : > { %v20489_v59 = vrot.slane %v9349_v45, %v23498_v55 }
 0x841   : > { %9684 = vmatmul.mubr.bf16.gmra.mxu1 %v9313_v44  ;;  %9877 = vmatmul.mubr.bf16.gmra.mxu0 %v9313_v44 }
 0x842   : > { %9693 = vmatprep.mubr.bf16.mxu1 %v23483_v48  ;;  %9886 = vmatprep.mubr.bf16.mxu0 %v23483_v48 }
 0x849   : > { %9694 = vmatmul.mubr.bf16.gmra.mxu1 %v9314_v61  ;;  %9887 = vmatmul.mubr.bf16.gmra.mxu0 %v9314_v61 }
 0x84a   : > { %9703 = vmatprep.mubr.bf16.mxu1 %v23483_v48  ;;  %9896 = vmatprep.mubr.bf16.mxu0 %v23483_v48 }
 0x851   : > { %9704 = vmatmul.mubr.bf16.gmra.mxu1 %v9315_v29  ;;  %9897 = vmatmul.mubr.bf16.gmra.mxu0 %v9315_v29 }
 0x852   : > { %9713 = vmatprep.mubr.bf16.mxu1 %v23483_v48  ;;  %9906 = vmatprep.mubr.bf16.mxu0 %v23483_v48 }
 0x859   : > { %9714 = vmatmul.mubr.bf16.gmra.mxu1 %v9316_v47  ;;  %9907 = vmatmul.mubr.bf16.gmra.mxu0 %v9316_v47 }
 0x85a   : > { %10141 = vmatprep.mubr.bf16.mxu1 %v2105_v38 }
 0x8a1   : > { %v9565_v1 = vpop.f32.mrf.mxu1  ;;  %v9758_v24 = vpop.f32.mrf.mxu0 }
 0x8a2   : > { %v9566_v28 = vadd.f32 %v9565_v1, %v20478_v41  ;;  %v9759_v60 = vadd.f32 %v9758_v24, %v20482_v40 }
 0x8a3   : > { %v9567_v62 = vpop.f32.mrf.mxu1  ;;  %v9760_v21 = vpop.f32.mrf.mxu0 }
 0x8a4   : > { %v9568_v49 = vadd.f32 %v9567_v62, %v20485_v50  ;;  %v9761_v9 = vadd.f32 %v9760_v21, %v20489_v59  ;;  %v9917_v30 = vmax.f32 %v9566_v28, 0.0  ;;  %v9919_v33 = vmax.f32 %v9759_v60, 0.0 }
 0x8a5   : > { %v9569_v0 = vpop.f32.mrf.mxu1  ;;  %v9762_v14 = vpop.f32.mrf.mxu0 }
 0x8a6   : > { %v9570_v3 = vadd.f32 %v9569_v0, %v20478_v41  ;;  %v9763_v36 = vadd.f32 %v9762_v14, %v20482_v40  ;;  %v9918_v7 = vmax.f32 %v9568_v49, 0.0  ;;  %v9920_v27 = vmax.f32 %v9761_v9, 0.0 }
 0x8a7   : > { %v9571_v35 = vpop.f32.mrf.mxu1  ;;  %v9764_v5 = vpop.f32.mrf.mxu0 }
 0x8a8   : > { %v9921_v12 = vmax.f32 %v9570_v3, 0.0  ;;  %v9923_v16 = vmax.f32 %v9763_v36, 0.0  ;;  %v9572_v4 = vadd.f32 %v9571_v35, %v20485_v50  ;;  %v9765_v20 = vadd.f32 %v9764_v5, %v20489_v59 }
 0x8a9   : > { %v9575_v31 = vpop.f32.mrf.mxu1  ;;  %v9768_v10 = vpop.f32.mrf.mxu0 }
 0x8aa   : > { %v20499_v32 = vpack.c.bf16 %v9921_v12, %v9917_v30  ;;  %v20501_v56 = vpack.c.bf16 %v9923_v16, %v9919_v33  ;;  %v9922_v53 = vmax.f32 %v9572_v4, 0.0  ;;  %v9924_v44 = vmax.f32 %v9765_v20, 0.0 }
 0x8ab   : > { %v9576_v61 = vadd.f32 %v9575_v31, %v20478_v41  ;;  %v9769_v46 = vadd.f32 %v9768_v10, %v20482_v40  ;;  %v9577_v58 = vpop.f32.mrf.mxu1  ;;  %v9770_v51 = vpop.f32.mrf.mxu0 }
 0x8ac   : > { %23499 = vst [vmem:[#allocation73_spill] sm:$0xff] %v20499_v32  ;;  %23500 = vst [vmem:[#allocation61_spill] sm:$0xff] %v20501_v56  ;;  %v20505_v63 = vpack.c.bf16 %v9922_v53, %v9918_v7  ;;  %v20507_v25 = vpack.c.bf16 %v9924_v44, %v9920_v27  ;;  %v9578_v34 = vadd.f32 %v9577_v58, %v20485_v50 }
 0x8ad   : > { %v9771_v6 = vadd.f32 %v9770_v51, %v20489_v59  ;;  %v9579_v42 = vpop.f32.mrf.mxu1  ;;  %v9772_v43 = vpop.f32.mrf.mxu0  ;;  %v9925_v18 = vmax.f32 %v9576_v61, 0.0  ;;  %v9927_v57 = vmax.f32 %v9769_v46, 0.0 }
 0x8ae   : > { %23501 = vst [vmem:[#allocation157_spill] sm:$0xff] %v20505_v63  ;;  %23502 = vst [vmem:[#allocation66_spill] sm:$0xff] %v20507_v25  ;;  %v9580_v54 = vadd.f32 %v9579_v42, %v20478_v41  ;;  %v9773_v26 = vadd.f32 %v9772_v43, %v20482_v40  ;;  %v9926_v22 = vmax.f32 %v9578_v34, 0.0 }
 0x8af   : > { %v9581_v47 = vpop.f32.mrf.mxu1  ;;  %v9774_v37 = vpop.f32.mrf.mxu0  ;;  %v9928_v19 = vmax.f32 %v9771_v6, 0.0 }
 0x8b0   : > { %v9929_v29 = vmax.f32 %v9580_v54, 0.0  ;;  %v9931_v8 = vmax.f32 %v9773_v26, 0.0  ;;  %v9582_v2 = vadd.f32 %v9581_v47, %v20485_v50  ;;  %v9775_v11 = vadd.f32 %v9774_v37, %v20489_v59 }
 0x8b1   : > { %v9585_v52 = vpop.f32.mrf.mxu1  ;;  %v20515_v17 = vpop.f32.mrf.mxu0 }
 0x8b2   : > { %v20517_v38 = vpack.c.bf16 %v9929_v29, %v9925_v18  ;;  %v20519_v45 = vpack.c.bf16 %v9931_v8, %v9927_v57  ;;  %v9930_v39 = vmax.f32 %v9582_v2, 0.0  ;;  %v9932_v23 = vmax.f32 %v9775_v11, 0.0 }
 0x8b3   : > { %v9587_v55 = vpop.f32.mrf.mxu1  ;;  %v9780_v1 = vpop.f32.mrf.mxu0  ;;  %v9586_v60 = vadd.f32 %v9585_v52, %v20478_v41 }
 0x8b4   : > { %23503 = vst [vmem:[#allocation208_spill] sm:$0xff] %v20517_v38  ;;  %23504 = vst [vmem:[#allocation203_spill] sm:$0xff] %v20519_v45  ;;  %v20521_v24 = vpack.c.bf16 %v9930_v39, %v9926_v22  ;;  %v20523_v28 = vpack.c.bf16 %v9932_v23, %v9928_v19  ;;  %v9588_v49 = vadd.f32 %v9587_v55, %v20485_v50 }
 0x8b5   : > { %v9589_v62 = vpop.f32.mrf.mxu1  ;;  %v9782_v21 = vpop.f32.mrf.mxu0  ;;  %v9933_v3 = vmax.f32 %v9586_v60, 0.0 }
 0x8b6   : > { %23505 = vst [vmem:[#allocation99_spill] sm:$0xff] %v20521_v24  ;;  %23506 = vst [vmem:[#allocation78_spill] sm:$0xff] %v20523_v28  ;;  %v9590_v9 = vadd.f32 %v9589_v62, %v20478_v41  ;;  %v9934_v5 = vmax.f32 %v9588_v49, 0.0 }
 0x8b7   : > { %v9591_v0 = vpop.f32.mrf.mxu1  ;;  %v9784_v14 = vpop.f32.mrf.mxu0 }
 0x8b8   : > { %v9937_v36 = vmax.f32 %v9590_v9, 0.0  ;;  %v9592_v30 = vadd.f32 %v9591_v0, %v20485_v50  ;;  %v20551_v55 = vadd.f32 %v9784_v14, %v20489_v59 }
 0x8b9   : > { %v9595_v33 = vpop.f32.mrf.mxu1  ;;  %v9788_v35 = vpop.f32.mrf.mxu0 }
 0x8ba   : > { %v20529_v12 = vpack.c.bf16 %v9937_v36, %v9933_v3  ;;  %v9938_v16 = vmax.f32 %v9592_v30, 0.0  ;;  %v9596_v27 = vadd.f32 %v9595_v33, %v20478_v41  ;;  %v20562_v33 = vadd.f32 %v20515_v17, %v20482_v40 }
 0x8bb   : > { %v20531_v4 = vpop.f32.mrf.mxu1  ;;  %v9790_v20 = vpop.f32.mrf.mxu0 }
 0x8bc   : > { %23507 = vst [vmem:[#allocation127_spill] sm:$0xff] %v20529_v12  ;;  %v20533_v7 = vpack.c.bf16 %v9938_v16, %v9934_v5  ;;  %v9941_v46 = vmax.f32 %v9596_v27, 0.0  ;;  %v9791_v60 = vadd.f32 %v9790_v20, %v20489_v59  ;;  %v20574_v20 = vadd.f32 %v9780_v1, %v20489_v59 }
 0x8bd   : > { %v9599_v31 = vpop.f32.mrf.mxu1  ;;  %v9792_v10 = vpop.f32.mrf.mxu0  ;;  %v20577_v27 = vadd.f32 %v9782_v21, %v20482_v40 }
 0x8be   : > { %23508 = vst [vmem:[#allocation72_spill] sm:$0xff] %v20533_v7  ;;  %v9600_v53 = vadd.f32 %v9599_v31, %v20478_v41  ;;  %v20555_v9 = vadd.f32 %v9792_v10, %v20482_v40  ;;  %v9944_v10 = vmax.f32 %v9791_v60, 0.0 }
 0x8bf   : > { %v20537_v44 = vpop.f32.mrf.mxu1  ;;  %v9794_v61 = vpop.f32.mrf.mxu0 }
 0x8c0   : > { %v9945_v58 = vmax.f32 %v9600_v53, 0.0  ;;  %v9795_v52 = vadd.f32 %v9794_v61, %v20489_v59  ;;  %v20581_v61 = vadd.f32 %v9788_v35, %v20482_v40 }
 0x8c1   : > { %v20539_v51 = vpop.f32.mrf.mxu1  ;;  %v9798_v34 = vpop.f32.mrf.mxu0 }
 0x8c2   : > { %v20541_v6 = vpack.c.bf16 %v9945_v58, %v9941_v46  ;;  %v9948_v0 = vmax.f32 %v9795_v52, 0.0  ;;  %v20558_v3 = vadd.f32 %v9798_v34, %v20482_v40 }
 0x8c3   : > { %v9607_v42 = vpop.f32.mrf.mxu1  ;;  %v9800_v43 = vpop.f32.mrf.mxu0 }
 0x8c4   : > { %23509 = vst [vmem:[#allocation82_spill] sm:$0xff] %v20541_v6  ;;  %v20565_v14 = vadd.f32 %v9800_v43, %v20489_v59  ;;  %v20590_v1 = vpack.c.bf16 %v9948_v0, %v9944_v10  ;;  %v20594_v43 = vadd.f32 %v9607_v42, %v20485_v50 }
 0x8c5   : > { %v20543_v54 = vpop.f32.mrf.mxu1  ;;  %v9802_v26 = vpop.f32.mrf.mxu0 }
 0x8c6   : > { %v20568_v5 = vadd.f32 %v9802_v26, %v20482_v40 }
 0x8c7   : > { %v9611_v18 = vpop.f32.mrf.mxu1  ;;  %v9804_v57 = vpop.f32.mrf.mxu0 }
 0x8c8   : > { %v20571_v16 = vadd.f32 %v9804_v57, %v20489_v59  ;;  %v20602_v60 = vadd.f32 %v9611_v18, %v20485_v50 }
 0x8c9   : > { %v20545_v47 = vpop.f32.mrf.mxu1  ;;  %v9808_v37 = vpop.f32.mrf.mxu0 }
 0x8ca   : > { %v20606_v0 = vadd.f32 %v9808_v37, %v20482_v40 }
 0x8cb   : > { %v9617_v29 = vpop.f32.mrf.mxu1  ;;  %v9810_v8 = vpop.f32.mrf.mxu0 }
 0x8cc   : > { %v20585_v58 = vadd.f32 %v9810_v8, %v20489_v59  ;;  %v20609_v42 = vadd.f32 %v9617_v29, %v20485_v50 }
 0x8cd   : > { %v20547_v2 = vpop.f32.mrf.mxu1  ;;  %v9812_v11 = vpop.f32.mrf.mxu0 }
 0x8ce   : > { %v20588_v34 = vadd.f32 %v9812_v11, %v20482_v40  ;;  %v9960_v21 = vmax.f32 %v20585_v58, 0.0 }
 0x8cf   : > { %v9621_v22 = vpop.f32.mrf.mxu1  ;;  %v9814_v19 = vpop.f32.mrf.mxu0 }
 0x8d0   : > { %v20597_v26 = vadd.f32 %v9814_v19, %v20489_v59  ;;  %v20616_v18 = vadd.f32 %v9621_v22, %v20485_v50 }
 0x8d1   : > { %v9625_v39 = vpop.f32.mrf.mxu1  ;;  %v9818_v23 = vpop.f32.mrf.mxu0 }
 0x8d2   : > { %v9964_v37 = vmax.f32 %v20597_v26, 0.0  ;;  %v20621_v29 = vadd.f32 %v9625_v39, %v20478_v41 }
 0x8d3   : > { %v9627_v62 = vpop.f32.mrf.mxu1  ;;  %v9820_v49 = vpop.f32.mrf.mxu0 }
 0x8d4   : > { %v9628_v19 = vadd.f32 %v9627_v62, %v20485_v50  ;;  %v9821_v10 = vadd.f32 %v9820_v49, %v20489_v59  ;;  %v20624_v62 = vadd.f32 %v9818_v23, %v20482_v40 }
 0x8d5   : > { %v9629_v36 = vpop.f32.mrf.mxu1  ;;  %v9822_v30 = vpop.f32.mrf.mxu0 }
 0x8d6   : > { %v9966_v48 = vmax.f32 %v9628_v19, 0.0  ;;  %v9968_v26 = vmax.f32 %v9821_v10, 0.0 }
 0x8d7   : > { %v9631_v17 = vpop.f32.mrf.mxu1  ;;  %v9824_v53 = vpop.f32.mrf.mxu0 }
 0x8d8   : > { %v9632_v11 = vadd.f32 %v9631_v17, %v20485_v50  ;;  %v9825_v49 = vadd.f32 %v9824_v53, %v20489_v59  ;;  %v9823_v53 = vadd.f32 %v9822_v30, %v20482_v40 }
 0x8d9   : > { %v9635_v35 = vpop.f32.mrf.mxu1  ;;  %v9828_v57 = vpop.f32.mrf.mxu0 }
 0x8da   : > { %v9636_v39 = vadd.f32 %v9635_v35, %v20478_v41  ;;  %v9829_v15 = vadd.f32 %v9828_v57, %v20482_v40  ;;  %v9970_v63 = vmax.f32 %v9632_v11, 0.0  ;;  %v9971_v25 = vmax.f32 %v9823_v53, 0.0 }
 0x8db   : > { %v9637_v46 = vpop.f32.mrf.mxu1  ;;  %v9830_v31 = vpop.f32.mrf.mxu0 }
 0x8dc   : > { %v9638_v58 = vadd.f32 %v9637_v46, %v20485_v50  ;;  %v9831_v8 = vadd.f32 %v9830_v31, %v20489_v59  ;;  %v20637_v31 = vadd.f32 %v9629_v36, %v20478_v41  ;;  %v9973_v6 = vmax.f32 %v9636_v39, 0.0 }
 0x8dd   : > { %v9639_v52 = vpop.f32.mrf.mxu1  ;;  %v9832_v13 = vpop.f32.mrf.mxu0  ;;  %v9975_v56 = vmax.f32 %v9829_v15, 0.0  ;;  %v10070_v36 = vpack.c.bf16 %v9970_v63, %v9966_v48  ;;  %v9962_v15 = vmax.f32 %v20616_v18, 0.0  ;;  %v10068_v48 = vpack.c.bf16 %v9964_v37, %v9960_v21 }
 0x8de   : > { %v9640_v22 = vadd.f32 %v9639_v52, %v20478_v41  ;;  %v9833_v17 = vadd.f32 %v9832_v13, %v20482_v40  ;;  %v9972_v52 = vmax.f32 %v9825_v49, 0.0  ;;  %v9974_v35 = vmax.f32 %v9638_v58, 0.0 }
 0x8df   : > { %v9641_v23 = vpop.f32.mrf.mxu1  ;;  %v9834_v32 = vpop.f32.mrf.mxu0  ;;  %v9976_v12 = vmax.f32 %v9831_v8, 0.0  ;;  %v9967_v63 = vmax.f32 %v20624_v62, 0.0 }
 0x8e0   : > { %v9642_v38 = vadd.f32 %v9641_v23, %v20485_v50  ;;  %v9835_v46 = vadd.f32 %v9834_v32, %v20489_v59  ;;  %v9977_v13 = vmax.f32 %v9640_v22, 0.0  ;;  %v9979_v19 = vmax.f32 %v9833_v17, 0.0 }
 0x8e1   : > { %v9645_v10 = vpop.f32.mrf.mxu1  ;;  %v9838_v24 = vpop.f32.mrf.mxu0  ;;  %v10072_v39 = vpack.c.bf16 %v9972_v52, %v9968_v26  ;;  %v10071_v52 = vpack.c.bf16 %v9971_v25, %v9967_v63 }
 0x8e2   : > { %v9978_v57 = vmax.f32 %v9642_v38, 0.0  ;;  %v9980_v7 = vmax.f32 %v9835_v46, 0.0  ;;  %v9646_v30 = vadd.f32 %v9645_v10, %v20478_v41  ;;  %v9839_v11 = vadd.f32 %v9838_v24, %v20482_v40 }
 0x8e3   : > { %v9647_v23 = vpop.f32.mrf.mxu1  ;;  %v9840_v32 = vpop.f32.mrf.mxu0  ;;  %v10073_v22 = vpack.c.bf16 %v9977_v13, %v9973_v6  ;;  %v10075_v17 = vpack.c.bf16 %v9979_v19, %v9975_v56 }
 0x8e4   : > { %v10074_v45 = vpack.c.bf16 %v9978_v57, %v9974_v35  ;;  %v10076_v49 = vpack.c.bf16 %v9980_v7, %v9976_v12  ;;  %v9648_v28 = vadd.f32 %v9647_v23, %v20485_v50  ;;  %v9841_v8 = vadd.f32 %v9840_v32, %v20489_v59 }
 0x8e5   : > { %v9649_v38 = vpop.f32.mrf.mxu1  ;;  %v9842_v58 = vpop.f32.mrf.mxu0  ;;  %v9981_v12 = vmax.f32 %v9646_v30, 0.0  ;;  %v9983_v56 = vmax.f32 %v9839_v11, 0.0  ;;  %v9959_v11 = vmax.f32 %v20606_v0, 0.0  ;;  %v9965_v23 = vmax.f32 %v20621_v29, 0.0 }
 0x8e6   : > { %v9650_v46 = vadd.f32 %v9649_v38, %v20478_v41  ;;  %v9843_v24 = vadd.f32 %v9842_v58, %v20482_v40  ;;  %10109 = vmatprep.subr.bf16.mxu1 %v10074_v45  ;;  %10172 = vmatprep.subr.bf16.mxu0 %v10076_v49  ;;  %v9969_v45 = vmax.f32 %v20637_v31, 0.0  ;;  %v9982_v21 = vmax.f32 %v9648_v28, 0.0 }
 0x8e7   : > { %v9651_v7 = vpop.f32.mrf.mxu1  ;;  %v9844_v6 = vpop.f32.mrf.mxu0  ;;  %10110 = vmatpush1.bf16.xpose.msra.mxu1 %v10073_v22  ;;  %10173 = vmatpush1.bf16.msra.mxu0 %v10075_v17  ;;  %v9984_v37 = vmax.f32 %v9841_v8, 0.0  ;;  %v9958_v28 = vmax.f32 %v20609_v42, 0.0  ;;  %v9620_v49 = vadd.f32 %v20547_v2, %v20478_v41  ;;  %v23514_v0 = vmax.f32 %v20588_v34, 0.0 }
 0x8e8   : > { %v9985_v53 = vmax.f32 %v9650_v46, 0.0  ;;  %v9987_v13 = vmax.f32 %v9843_v24, 0.0  ;;  %v9652_v18 = vadd.f32 %v9651_v7, %v20485_v50  ;;  %v9845_v26 = vadd.f32 %v9844_v6, %v20489_v59  ;;  %10111 = vmatprep.subr.bf16.mxu1 %v10070_v36  ;;  %10174 = vmatprep.subr.bf16.mxu0 %v10072_v39 }
 0x8e9   : > { %v9655_v62 = vpop.f32.mrf.mxu1  ;;  %v9848_v19 = vpop.f32.mrf.mxu0  ;;  %v10067_v29 = vpack.c.bf16 %v23514_v0, %v9959_v11  ;;  %v10069_v8 = vpack.c.bf16 %v9969_v45, %v9965_v23  ;;  %v23515_v42 = vmax.f32 %v20565_v14, 0.0  ;;  %v23516_v24 = vmax.f32 %v20571_v16, 0.0 }
 0x8ea   : > { %v20650_v10 = vpack.c.bf16 %v9985_v53, %v9981_v12  ;;  %v20652_v35 = vpack.c.bf16 %v9987_v13, %v9983_v56  ;;  %v9986_v57 = vmax.f32 %v9652_v18, 0.0  ;;  %v9988_v30 = vmax.f32 %v9845_v26, 0.0 }
 0x8eb   : > { %v9656_v32 = vadd.f32 %v9655_v62, %v20478_v41  ;;  %v9849_v36 = vadd.f32 %v9848_v19, %v20482_v40  ;;  %v9657_v31 = vpop.f32.mrf.mxu1  ;;  %v9850_v25 = vpop.f32.mrf.mxu0  ;;  %10175 = vmatpush1.bf16.msra.mxu0 %v10071_v52  ;;  %v10064_v2 = vpack.c.bf16 %v23516_v24, %v23515_v42  ;;  %v10066_v63 = vpack.c.bf16 %v9962_v15, %v9958_v28 }
 0x8ec   : > { %23510 = vst [vmem:[#allocation211_spill] sm:$0xff] %v20650_v10  ;;  %23511 = vst [vmem:[#allocation214_spill] sm:$0xff] %v20652_v35  ;;  %v20661_v22 = vpack.c.bf16 %v9986_v57, %v9982_v21  ;;  %v20663_v17 = vpack.c.bf16 %v9988_v30, %v9984_v37  ;;  %10176 = vmatprep.subr.bf16.mxu0 %v10068_v48  ;;  %v9658_v38 = vadd.f32 %v9657_v31, %v20485_v50 }
 0x8ed   : > { %v9851_v58 = vadd.f32 %v9850_v25, %v20489_v59  ;;  %v9659_v39 = vpop.f32.mrf.mxu1  ;;  %v9852_v46 = vpop.f32.mrf.mxu0  ;;  %v23517_v34 = vmax.f32 %v20558_v3, 0.0  ;;  %v23518_v56 = vmax.f32 %v20568_v5, 0.0  ;;  %v9616_v6 = vadd.f32 %v20545_v47, %v20478_v41 }
 0x8ee   : > { %23512 = vst [vmem:[#allocation100_spill] sm:$0xff] %v20661_v22  ;;  %23513 = vst [vmem:[#allocation216_spill] sm:$0xff] %v20663_v17  ;;  %v9660_v12 = vadd.f32 %v9659_v39, %v20478_v41  ;;  %v9853_v48 = vadd.f32 %v9852_v46, %v20482_v40  ;;  %v9989_v53 = vmax.f32 %v9656_v32, 0.0  ;;  %v9991_v13 = vmax.f32 %v9849_v36, 0.0  ;;  %v23537_v22 = vld [vmem:[#allocation73_spill] sm:$0xff] }
 0x8ef   : > { %v10063_v7 = vpack.c.bf16 %v23518_v56, %v23517_v34  ;;  %v9661_v18 = vpop.f32.mrf.mxu1  ;;  %v9854_v14 = vpop.f32.mrf.mxu0  ;;  %10112 = vmatpush1.bf16.xpose.msra.mxu1 %v10069_v8  ;;  %10177 = vmatpush1.bf16.msra.mxu0 %v10067_v29  ;;  %v9954_v3 = vmax.f32 %v20602_v60, 0.0  ;;  %v9961_v5 = vmax.f32 %v9620_v49, 0.0  ;;  %v9990_v52 = vmax.f32 %v9658_v38, 0.0 }
 0x8f0   : > { %v9993_v16 = vmax.f32 %v9660_v12, 0.0  ;;  %v9995_v15 = vmax.f32 %v9853_v48, 0.0  ;;  %v9662_v26 = vadd.f32 %v9661_v18, %v20485_v50  ;;  %v9855_v45 = vadd.f32 %v9854_v14, %v20489_v59  ;;  %10113 = vmatprep.subr.bf16.mxu1 %v10066_v63  ;;  %10178 = vmatprep.subr.bf16.mxu0 %v10064_v2 }
 0x8f1   : > { %v9992_v21 = vmax.f32 %v9851_v58, 0.0  ;;  %v9665_v47 = vpop.f32.mrf.mxu1  ;;  %v20684_v37 = vpop.f32.mrf.mxu0  ;;  %v9936_v11 = vmax.f32 %v20574_v20, 0.0  ;;  %v9939_v23 = vmax.f32 %v20577_v27, 0.0  ;;  %v9943_v32 = vmax.f32 %v20581_v61, 0.0 }
 0x8f2   : > { %v20686_v62 = vpack.c.bf16 %v9993_v16, %v9989_v53  ;;  %v20688_v19 = vpack.c.bf16 %v9995_v15, %v9991_v13  ;;  %v9994_v57 = vmax.f32 %v9662_v26, 0.0  ;;  %v9996_v30 = vmax.f32 %v9855_v45, 0.0  ;;  %v23526_v26 = vld [vmem:[#allocation78_spill] sm:$0xff] }
 0x8f3   : > { %v9957_v36 = vmax.f32 %v9616_v6, 0.0  ;;  %v9667_v60 = vpop.f32.mrf.mxu1  ;;  %v20693_v31 = vpop.f32.mrf.mxu0  ;;  %10179 = vmatpush1.bf16.msra.mxu0 %v10063_v7  ;;  %v9950_v25 = vmax.f32 %v20594_v43, 0.0  ;;  %v9666_v0 = vadd.f32 %v9665_v47, %v20478_v41  ;;  %v23522_v20 = vmax.f32 %v20551_v55, 0.0 }
 0x8f4   : > { %23519 = vst [vmem:[#allocation168_spill] sm:$0xff] %v20686_v62  ;;  %23520 = vst [vmem:[#allocation84_spill] sm:$0xff] %v20688_v19  ;;  %v20696_v28 = vpack.c.bf16 %v9994_v57, %v9990_v52  ;;  %v20698_v49 = vpack.c.bf16 %v9996_v30, %v9992_v21  ;;  %10180 = vmatprep.subr.bf16.mxu0 %v20590_v1  ;;  %v23523_v61 = vmax.f32 %v20555_v9, 0.0  ;;  %v9935_v55 = vmax.f32 %v20562_v33, 0.0  ;;  %v23527_v30 = vld [vmem:[#allocation203_spill] sm:$0xff] }
 0x8f5   : > { %v10056_v27 = vpack.c.bf16 %v23522_v20, %v9936_v11  ;;  %v9610_v8 = vadd.f32 %v20543_v54, %v20478_v41  ;;  %v10065_v38 = vpack.c.bf16 %v9961_v5, %v9957_v36  ;;  %v9669_v58 = vpop.f32.mrf.mxu1  ;;  %v20708_v43 = vpop.f32.mrf.mxu0  ;;  %v9602_v39 = vadd.f32 %v20537_v44, %v20485_v50 }
 0x8f6   : > { %23521 = vst [vmem:[#allocation19_spill] sm:$0xff] %v20696_v28  ;;  %v10059_v29 = vpack.c.bf16 %v23523_v61, %v9943_v32  ;;  %v10062_v46 = vpack.c.bf16 %v9954_v3, %v9950_v25  ;;  %v9668_v42 = vadd.f32 %v9667_v60, %v20485_v50  ;;  %v9670_v1 = vadd.f32 %v9669_v58, %v20478_v41  ;;  %v23528_v32 = vld [vmem:[#allocation66_spill] sm:$0xff] }
 0x8f7   : > { %v9606_v9 = vadd.f32 %v20539_v51, %v20478_v41  ;;  %v9671_v24 = vpop.f32.mrf.mxu1  ;;  %v20717_v2 = vpop.f32.mrf.mxu0  ;;  %10114 = vmatpush1.bf16.xpose.msra.mxu1 %v10065_v38  ;;  %v9598_v54 = vadd.f32 %v20531_v4, %v20485_v50  ;;  %v9997_v63 = vmax.f32 %v9666_v0, 0.0  ;;  %v10055_v48 = vpack.c.bf16 %v9939_v23, %v9935_v55  ;;  %v23531_v58 = vld [vmem:[#allocation82_spill] sm:$0xff] }
 0x8f8   : > { %10181 = vmatpush1.bf16.msra.mxu0 %v10059_v29  ;;  %v10001_v44 = vmax.f32 %v9670_v1, 0.0  ;;  %v9672_v12 = vadd.f32 %v9671_v24, %v20485_v50  ;;  %10115 = vmatprep.subr.bf16.mxu1 %v10062_v46  ;;  %v9953_v34 = vmax.f32 %v9610_v8, 0.0  ;;  %v9946_v51 = vmax.f32 %v9602_v39, 0.0  ;;  %v23532_v39 = vld [vmem:[#allocation72_spill] sm:$0xff] }
 0x8f9   : > { %10182 = vmatprep.subr.bf16.mxu0 %v10056_v27  ;;  %v9675_v33 = vpop.f32.mrf.mxu1  ;;  %v20722_v56 = vpop.f32.mrf.mxu0  ;;  %v9998_v7 = vmax.f32 %v9668_v42, 0.0  ;;  %v9949_v13 = vmax.f32 %v9606_v9, 0.0  ;;  %v9942_v14 = vmax.f32 %v9598_v54, 0.0  ;;  %v23530_v27 = vld [vmem:[#allocation61_spill] sm:$0xff] }
 0x8fa   : > { %v20724_v6 = vpack.c.bf16 %v10001_v44, %v9997_v63  ;;  %v10002_v53 = vmax.f32 %v9672_v12, 0.0  ;;  %v9676_v15 = vadd.f32 %v9675_v33, %v20478_v41  ;;  %v23533_v44 = vld [vmem:[#allocation127_spill] sm:$0xff] }
 0x8fb   : > { %v20726_v18 = vpop.f32.mrf.mxu1  ;;  %v20728_v4 = vpop.f32.mrf.mxu0  ;;  %v10061_v45 = vpack.c.bf16 %v9953_v34, %v9949_v13  ;;  %v10058_v52 = vpack.c.bf16 %v9946_v51, %v9942_v14  ;;  %v23534_v12 = vld [vmem:[#allocation99_spill] sm:$0xff] }
 0x8fc   : > { %23524 = vst [vmem:[#allocation169_spill] sm:$0xff] %v20724_v6  ;;  %10183 = vmatpush1.bf16.msra.mxu0 %v10055_v48  ;;  %v20730_v16 = vpack.c.bf16 %v10002_v53, %v9998_v7  ;;  %v10005_v11 = vmax.f32 %v9676_v15, 0.0  ;;  %v23535_v15 = vld [vmem:[#allocation208_spill] sm:$0xff] }
 0x8fd   : > { %10184 = vmatprep.subr.bf16.mxu0 %v23526_v26  ;;  %v9679_v3 = vpop.f32.mrf.mxu1  ;;  %v20734_v5 = vpop.f32.mrf.mxu0  ;;  %v23536_v26 = vld [vmem:[#allocation157_spill] sm:$0xff] }
 0x8fe   : > { %23525 = vst [vmem:[#allocation26_spill] sm:$0xff] %v20730_v16  ;;  %v9680_v21 = vadd.f32 %v9679_v3, %v20478_v41 }
 0x8ff   : > { %v20737_v47 = vpop.f32.mrf.mxu1  ;;  %v20739_v57 = vpop.f32.mrf.mxu0  ;;  %10116 = vmatpush1.bf16.xpose.msra.mxu1 %v10061_v45 }
 0x900   : > { %10185 = vmatpush1.bf16.msra.mxu0 %v23527_v30  ;;  %v10009_v23 = vmax.f32 %v9680_v21, 0.0  ;;  %10117 = vmatprep.subr.bf16.mxu1 %v10058_v52 }
 0x901   : > { %10186 = vmatprep.subr.bf16.mxu0 %v23528_v32  ;;  %v20743_v36 = vpop.f32.mrf.mxu1  ;;  %v20745_v60 = vpop.f32.mrf.mxu0 }
 0x902   : > { %v20747_v25 = vpack.c.bf16 %v10009_v23, %v10005_v11 }
 0x903   : > { %v20749_v0 = vpop.f32.mrf.mxu1  ;;  %v20751_v20 = vpop.f32.mrf.mxu0 }
 0x904   : > { %23529 = vst [vmem:[#allocation93_spill] sm:$0xff] %v20747_v25  ;;  %10187 = vmatpush1.bf16.msra.mxu0 %v23530_v27 }
 0x905   : > { %v20754_v61 = vpop.f32.mrf.mxu1  ;;  %v20756_v29 = vpop.f32.mrf.mxu0 }
 0x907   : > { %v20758_v8 = vpop.f32.mrf.mxu1  ;;  %v9884_v38 = vpop.f32.mrf.mxu0  ;;  %10118 = vmatpush1.bf16.xpose.msra.mxu1 %v23531_v58 }
 0x908   : > { %10119 = vmatprep.subr.bf16.mxu1 %v23532_v39  ;;  %v20775_v30 = vadd.f32 %v9884_v38, %v20489_v59 }
 0x909   : > { %v20762_v46 = vpop.f32.mrf.mxu1  ;;  %v20764_v42 = vpop.f32.mrf.mxu0 }
 0x90b   : > { %v20766_v1 = vpop.f32.mrf.mxu1  ;;  %v9890_v55 = vpop.f32.mrf.mxu0 }
 0x90c   : > { %v20778_v11 = vadd.f32 %v9890_v55, %v20489_v59 }
 0x90d   : > { %v20768_v9 = vpop.f32.mrf.mxu1  ;;  %v9892_v24 = vpop.f32.mrf.mxu0 }
 0x90e   : > { %v9893_v25 = vadd.f32 %v9892_v24, %v20482_v40  ;;  %v9889_v24 = vadd.f32 %v20764_v42, %v20482_v40  ;;  %v9875_v42 = vadd.f32 %v20739_v57, %v20489_v59 }
 0x90f   : > { %v9701_v54 = vpop.f32.mrf.mxu1  ;;  %v9894_v63 = vpop.f32.mrf.mxu0  ;;  %10120 = vmatpush1.bf16.xpose.msra.mxu1 %v23533_v44 }
 0x910   : > { %10121 = vmatprep.subr.bf16.mxu1 %v23534_v12  ;;  %v9895_v38 = vadd.f32 %v9894_v63, %v20489_v59 }
 0x911   : > { %v9705_v48 = vpop.f32.mrf.mxu1  ;;  %v9898_v34 = vpop.f32.mrf.mxu0 }
 0x913   : > { %v9707_v33 = vpop.f32.mrf.mxu1  ;;  %v9900_v51 = vpop.f32.mrf.mxu0 }
 0x915   : > { %v9709_v7 = vpop.f32.mrf.mxu1  ;;  %v9902_v53 = vpop.f32.mrf.mxu0 }
 0x917   : > { %v9711_v13 = vpop.f32.mrf.mxu1  ;;  %v9904_v14 = vpop.f32.mrf.mxu0  ;;  %10122 = vmatpush1.bf16.xpose.msra.mxu1 %v23535_v15 }
 0x918   : > { %10123 = vmatprep.subr.bf16.mxu1 %v23536_v26  ;;  %v9712_v23 = vadd.f32 %v9711_v13, %v20485_v50  ;;  %v9905_v32 = vadd.f32 %v9904_v14, %v20489_v59  ;;  %v9708_v26 = vadd.f32 %v9707_v33, %v20485_v50 }
 0x919   : > { %v9715_v45 = vpop.f32.mrf.mxu1  ;;  %v9908_v3 = vpop.f32.mrf.mxu0 }
 0x91a   : > { %v9716_v55 = vadd.f32 %v9715_v45, %v20478_v41  ;;  %v9909_v13 = vadd.f32 %v9908_v3, %v20482_v40  ;;  %v10034_v62 = vmax.f32 %v9712_v23, 0.0  ;;  %v10036_v63 = vmax.f32 %v9905_v32, 0.0 }
 0x91b   : > { %v9717_v52 = vpop.f32.mrf.mxu1  ;;  %v9910_v21 = vpop.f32.mrf.mxu0  ;;  %v10030_v17 = vmax.f32 %v9708_v26, 0.0 }
 0x91c   : > { %v9718_v39 = vadd.f32 %v9717_v52, %v20485_v50  ;;  %v9911_v44 = vadd.f32 %v9910_v21, %v20489_v59  ;;  %v9901_v52 = vadd.f32 %v9900_v51, %v20489_v59  ;;  %v9903_v21 = vadd.f32 %v9902_v53, %v20482_v40 }
 0x91d   : > { %v9719_v27 = vpop.f32.mrf.mxu1  ;;  %v9912_v58 = vpop.f32.mrf.mxu0  ;;  %v10037_v35 = vmax.f32 %v9716_v55, 0.0  ;;  %v10039_v51 = vmax.f32 %v9909_v13, 0.0  ;;  %v9700_v13 = vadd.f32 %v20768_v9, %v20478_v41  ;;  %v9861_v9 = vadd.f32 %v20693_v31, %v20489_v59 }
 0x91e   : > { %v9720_v12 = vadd.f32 %v9719_v27, %v20478_v41  ;;  %v9913_v15 = vadd.f32 %v9912_v58, %v20482_v40  ;;  %v10038_v6 = vmax.f32 %v9718_v39, 0.0  ;;  %v10040_v45 = vmax.f32 %v9911_v44, 0.0 }
 0x91f   : > { %v9721_v10 = vpop.f32.mrf.mxu1  ;;  %v9914_v14 = vpop.f32.mrf.mxu0  ;;  %10124 = vmatpush1.bf16.xpose.msra.mxu1 %v23537_v22  ;;  %v9899_v22 = vadd.f32 %v9898_v34, %v20482_v40  ;;  %v10032_v53 = vmax.f32 %v9901_v52, 0.0  ;;  %v10035_v23 = vmax.f32 %v9903_v21, 0.0  ;;  %v9702_v39 = vadd.f32 %v9701_v54, %v20485_v50 }
 0x920   : > { %v9722_v27 = vadd.f32 %v9721_v10, %v20485_v50  ;;  %v9915_v58 = vadd.f32 %v9914_v14, %v20489_v59  ;;  %v10041_v28 = vmax.f32 %v9720_v12, 0.0  ;;  %v10043_v33 = vmax.f32 %v9913_v15, 0.0 }
 0x921   : > { %v9710_v14 = vadd.f32 %v9709_v7, %v20478_v41  ;;  %v10028_v44 = vmax.f32 %v9895_v38, 0.0  ;;  %v10102_v15 = vpack.c.bf16 %v10034_v62, %v10030_v17  ;;  %v9706_v34 = vadd.f32 %v9705_v48, %v20478_v41 }
 0x922   : > { %v10042_v16 = vmax.f32 %v9722_v27, 0.0  ;;  %v10044_v3 = vmax.f32 %v9915_v58, 0.0  ;;  %v10105_v32 = vpack.c.bf16 %v10041_v28, %v10037_v35  ;;  %v10107_v12 = vpack.c.bf16 %v10043_v33, %v10039_v51 }
 0x923   : > { %v10104_v27 = vpack.c.bf16 %v10036_v63, %v10032_v53  ;;  %v10031_v26 = vmax.f32 %v9899_v22, 0.0  ;;  %v9698_v35 = vadd.f32 %v20766_v1, %v20485_v50  ;;  %v10024_v28 = vmax.f32 %v20778_v11, 0.0 }
 0x924   : > { %v10106_v19 = vpack.c.bf16 %v10042_v16, %v10038_v6  ;;  %v10108_v10 = vpack.c.bf16 %v10044_v3, %v10040_v45  ;;  %v9881_v6 = vadd.f32 %v20751_v20, %v20489_v59  ;;  %v9883_v17 = vadd.f32 %v20756_v29, %v20482_v40 }
 0x925   : > { %v10027_v62 = vmax.f32 %v9893_v25, 0.0  ;;  %v10103_v16 = vpack.c.bf16 %v10035_v23, %v10031_v26  ;;  %v10020_v54 = vmax.f32 %v20775_v30, 0.0  ;;  %v10026_v48 = vmax.f32 %v9702_v39, 0.0 }
 0x926   : > { %10125 = vmatprep.subr.bf16.mxu1 %v10106_v19  ;;  %10188 = vmatprep.subr.bf16.mxu0 %v10108_v10  ;;  %v10033_v19 = vmax.f32 %v9710_v14, 0.0  ;;  %v10100_v20 = vpack.c.bf16 %v10028_v44, %v10024_v28  ;;  %v9865_v1 = vadd.f32 %v20717_v2, %v20489_v59  ;;  %v9879_v7 = vadd.f32 %v20745_v60, %v20482_v40 }
 0x927   : > { %10126 = vmatpush2.bf16.xpose.msra.mxu1 %v10105_v32  ;;  %10189 = vmatpush2.bf16.msra.mxu0 %v10107_v12  ;;  %v10023_v11 = vmax.f32 %v9889_v24, 0.0  ;;  %v10029_v38 = vmax.f32 %v9706_v34, 0.0  ;;  %v9871_v25 = vadd.f32 %v20728_v4, %v20489_v59  ;;  %v9873_v29 = vadd.f32 %v20734_v5, %v20482_v40 }
 0x928   : > { %10127 = vmatprep.subr.bf16.mxu1 %v10102_v15  ;;  %10190 = vmatprep.subr.bf16.mxu0 %v10104_v27  ;;  %v10016_v57 = vmax.f32 %v9881_v6, 0.0  ;;  %v10022_v55 = vmax.f32 %v9698_v35, 0.0  ;;  %v10019_v30 = vmax.f32 %v9883_v17, 0.0  ;;  %v10012_v21 = vmax.f32 %v9875_v42, 0.0  ;;  %v23538_v17 = vld [vmem:[#allocation84_spill] sm:$0xff] }
 0x929   : > { %v10099_v2 = vpack.c.bf16 %v10027_v62, %v10023_v11  ;;  %v10101_v52 = vpack.c.bf16 %v10033_v19, %v10029_v38  ;;  %v9692_v60 = vadd.f32 %v20758_v8, %v20485_v50  ;;  %v9869_v4 = vadd.f32 %v20722_v56, %v20482_v40  ;;  %v23543_v62 = vld [vmem:[#allocation169_spill] sm:$0xff]  ;;  %v23544_v19 = vld [vmem:[#allocation19_spill] sm:$0xff]  ;;  %v23546_v42 = vld [vmem:[#allocation8_spill] sm:$0xff] }
 0x92a   : > { %v10096_v58 = vpack.c.bf16 %v10020_v54, %v10016_v57  ;;  %v10098_v63 = vpack.c.bf16 %v10026_v48, %v10022_v55  ;;  %v10015_v33 = vmax.f32 %v9879_v7, 0.0  ;;  %v9696_v5 = vadd.f32 %v20762_v46, %v20478_v41  ;;  %v23547_v48 = vld [vmem:[#allocation100_spill] sm:$0xff]  ;;  %v23549_v7 = vld [vmem:[#allocation211_spill] sm:$0xff] }
 0x92b   : > { %10191 = vmatpush2.bf16.msra.mxu0 %v10103_v16  ;;  %v10008_v45 = vmax.f32 %v9871_v25, 0.0  ;;  %v9688_v3 = vadd.f32 %v20749_v0, %v20485_v50  ;;  %v9863_v8 = vadd.f32 %v20708_v43, %v20482_v40  ;;  %v10011_v22 = vmax.f32 %v9873_v29, 0.0  ;;  %v23545_v16 = vld [vmem:[#allocation168_spill] sm:$0xff] }
 0x92c   : > { %10192 = vmatprep.subr.bf16.mxu0 %v10100_v20  ;;  %v10095_v56 = vpack.c.bf16 %v10019_v30, %v10015_v33  ;;  %v10025_v51 = vmax.f32 %v9700_v13, 0.0  ;;  %v10004_v53 = vmax.f32 %v9865_v1, 0.0  ;;  %v10018_v46 = vmax.f32 %v9692_v60, 0.0  ;;  %v23548_v20 = vld [vmem:[#allocation12_spill] sm:$0xff] }
 0x92d   : > { %v10092_v10 = vpack.c.bf16 %v10012_v21, %v10008_v45  ;;  %v9859_v14 = vadd.f32 %v20684_v37, %v20482_v40  ;;  %v10007_v23 = vmax.f32 %v9869_v4, 0.0  ;;  %v10021_v59 = vmax.f32 %v9696_v5, 0.0 }
 0x92e   : > { %v10000_v31 = vmax.f32 %v9861_v9, 0.0  ;;  %v10014_v32 = vmax.f32 %v9688_v3, 0.0  ;;  %v10003_v0 = vmax.f32 %v9863_v8, 0.0  ;;  %v9690_v43 = vadd.f32 %v20754_v61, %v20478_v41  ;;  %v13535_v3 = vld [vmem:[%s21052_s20 + $0x74] ss:$8 sps:$4 sm:$0xff]  }
 0x92f   : > { %10128 = vmatpush2.bf16.xpose.msra.mxu1 %v10101_v52  ;;  %10193 = vmatpush2.bf16.msra.mxu0 %v10099_v2  ;;  %v10091_v12 = vpack.c.bf16 %v10011_v22, %v10007_v23  ;;  %v10097_v39 = vpack.c.bf16 %v10025_v51, %v10021_v59  ;;  %v9682_v15 = vadd.f32 %v20737_v47, %v20485_v50  ;;  %v9999_v24 = vmax.f32 %v9859_v14, 0.0  ;;  %v13557_v8 = vld [vmem:[%s21051_s19 + $0x70] ss:$8 sps:$4 sm:$0xff]   ;;  %v13559_v22 = vld [vmem:[%s21051_s19 + $0x74] ss:$8 sps:$4 sm:$0xff]  }
 0x930   : > { %10129 = vmatprep.subr.bf16.mxu1 %v10098_v63  ;;  %10194 = vmatprep.subr.bf16.mxu0 %v10096_v58  ;;  %v10088_v44 = vpack.c.bf16 %v10004_v53, %v10000_v31  ;;  %v10094_v27 = vpack.c.bf16 %v10018_v46, %v10014_v32  ;;  %v9686_v40 = vadd.f32 %v20743_v36, %v20478_v41  ;;  %v10017_v26 = vmax.f32 %v9690_v43, 0.0  ;;  %v23539_v41 = vld [vmem:[#allocation216_spill] sm:$0xff]  ;;  %v23540_v36 = vld [vmem:[#allocation214_spill] sm:$0xff] }
 0x931   : > { %v9678_v37 = vadd.f32 %v20726_v18, %v20485_v50  ;;  %v10087_v34 = vpack.c.bf16 %v10003_v0, %v9999_v24  ;;  %v10010_v61 = vmax.f32 %v9682_v15, 0.0  ;;  %v23541_v50 = vld [vmem:[#allocation93_spill] sm:$0xff]  ;;  %v23542_v18 = vld [vmem:[#allocation26_spill] sm:$0xff] }
 0x932   : > { %v10013_v6 = vmax.f32 %v9686_v40, 0.0  ;;  %v13560_v51 = vld [vmem:[%s21051_s19 + $0x60] ss:$8 sps:$4 sm:$0xff]   ;;  %v13565_v53 = vld [vmem:[%s21051_s19 + $0x54] ss:$8 sps:$4 sm:$0xff]  }
 0x933   : > { %10195 = vmatpush2.bf16.msra.mxu0 %v10095_v56  ;;  %v10006_v35 = vmax.f32 %v9678_v37, 0.0  ;;  %v13562_v56 = vld [vmem:[%s21051_s19 + $0x64] ss:$8 sps:$4 sm:$0xff]   ;;  %v13566_v14 = vld [vmem:[%s21051_s19 + $0x40] ss:$8 sps:$4 sm:$0xff]  }
 0x934   : > { %10196 = vmatprep.subr.bf16.mxu0 %v10092_v10  ;;  %v10093_v47 = vpack.c.bf16 %v10017_v26, %v10013_v6  ;;  %v13563_v10 = vld [vmem:[%s21051_s19 + $0x50] ss:$8 sps:$4 sm:$0xff]   ;;  %v13568_v46 = vld [vmem:[%s21051_s19 + $0x44] ss:$8 sps:$4 sm:$0xff]   ;;  %v13571_v23 = vld [vmem:[%s21051_s19 + $0x34] ss:$8 sps:$4 sm:$0xff]  }
 0x935   : > { %v10090_v28 = vpack.c.bf16 %v10010_v61, %v10006_v35  ;;  %v13569_v59 = vld [vmem:[%s21051_s19 + $0x30] ss:$8 sps:$4 sm:$0xff]   ;;  %v13574_v31 = vld [vmem:[%s21051_s19 + $0x24] ss:$8 sps:$4 sm:$0xff]   ;;  %v13572_v32 = vld [vmem:[%s21051_s19 + $0x20] ss:$8 sps:$4 sm:$0xff]  }
 0x936   : > { %v13577_v0 = vld [vmem:[%s21051_s19 + $0x14] ss:$8 sps:$4 sm:$0xff]   ;;  %v13580_v43 = vld [vmem:[%s21051_s19 + $0x4] ss:$8 sps:$4 sm:$0xff]   ;;  %v13581_v15 = vld [vmem:[%s21051_s19 + $0xf0] ss:$8 sps:$4 sm:$0xff]  }
 0x937   : > { %10130 = vmatpush2.bf16.xpose.msra.mxu1 %v10097_v39  ;;  %10197 = vmatpush2.bf16.msra.mxu0 %v10091_v12  ;;  %v13575_v12 = vld [vmem:[%s21051_s19 + $0x10] ss:$8 sps:$4 sm:$0xff]   ;;  %v13578_v39 = vld [vmem:[%s21051_s19] ss:$8 sps:$4 sm:$0xff]   ;;  %v13589_v40 = vld [vmem:[%s21051_s19 + $0xd4] ss:$8 sps:$4 sm:$0xff]  }
 0x938   : > { %10131 = vmatprep.subr.bf16.mxu1 %v10094_v27  ;;  %10198 = vmatprep.subr.bf16.mxu0 %v10088_v44  ;;  %v13583_v44 = vld [vmem:[%s21051_s19 + $0xf4] ss:$8 sps:$4 sm:$0xff]   ;;  %v13586_v27 = vld [vmem:[%s21051_s19 + $0xe4] ss:$8 sps:$4 sm:$0xff]   ;;  %v13584_v24 = vld [vmem:[%s21051_s19 + $0xe0] ss:$8 sps:$4 sm:$0xff]  }
 0x939   : > { %v13587_v37 = vld [vmem:[%s21051_s19 + $0xd0] ss:$8 sps:$4 sm:$0xff]   ;;  %v13590_v26 = vld [vmem:[%s21051_s19 + $0xc0] ss:$8 sps:$4 sm:$0xff]   ;;  %v13595_v61 = vld [vmem:[%s21051_s19 + $0xb4] ss:$8 sps:$4 sm:$0xff]  }
 0x93a   : > { %v13593_v6 = vld [vmem:[%s21051_s19 + $0xb0] ss:$8 sps:$4 sm:$0xff]   ;;  %v13598_v35 = vld [vmem:[%s21051_s19 + $0xa4] ss:$8 sps:$4 sm:$0xff]  }
 0x93b   : > { %10199 = vmatpush2.bf16.msra.mxu0 %v10087_v34  ;;  %v13592_v34 = vld [vmem:[%s21051_s19 + $0xc4] ss:$8 sps:$4 sm:$0xff]  }
 0x93c   : > { %10200 = vmatprep.subr.bf16.mxu0 %v20698_v49  ;;  %v13612_v49 = vld [vmem:[%s21043_s11] sm:$0xf] }
 0x93d   : > { %v2003_v54 = vrot.slane %v13612_v49, %v23546_v42  ;;  %v13538_v49 = vld [vmem:[%s21052_s20 + $0x64] ss:$8 sps:$4 sm:$0xff]   ;;  %v13536_v42 = vld [vmem:[%s21052_s20 + $0x60] ss:$8 sps:$4 sm:$0xff]  }
 0x93f   : > { %10132 = vmatpush2.bf16.xpose.msra.mxu1 %v10093_v47  ;;  %10201 = vmatpush2.bf16.msra.mxu0 %v23538_v17  ;;  %v2055_v1 = vadd.f32 %v23548_v20, %v2003_v54  ;;  %v13596_v47 = vld [vmem:[%s21051_s19 + $0xa0] ss:$8 sps:$4 sm:$0xff]   ;;  %v13599_v17 = vld [vmem:[%s21051_s19 + $0x90] ss:$8 sps:$4 sm:$0xff]   ;;  %v23550_v54 = vmov 0  }
 0x940   : > { %10133 = vmatprep.subr.bf16.mxu1 %v10090_v28  ;;  %10202 = vmatprep.subr.bf16.mxu0 %v23539_v41  ;;  %v13601_v28 = vld [vmem:[%s21051_s19 + $0x94] ss:$8 sps:$4 sm:$0xff]  }
 0x941   : > { %v2102_v11 = vmax.f32 %v2055_v1, 0.0  ;;  %v13541_v1 = vld [vmem:[%s21052_s20 + $0x54] ss:$8 sps:$4 sm:$0xff]  }
 0x943   : > { %10203 = vmatpush2.bf16.msra.mxu0 %v23540_v36  ;;  %v2104_v38 = vpack.c.bf16 %v2102_v11, %v2102_v11 }
 0x944   : > { %10585 = vmatprep.subr.bf16.mxu0 %v13535_v3 }
 0x947   : > { %10134 = vmatpush2.bf16.xpose.msra.mxu1 %v23541_v50 }
 0x948   : > { %10135 = vmatprep.subr.bf16.mxu1 %v23542_v18 }
 0x94f   : > { %10136 = vmatpush2.bf16.xpose.msra.mxu1 %v23543_v62 }
 0x950   : > { %10137 = vmatprep.subr.bf16.mxu1 %v23544_v19 }
 0x957   : > { %10138 = vmatpush2.bf16.xpose.msra.mxu1 %v23545_v16  ;;  %v13533_v16 = vld [vmem:[%s21052_s20 + $0x70] ss:$8 sps:$4 sm:$0xff]  }
 0x958   : > { %10139 = vmatprep.subr.bf16.mxu1 %v23547_v48  ;;  %v23551_v48 = vld [vmem:[#allocation54_spill] sm:$0xff] }
 0x959   : > { %v10244_v20 = vrot.slane %v23551_v48, 4 }
 0x95b   : > { %v10245_v11 = vadd.f32 %v10244_v20, %v23551_v48 }
 0x95f   : > { %10140 = vmatpush2.bf16.xpose.msra.mxu1 %v23549_v7  ;;  %v13539_v7 = vld [vmem:[%s21052_s20 + $0x50] ss:$8 sps:$4 sm:$0xff]  }
 0x960   : > { %10445 = vmatprep.subr.bf16.mxu1 %v13559_v22 }
 0x966   : > { %10142 = vmatmul.mubr.bf16.vlgmr.msra.gmra.mxu1 %v2104_v38  ;;  %v13544_v38 = vld [vmem:[%s21052_s20 + $0x44] ss:$8 sps:$4 sm:$0xff]  }
 0x967   : > { %10446 = vmatpush1.bf16.msra.mxu1 %v13557_v8 }
 0x968   : > { %10447 = vmatprep.subr.bf16.mxu1 %v13562_v56 }
 0x96b   : > { %10448 = vmatpush1.bf16.msra.mxu1 %v13560_v51 }
 0x96c   : > { %10449 = vmatprep.subr.bf16.mxu1 %v13565_v53 }
 0x96f   : > { %10450 = vmatpush1.bf16.msra.mxu1 %v13563_v10 }
 0x970   : > { %10451 = vmatprep.subr.bf16.mxu1 %v13568_v46 }
 0x973   : > { %10452 = vmatpush1.bf16.msra.mxu1 %v13566_v14 }
 0x974   : > { %10453 = vmatprep.subr.bf16.mxu1 %v13571_v23 }
 0x977   : > { %10454 = vmatpush1.bf16.msra.mxu1 %v13569_v59 }
 0x978   : > { %10455 = vmatprep.subr.bf16.mxu1 %v13574_v31  ;;  %v23552_v31 = vld [vmem:[#allocation13_spill] sm:$0xff] }
 0x97b   : > { %10456 = vmatpush1.bf16.msra.mxu1 %v13572_v32 }
 0x97c   : > { %10457 = vmatprep.subr.bf16.mxu1 %v13577_v0 }
 0x97f   : > { %10458 = vmatpush1.bf16.msra.mxu1 %v13575_v12 }
 0x980   : > { %10459 = vmatprep.subr.bf16.mxu1 %v13580_v43  ;;  %v23553_v43 = vld [vmem:[#allocation15_spill] sm:$0xff] }
 0x983   : > { %10460 = vmatpush1.bf16.msra.mxu1 %v13578_v39 }
 0x984   : > { %10461 = vmatprep.subr.bf16.mxu1 %v13583_v44 }
 0x987   : > { %10462 = vmatpush2.bf16.msra.mxu1 %v13581_v15 }
 0x988   : > { %10463 = vmatprep.subr.bf16.mxu1 %v13586_v27 }
 0x98b   : > { %10464 = vmatpush2.bf16.msra.mxu1 %v13584_v24 }
 0x98c   : > { %10465 = vmatprep.subr.bf16.mxu1 %v13589_v40 }
 0x98f   : > { %10466 = vmatpush2.bf16.msra.mxu1 %v13587_v37 }
 0x990   : > { %10467 = vmatprep.subr.bf16.mxu1 %v13592_v34  ;;  %v23554_v34 = vld [vmem:[#allocation7_spill] sm:$0xff] }
 0x993   : > { %10468 = vmatpush2.bf16.msra.mxu1 %v13590_v26 }
 0x994   : > { %10469 = vmatprep.subr.bf16.mxu1 %v13595_v61  ;;  %v23556_v61 = vlaneseq }
 0x996   : > { %vm10650_vm11 = vcmp.lt.s32.totalorder %v23556_v61, 256 }
 0x997   : > { %10470 = vmatpush2.bf16.msra.mxu1 %v13593_v6 }
 0x998   : > { %10471 = vmatprep.subr.bf16.mxu1 %v13598_v35 }
 0x99b   : > { %10472 = vmatpush2.bf16.msra.mxu1 %v13596_v47 }
 0x99c   : > { %10473 = vmatprep.subr.bf16.mxu1 %v13601_v28 }
 0x99f   : > { %10474 = vmatpush2.bf16.msra.mxu1 %v13599_v17 }
 0xa26   : > { %v10143_v25 = vpop.f32.mrf.mxu1 }
 0xa27   : > { %v10151_v57 = vsel %vm10150_vm4, %v10143_v25, -inf }
 0xa28   : > { %v10145_v29 = vpop.f32.mrf.mxu1 }
 0xa29   : > { %v10152_v55 = vsel %vm10150_vm4, %v10145_v29, -inf }
 0xa2a   : > { %v10147_v30 = vpop.f32.mrf.mxu1  ;;  %v10153_v13 = vmax.f32 %v10151_v57, %v10152_v55  ;;  %v13547_v57 = vld [vmem:[%s21052_s20 + $0x34] ss:$8 sps:$4 sm:$0xff]   ;;  %v13545_v55 = vld [vmem:[%s21052_s20 + $0x30] ss:$8 sps:$4 sm:$0xff]  }
 0xa2b   : > { %v13550_v30 = vld [vmem:[%s21052_s20 + $0x24] ss:$8 sps:$4 sm:$0xff]  }
 0xa2c   : > { %10154 = vmax.xlane.f32.xlu0 %v10153_v13  ;;  %v10148_v2 = vpop.f32.mrf.mxu1 }
 0xa2d   : > { %v13548_v2 = vld [vmem:[%s21052_s20 + $0x20] ss:$8 sps:$4 sm:$0xff]  }
 0xab5   : > { %v10155_v52 = vpop.xlane.xlu0 %10154 }
 0xab6   : > { %v10156_v21 = vsub.f32 %v10143_v25, %v10155_v52  ;;  %v10157_v60 = vsub.f32 %v10145_v29, %v10155_v52  ;;  %v13542_v25 = vld [vmem:[%s21052_s20 + $0x40] ss:$8 sps:$4 sm:$0xff]   ;;  %v10246_v29 = vrot.slane %v10245_v11, 2  ;;  %v13553_v52 = vld [vmem:[%s21052_s20 + $0x14] ss:$8 sps:$4 sm:$0xff]  }
 0xab8   : > { %v10158_v58 = vmul.f32 1.442695, %v10156_v21  ;;  %v10160_v63 = vmul.f32 1.442695, %v10157_v60  ;;  %v10247_v13 = vadd.f32 %v10246_v29, %v10245_v11  ;;  %v13551_v60 = vld [vmem:[%s21052_s20 + $0x10] ss:$8 sps:$4 sm:$0xff]  }
 0xaba   : > { %13605 = vpow2.f32 %v10158_v58  ;;  %v10248_v21 = vrot.slane %v10247_v13, 1  ;;  %v13556_v58 = vld [vmem:[%s21052_s20 + $0x4] ss:$8 sps:$4 sm:$0xff]  }
 0xabb   : > { %13607 = vpow2.f32 %v10160_v63 }
 0xabc   : > { %v10249_v63 = vadd.f32 %v10248_v21, %v10247_v13 }
 0xac7   : > { %v20862_v4 = vpop.eup %13605 }
 0xac8   : > { %v20864_v33 = vpop.eup %13607  ;;  %v10162_v5 = vsel %vm10150_vm4, %v20862_v4, 0.0 }
 0xac9   : > { %v10163_v9 = vsel %vm10150_vm4, %v20864_v33, 0.0 }
 0xaca   : > { %v10164_v45 = vadd.f32 %v10163_v9, %v10162_v5  ;;  %v13602_v9 = vld [vmem:[%s21051_s19 + $0x80] ss:$8 sps:$4 sm:$0xff]  }
 0xacc   : > { %10165 = vadd.xlane.f32.xlu0 %v10164_v45  ;;  %v13604_v45 = vld [vmem:[%s21051_s19 + $0x84] ss:$8 sps:$4 sm:$0xff]  }
 0xacd   : > { %10475 = vmatprep.subr.bf16.mxu1 %v13604_v45 }
 0xace   : > { %10476 = vmatpush2.bf16.msra.mxu1 %v13602_v9 }
 0xb55   : > { %v10166_v41 = vpop.xlane.xlu0 %10165 }
 0xb56   : > { %13609 = vrcp.f32 %v10166_v41 }
 0xb63   : > { %v13610_v36 = vpop.eup %13609 }
 0xb64   : > { %v10168_v50 = vmul.f32 %v13610_v36, %v20862_v4  ;;  %v10169_v18 = vmul.f32 %v13610_v36, %v20864_v33  ;;  %v13554_v4 = vld [vmem:[%s21052_s20] ss:$8 sps:$4 sm:$0xff]   ;;  %v10250_v33 = vmul.f32 0.00390625, %v10249_v63 }
 0xb66   : > { %v10170_v62 = vpack.c.bf16 %v10168_v50, %v10168_v50  ;;  %v10171_v19 = vpack.c.bf16 %v10169_v18, %v10169_v18  ;;  %v10488_v5 = vpack.c.bf16 %v10250_v33, %v10250_v33 }
 0xb68   : > { %10204 = vmatprep.mubr.bf16.mxu0 %v10171_v19 }
 0xb69   : > { %10205 = vmatmul.mubr.bf16.vlgmr.msra.gmra.mxu0 %v10170_v62 }
 0xb6a   : > { %10586 = vmatpush1.bf16.msra.mxu0 %v13533_v16  ;;  %10617 = vmatprep.mubr.bf16.mxu0 %v23550_v54 }
 0xb6b   : > { %10587 = vmatprep.subr.bf16.mxu0 %v13538_v49 }
 0xb6e   : > { %10588 = vmatpush1.bf16.msra.mxu0 %v13536_v42 }
 0xb6f   : > { %10589 = vmatprep.subr.bf16.mxu0 %v13541_v1 }
 0xb72   : > { %10590 = vmatpush1.bf16.msra.mxu0 %v13539_v7 }
 0xb73   : > { %10591 = vmatprep.subr.bf16.mxu0 %v13544_v38 }
 0xb76   : > { %10592 = vmatpush1.bf16.msra.mxu0 %v13542_v25 }
 0xb77   : > { %10593 = vmatprep.subr.bf16.mxu0 %v13547_v57 }
 0xb7a   : > { %10594 = vmatpush1.bf16.msra.mxu0 %v13545_v55 }
 0xb7b   : > { %10595 = vmatprep.subr.bf16.mxu0 %v13550_v30 }
 0xb7e   : > { %10596 = vmatpush1.bf16.msra.mxu0 %v13548_v2 }
 0xb7f   : > { %10597 = vmatprep.subr.bf16.mxu0 %v13553_v52 }
 0xb82   : > { %10598 = vmatpush1.bf16.msra.mxu0 %v13551_v60 }
 0xb83   : > { %10599 = vmatprep.subr.bf16.mxu0 %v13556_v58 }
 0xb86   : > { %10600 = vmatpush1.bf16.msra.mxu0 %v13554_v4 }
 0xb89   : > { %10618 = vmatmul.mubr.bf16.vlgmr.msra.gmra.mxu0 %v10488_v5 }
 0xc29   : > { %v10206_v3 = vpop.f32.mrf.mxu0 }
 0xc2a   : > { %v10251_v56 = vpack.c.bf16 %v10206_v3, %v10206_v3 }
 0xc2b   : > { %v10208_v8 = vpop.f32.mrf.mxu0 }
 0xc2c   : > { %v10252_v22 = vpack.c.bf16 %v10208_v8, %v10208_v8 }
 0xc2d   : > { %v10210_v51 = vpop.f32.mrf.mxu0 }
 0xc2e   : > { %10477 = vmatprep.mubr.bf16.mxu1 %v10252_v22 }
 0xc2f   : > { %v10211_v53 = vpop.f32.mrf.mxu0  ;;  %10478 = vmatmul.mubr.bf16.vlgmr.msra.gmra.mxu1 %v10251_v56 }
 0xc49   : > { %v10619_v10 = vpop.f32.mrf.mxu0 }
 0xc4b   : > { %v10621_v46 = vpop.f32.mrf.mxu0 }
 0xc4d   : > { %v10623_v14 = vpop.f32.mrf.mxu0 }
 0xc4f   : > { %v10624_v23 = vpop.f32.mrf.mxu0 }
 0xcef   : > { %v10479_v59 = vpop.f32.mrf.mxu1 }
 0xcf0   : > { %v10486_v32 = vadd.f32 %v10479_v59, %v23552_v31 }
 0xcf1   : > { %v10481_v0 = vpop.f32.mrf.mxu1 }
 0xcf2   : > { %v10626_v12 = vadd.f32 %v10619_v10, %v10486_v32  ;;  %v10487_v39 = vadd.f32 %v10481_v0, %v23553_v43 }
 0xcf3   : > { %v10483_v44 = vpop.f32.mrf.mxu1 }
 0xcf4   : > { %v10627_v15 = vadd.f32 %v10621_v46, %v10487_v39  ;;  %v10628_v24 = vmax.f32 %v10626_v12, 0.0 }
 0xcf5   : > { %v10484_v27 = vpop.f32.mrf.mxu1 }
 0xcf6   : > { %v10629_v40 = vmax.f32 %v10627_v15, 0.0 }
 0xcf8   : > { %v10632_v37 = vcombine.low %v10628_v24, %v10629_v40 }
 0xcfa   : > { %v10639_v26 = vrot.slane %v10632_v37, %v23554_v34 }
 0xcfc   : > { %v10646_v6 = vrot.slane %v10639_v26, %v23554_v34 }
 0xcfe   : > { %10652 = vst.msk [vmem:[%s699_s22] sm:$0x3] %vm10650_vm11, %v10646_v6 }
 0xcff PF: > { %s23557_s28 = sld [smem:[#allocation5_spill]] }
 0xd05   : > { %s32_s2 = sadd.s32 1, %s23557_s28  }
 0xd06   : > { %p29_p1 = scmp.ge.s32.totalorder %s32_s2, 4  }
 0xd08   :  { %31 = sbr.rel (!%p29_p1) target bundleno = 9 (0x9), region = 161 }
 0xd0d   :  { %10672 = vsyncpa [#allocation3], 1 }
 0xd0e   :  { %10674 = vsyncpa [#allocation3 + $0x1], 1 }

</bundles_post_ra>
